<compile_context>
chip_gen: v6e
topology: v6e:2x2x1
jax: 0.10.0
libtpu: 0.0.40
codegen_flags: <defaults>
</compile_context>

<pallas_src>
import jax
import jax.numpy as jnp
from jax.experimental import pallas as pl
from jax.experimental.pallas import tpu as pltpu

NUM_POSITIONS = 20
NUM_GEARS = 10
NUM_LAPS = 100
NUM_FEATURES = 1000
FEAT_PADDED = 1024            # 1000 -> 1024: dense vregs / clean MXU K

# Fused head column layout (vreg-aligned: no softmax segment crosses lane 128):
#   vreg0: [ lap 0..99 | position 100..119 | in_race 120 | speed 121 | pad ]
#   vreg1: [ gear 128..137 | pad ]
COL_LAP = 0
COL_POS = COL_LAP + NUM_LAPS                 # 100
COL_IR = COL_POS + NUM_POSITIONS             # 120
COL_SP = COL_IR + 1                          # 121
VREG0_USED = COL_SP + 1                      # 122
COL_GEAR = 128
VREG1_USED = COL_GEAR + NUM_GEARS            # 138
HEADS_PADDED = 256                           # lane-dense output width


def _sigmoid(z):
    return 1.0 / (1.0 + jnp.exp(-z))


def _softmax_rows(z):
    m = jnp.max(z, axis=1, keepdims=True)
    e = jnp.exp(z - m)
    return e / jnp.sum(e, axis=1, keepdims=True)


def racing_kernel(
    x_ref,        # (B, C, H*W) bf16
    wb_ref,       # backbone stand-in weight:        (C, 1024) f32 (cols >=1000 zero)
    bb_ref,       # backbone stand-in bias:          (1, 1024) f32 (cols >=1000 zero)
    wh_ref,       # fused head weight (vreg layout): (1024, 256) bf16 (rows >=1000 zero)
    bh_ref,       # fused head bias:                 (1, 256) f32
    out_ref,      # fused, lane-dense activated output: (B, 256) f32
):
    B = out_ref.shape[0]
    C = wb_ref.shape[0]
    hw = x_ref.shape[2]

    # Global average pool: f32 accumulation of the bf16 input, scalar 1/HW.
    pooled = jnp.sum(x_ref[...].astype(jnp.float32), axis=2) * (1.0 / hw)  # (B, C) f32

    # Backbone stand-in projection on the VPU (C is tiny, K=C would waste the
    # MXU): feats = bb + sum_c pooled[:, c] * wb[c, :], all in f32.
    feats = bb_ref[...]                                                    # (1, 1024)
    for c in range(C):
        feats = feats + pooled[:, c:c + 1] * wb_ref[c:c + 1, :]            # (B, 1024)

    # Single fused head matmul on the MXU: bf16 operands, f32 accumulation.
    z = (
        jnp.dot(feats.astype(jnp.bfloat16), wh_ref[...],
                preferred_element_type=jnp.float32)
        + bh_ref[...]
    )                                                                      # (B, 256)

    # Per-head activations on vreg-aligned column slices; exact divides.
    lap_p = _softmax_rows(z[:, COL_LAP:COL_LAP + NUM_LAPS])                # (B, 100)
    pos_p = _softmax_rows(z[:, COL_POS:COL_POS + NUM_POSITIONS])           # (B, 20)
    irsp_p = _sigmoid(z[:, COL_IR:COL_SP + 1])                             # (B, 2)
    gear_p = _softmax_rows(z[:, COL_GEAR:COL_GEAR + NUM_GEARS])            # (B, 10)

    pad0 = jnp.zeros((B, 128 - VREG0_USED), jnp.float32)                   # lanes 122..127
    pad1 = jnp.zeros((B, HEADS_PADDED - VREG1_USED), jnp.float32)          # lanes 138..255

    # One unmasked lane-dense store of the whole (B, 256) block.
    out_ref[...] = jnp.concatenate(
        [lap_p, pos_p, irsp_p, pad0, gear_p, pad1], axis=1)


def init_params(key, in_channels):
    """Deterministic torch.nn.Linear-style init (uniform +/- 1/sqrt(fan_in))."""
    def dense(k, fan_in, fan_out):
        kw, kb = jax.random.split(k)
        bound = 1.0 / jnp.sqrt(jnp.float32(fan_in))
        w = jax.random.uniform(kw, (fan_in, fan_out), jnp.float32, -bound, bound)
        b = jax.random.uniform(kb, (1, fan_out), jnp.float32, -bound, bound)
        return w, b

    keys = jax.random.split(key, 6)
    wb, bb = dense(keys[0], in_channels, NUM_FEATURES)          # backbone stand-in
    w_ir, b_ir = dense(keys[1], NUM_FEATURES, 1)                # in_race_fc
    w_sp, b_sp = dense(keys[2], NUM_FEATURES, 1)                # speed_fc
    w_pos, b_pos = dense(keys[3], NUM_FEATURES, NUM_POSITIONS)  # position_fc
    w_gear, b_gear = dense(keys[4], NUM_FEATURES, NUM_GEARS)    # gear_fc
    w_lap, b_lap = dense(keys[5], NUM_FEATURES, NUM_LAPS)       # lap_fc
    return (wb, bb, w_ir, b_ir, w_sp, b_sp, w_pos, b_pos,
            w_gear, b_gear, w_lap, b_lap)


def prepare_params(params):
    """One-time weight preprocessing (hoisted out of the per-call forward)."""
    (wb, bb, w_ir, b_ir, w_sp, b_sp, w_pos, b_pos,
     w_gear, b_gear, w_lap, b_lap) = params

    feat_pad = FEAT_PADDED - NUM_FEATURES

    # Backbone stand-in stays f32 (used on the VPU); pad feature dim to 1024.
    wb_p = jnp.pad(wb.astype(jnp.float32), ((0, 0), (0, feat_pad)))          # (C, 1024)
    bb_p = jnp.pad(bb.astype(jnp.float32), ((0, 0), (0, feat_pad)))          # (1, 1024)

    # Fuse heads into the vreg-aligned layout [lap|pos|ir|sp|pad || gear|pad].
    def fuse(parts):
        v0 = jnp.concatenate(parts[:4], axis=1)                              # width 122
        v0 = jnp.pad(v0, ((0, 0), (0, 128 - VREG0_USED)))                    # width 128
        v1 = jnp.pad(parts[4], ((0, 0), (0, 128 - NUM_GEARS)))               # width 128
        return jnp.concatenate([v0, v1], axis=1)                             # width 256

    w_heads = fuse([w_lap, w_pos, w_ir, w_sp, w_gear])                       # (1000, 256)
    b_heads = fuse([b_lap, b_pos, b_ir, b_sp, b_gear])                       # (1, 256)
    w_heads = jnp.pad(w_heads, ((0, feat_pad), (0, 0))).astype(jnp.bfloat16)  # (1024, 256)
    b_heads = b_heads.astype(jnp.float32)                                     # (1, 256)

    return (wb_p, bb_p, w_heads, b_heads)


def racing_net_forward(x_nchw, prepared):
    wb_p, bb_p, w_heads, b_heads = prepared
    B, C, H, W = x_nchw.shape
    HW = H * W
    # bf16 input DMA (halves the largest HBM->VMEM transfer); f32 accumulation
    # happens inside the kernel.
    x_flat = x_nchw.reshape(B, C, HW).astype(jnp.bfloat16)

    vmem_spec = pl.BlockSpec(memory_space=pltpu.MemorySpace.VMEM)

    fused = pl.pallas_call(
        racing_kernel,
        out_shape=jax.ShapeDtypeStruct((B, HEADS_PADDED), jnp.float32),
        in_specs=[vmem_spec] * 5,
        out_specs=vmem_spec,
        compiler_params=pltpu.CompilerParams(
            vmem_limit_bytes=32 * 1024 * 1024,   # explicit; safe on v5e/v6e/v7x
        ),
    )(x_flat, wb_p, bb_p, w_heads, b_heads)

    # Slice the lane-dense fused output back into the five module outputs.
    in_race = fused[:, COL_IR:COL_IR + 1]
    speed = fused[:, COL_SP:COL_SP + 1]
    position = fused[:, COL_POS:COL_POS + NUM_POSITIONS]
    gear = fused[:, COL_GEAR:COL_GEAR + NUM_GEARS]
    lap = fused[:, COL_LAP:COL_LAP + NUM_LAPS]
    return in_race, speed, position, gear, lap


def racing_net_reference(x_nchw, params):
    """Pure-JAX reference mirroring the module forward with the same numerics
    (bf16 input, f32 pool + backbone stand-in, bf16 head matmul, f32 acc)."""
    (wb, bb, w_ir, b_ir, w_sp, b_sp, w_pos, b_pos,
     w_gear, b_gear, w_lap, b_lap) = params
    B, C, H, W = x_nchw.shape
    xb = x_nchw.astype(jnp.bfloat16).astype(jnp.float32).reshape(B, C, H * W)
    pooled = jnp.mean(xb, axis=2)                                            # (B, C) f32
    feats = jnp.dot(pooled, wb) + bb                                         # (B, 1000) f32
    f16 = feats.astype(jnp.bfloat16)

    def head(w, b):
        return jnp.dot(f16, w.astype(jnp.bfloat16),
                       preferred_element_type=jnp.float32) + b

    in_race = jax.nn.sigmoid(head(w_ir, b_ir))
    speed = jax.nn.sigmoid(head(w_sp, b_sp))
    position = jax.nn.softmax(head(w_pos, b_pos), axis=1)
    gear = jax.nn.softmax(head(w_gear, b_gear), axis=1)
    lap = jax.nn.softmax(head(w_lap, b_lap), axis=1)
    return in_race, speed, position, gear, lap


if __name__ == "__main__":
    key = jax.random.PRNGKey(0)
    k_x, k_p = jax.random.split(key)

    # Small NCHW image batch consistent with the module's forward().
    B, C, H, W = 2, 3, 32, 32
    x = jax.random.normal(k_x, (B, C, H, W), jnp.float32)

    params = init_params(k_p, in_channels=C)
    prepared = prepare_params(params)          # one-time weight prep (hoisted)

    fwd = jax.jit(racing_net_forward)
    outs = jax.block_until_ready(fwd(x, prepared))
    in_race, speed, position, gear, lap = outs

    # Shape checks.
    assert in_race.shape == (B, 1) and speed.shape == (B, 1)
    assert position.shape == (B, NUM_POSITIONS)
    assert gear.shape == (B, NUM_GEARS)
    assert lap.shape == (B, NUM_LAPS)

    # Softmax rows sum to 1 (exact divides in the kernel).
    assert jnp.allclose(jnp.sum(position, axis=1), 1.0, atol=1e-4)
    assert jnp.allclose(jnp.sum(gear, axis=1), 1.0, atol=1e-4)
    assert jnp.allclose(jnp.sum(lap, axis=1), 1.0, atol=1e-4)

    # Compare against a pure-JAX reference with the same numeric recipe
    # (validates head fusion, vreg-aligned layout, and feature-dim padding).
    refs = racing_net_reference(x, params)
    for got, want in zip(outs, refs):
        assert jnp.allclose(got, want, atol=1e-2), (
            float(jnp.max(jnp.abs(got - want))))

    print("KERNEL_OK")
</pallas_src>

<mosaic_0001>
module attributes {stable_mosaic.version = 11 : i64} {
  func.func @racing_kernel(%arg0: memref<2x3x1024xbf16, #tpu.memory_space<vmem>>, %arg1: memref<3x1024xf32, #tpu.memory_space<vmem>>, %arg2: memref<1x1024xf32, #tpu.memory_space<vmem>>, %arg3: memref<1024x256xbf16, #tpu.memory_space<vmem>>, %arg4: memref<1x256xf32, #tpu.memory_space<vmem>>, %arg5: memref<2x256xf32, #tpu.memory_space<vmem>>) attributes {dimension_semantics = [], scalar_prefetch = 0 : i64, scratch_operands = 0 : i64, tpu.core_type = #tpu.core_type<tc>} {
    %c0 = arith.constant 0 : index
    %c0_0 = arith.constant 0 : index
    %c0_1 = arith.constant 0 : index
    %0 = vector.load %arg0[%c0, %c0_0, %c0_1] : memref<2x3x1024xbf16, #tpu.memory_space<vmem>>, vector<2x3x1024xbf16>
    %1 = arith.extf %0 : vector<2x3x1024xbf16> to vector<2x3x1024xf32>
    %cst = arith.constant dense<0.000000e+00> : vector<2x3xf32>
    %2 = vector.multi_reduction <add>, %1, %cst [2] : vector<2x3x1024xf32> to vector<2x3xf32>
    %cst_2 = arith.constant 9.765625E-4 : f32
    %3 = vector.broadcast %cst_2 : f32 to vector<2x3xf32>
    %4 = arith.mulf %2, %3 : vector<2x3xf32>
    %c0_3 = arith.constant 0 : index
    %c0_4 = arith.constant 0 : index
    %5 = vector.load %arg2[%c0_3, %c0_4] : memref<1x1024xf32, #tpu.memory_space<vmem>>, vector<1x1024xf32>
    %6 = vector.extract_strided_slice %4 {offsets = [0, 0], sizes = [2, 1], strides = [1, 1]} : vector<2x3xf32> to vector<2x1xf32>
    %c0_5 = arith.constant 0 : index
    %c0_6 = arith.constant 0 : index
    %7 = vector.load %arg1[%c0_5, %c0_6] : memref<3x1024xf32, #tpu.memory_space<vmem>>, vector<1x1024xf32>
    %8 = vector.broadcast %6 : vector<2x1xf32> to vector<2x1024xf32>
    %9 = vector.broadcast %7 : vector<1x1024xf32> to vector<2x1024xf32>
    %10 = arith.mulf %8, %9 : vector<2x1024xf32>
    %11 = vector.broadcast %5 : vector<1x1024xf32> to vector<2x1024xf32>
    %12 = arith.addf %11, %10 : vector<2x1024xf32>
    %13 = vector.extract_strided_slice %4 {offsets = [0, 1], sizes = [2, 1], strides = [1, 1]} : vector<2x3xf32> to vector<2x1xf32>
    %c1 = arith.constant 1 : index
    %c0_7 = arith.constant 0 : index
    %14 = vector.load %arg1[%c1, %c0_7] : memref<3x1024xf32, #tpu.memory_space<vmem>>, vector<1x1024xf32>
    %15 = vector.broadcast %13 : vector<2x1xf32> to vector<2x1024xf32>
    %16 = vector.broadcast %14 : vector<1x1024xf32> to vector<2x1024xf32>
    %17 = arith.mulf %15, %16 : vector<2x1024xf32>
    %18 = arith.addf %12, %17 : vector<2x1024xf32>
    %19 = vector.extract_strided_slice %4 {offsets = [0, 2], sizes = [2, 1], strides = [1, 1]} : vector<2x3xf32> to vector<2x1xf32>
    %c2 = arith.constant 2 : index
    %c0_8 = arith.constant 0 : index
    %20 = vector.load %arg1[%c2, %c0_8] : memref<3x1024xf32, #tpu.memory_space<vmem>>, vector<1x1024xf32>
    %21 = vector.broadcast %19 : vector<2x1xf32> to vector<2x1024xf32>
    %22 = vector.broadcast %20 : vector<1x1024xf32> to vector<2x1024xf32>
    %23 = arith.mulf %21, %22 : vector<2x1024xf32>
    %24 = arith.addf %18, %23 : vector<2x1024xf32>
    %25 = arith.truncf %24 : vector<2x1024xf32> to vector<2x1024xbf16>
    %c0_9 = arith.constant 0 : index
    %c0_10 = arith.constant 0 : index
    %26 = vector.load %arg3[%c0_9, %c0_10] : memref<1024x256xbf16, #tpu.memory_space<vmem>>, vector<1024x256xbf16>
    %cst_11 = arith.constant dense<0.000000e+00> : vector<2x256xf32>
    %27 = tpu.matmul %25, %26, %cst_11 {dimension_numbers = #tpu.dot_dimension_numbers<[1], [0], [0], [1], [0, 0, 1, 1], [], []>} : vector<2x1024xbf16>, vector<1024x256xbf16>, vector<2x256xf32> -> vector<2x256xf32>
    %c0_12 = arith.constant 0 : index
    %c0_13 = arith.constant 0 : index
    %28 = vector.load %arg4[%c0_12, %c0_13] : memref<1x256xf32, #tpu.memory_space<vmem>>, vector<1x256xf32>
    %29 = vector.broadcast %28 : vector<1x256xf32> to vector<2x256xf32>
    %30 = arith.addf %27, %29 : vector<2x256xf32>
    %31 = vector.extract_strided_slice %30 {offsets = [0, 0], sizes = [2, 100], strides = [1, 1]} : vector<2x256xf32> to vector<2x100xf32>
    %cst_14 = arith.constant dense<0xFF800000> : vector<2xf32>
    %32 = vector.multi_reduction <maximumf>, %31, %cst_14 [1] : vector<2x100xf32> to vector<2xf32>
    %33 = vector.shape_cast %32 : vector<2xf32> to vector<2x1xf32>
    %34 = vector.broadcast %33 : vector<2x1xf32> to vector<2x100xf32>
    %35 = arith.subf %31, %34 : vector<2x100xf32>
    %36 = math.exp %35 : vector<2x100xf32>
    %cst_15 = arith.constant dense<0.000000e+00> : vector<2xf32>
    %37 = vector.multi_reduction <add>, %36, %cst_15 [1] : vector<2x100xf32> to vector<2xf32>
    %38 = vector.shape_cast %37 : vector<2xf32> to vector<2x1xf32>
    %39 = vector.broadcast %38 : vector<2x1xf32> to vector<2x100xf32>
    %40 = arith.divf %36, %39 : vector<2x100xf32>
    %41 = vector.extract_strided_slice %30 {offsets = [0, 100], sizes = [2, 20], strides = [1, 1]} : vector<2x256xf32> to vector<2x20xf32>
    %cst_16 = arith.constant dense<0xFF800000> : vector<2xf32>
    %42 = vector.multi_reduction <maximumf>, %41, %cst_16 [1] : vector<2x20xf32> to vector<2xf32>
    %43 = vector.shape_cast %42 : vector<2xf32> to vector<2x1xf32>
    %44 = vector.broadcast %43 : vector<2x1xf32> to vector<2x20xf32>
    %45 = arith.subf %41, %44 : vector<2x20xf32>
    %46 = math.exp %45 : vector<2x20xf32>
    %cst_17 = arith.constant dense<0.000000e+00> : vector<2xf32>
    %47 = vector.multi_reduction <add>, %46, %cst_17 [1] : vector<2x20xf32> to vector<2xf32>
    %48 = vector.shape_cast %47 : vector<2xf32> to vector<2x1xf32>
    %49 = vector.broadcast %48 : vector<2x1xf32> to vector<2x20xf32>
    %50 = arith.divf %46, %49 : vector<2x20xf32>
    %51 = vector.extract_strided_slice %30 {offsets = [0, 120], sizes = [2, 2], strides = [1, 1]} : vector<2x256xf32> to vector<2x2xf32>
    %cst_18 = arith.constant 0.000000e+00 : f32
    %52 = vector.broadcast %cst_18 : f32 to vector<2x2xf32>
    %53 = arith.subf %52, %51 : vector<2x2xf32>
    %54 = math.exp %53 : vector<2x2xf32>
    %cst_19 = arith.constant 1.000000e+00 : f32
    %55 = vector.broadcast %cst_19 : f32 to vector<2x2xf32>
    %56 = arith.addf %55, %54 : vector<2x2xf32>
    %cst_20 = arith.constant 1.000000e+00 : f32
    %57 = vector.broadcast %cst_20 : f32 to vector<2x2xf32>
    %58 = arith.divf %57, %56 : vector<2x2xf32>
    %59 = vector.extract_strided_slice %30 {offsets = [0, 128], sizes = [2, 10], strides = [1, 1]} : vector<2x256xf32> to vector<2x10xf32>
    %cst_21 = arith.constant dense<0xFF800000> : vector<2xf32>
    %60 = vector.multi_reduction <maximumf>, %59, %cst_21 [1] : vector<2x10xf32> to vector<2xf32>
    %61 = vector.shape_cast %60 : vector<2xf32> to vector<2x1xf32>
    %62 = vector.broadcast %61 : vector<2x1xf32> to vector<2x10xf32>
    %63 = arith.subf %59, %62 : vector<2x10xf32>
    %64 = math.exp %63 : vector<2x10xf32>
    %cst_22 = arith.constant dense<0.000000e+00> : vector<2xf32>
    %65 = vector.multi_reduction <add>, %64, %cst_22 [1] : vector<2x10xf32> to vector<2xf32>
    %66 = vector.shape_cast %65 : vector<2xf32> to vector<2x1xf32>
    %67 = vector.broadcast %66 : vector<2x1xf32> to vector<2x10xf32>
    %68 = arith.divf %64, %67 : vector<2x10xf32>
    %cst_23 = arith.constant 0.000000e+00 : f32
    %69 = vector.broadcast %cst_23 : f32 to vector<2x6xf32>
    %cst_24 = arith.constant 0.000000e+00 : f32
    %70 = vector.broadcast %cst_24 : f32 to vector<2x118xf32>
    %71 = tpu.concatenate %40, %50, %58, %69, %68, %70 in 1 : vector<2x100xf32>, vector<2x20xf32>, vector<2x2xf32>, vector<2x6xf32>, vector<2x10xf32>, vector<2x118xf32> -> vector<2x256xf32>
    %c0_25 = arith.constant 0 : index
    %c0_26 = arith.constant 0 : index
    %72 = vector.load %arg5[%c0_25, %c0_26] : memref<2x256xf32, #tpu.memory_space<vmem>>, vector<2x256xf32>
    tpu.vector_store %arg5[%c0_25, %c0_26], %71 {strides = array<i32>} : memref<2x256xf32, #tpu.memory_space<vmem>>, vector<2x256xf32>,
    return
  }
}

</mosaic_0001>

<bundles_post_ra>
// kernel: racing_net_forward.1
= control target key start
LH: loop header
LB: loop body
LE: loop exit
PB: predicated region body
PF: predicated region fallthrough
CT: control target
= control target key end

     0   :  { %10 = vsyncpa [#allocation3], 0  ;;  %s11303_s18 = smov [#allocation2]   ;;  %s17991_s0 = inlined_call_operand.vmem [shape: bf16[2,3,1024], index: 0, kind: input, shape index: {}]   ;;  %s17992_s1 = inlined_call_operand.vmem [shape: f32[3,1024], index: 1, kind: input, shape index: {}]   ;;  %s17993_s2 = inlined_call_operand.vmem [shape: f32[1,1024], index: 2, kind: input, shape index: {}]   ;;  %s17994_s3 = inlined_call_operand.hbm [shape: bf16[1024,256], index: 3, kind: input, shape index: {}]   ;;  %s17995_s4 = inlined_call_operand.vmem [shape: f32[1,256], index: 4, kind: input, shape index: {}]   ;;  %s17996_s5 = inlined_call_operand.vmem [shape: f32[2,256], index: 5, kind: output, shape index: {}]  }
   0x1   :  { %s22_s19 = sshll.u32 %s11303_s18, 4  ;;  %s23_s19 = int_to_ptr.vmem [resolvable:$true] %s22_s19 }
   0x2   :  { %s11289_s20 = scalar_lea.vmem %s23_s19, 16384  ;;  %p11294_p1 = scmp.lt.s32.totalorder %s23_s19, %s23_s19 }
   0x3   :  { %p11290_p0 = scmp.ne.s32.totalorder %s23_s19, %s11289_s20  ;;  %p11295_p2 = scmp.lt.s32.totalorder %s11289_s20, %s11289_s20 }
   0x5   :  { %p11296_p3 = por %p11295_p2, %p11294_p1 }
   0x7   :  { %p11297_p4 = pnand %p11296_p3, %p11290_p0 }
   0x9   :  { %11300 = shalt.err (!%p11297_p4)
}
   0xa   :  { %s11304_s21 = smov 128   ;;  %s11305_s22 = smov 8  }
   0xb   :  { %28 = dma.hbm_to_vmem [thread:$0]  %s17994_s3, 16384, %s23_s19, [#allocation3], %s11304_s21, %s11304_s21, %s11305_s22  }
   0xc   :  { %11301 = dma.done.wait [#allocation3], 16384  }
   0xd   :  { %11302 = vsyncadd [#allocation3], 4294950912  ;;  %v17997_v0 = vlaneseq  ;;  %v11350_v3 = vld [vmem:[%s17992_s1] ss:$4 sm:$0xff]  ;;  %vm70_vm0 = vcmask 1042432   ;;  %vm2114_vm1 = vcmask 130112  }
   0xe   :  { %v34_v4 = vld [vmem:[%s17991_s0] sm:$0xff]  ;;  %v36_v7 = vld [vmem:[%s17991_s0 + $0x10] sm:$0xff]  ;;  %v35_v8 = vld [vmem:[%s17991_s0 + $0x8] sm:$0xff]  ;;  %vm2121_vm2 = vcmask 195712   ;;  %vm2128_vm3 = vcmask 261312   ;;  %vm2135_vm4 = vcmask 326912  }
   0xf   :  { %v11342_v1 = vshrl.u32 %v17997_v0, 7  ;;  %v38_v6 = vunpack.c.l.bf16 %v34_v4  ;;  %v39_v9 = vunpack.c.h.bf16 %v34_v4  ;;  %v42_v12 = vunpack.c.l.bf16 %v36_v7  ;;  %v37_v19 = vld [vmem:[%s17991_s0 + $0x18] sm:$0xff] }
  0x10   :  { %v43_v16 = vunpack.c.h.bf16 %v36_v7  ;;  %v40_v18 = vunpack.c.l.bf16 %v35_v8  ;;  %v44_v31 = vunpack.c.l.bf16 %v37_v19  ;;  %v41_v36 = vunpack.c.h.bf16 %v35_v8 }
  0x11   :  { %18326 = vst [vmem:[#allocation5_spill] sm:$0xff] %v11342_v1  ;;  %v11345_v2 = vsub.s32 0, %v11342_v1  ;;  %v54_v10 = vcombine.high %v38_v6, %v38_v6  ;;  %v71_v11 = vsel %vm70_vm0, %v38_v6, 0.0  ;;  %v55_v13 = vcombine.high %v39_v9, %v39_v9 }
  0x12   :  { %v74_v15 = vsel %vm70_vm0, %v39_v9, 0.0  ;;  %v58_v20 = vcombine.high %v42_v12, %v42_v12  ;;  %v59_v23 = vcombine.high %v43_v16, %v43_v16  ;;  %v88_v24 = vsel %vm70_vm0, %v42_v12, 0.0 }
  0x13   :  { %18327 = vst [vmem:[#allocation6_spill] sm:$0xff] %v11345_v2  ;;  %v11357_v5 = vrot.slane %v11350_v3, %v11345_v2  ;;  %v72_v14 = vsel %vm70_vm0, %v54_v10, 0.0  ;;  %v76_v22 = vsel %vm70_vm0, %v55_v13, 0.0  ;;  %v91_v26 = vsel %vm70_vm0, %v43_v16, 0.0 }
  0x14   :  { %v73_v17 = vadd.f32 %v72_v14, %v71_v11  ;;  %v89_v25 = vsel %vm70_vm0, %v58_v20, 0.0  ;;  %v56_v28 = vcombine.high %v40_v18, %v40_v18  ;;  %v78_v30 = vsel %vm70_vm0, %v40_v18, 0.0 }
  0x15   :  { %159 = vbcast.lane.b32.xlu0 %v11357_v5, 272  ;;  %151 = vbcast.lane.b32.xlu1 %v11357_v5, 256  ;;  %v90_v27 = vadd.f32 %v89_v25, %v88_v24  ;;  %v93_v33 = vsel %vm70_vm0, %v59_v23, 0.0  ;;  %v60_v38 = vcombine.high %v44_v31, %v44_v31  ;;  %v95_v39 = vsel %vm70_vm0, %v44_v31, 0.0 }
  0x16   :  { %v75_v21 = vadd.f32 %v74_v15, %v73_v17  ;;  %v80_v37 = vsel %vm70_vm0, %v56_v28, 0.0  ;;  %v57_v42 = vcombine.high %v41_v36, %v41_v36  ;;  %v82_v43 = vsel %vm70_vm0, %v41_v36, 0.0 }
  0x17   :  { %v92_v32 = vadd.f32 %v91_v26, %v90_v27  ;;  %v45_v44 = vunpack.c.h.bf16 %v37_v19  ;;  %v97_v45 = vsel %vm70_vm0, %v60_v38, 0.0  ;;  %v11396_v55 = vsub.s32 1, %v11342_v1 }
  0x18   :  { %v77_v29 = vadd.f32 %v76_v22, %v75_v21  ;;  %v84_v48 = vsel %vm70_vm0, %v57_v42, 0.0  ;;  %v11405_v57 = vsub.s32 2, %v11342_v1  ;;  %v11411_v59 = vsub.s32 3, %v11342_v1 }
  0x19   :  { %155 = vbcast.lane.b32.xlu1 %v11357_v5, 264  ;;  %v94_v35 = vadd.f32 %v93_v33, %v92_v32  ;;  %v61_v49 = vcombine.high %v45_v44, %v45_v44  ;;  %v99_v50 = vsel %vm70_vm0, %v45_v44, 0.0  ;;  %18328 = vst [vmem:[#allocation7_spill] sm:$0xff] %v11396_v55  ;;  %v125_v56 = vrot.slane %v11350_v3, %v11396_v55 }
  0x1a   :  { %v79_v34 = vadd.f32 %v78_v30, %v77_v29  ;;  %18329 = vst [vmem:[#allocation8_spill] sm:$0xff] %v11405_v57  ;;  %v129_v58 = vrot.slane %v11350_v3, %v11405_v57  ;;  %18330 = vst [vmem:[#allocation9_spill] sm:$0xff] %v11411_v59  ;;  %v133_v60 = vrot.slane %v11350_v3, %v11411_v59  ;;  %v11426_v6 = vsub.s32 4, %v11342_v1 }
  0x1b   :  { %v96_v41 = vadd.f32 %v95_v39, %v94_v35  ;;  %v101_v53 = vsel %vm70_vm0, %v61_v49, 0.0  ;;  %v11306_v10 = vmov 0   ;;  %v11449_v18 = vsub.s32 5, %v11342_v1 }
  0x1c   :  { %v81_v40 = vadd.f32 %v80_v37, %v79_v34  ;;  %18336 = vst [vmem:[#allocation15_spill] sm:$0xff] %v11426_v6  ;;  %v137_v8 = vrot.slane %v11350_v3, %v11426_v6  ;;  %11071 = vset.pattern.permute.xlu0 %v11306_v10  ;;  %11070 = vset.pattern.permute.xlu1 %v11306_v10  ;;  %v11495_v36 = vsub.s32 6, %v11342_v1  ;;  %vm2142_vm5 = vcmask 392512  }
  0x1d   :  { %163 = vbcast.lane.b32.xlu1 %v11357_v5, 280  ;;  %v98_v47 = vadd.f32 %v97_v45, %v96_v41  ;;  %18346 = vst [vmem:[#allocation25_spill] sm:$0xff] %v11449_v18  ;;  %v11457_v21 = vrot.slane %v11350_v3, %v11449_v18  ;;  %vm2149_vm6 = vcmask 458112   ;;  %vm2156_vm7 = vcmask 523712  }
  0x1e   :  { %v83_v46 = vadd.f32 %v82_v43, %v81_v40  ;;  %18362 = vst [vmem:[#allocation41_spill] sm:$0xff] %v11495_v36  ;;  %v11504_v39 = vrot.slane %v11350_v3, %v11495_v36  ;;  %vm2163_vm8 = vcmask 589312   ;;  %vm2170_vm9 = vcmask 654912  }
  0x1f   :  { %v100_v52 = vadd.f32 %v99_v50, %v98_v47  ;;  %vm2177_vm10 = vcmask 720512   ;;  %vm2184_vm11 = vcmask 786112   ;;  %vm2191_vm12 = vcmask 851712  }
  0x20   :  { %v85_v51 = vadd.f32 %v84_v48, %v83_v46  ;;  %vm2198_vm13 = vcmask 917312   ;;  %vm2205_vm14 = vcmask 982912   ;;  %vm2212_vm15 = vcmask 1048512  }
  0x21   :  { %167 = vbcast.lane.b32.xlu1 %v11357_v5, 288  ;;  %v102_v54 = vadd.f32 %v101_v53, %v100_v52  ;;  %vm3399_vm0 = vcmask 1041409  }
  0x25   :  { %171 = vbcast.lane.b32.xlu1 %v11357_v5, 296 }
  0x29   :  { %175 = vbcast.lane.b32.xlu1 %v11357_v5, 304 }
  0x2d   :  { %179 = vbcast.lane.b32.xlu1 %v11357_v5, 312 }
  0x31   :  { %183 = vbcast.lane.b32.xlu1 %v11357_v5, 320 }
  0x34   :  { %86 = vadd.xlane.f32.xlu0 %v85_v51 }
  0x35   :  { %191 = vbcast.lane.b32.xlu1 %v11357_v5, 336 }
  0x38   :  { %103 = vadd.xlane.f32.xlu0 %v102_v54  ;;  %v11549_v54 = vsub.s32 7, %v11342_v1 }
  0x39   :  { %199 = vbcast.lane.b32.xlu1 %v11357_v5, 352 }
  0x3a   :  { %18379 = vst [vmem:[#allocation58_spill] sm:$0xff] %v11549_v54 }
  0x3d   :  { %207 = vbcast.lane.b32.xlu1 %v11357_v5, 368 }
  0x41   :  { %214 = vbcast.lane.b32.xlu1 %v125_v56, 256 }
  0x45   :  { %222 = vbcast.lane.b32.xlu1 %v125_v56, 272 }
  0x49   :  { %230 = vbcast.lane.b32.xlu1 %v125_v56, 288 }
  0x4d   :  { %238 = vbcast.lane.b32.xlu1 %v125_v56, 304 }
  0x4e   :  { %187 = vbcast.lane.b32.xlu0 %v11357_v5, 328 }
  0x51   :  { %246 = vbcast.lane.b32.xlu1 %v125_v56, 320 }
  0x52   :  { %195 = vbcast.lane.b32.xlu0 %v11357_v5, 344 }
  0x55   :  { %254 = vbcast.lane.b32.xlu1 %v125_v56, 336 }
  0x56   :  { %203 = vbcast.lane.b32.xlu0 %v11357_v5, 360 }
  0x59   :  { %262 = vbcast.lane.b32.xlu1 %v125_v56, 352 }
  0x5a   :  { %211 = vbcast.lane.b32.xlu0 %v11357_v5, 376 }
  0x5d   :  { %270 = vbcast.lane.b32.xlu1 %v125_v56, 368 }
  0x5e   :  { %218 = vbcast.lane.b32.xlu0 %v125_v56, 264 }
  0x61   :  { %277 = vbcast.lane.b32.xlu1 %v129_v58, 256 }
  0x62   :  { %226 = vbcast.lane.b32.xlu0 %v125_v56, 280 }
  0x65   :  { %285 = vbcast.lane.b32.xlu1 %v129_v58, 272 }
  0x66   :  { %234 = vbcast.lane.b32.xlu0 %v125_v56, 296 }
  0x69   :  { %293 = vbcast.lane.b32.xlu1 %v129_v58, 288 }
  0x6a   :  { %242 = vbcast.lane.b32.xlu0 %v125_v56, 312 }
  0x6d   :  { %301 = vbcast.lane.b32.xlu1 %v129_v58, 304 }
  0x6e   :  { %250 = vbcast.lane.b32.xlu0 %v125_v56, 328 }
  0x71   :  { %309 = vbcast.lane.b32.xlu1 %v129_v58, 320 }
  0x72   :  { %258 = vbcast.lane.b32.xlu0 %v125_v56, 344 }
  0x75   :  { %317 = vbcast.lane.b32.xlu1 %v129_v58, 336 }
  0x76   :  { %266 = vbcast.lane.b32.xlu0 %v125_v56, 360 }
  0x79   :  { %325 = vbcast.lane.b32.xlu1 %v129_v58, 352 }
  0x7a   :  { %274 = vbcast.lane.b32.xlu0 %v125_v56, 376 }
  0x7d   :  { %333 = vbcast.lane.b32.xlu1 %v129_v58, 368 }
  0x7e   :  { %281 = vbcast.lane.b32.xlu0 %v129_v58, 264 }
  0x81   :  { %340 = vbcast.lane.b32.xlu1 %v133_v60, 256 }
  0x82   :  { %289 = vbcast.lane.b32.xlu0 %v129_v58, 280 }
  0x85   :  { %348 = vbcast.lane.b32.xlu1 %v133_v60, 272 }
  0x86   :  { %297 = vbcast.lane.b32.xlu0 %v129_v58, 296 }
  0x87   :  { %v11415_v61 = vpop.permute.xlu1 %151  ;;  %v11446_v17 = vpop.permute.xlu0 %159 }
  0x88   :  { %18331 = vst [vmem:[#allocation10_spill] sm:$0xff] %v11415_v61  ;;  %18345 = vst [vmem:[#allocation24_spill] sm:$0xff] %v11446_v17 }
  0x89   :  { %356 = vbcast.lane.b32.xlu1 %v133_v60, 288 }
  0x8a   :  { %305 = vbcast.lane.b32.xlu0 %v129_v58, 312 }
  0x8b   :  { %v11417_v62 = vpop.permute.xlu1 %155 }
  0x8c   :  { %18332 = vst [vmem:[#allocation11_spill] sm:$0xff] %v11417_v62 }
  0x8d   :  { %364 = vbcast.lane.b32.xlu1 %v133_v60, 304 }
  0x8e   :  { %313 = vbcast.lane.b32.xlu0 %v129_v58, 328 }
  0x8f   :  { %v11419_v63 = vpop.permute.xlu1 %163 }
  0x90   :  { %18333 = vst [vmem:[#allocation12_spill] sm:$0xff] %v11419_v63 }
  0x91   :  { %372 = vbcast.lane.b32.xlu1 %v133_v60, 320 }
  0x92   :  { %321 = vbcast.lane.b32.xlu0 %v129_v58, 344 }
  0x93   :  { %v11421_v4 = vpop.permute.xlu1 %167 }
  0x94   :  { %18334 = vst [vmem:[#allocation13_spill] sm:$0xff] %v11421_v4 }
  0x95   :  { %380 = vbcast.lane.b32.xlu1 %v133_v60, 336 }
  0x96   :  { %329 = vbcast.lane.b32.xlu0 %v129_v58, 360 }
  0x97   :  { %v11423_v5 = vpop.permute.xlu1 %171 }
  0x98   :  { %18335 = vst [vmem:[#allocation14_spill] sm:$0xff] %v11423_v5 }
  0x99   :  { %388 = vbcast.lane.b32.xlu1 %v133_v60, 352 }
  0x9a   :  { %337 = vbcast.lane.b32.xlu0 %v129_v58, 376 }
  0x9b   :  { %v11428_v7 = vpop.permute.xlu1 %175 }
  0x9c   :  { %18337 = vst [vmem:[#allocation16_spill] sm:$0xff] %v11428_v7 }
  0x9d   :  { %396 = vbcast.lane.b32.xlu1 %v133_v60, 368 }
  0x9e   :  { %344 = vbcast.lane.b32.xlu0 %v133_v60, 264 }
  0x9f   :  { %v11432_v9 = vpop.permute.xlu1 %179 }
  0xa0   :  { %18338 = vst [vmem:[#allocation17_spill] sm:$0xff] %v11432_v9 }
  0xa1   :  { %403 = vbcast.lane.b32.xlu1 %v137_v8, 256 }
  0xa2   :  { %352 = vbcast.lane.b32.xlu0 %v133_v60, 280 }
  0xa3   :  { %v11434_v11 = vpop.permute.xlu1 %183 }
  0xa4   :  { %18339 = vst [vmem:[#allocation18_spill] sm:$0xff] %v11434_v11 }
  0xa5   :  { %411 = vbcast.lane.b32.xlu1 %v137_v8, 272 }
  0xa6   :  { %360 = vbcast.lane.b32.xlu0 %v133_v60, 296 }
  0xa7   :  { %v11436_v12 = vpop.permute.xlu1 %191 }
  0xa8   :  { %18340 = vst [vmem:[#allocation19_spill] sm:$0xff] %v11436_v12 }
  0xa9   :  { %419 = vbcast.lane.b32.xlu1 %v137_v8, 288 }
  0xaa   :  { %368 = vbcast.lane.b32.xlu0 %v133_v60, 312 }
  0xab   :  { %v11438_v13 = vpop.permute.xlu1 %199 }
  0xac   :  { %18341 = vst [vmem:[#allocation20_spill] sm:$0xff] %v11438_v13 }
  0xad   :  { %427 = vbcast.lane.b32.xlu1 %v137_v8, 304 }
  0xae   :  { %376 = vbcast.lane.b32.xlu0 %v133_v60, 328 }
  0xaf   :  { %v11440_v14 = vpop.permute.xlu1 %207 }
  0xb0   :  { %18342 = vst [vmem:[#allocation21_spill] sm:$0xff] %v11440_v14 }
  0xb1   :  { %435 = vbcast.lane.b32.xlu1 %v137_v8, 320 }
  0xb2   :  { %384 = vbcast.lane.b32.xlu0 %v133_v60, 344 }
  0xb3   :  { %v11442_v15 = vpop.permute.xlu1 %214 }
  0xb4   :  { %18343 = vst [vmem:[#allocation22_spill] sm:$0xff] %v11442_v15 }
  0xb5   :  { %443 = vbcast.lane.b32.xlu1 %v137_v8, 336 }
  0xb6   :  { %392 = vbcast.lane.b32.xlu0 %v133_v60, 360 }
  0xb7   :  { %v11444_v16 = vpop.permute.xlu1 %222 }
  0xb8   :  { %18344 = vst [vmem:[#allocation23_spill] sm:$0xff] %v11444_v16 }
  0xb9   :  { %451 = vbcast.lane.b32.xlu1 %v137_v8, 352 }
  0xba   :  { %400 = vbcast.lane.b32.xlu0 %v133_v60, 376  ;;  %v11559_v60 = vrot.slane %v11350_v3, %v11549_v54 }
  0xbb   :  { %v11451_v19 = vpop.permute.xlu1 %230 }
  0xbc   :  { %18347 = vst [vmem:[#allocation26_spill] sm:$0xff] %v11451_v19 }
  0xbd   :  { %459 = vbcast.lane.b32.xlu1 %v137_v8, 368  ;;  %v11453_v20 = vpop.xlane.xlu0 %86 }
  0xbe   :  { %407 = vbcast.lane.b32.xlu0 %v137_v8, 264  ;;  %v11599_v55 = vmul.f32 0.0009765625, %v11453_v20 }
  0xbf   :  { %v11459_v22 = vpop.permute.xlu1 %238 }
  0xc0   :  { %18348 = vst [vmem:[#allocation27_spill] sm:$0xff] %v11459_v22  ;;  %18393 = vst [vmem:[#allocation72_spill] sm:$0xff] %v11599_v55 }
  0xc1   :  { %466 = vbcast.lane.b32.xlu1 %v11457_v21, 256  ;;  %v11462_v23 = vpop.xlane.xlu0 %103 }
  0xc2   :  { %18349 = vst [vmem:[#allocation28_spill] sm:$0xff] %v11462_v23  ;;  %415 = vbcast.lane.b32.xlu0 %v137_v8, 280 }
  0xc3   :  { %v11464_v24 = vpop.permute.xlu1 %246 }
  0xc4   :  { %18350 = vst [vmem:[#allocation29_spill] sm:$0xff] %v11464_v24 }
  0xc5   :  { %474 = vbcast.lane.b32.xlu1 %v11457_v21, 272  ;;  %v11467_v25 = vpop.permute.xlu0 %187 }
  0xc6   :  { %18351 = vst [vmem:[#allocation30_spill] sm:$0xff] %v11467_v25  ;;  %423 = vbcast.lane.b32.xlu0 %v137_v8, 296 }
  0xc7   :  { %v11469_v26 = vpop.permute.xlu1 %254 }
  0xc8   :  { %18352 = vst [vmem:[#allocation31_spill] sm:$0xff] %v11469_v26 }
  0xc9   :  { %482 = vbcast.lane.b32.xlu1 %v11457_v21, 288  ;;  %v11472_v27 = vpop.permute.xlu0 %195 }
  0xca   :  { %18353 = vst [vmem:[#allocation32_spill] sm:$0xff] %v11472_v27  ;;  %431 = vbcast.lane.b32.xlu0 %v137_v8, 312 }
  0xcb   :  { %v11474_v28 = vpop.permute.xlu1 %262 }
  0xcc   :  { %18354 = vst [vmem:[#allocation33_spill] sm:$0xff] %v11474_v28 }
  0xcd   :  { %490 = vbcast.lane.b32.xlu1 %v11457_v21, 304  ;;  %v11477_v29 = vpop.permute.xlu0 %203 }
  0xce   :  { %18355 = vst [vmem:[#allocation34_spill] sm:$0xff] %v11477_v29  ;;  %439 = vbcast.lane.b32.xlu0 %v137_v8, 328 }
  0xcf   :  { %v11479_v30 = vpop.permute.xlu1 %270 }
  0xd0   :  { %18356 = vst [vmem:[#allocation35_spill] sm:$0xff] %v11479_v30 }
  0xd1   :  { %498 = vbcast.lane.b32.xlu1 %v11457_v21, 320  ;;  %v11482_v31 = vpop.permute.xlu0 %211 }
  0xd2   :  { %18357 = vst [vmem:[#allocation36_spill] sm:$0xff] %v11482_v31  ;;  %447 = vbcast.lane.b32.xlu0 %v137_v8, 344 }
  0xd3   :  { %v11484_v32 = vpop.permute.xlu1 %277 }
  0xd4   :  { %18358 = vst [vmem:[#allocation37_spill] sm:$0xff] %v11484_v32 }
  0xd5   :  { %506 = vbcast.lane.b32.xlu1 %v11457_v21, 336  ;;  %v11487_v33 = vpop.permute.xlu0 %218 }
  0xd6   :  { %18359 = vst [vmem:[#allocation38_spill] sm:$0xff] %v11487_v33  ;;  %455 = vbcast.lane.b32.xlu0 %v137_v8, 360 }
  0xd7   :  { %v11489_v34 = vpop.permute.xlu1 %285 }
  0xd8   :  { %18360 = vst [vmem:[#allocation39_spill] sm:$0xff] %v11489_v34 }
  0xd9   :  { %514 = vbcast.lane.b32.xlu1 %v11457_v21, 352  ;;  %v11492_v35 = vpop.permute.xlu0 %226 }
  0xda   :  { %18361 = vst [vmem:[#allocation40_spill] sm:$0xff] %v11492_v35  ;;  %463 = vbcast.lane.b32.xlu0 %v137_v8, 376 }
  0xdb   :  { %v11497_v37 = vpop.permute.xlu1 %293 }
  0xdc   :  { %18363 = vst [vmem:[#allocation42_spill] sm:$0xff] %v11497_v37 }
  0xdd   :  { %522 = vbcast.lane.b32.xlu1 %v11457_v21, 368  ;;  %v11500_v38 = vpop.permute.xlu0 %234 }
  0xde   :  { %18364 = vst [vmem:[#allocation43_spill] sm:$0xff] %v11500_v38  ;;  %470 = vbcast.lane.b32.xlu0 %v11457_v21, 264 }
  0xdf   :  { %v11507_v40 = vpop.permute.xlu1 %301 }
  0xe0   :  { %18365 = vst [vmem:[#allocation44_spill] sm:$0xff] %v11507_v40 }
  0xe1   :  { %529 = vbcast.lane.b32.xlu1 %v11504_v39, 256  ;;  %v11510_v41 = vpop.permute.xlu0 %242 }
  0xe2   :  { %18366 = vst [vmem:[#allocation45_spill] sm:$0xff] %v11510_v41  ;;  %478 = vbcast.lane.b32.xlu0 %v11457_v21, 280 }
  0xe3   :  { %v11513_v42 = vpop.permute.xlu1 %309 }
  0xe4   :  { %18367 = vst [vmem:[#allocation46_spill] sm:$0xff] %v11513_v42 }
  0xe5   :  { %537 = vbcast.lane.b32.xlu1 %v11504_v39, 272  ;;  %v11516_v43 = vpop.permute.xlu0 %250 }
  0xe6   :  { %18368 = vst [vmem:[#allocation47_spill] sm:$0xff] %v11516_v43  ;;  %486 = vbcast.lane.b32.xlu0 %v11457_v21, 296 }
  0xe7   :  { %v11519_v44 = vpop.permute.xlu1 %317 }
  0xe8   :  { %18369 = vst [vmem:[#allocation48_spill] sm:$0xff] %v11519_v44 }
  0xe9   :  { %545 = vbcast.lane.b32.xlu1 %v11504_v39, 288  ;;  %v11522_v45 = vpop.permute.xlu0 %258 }
  0xea   :  { %18370 = vst [vmem:[#allocation49_spill] sm:$0xff] %v11522_v45  ;;  %494 = vbcast.lane.b32.xlu0 %v11457_v21, 312 }
  0xeb   :  { %v11525_v46 = vpop.permute.xlu1 %325 }
  0xec   :  { %18371 = vst [vmem:[#allocation50_spill] sm:$0xff] %v11525_v46 }
  0xed   :  { %553 = vbcast.lane.b32.xlu1 %v11504_v39, 304  ;;  %v11528_v47 = vpop.permute.xlu0 %266 }
  0xee   :  { %18372 = vst [vmem:[#allocation51_spill] sm:$0xff] %v11528_v47  ;;  %502 = vbcast.lane.b32.xlu0 %v11457_v21, 328 }
  0xef   :  { %v11531_v48 = vpop.permute.xlu1 %333 }
  0xf0   :  { %18373 = vst [vmem:[#allocation52_spill] sm:$0xff] %v11531_v48 }
  0xf1   :  { %561 = vbcast.lane.b32.xlu1 %v11504_v39, 320  ;;  %v11534_v49 = vpop.permute.xlu0 %274 }
  0xf2   :  { %18374 = vst [vmem:[#allocation53_spill] sm:$0xff] %v11534_v49  ;;  %510 = vbcast.lane.b32.xlu0 %v11457_v21, 344 }
  0xf3   :  { %v11537_v50 = vpop.permute.xlu1 %340 }
  0xf4   :  { %18375 = vst [vmem:[#allocation54_spill] sm:$0xff] %v11537_v50 }
  0xf5   :  { %569 = vbcast.lane.b32.xlu1 %v11504_v39, 336  ;;  %v11540_v51 = vpop.permute.xlu0 %281 }
  0xf6   :  { %18376 = vst [vmem:[#allocation55_spill] sm:$0xff] %v11540_v51  ;;  %518 = vbcast.lane.b32.xlu0 %v11457_v21, 360 }
  0xf7   :  { %v11543_v52 = vpop.permute.xlu1 %348 }
  0xf8   :  { %18377 = vst [vmem:[#allocation56_spill] sm:$0xff] %v11543_v52 }
  0xf9   :  { %577 = vbcast.lane.b32.xlu1 %v11504_v39, 352  ;;  %v11546_v53 = vpop.permute.xlu0 %289 }
  0xfa   :  { %18378 = vst [vmem:[#allocation57_spill] sm:$0xff] %v11546_v53  ;;  %526 = vbcast.lane.b32.xlu0 %v11457_v21, 376 }
  0xfb   :  { %v11552_v56 = vpop.permute.xlu1 %356 }
  0xfc   :  { %18380 = vst [vmem:[#allocation59_spill] sm:$0xff] %v11552_v56 }
  0xfd   :  { %585 = vbcast.lane.b32.xlu1 %v11504_v39, 368  ;;  %v11555_v58 = vpop.permute.xlu0 %297 }
  0xfe   :  { %18381 = vst [vmem:[#allocation60_spill] sm:$0xff] %v11555_v58  ;;  %533 = vbcast.lane.b32.xlu0 %v11504_v39, 264 }
  0xff   :  { %v11562_v8 = vpop.permute.xlu1 %364 }
 0x100   :  { %18382 = vst [vmem:[#allocation61_spill] sm:$0xff] %v11562_v8 }
 0x101   :  { %592 = vbcast.lane.b32.xlu1 %v11559_v60, 256  ;;  %v11565_v10 = vpop.permute.xlu0 %305 }
 0x102   :  { %18383 = vst [vmem:[#allocation62_spill] sm:$0xff] %v11565_v10  ;;  %541 = vbcast.lane.b32.xlu0 %v11504_v39, 280 }
 0x103   :  { %v11568_v21 = vpop.permute.xlu1 %372 }
 0x104   :  { %18384 = vst [vmem:[#allocation63_spill] sm:$0xff] %v11568_v21 }
 0x105   :  { %600 = vbcast.lane.b32.xlu1 %v11559_v60, 272  ;;  %v11571_v0 = vpop.permute.xlu0 %313 }
 0x106   :  { %18385 = vst [vmem:[#allocation64_spill] sm:$0xff] %v11571_v0  ;;  %549 = vbcast.lane.b32.xlu0 %v11504_v39, 296 }
 0x107   :  { %v11574_v3 = vpop.permute.xlu1 %380 }
 0x108   :  { %18386 = vst [vmem:[#allocation65_spill] sm:$0xff] %v11574_v3 }
 0x109   :  { %608 = vbcast.lane.b32.xlu1 %v11559_v60, 288  ;;  %v11577_v1 = vpop.permute.xlu0 %321 }
 0x10a   :  { %18387 = vst [vmem:[#allocation66_spill] sm:$0xff] %v11577_v1  ;;  %557 = vbcast.lane.b32.xlu0 %v11504_v39, 312 }
 0x10b   :  { %v11580_v54 = vpop.permute.xlu1 %388 }
 0x10c   :  { %18388 = vst [vmem:[#allocation67_spill] sm:$0xff] %v11580_v54 }
 0x10d   :  { %616 = vbcast.lane.b32.xlu1 %v11559_v60, 304  ;;  %v11583_v36 = vpop.permute.xlu0 %329 }
 0x10e   :  { %18389 = vst [vmem:[#allocation68_spill] sm:$0xff] %v11583_v36  ;;  %565 = vbcast.lane.b32.xlu0 %v11504_v39, 328 }
 0x10f   :  { %v11586_v18 = vpop.permute.xlu1 %396 }
 0x110   :  { %18390 = vst [vmem:[#allocation69_spill] sm:$0xff] %v11586_v18 }
 0x111   :  { %624 = vbcast.lane.b32.xlu1 %v11559_v60, 320  ;;  %v11589_v6 = vpop.permute.xlu0 %337 }
 0x112   :  { %573 = vbcast.lane.b32.xlu0 %v11504_v39, 344 }
 0x113   :  { %v11592_v59 = vpop.permute.xlu1 %403 }
 0x114   :  { %18391 = vst [vmem:[#allocation70_spill] sm:$0xff] %v11592_v59  ;;  %v11609_v59 = vrot.slane %v11599_v55, %v11345_v2 }
 0x115   :  { %632 = vbcast.lane.b32.xlu1 %v11559_v60, 336  ;;  %v11595_v57 = vpop.permute.xlu0 %344 }
 0x116   :  { %18392 = vst [vmem:[#allocation71_spill] sm:$0xff] %v11595_v57  ;;  %581 = vbcast.lane.b32.xlu0 %v11504_v39, 360  ;;  %v782_v20 = vmul.f32 %v11415_v61, %v11609_v59  ;;  %v785_v61 = vmul.f32 %v11419_v63, %v11609_v59  ;;  %v789_v63 = vmul.f32 %v11432_v9, %v11609_v59 }
 0x117   :  { %v11601_v23 = vpop.permute.xlu1 %411  ;;  %v793_v9 = vmul.f32 %v11472_v27, %v11609_v59  ;;  %v797_v27 = vmul.f32 %v11482_v31, %v11609_v59  ;;  %v801_v31 = vmul.f32 %v11492_v35, %v11609_v59  ;;  %v805_v35 = vmul.f32 %v11510_v41, %v11609_v59 }
 0x118   :  { %18394 = vst [vmem:[#allocation73_spill] sm:$0xff] %v11601_v23  ;;  %v809_v41 = vmul.f32 %v11522_v45, %v11609_v59  ;;  %v813_v45 = vmul.f32 %v11534_v49, %v11609_v59  ;;  %v817_v49 = vmul.f32 %v11546_v53, %v11609_v59  ;;  %v821_v53 = vmul.f32 %v11565_v10, %v11609_v59 }
 0x119   :  { %640 = vbcast.lane.b32.xlu1 %v11559_v60, 352  ;;  %v11604_v18 = vpop.permute.xlu0 %352  ;;  %v825_v10 = vmul.f32 %v11577_v1, %v11609_v59  ;;  %v829_v1 = vmul.f32 %v11589_v6, %v11609_v59 }
 0x11a   :  { %18395 = vst [vmem:[#allocation74_spill] sm:$0xff] %v11604_v18  ;;  %589 = vbcast.lane.b32.xlu0 %v11504_v39, 376  ;;  %v784_v39 = vmul.f32 %v11446_v17, %v11609_v59  ;;  %v787_v17 = vmul.f32 %v11423_v5, %v11609_v59  ;;  %v791_v5 = vmul.f32 %v11467_v25, %v11609_v59 }
 0x11b   :  { %v11611_v54 = vpop.permute.xlu1 %419  ;;  %v795_v25 = vmul.f32 %v11477_v29, %v11609_v59  ;;  %v799_v29 = vmul.f32 %v11487_v33, %v11609_v59  ;;  %v803_v33 = vmul.f32 %v11500_v38, %v11609_v59  ;;  %v807_v38 = vmul.f32 %v11516_v43, %v11609_v59 }
 0x11c   :  { %18396 = vst [vmem:[#allocation75_spill] sm:$0xff] %v11611_v54  ;;  %v811_v43 = vmul.f32 %v11528_v47, %v11609_v59  ;;  %v815_v47 = vmul.f32 %v11540_v51, %v11609_v59  ;;  %v819_v51 = vmul.f32 %v11555_v58, %v11609_v59  ;;  %v823_v58 = vmul.f32 %v11571_v0, %v11609_v59 }
 0x11d   :  { %648 = vbcast.lane.b32.xlu1 %v11559_v60, 368  ;;  %v11614_v3 = vpop.permute.xlu0 %360  ;;  %v827_v0 = vmul.f32 %v11583_v36, %v11609_v59  ;;  %v831_v36 = vmul.f32 %v11595_v57, %v11609_v59 }
 0x11e   :  { %596 = vbcast.lane.b32.xlu0 %v11559_v60, 264  ;;  %v835_v57 = vmul.f32 %v11614_v3, %v11609_v59 }
 0x11f   :  { %v11619_v23 = vpop.permute.xlu1 %427 }
 0x120   :  { %18397 = vst [vmem:[#allocation76_spill] sm:$0xff] %v11619_v23 }
 0x121   :  { %1336 = vperm.xlu1 %11070, %v782_v20   ;;  %v11621_v21 = vpop.permute.xlu0 %368 }
 0x122   :  { %18398 = vst [vmem:[#allocation77_spill] sm:$0xff] %v11621_v21  ;;  %604 = vbcast.lane.b32.xlu0 %v11559_v60, 280 }
 0x123   :  { %v11626_v55 = vpop.permute.xlu1 %435 }
 0x124   :  { %18399 = vst [vmem:[#allocation78_spill] sm:$0xff] %v11626_v55 }
 0x125   :  { %1342 = vperm.xlu1 %11070, %v784_v39   ;;  %v11628_v2 = vpop.permute.xlu0 %376 }
 0x126   :  { %18400 = vst [vmem:[#allocation79_spill] sm:$0xff] %v11628_v2  ;;  %612 = vbcast.lane.b32.xlu0 %v11559_v60, 296 }
 0x127   :  { %v11633_v54 = vpop.permute.xlu1 %443 }
 0x128   :  { %18401 = vst [vmem:[#allocation80_spill] sm:$0xff] %v11633_v54 }
 0x129   :  { %1345 = vperm.xlu1 %11070, %v785_v61   ;;  %v11635_v20 = vpop.permute.xlu0 %384 }
 0x12a   :  { %18402 = vst [vmem:[#allocation81_spill] sm:$0xff] %v11635_v20  ;;  %620 = vbcast.lane.b32.xlu0 %v11559_v60, 312 }
 0x12b   :  { %v11640_v23 = vpop.permute.xlu1 %451 }
 0x12c   :  { %18403 = vst [vmem:[#allocation82_spill] sm:$0xff] %v11640_v23 }
 0x12d   :  { %1351 = vperm.xlu1 %11070, %v787_v17   ;;  %v11642_v39 = vpop.permute.xlu0 %392 }
 0x12e   :  { %628 = vbcast.lane.b32.xlu0 %v11559_v60, 328 }
 0x12f   :  { %v11647_v55 = vpop.permute.xlu1 %459 }
 0x130   :  { %18404 = vst [vmem:[#allocation83_spill] sm:$0xff] %v11647_v55 }
 0x131   :  { %1357 = vperm.xlu1 %11070, %v789_v63   ;;  %v11649_v61 = vpop.permute.xlu0 %400 }
 0x132   :  { %18405 = vst [vmem:[#allocation84_spill] sm:$0xff] %v11649_v61  ;;  %636 = vbcast.lane.b32.xlu0 %v11559_v60, 344 }
 0x133   :  { %v11654_v54 = vpop.permute.xlu1 %466 }
 0x134   :  { %18406 = vst [vmem:[#allocation85_spill] sm:$0xff] %v11654_v54 }
 0x135   :  { %1363 = vperm.xlu1 %11070, %v791_v5   ;;  %v11656_v17 = vpop.permute.xlu0 %407  ;;  %v783_v5 = vmul.f32 %v11417_v62, %v11609_v59 }
 0x136   :  { %18407 = vst [vmem:[#allocation86_spill] sm:$0xff] %v11656_v17  ;;  %644 = vbcast.lane.b32.xlu0 %v11559_v60, 360 }
 0x137   :  { %v11661_v23 = vpop.permute.xlu1 %474 }
 0x138   :  { %18408 = vst [vmem:[#allocation87_spill] sm:$0xff] %v11661_v23 }
 0x139   :  { %1369 = vperm.xlu1 %11070, %v793_v9   ;;  %v11663_v63 = vpop.permute.xlu0 %415 }
 0x13a   :  { %18409 = vst [vmem:[#allocation88_spill] sm:$0xff] %v11663_v63  ;;  %652 = vbcast.lane.b32.xlu0 %v11559_v60, 376  ;;  %v786_v60 = vmul.f32 %v11421_v4, %v11609_v59 }
 0x13b   :  { %v11668_v55 = vpop.permute.xlu1 %482 }
 0x13d   :  { %1375 = vperm.xlu1 %11070, %v795_v25   ;;  %v11672_v54 = vpop.permute.xlu0 %423  ;;  %v788_v25 = vmul.f32 %v11428_v7, %v11609_v59 }
 0x13e   :  { %1339 = vperm.xlu0 %11071, %v783_v5  }
 0x13f   :  { %v11676_v9 = vpop.permute.xlu1 %490 }
 0x141   :  { %1381 = vperm.xlu1 %11070, %v797_v27   ;;  %v11680_v23 = vpop.permute.xlu0 %431  ;;  %v790_v27 = vmul.f32 %v11434_v11, %v11609_v59 }
 0x142   :  { %18410 = vst [vmem:[#allocation89_spill] sm:$0xff] %v11680_v23  ;;  %1348 = vperm.xlu0 %11071, %v786_v60  }
 0x143   :  { %v11684_v62 = vpop.permute.xlu1 %498 }
 0x145   :  { %1387 = vperm.xlu1 %11070, %v799_v29   ;;  %v11688_v5 = vpop.permute.xlu0 %439  ;;  %v792_v29 = vmul.f32 %v11436_v12, %v11609_v59 }
 0x146   :  { %18411 = vst [vmem:[#allocation90_spill] sm:$0xff] %v11688_v5  ;;  %1354 = vperm.xlu0 %11071, %v788_v25  }
 0x147   :  { %v11692_v4 = vpop.permute.xlu1 %506 }
 0x149   :  { %1393 = vperm.xlu1 %11070, %v801_v31   ;;  %v11696_v60 = vpop.permute.xlu0 %447  ;;  %v794_v31 = vmul.f32 %v11438_v13, %v11609_v59 }
 0x14a   :  { %1360 = vperm.xlu0 %11071, %v790_v27  }
 0x14b   :  { %v11700_v7 = vpop.permute.xlu1 %514 }
 0x14d   :  { %1399 = vperm.xlu1 %11070, %v803_v33   ;;  %v11704_v25 = vpop.permute.xlu0 %455  ;;  %v796_v33 = vmul.f32 %v11440_v14, %v11609_v59 }
 0x14e   :  { %1366 = vperm.xlu0 %11071, %v792_v29  }
 0x14f   :  { %v11708_v11 = vpop.permute.xlu1 %522 }
 0x151   :  { %1405 = vperm.xlu1 %11070, %v805_v35   ;;  %v11712_v27 = vpop.permute.xlu0 %463  ;;  %v798_v35 = vmul.f32 %v11442_v15, %v11609_v59 }
 0x152   :  { %1372 = vperm.xlu0 %11071, %v794_v31  }
 0x153   :  { %v11716_v12 = vpop.permute.xlu1 %529 }
 0x155   :  { %1411 = vperm.xlu1 %11070, %v807_v38   ;;  %v11720_v29 = vpop.permute.xlu0 %470  ;;  %v800_v38 = vmul.f32 %v11444_v16, %v11609_v59 }
 0x156   :  { %1378 = vperm.xlu0 %11071, %v796_v33  }
 0x157   :  { %v11724_v13 = vpop.permute.xlu1 %537 }
 0x159   :  { %1417 = vperm.xlu1 %11070, %v809_v41   ;;  %v11728_v31 = vpop.permute.xlu0 %478  ;;  %v802_v41 = vmul.f32 %v11451_v19, %v11609_v59 }
 0x15a   :  { %1384 = vperm.xlu0 %11071, %v798_v35  }
 0x15b   :  { %v11732_v14 = vpop.permute.xlu1 %545 }
 0x15d   :  { %1423 = vperm.xlu1 %11070, %v811_v43   ;;  %v11736_v33 = vpop.permute.xlu0 %486  ;;  %v804_v43 = vmul.f32 %v11459_v22, %v11609_v59 }
 0x15e   :  { %1390 = vperm.xlu0 %11071, %v800_v38  }
 0x15f   :  { %v11740_v15 = vpop.permute.xlu1 %553 }
 0x161   :  { %1429 = vperm.xlu1 %11070, %v813_v45   ;;  %v11744_v35 = vpop.permute.xlu0 %494  ;;  %v806_v45 = vmul.f32 %v11464_v24, %v11609_v59 }
 0x162   :  { %1396 = vperm.xlu0 %11071, %v802_v41  }
 0x163   :  { %v11748_v16 = vpop.permute.xlu1 %561 }
 0x165   :  { %1435 = vperm.xlu1 %11070, %v815_v47   ;;  %v11752_v38 = vpop.permute.xlu0 %502  ;;  %v808_v47 = vmul.f32 %v11469_v26, %v11609_v59 }
 0x166   :  { %1402 = vperm.xlu0 %11071, %v804_v43  }
 0x167   :  { %v11756_v19 = vpop.permute.xlu1 %569 }
 0x169   :  { %1441 = vperm.xlu1 %11070, %v817_v49   ;;  %v11760_v41 = vpop.permute.xlu0 %510  ;;  %v810_v49 = vmul.f32 %v11474_v28, %v11609_v59 }
 0x16a   :  { %1408 = vperm.xlu0 %11071, %v806_v45  }
 0x16b   :  { %v11764_v22 = vpop.permute.xlu1 %577 }
 0x16d   :  { %1447 = vperm.xlu1 %11070, %v819_v51   ;;  %v11768_v43 = vpop.permute.xlu0 %518  ;;  %v812_v51 = vmul.f32 %v11479_v30, %v11609_v59 }
 0x16e   :  { %1414 = vperm.xlu0 %11071, %v808_v47  }
 0x16f   :  { %v11772_v24 = vpop.permute.xlu1 %585 }
 0x170   :  { %18412 = vst [vmem:[#allocation91_spill] sm:$0xff] %v11772_v24 }
 0x171   :  { %1453 = vperm.xlu1 %11070, %v821_v53   ;;  %v11776_v45 = vpop.permute.xlu0 %526  ;;  %v814_v53 = vmul.f32 %v11484_v32, %v11609_v59 }
 0x172   :  { %1420 = vperm.xlu0 %11071, %v810_v49  }
 0x173   :  { %v11780_v26 = vpop.permute.xlu1 %592 }
 0x175   :  { %1459 = vperm.xlu1 %11070, %v823_v58   ;;  %v11784_v47 = vpop.permute.xlu0 %533  ;;  %v816_v58 = vmul.f32 %v11489_v34, %v11609_v59 }
 0x176   :  { %1426 = vperm.xlu0 %11071, %v812_v51  }
 0x177   :  { %v11788_v28 = vpop.permute.xlu1 %600 }
 0x178   :  { %18413 = vst [vmem:[#allocation92_spill] sm:$0xff] %v11788_v28 }
 0x179   :  { %1465 = vperm.xlu1 %11070, %v825_v10   ;;  %v11792_v49 = vpop.permute.xlu0 %541  ;;  %v818_v10 = vmul.f32 %v11497_v37, %v11609_v59  ;;  %v833_v37 = vmul.f32 %v11604_v18, %v11609_v59  ;;  %v837_v18 = vmul.f32 %v11621_v21, %v11609_v59  ;;  %v841_v21 = vmul.f32 %v11635_v20, %v11609_v59 }
 0x17a   :  { %1432 = vperm.xlu0 %11071, %v814_v53  }
 0x17b   :  { %v11796_v30 = vpop.permute.xlu1 %608 }
 0x17c   :  { %18414 = vst [vmem:[#allocation93_spill] sm:$0xff] %v11796_v30 }
 0x17d   :  { %1471 = vperm.xlu1 %11070, %v827_v0   ;;  %v11800_v51 = vpop.permute.xlu0 %549  ;;  %v820_v0 = vmul.f32 %v11507_v40, %v11609_v59 }
 0x17e   :  { %1438 = vperm.xlu0 %11071, %v816_v58  }
 0x17f   :  { %v11806_v32 = vpop.permute.xlu1 %616 }
 0x181   :  { %1477 = vperm.xlu1 %11070, %v829_v1   ;;  %v11808_v53 = vpop.permute.xlu0 %557  ;;  %v822_v1 = vmul.f32 %v11513_v42, %v11609_v59 }
 0x182   :  { %1444 = vperm.xlu0 %11071, %v818_v10  }
 0x183   :  { %v11816_v34 = vpop.permute.xlu1 %624 }
 0x185   :  { %1483 = vperm.xlu1 %11070, %v831_v36   ;;  %v11814_v58 = vpop.permute.xlu0 %565  ;;  %v824_v36 = vmul.f32 %v11519_v44, %v11609_v59  ;;  %v839_v44 = vmul.f32 %v11628_v2, %v11609_v59  ;;  %v843_v2 = vmul.f32 %v11642_v39, %v11609_v59 }
 0x186   :  { %1450 = vperm.xlu0 %11071, %v820_v0  }
 0x187   :  { %v11828_v40 = vpop.permute.xlu1 %632 }
 0x189   :  { %1489 = vperm.xlu1 %11070, %v833_v37   ;;  %v11822_v10 = vpop.permute.xlu0 %573  ;;  %v826_v37 = vmul.f32 %v11525_v46, %v11609_v59 }
 0x18a   :  { %1456 = vperm.xlu0 %11071, %v822_v1  }
 0x18b   :  { %v11838_v42 = vpop.permute.xlu1 %640 }
 0x18d   :  { %1495 = vperm.xlu1 %11070, %v835_v57   ;;  %v11830_v0 = vpop.permute.xlu0 %581  ;;  %v828_v57 = vmul.f32 %v11531_v48, %v11609_v59 }
 0x18e   :  { %1462 = vperm.xlu0 %11071, %v824_v36  }
 0x18f   :  { %v11850_v46 = vpop.permute.xlu1 %648 }
 0x191   :  { %1501 = vperm.xlu1 %11070, %v837_v18   ;;  %v11836_v1 = vpop.permute.xlu0 %589  ;;  %v830_v18 = vmul.f32 %v11537_v50, %v11609_v59  ;;  %v845_v50 = vmul.f32 %v11649_v61, %v11609_v59 }
 0x192   :  { %1468 = vperm.xlu0 %11071, %v826_v37  }
 0x195   :  { %1507 = vperm.xlu1 %11070, %v839_v44   ;;  %v11844_v36 = vpop.permute.xlu0 %596  ;;  %v832_v44 = vmul.f32 %v11543_v52, %v11609_v59  ;;  %v847_v52 = vmul.f32 %v11656_v17, %v11609_v59 }
 0x196   :  { %1474 = vperm.xlu0 %11071, %v828_v57  }
 0x199   :  { %1513 = vperm.xlu1 %11070, %v841_v21   ;;  %v11852_v37 = vpop.permute.xlu0 %604  ;;  %v834_v21 = vmul.f32 %v11552_v56, %v11609_v59  ;;  %v849_v56 = vmul.f32 %v11663_v63, %v11609_v59 }
 0x19a   :  { %1480 = vperm.xlu0 %11071, %v830_v18  }
 0x19c   :  { %v11858_v48 = vpop.permute.xlu1 %1336 }
 0x19d   :  { %18415 = vst [vmem:[#allocation94_spill] sm:$0xff] %v11858_v48  ;;  %1519 = vperm.xlu1 %11070, %v843_v2   ;;  %v11860_v57 = vpop.permute.xlu0 %612  ;;  %v836_v2 = vmul.f32 %v11562_v8, %v11609_v59  ;;  %v851_v8 = vmul.f32 %v11672_v54, %v11609_v59 }
 0x19e   :  { %1486 = vperm.xlu0 %11071, %v832_v44  }
 0x1a0   :  { %v11866_v20 = vpop.permute.xlu1 %1342 }
 0x1a1   :  { %18416 = vst [vmem:[#allocation95_spill] sm:$0xff] %v11866_v20  ;;  %1525 = vperm.xlu1 %11070, %v845_v50   ;;  %v11868_v18 = vpop.permute.xlu0 %620  ;;  %v18418_v50 = vld [vmem:[#allocation63_spill] sm:$0xff] }
 0x1a2   :  { %1492 = vperm.xlu0 %11071, %v834_v21   ;;  %v838_v20 = vmul.f32 %v18418_v50, %v11609_v59 }
 0x1a4   :  { %v11874_v48 = vpop.permute.xlu1 %1345 }
 0x1a5   :  { %18417 = vst [vmem:[#allocation96_spill] sm:$0xff] %v11874_v48  ;;  %1531 = vperm.xlu1 %11070, %v847_v52   ;;  %v11876_v44 = vpop.permute.xlu0 %628  ;;  %v18420_v52 = vld [vmem:[#allocation65_spill] sm:$0xff] }
 0x1a6   :  { %1498 = vperm.xlu0 %11071, %v836_v2   ;;  %v840_v48 = vmul.f32 %v18420_v52, %v11609_v59  ;;  %v853_v2 = vmul.f32 %v11680_v23, %v11609_v59  ;;  %v18424_v52 = vld [vmem:[#allocation69_spill] sm:$0xff]  ;;  %v857_v23 = vmul.f32 %v11696_v60, %v11609_v59 }
 0x1a8   :  { %v11882_v61 = vpop.permute.xlu1 %1351 }
 0x1a9   :  { %18419 = vst [vmem:[#allocation97_spill] sm:$0xff] %v11882_v61  ;;  %1537 = vperm.xlu1 %11070, %v849_v56   ;;  %v11884_v21 = vpop.permute.xlu0 %636  ;;  %v18422_v56 = vld [vmem:[#allocation67_spill] sm:$0xff] }
 0x1aa   :  { %1504 = vperm.xlu0 %11071, %v838_v20   ;;  %v842_v61 = vmul.f32 %v18422_v56, %v11609_v59  ;;  %v855_v20 = vmul.f32 %v11688_v5, %v11609_v59  ;;  %v18426_v56 = vld [vmem:[#allocation70_spill] sm:$0xff] }
 0x1ac   :  { %v11890_v17 = vpop.permute.xlu1 %1357 }
 0x1ad   :  { %18421 = vst [vmem:[#allocation98_spill] sm:$0xff] %v11890_v17  ;;  %1543 = vperm.xlu1 %11070, %v851_v8   ;;  %v11894_v50 = vpop.permute.xlu0 %644  ;;  %v844_v17 = vmul.f32 %v18424_v52, %v11609_v59  ;;  %v859_v52 = vmul.f32 %v11704_v25, %v11609_v59 }
 0x1ae   :  { %1510 = vperm.xlu0 %11071, %v840_v48  }
 0x1b0   :  { %v11898_v63 = vpop.permute.xlu1 %1363 }
 0x1b1   :  { %18423 = vst [vmem:[#allocation99_spill] sm:$0xff] %v11898_v63  ;;  %1549 = vperm.xlu1 %11070, %v853_v2   ;;  %v11906_v48 = vpop.permute.xlu0 %652  ;;  %v846_v63 = vmul.f32 %v18426_v56, %v11609_v59  ;;  %v861_v56 = vmul.f32 %v11712_v27, %v11609_v59 }
 0x1b2   :  { %1516 = vperm.xlu0 %11071, %v842_v61  }
 0x1b4   :  { %v11904_v8 = vpop.permute.xlu1 %1369 }
 0x1b5   :  { %18425 = vst [vmem:[#allocation100_spill] sm:$0xff] %v11904_v8  ;;  %1555 = vperm.xlu1 %11070, %v855_v20   ;;  %v18429_v8 = vld [vmem:[#allocation73_spill] sm:$0xff] }
 0x1b6   :  { %1522 = vperm.xlu0 %11071, %v844_v17   ;;  %v848_v5 = vmul.f32 %v18429_v8, %v11609_v59  ;;  %v863_v8 = vmul.f32 %v11720_v29, %v11609_v59 }
 0x1b8   :  { %v11912_v2 = vpop.permute.xlu1 %1375 }
 0x1b9   :  { %18427 = vst [vmem:[#allocation101_spill] sm:$0xff] %v11912_v2  ;;  %1561 = vperm.xlu1 %11070, %v857_v23   ;;  %v11914_v61 = vpop.permute.xlu0 %1339  ;;  %v18432_v23 = vld [vmem:[#allocation75_spill] sm:$0xff] }
 0x1ba   :  { %18428 = vst [vmem:[#allocation102_spill] sm:$0xff] %v11914_v61  ;;  %1528 = vperm.xlu0 %11071, %v846_v63   ;;  %v850_v2 = vmul.f32 %v18432_v23, %v11609_v59  ;;  %v865_v23 = vmul.f32 %v11728_v31, %v11609_v59 }
 0x1bc   :  { %v11920_v20 = vpop.permute.xlu1 %1381 }
 0x1bd   :  { %18430 = vst [vmem:[#allocation103_spill] sm:$0xff] %v11920_v20  ;;  %1567 = vperm.xlu1 %11070, %v859_v52   ;;  %v11922_v17 = vpop.permute.xlu0 %1348  ;;  %v18435_v52 = vld [vmem:[#allocation76_spill] sm:$0xff] }
 0x1be   :  { %18431 = vst [vmem:[#allocation104_spill] sm:$0xff] %v11922_v17  ;;  %1534 = vperm.xlu0 %11071, %v848_v5   ;;  %v852_v20 = vmul.f32 %v18435_v52, %v11609_v59  ;;  %v867_v52 = vmul.f32 %v11736_v33, %v11609_v59 }
 0x1c0   :  { %v11928_v61 = vpop.permute.xlu1 %1387 }
 0x1c1   :  { %18433 = vst [vmem:[#allocation105_spill] sm:$0xff] %v11928_v61  ;;  %1573 = vperm.xlu1 %11070, %v861_v56   ;;  %v11930_v63 = vpop.permute.xlu0 %1354  ;;  %v18438_v56 = vld [vmem:[#allocation78_spill] sm:$0xff] }
 0x1c2   :  { %18434 = vst [vmem:[#allocation106_spill] sm:$0xff] %v11930_v63  ;;  %1540 = vperm.xlu0 %11071, %v850_v2   ;;  %v854_v61 = vmul.f32 %v18438_v56, %v11609_v59  ;;  %v869_v56 = vmul.f32 %v11744_v35, %v11609_v59 }
 0x1c4   :  { %v11936_v17 = vpop.permute.xlu1 %1393 }
 0x1c5   :  { %18436 = vst [vmem:[#allocation107_spill] sm:$0xff] %v11936_v17  ;;  %1579 = vperm.xlu1 %11070, %v863_v8   ;;  %v11938_v5 = vpop.permute.xlu0 %1360  ;;  %v18441_v8 = vld [vmem:[#allocation80_spill] sm:$0xff] }
 0x1c6   :  { %18437 = vst [vmem:[#allocation108_spill] sm:$0xff] %v11938_v5  ;;  %1546 = vperm.xlu0 %11071, %v852_v20   ;;  %v856_v17 = vmul.f32 %v18441_v8, %v11609_v59  ;;  %v871_v8 = vmul.f32 %v11752_v38, %v11609_v59 }
 0x1c8   :  { %v11944_v63 = vpop.permute.xlu1 %1399 }
 0x1c9   :  { %18439 = vst [vmem:[#allocation109_spill] sm:$0xff] %v11944_v63  ;;  %1585 = vperm.xlu1 %11070, %v865_v23   ;;  %v11946_v2 = vpop.permute.xlu0 %1366  ;;  %v18444_v23 = vld [vmem:[#allocation82_spill] sm:$0xff] }
 0x1ca   :  { %18440 = vst [vmem:[#allocation110_spill] sm:$0xff] %v11946_v2  ;;  %1552 = vperm.xlu0 %11071, %v854_v61   ;;  %v858_v63 = vmul.f32 %v18444_v23, %v11609_v59  ;;  %v873_v23 = vmul.f32 %v11760_v41, %v11609_v59 }
 0x1cc   :  { %v11952_v5 = vpop.permute.xlu1 %1405 }
 0x1cd   :  { %18442 = vst [vmem:[#allocation111_spill] sm:$0xff] %v11952_v5  ;;  %1591 = vperm.xlu1 %11070, %v867_v52   ;;  %v11954_v20 = vpop.permute.xlu0 %1372  ;;  %v18447_v52 = vld [vmem:[#allocation83_spill] sm:$0xff] }
 0x1ce   :  { %18443 = vst [vmem:[#allocation112_spill] sm:$0xff] %v11954_v20  ;;  %1558 = vperm.xlu0 %11071, %v856_v17   ;;  %v860_v5 = vmul.f32 %v18447_v52, %v11609_v59  ;;  %v875_v52 = vmul.f32 %v11768_v43, %v11609_v59 }
 0x1d0   :  { %v11960_v2 = vpop.permute.xlu1 %1411 }
 0x1d1   :  { %18445 = vst [vmem:[#allocation113_spill] sm:$0xff] %v11960_v2  ;;  %1597 = vperm.xlu1 %11070, %v869_v56   ;;  %v11962_v61 = vpop.permute.xlu0 %1378  ;;  %v18450_v56 = vld [vmem:[#allocation85_spill] sm:$0xff] }
 0x1d2   :  { %18446 = vst [vmem:[#allocation114_spill] sm:$0xff] %v11962_v61  ;;  %1564 = vperm.xlu0 %11071, %v858_v63   ;;  %v862_v2 = vmul.f32 %v18450_v56, %v11609_v59  ;;  %v877_v56 = vmul.f32 %v11776_v45, %v11609_v59 }
 0x1d4   :  { %v11968_v20 = vpop.permute.xlu1 %1417 }
 0x1d5   :  { %18448 = vst [vmem:[#allocation115_spill] sm:$0xff] %v11968_v20  ;;  %1603 = vperm.xlu1 %11070, %v871_v8   ;;  %v11970_v17 = vpop.permute.xlu0 %1384  ;;  %v18453_v8 = vld [vmem:[#allocation87_spill] sm:$0xff] }
 0x1d6   :  { %18449 = vst [vmem:[#allocation116_spill] sm:$0xff] %v11970_v17  ;;  %1570 = vperm.xlu0 %11071, %v860_v5   ;;  %v864_v20 = vmul.f32 %v18453_v8, %v11609_v59 }
 0x1d8   :  { %v11976_v61 = vpop.permute.xlu1 %1423 }
 0x1d9   :  { %18451 = vst [vmem:[#allocation117_spill] sm:$0xff] %v11976_v61  ;;  %1609 = vperm.xlu1 %11070, %v873_v23   ;;  %v11978_v63 = vpop.permute.xlu0 %1390  ;;  %v866_v23 = vmul.f32 %v11668_v55, %v11609_v59 }
 0x1da   :  { %18452 = vst [vmem:[#allocation118_spill] sm:$0xff] %v11978_v63  ;;  %1576 = vperm.xlu0 %11071, %v862_v2   ;;  %v879_v63 = vmul.f32 %v11784_v47, %v11609_v59 }
 0x1dc   :  { %v11984_v17 = vpop.permute.xlu1 %1429 }
 0x1dd   :  { %18454 = vst [vmem:[#allocation87_spill] sm:$0xff] %v11984_v17  ;;  %1615 = vperm.xlu1 %11070, %v875_v52   ;;  %v11986_v5 = vpop.permute.xlu0 %1396  ;;  %v868_v52 = vmul.f32 %v11676_v9, %v11609_v59 }
 0x1de   :  { %18455 = vst [vmem:[#allocation119_spill] sm:$0xff] %v11986_v5  ;;  %1582 = vperm.xlu0 %11071, %v864_v20   ;;  %v881_v5 = vmul.f32 %v11792_v49, %v11609_v59 }
 0x1e0   :  { %v11992_v61 = vpop.permute.xlu1 %1435 }
 0x1e1   :  { %18456 = vst [vmem:[#allocation120_spill] sm:$0xff] %v11992_v61  ;;  %1621 = vperm.xlu1 %11070, %v877_v56   ;;  %v11994_v2 = vpop.permute.xlu0 %1402  ;;  %v870_v56 = vmul.f32 %v11684_v62, %v11609_v59 }
 0x1e2   :  { %18457 = vst [vmem:[#allocation121_spill] sm:$0xff] %v11994_v2  ;;  %1588 = vperm.xlu0 %11071, %v866_v23   ;;  %v883_v2 = vmul.f32 %v11800_v51, %v11609_v59 }
 0x1e4   :  { %v12000_v17 = vpop.permute.xlu1 %1441 }
 0x1e5   :  { %18458 = vst [vmem:[#allocation122_spill] sm:$0xff] %v12000_v17  ;;  %1627 = vperm.xlu1 %11070, %v879_v63   ;;  %v12002_v20 = vpop.permute.xlu0 %1408  ;;  %v872_v63 = vmul.f32 %v11692_v4, %v11609_v59 }
 0x1e6   :  { %18459 = vst [vmem:[#allocation123_spill] sm:$0xff] %v12002_v20  ;;  %1594 = vperm.xlu0 %11071, %v868_v52   ;;  %v885_v20 = vmul.f32 %v11808_v53, %v11609_v59 }
 0x1e8   :  { %v12008_v61 = vpop.permute.xlu1 %1447 }
 0x1e9   :  { %18460 = vst [vmem:[#allocation124_spill] sm:$0xff] %v12008_v61  ;;  %1633 = vperm.xlu1 %11070, %v881_v5   ;;  %v12010_v23 = vpop.permute.xlu0 %1414  ;;  %v874_v5 = vmul.f32 %v11700_v7, %v11609_v59 }
 0x1ea   :  { %18461 = vst [vmem:[#allocation125_spill] sm:$0xff] %v12010_v23  ;;  %1600 = vperm.xlu0 %11071, %v870_v56   ;;  %v887_v23 = vmul.f32 %v11814_v58, %v11609_v59 }
 0x1ec   :  { %v12016_v17 = vpop.permute.xlu1 %1453 }
 0x1ed   :  { %18462 = vst [vmem:[#allocation126_spill] sm:$0xff] %v12016_v17  ;;  %1639 = vperm.xlu1 %11070, %v883_v2   ;;  %v12018_v52 = vpop.permute.xlu0 %1420  ;;  %v876_v2 = vmul.f32 %v11708_v11, %v11609_v59 }
 0x1ee   :  { %18463 = vst [vmem:[#allocation127_spill] sm:$0xff] %v12018_v52  ;;  %1606 = vperm.xlu0 %11071, %v872_v63   ;;  %v889_v52 = vmul.f32 %v11822_v10, %v11609_v59 }
 0x1f0   :  { %v12024_v61 = vpop.permute.xlu1 %1459 }
 0x1f1   :  { %18464 = vst [vmem:[#allocation128_spill] sm:$0xff] %v12024_v61  ;;  %1645 = vperm.xlu1 %11070, %v885_v20   ;;  %v12026_v56 = vpop.permute.xlu0 %1426  ;;  %v878_v20 = vmul.f32 %v11716_v12, %v11609_v59  ;;  %v891_v61 = vmul.f32 %v11830_v0, %v11609_v59 }
 0x1f2   :  { %18465 = vst [vmem:[#allocation129_spill] sm:$0xff] %v12026_v56  ;;  %1612 = vperm.xlu0 %11071, %v874_v5  }
 0x1f4   :  { %v12032_v17 = vpop.permute.xlu1 %1465 }
 0x1f5   :  { %18466 = vst [vmem:[#allocation130_spill] sm:$0xff] %v12032_v17  ;;  %1651 = vperm.xlu1 %11070, %v887_v23   ;;  %v12034_v63 = vpop.permute.xlu0 %1432  ;;  %v880_v23 = vmul.f32 %v11724_v13, %v11609_v59 }
 0x1f6   :  { %18467 = vst [vmem:[#allocation131_spill] sm:$0xff] %v12034_v63  ;;  %1618 = vperm.xlu0 %11071, %v876_v2   ;;  %v893_v63 = vmul.f32 %v11836_v1, %v11609_v59 }
 0x1f8   :  { %v12040_v56 = vpop.permute.xlu1 %1471 }
 0x1f9   :  { %18468 = vst [vmem:[#allocation132_spill] sm:$0xff] %v12040_v56  ;;  %1657 = vperm.xlu1 %11070, %v889_v52   ;;  %v12042_v5 = vpop.permute.xlu0 %1438  ;;  %v882_v52 = vmul.f32 %v11732_v14, %v11609_v59 }
 0x1fa   :  { %18469 = vst [vmem:[#allocation133_spill] sm:$0xff] %v12042_v5  ;;  %1624 = vperm.xlu0 %11071, %v878_v20   ;;  %v895_v5 = vmul.f32 %v11844_v36, %v11609_v59 }
 0x1fc   :  { %v12048_v17 = vpop.permute.xlu1 %1477 }
 0x1fd   :  { %18470 = vst [vmem:[#allocation134_spill] sm:$0xff] %v12048_v17  ;;  %1663 = vperm.xlu1 %11070, %v891_v61   ;;  %v12050_v2 = vpop.permute.xlu0 %1444  ;;  %v884_v61 = vmul.f32 %v11740_v15, %v11609_v59 }
 0x1fe   :  { %18471 = vst [vmem:[#allocation135_spill] sm:$0xff] %v12050_v2  ;;  %1630 = vperm.xlu0 %11071, %v880_v23   ;;  %v897_v2 = vmul.f32 %v11852_v37, %v11609_v59 }
 0x200   :  { %v12056_v56 = vpop.permute.xlu1 %1483 }
 0x201   :  { %18472 = vst [vmem:[#allocation136_spill] sm:$0xff] %v12056_v56  ;;  %1669 = vperm.xlu1 %11070, %v893_v63   ;;  %v12058_v20 = vpop.permute.xlu0 %1450  ;;  %v886_v63 = vmul.f32 %v11748_v16, %v11609_v59  ;;  %v899_v56 = vmul.f32 %v11860_v57, %v11609_v59 }
 0x202   :  { %18473 = vst [vmem:[#allocation137_spill] sm:$0xff] %v12058_v20  ;;  %1636 = vperm.xlu0 %11071, %v882_v52  }
 0x204   :  { %v12064_v17 = vpop.permute.xlu1 %1489 }
 0x205   :  { %18474 = vst [vmem:[#allocation138_spill] sm:$0xff] %v12064_v17  ;;  %1675 = vperm.xlu1 %11070, %v895_v5   ;;  %v12066_v23 = vpop.permute.xlu0 %1456  ;;  %v888_v5 = vmul.f32 %v11756_v19, %v11609_v59  ;;  %v901_v17 = vmul.f32 %v11868_v18, %v11609_v59 }
 0x206   :  { %18475 = vst [vmem:[#allocation139_spill] sm:$0xff] %v12066_v23  ;;  %1642 = vperm.xlu0 %11071, %v884_v61  }
 0x208   :  { %v12072_v20 = vpop.permute.xlu1 %1495 }
 0x209   :  { %18476 = vst [vmem:[#allocation140_spill] sm:$0xff] %v12072_v20  ;;  %1681 = vperm.xlu1 %11070, %v897_v2   ;;  %v12074_v52 = vpop.permute.xlu0 %1462  ;;  %v890_v2 = vmul.f32 %v11764_v22, %v11609_v59  ;;  %v903_v20 = vmul.f32 %v11876_v44, %v11609_v59 }
 0x20a   :  { %18477 = vst [vmem:[#allocation141_spill] sm:$0xff] %v12074_v52  ;;  %1648 = vperm.xlu0 %11071, %v886_v63  }
 0x20c   :  { %v12080_v23 = vpop.permute.xlu1 %1501 }
 0x20d   :  { %18478 = vst [vmem:[#allocation142_spill] sm:$0xff] %v12080_v23  ;;  %1687 = vperm.xlu1 %11070, %v899_v56   ;;  %v12082_v61 = vpop.permute.xlu0 %1468  ;;  %v892_v56 = vmul.f32 %v11772_v24, %v11609_v59  ;;  %v905_v23 = vmul.f32 %v11884_v21, %v11609_v59 }
 0x20e   :  { %18479 = vst [vmem:[#allocation143_spill] sm:$0xff] %v12082_v61  ;;  %1654 = vperm.xlu0 %11071, %v888_v5  }
 0x210   :  { %v12088_v52 = vpop.permute.xlu1 %1507 }
 0x211   :  { %18480 = vst [vmem:[#allocation144_spill] sm:$0xff] %v12088_v52  ;;  %1693 = vperm.xlu1 %11070, %v901_v17   ;;  %v12090_v63 = vpop.permute.xlu0 %1474  ;;  %v894_v17 = vmul.f32 %v11780_v26, %v11609_v59  ;;  %v18486_v52 = vld [vmem:[#allocation28_spill] sm:$0xff] }
 0x212   :  { %18481 = vst [vmem:[#allocation145_spill] sm:$0xff] %v12090_v63  ;;  %1660 = vperm.xlu0 %11071, %v890_v2   ;;  %v12109_v24 = vmul.f32 0.0009765625, %v18486_v52  ;;  %v909_v52 = vmul.f32 %v11906_v48, %v11609_v59 }
 0x214   :  { %v12096_v61 = vpop.permute.xlu1 %1513  ;;  %18487 = vst [vmem:[#allocation28_spill] sm:$0xff] %v12109_v24 }
 0x215   :  { %18482 = vst [vmem:[#allocation146_spill] sm:$0xff] %v12096_v61  ;;  %1699 = vperm.xlu1 %11070, %v903_v20   ;;  %v12098_v5 = vpop.permute.xlu0 %1480  ;;  %v907_v20 = vmul.f32 %v11894_v50, %v11609_v59 }
 0x216   :  { %18483 = vst [vmem:[#allocation147_spill] sm:$0xff] %v12098_v5  ;;  %1666 = vperm.xlu0 %11071, %v892_v56   ;;  %v896_v56 = vmul.f32 %v11788_v28, %v11609_v59 }
 0x218   :  { %v12104_v63 = vpop.permute.xlu1 %1519 }
 0x219   :  { %18484 = vst [vmem:[#allocation148_spill] sm:$0xff] %v12104_v63  ;;  %1705 = vperm.xlu1 %11070, %v905_v23   ;;  %v12106_v2 = vpop.permute.xlu0 %1486  ;;  %v18490_v63 = vld [vmem:[#allocation6_spill] sm:$0xff] }
 0x21a   :  { %18485 = vst [vmem:[#allocation149_spill] sm:$0xff] %v12106_v2  ;;  %1672 = vperm.xlu0 %11071, %v894_v17   ;;  %v12121_v23 = vrot.slane %v12109_v24, %v18490_v63  ;;  %v898_v17 = vmul.f32 %v11796_v30, %v11609_v59  ;;  %v18496_v63 = vld [vmem:[#allocation12_spill] sm:$0xff] }
 0x21c   :  { %v12115_v61 = vpop.permute.xlu1 %1525  ;;  %v913_v30 = vmul.f32 %v18496_v63, %v12121_v23  ;;  %v18502_v63 = vld [vmem:[#allocation17_spill] sm:$0xff] }
 0x21d   :  { %18488 = vst [vmem:[#allocation150_spill] sm:$0xff] %v12115_v61  ;;  %1711 = vperm.xlu1 %11070, %v907_v20   ;;  %v12117_v5 = vpop.permute.xlu0 %1492  ;;  %v18493_v20 = vld [vmem:[#allocation11_spill] sm:$0xff] }
 0x21e   :  { %18489 = vst [vmem:[#allocation151_spill] sm:$0xff] %v12117_v5  ;;  %1678 = vperm.xlu0 %11071, %v896_v56   ;;  %v911_v61 = vmul.f32 %v18493_v20, %v12121_v23  ;;  %v900_v56 = vmul.f32 %v11806_v32, %v11609_v59  ;;  %v18499_v20 = vld [vmem:[#allocation14_spill] sm:$0xff] }
 0x220   :  { %v12127_v2 = vpop.permute.xlu1 %1531 }
 0x221   :  { %18491 = vst [vmem:[#allocation152_spill] sm:$0xff] %v12127_v2  ;;  %1717 = vperm.xlu1 %11070, %v909_v52   ;;  %v12129_v28 = vpop.permute.xlu0 %1498  ;;  %v902_v52 = vmul.f32 %v11816_v34, %v11609_v59 }
 0x222   :  { %18492 = vst [vmem:[#allocation153_spill] sm:$0xff] %v12129_v28  ;;  %1684 = vperm.xlu0 %11071, %v898_v17   ;;  %v915_v28 = vmul.f32 %v18499_v20, %v12121_v23  ;;  %v18505_v20 = vld [vmem:[#allocation30_spill] sm:$0xff] }
 0x224   :  { %v12135_v5 = vpop.permute.xlu1 %1537 }
 0x225   :  { %18494 = vst [vmem:[#allocation11_spill] sm:$0xff] %v12135_v5  ;;  %1723 = vperm.xlu1 %11070, %v911_v61   ;;  %v12137_v24 = vpop.permute.xlu0 %1504  ;;  %v904_v61 = vmul.f32 %v11828_v40, %v11609_v59 }
 0x226   :  { %18495 = vst [vmem:[#allocation154_spill] sm:$0xff] %v12137_v24  ;;  %1690 = vperm.xlu0 %11071, %v900_v56   ;;  %v917_v24 = vmul.f32 %v18502_v63, %v12121_v23  ;;  %v18508_v63 = vld [vmem:[#allocation32_spill] sm:$0xff] }
 0x228   :  { %v12143_v2 = vpop.permute.xlu1 %1543 }
 0x229   :  { %18497 = vst [vmem:[#allocation12_spill] sm:$0xff] %v12143_v2  ;;  %1729 = vperm.xlu1 %11070, %v913_v30   ;;  %v12145_v17 = vpop.permute.xlu0 %1510  ;;  %v906_v30 = vmul.f32 %v11838_v42, %v11609_v59 }
 0x22a   :  { %18498 = vst [vmem:[#allocation155_spill] sm:$0xff] %v12145_v17  ;;  %1696 = vperm.xlu0 %11071, %v902_v52   ;;  %v919_v17 = vmul.f32 %v18505_v20, %v12121_v23 }
 0x22c   :  { %v12151_v5 = vpop.permute.xlu1 %1549 }
 0x22d   :  { %18500 = vst [vmem:[#allocation14_spill] sm:$0xff] %v12151_v5  ;;  %1735 = vperm.xlu1 %11070, %v915_v28   ;;  %v12153_v56 = vpop.permute.xlu0 %1516  ;;  %v908_v28 = vmul.f32 %v11850_v46, %v11609_v59  ;;  %v18512_v59 = vld [vmem:[#allocation34_spill] sm:$0xff] }
 0x22e   :  { %18501 = vst [vmem:[#allocation156_spill] sm:$0xff] %v12153_v56  ;;  %1702 = vperm.xlu0 %11071, %v904_v61   ;;  %v921_v56 = vmul.f32 %v18508_v63, %v12121_v23  ;;  %v923_v20 = vmul.f32 %v18512_v59, %v12121_v23  ;;  %v18516_v63 = vld [vmem:[#allocation36_spill] sm:$0xff]  ;;  %v18520_v59 = vld [vmem:[#allocation38_spill] sm:$0xff] }
 0x230   :  { %v12159_v2 = vpop.permute.xlu1 %1555 }
 0x231   :  { %18503 = vst [vmem:[#allocation17_spill] sm:$0xff] %v12159_v2  ;;  %1741 = vperm.xlu1 %11070, %v917_v24   ;;  %v12161_v52 = vpop.permute.xlu0 %1522  ;;  %v18509_v24 = vld [vmem:[#allocation10_spill] sm:$0xff] }
 0x232   :  { %18504 = vst [vmem:[#allocation157_spill] sm:$0xff] %v12161_v52  ;;  %1708 = vperm.xlu0 %11071, %v906_v30   ;;  %v910_v2 = vmul.f32 %v18509_v24, %v12121_v23  ;;  %v925_v24 = vmul.f32 %v18516_v63, %v12121_v23  ;;  %v18524_v63 = vld [vmem:[#allocation40_spill] sm:$0xff] }
 0x234   :  { %v12167_v5 = vpop.permute.xlu1 %1561 }
 0x235   :  { %18506 = vst [vmem:[#allocation30_spill] sm:$0xff] %v12167_v5  ;;  %1747 = vperm.xlu1 %11070, %v919_v17   ;;  %v12169_v61 = vpop.permute.xlu0 %1528  ;;  %v18513_v17 = vld [vmem:[#allocation24_spill] sm:$0xff] }
 0x236   :  { %18507 = vst [vmem:[#allocation158_spill] sm:$0xff] %v12169_v61  ;;  %1714 = vperm.xlu0 %11071, %v908_v28   ;;  %v912_v5 = vmul.f32 %v18513_v17, %v12121_v23  ;;  %v927_v17 = vmul.f32 %v18520_v59, %v12121_v23  ;;  %v18528_v59 = vld [vmem:[#allocation43_spill] sm:$0xff] }
 0x238   :  { %v12175_v52 = vpop.permute.xlu1 %1567 }
 0x239   :  { %18510 = vst [vmem:[#allocation32_spill] sm:$0xff] %v12175_v52  ;;  %1753 = vperm.xlu1 %11070, %v921_v56   ;;  %v12177_v30 = vpop.permute.xlu0 %1534  ;;  %v18517_v56 = vld [vmem:[#allocation13_spill] sm:$0xff] }
 0x23a   :  { %18511 = vst [vmem:[#allocation10_spill] sm:$0xff] %v12177_v30  ;;  %1720 = vperm.xlu0 %11071, %v910_v2   ;;  %v914_v52 = vmul.f32 %v18517_v56, %v12121_v23  ;;  %v929_v56 = vmul.f32 %v18524_v63, %v12121_v23  ;;  %v18532_v63 = vld [vmem:[#allocation45_spill] sm:$0xff] }
 0x23c   :  { %v12183_v61 = vpop.permute.xlu1 %1573 }
 0x23d   :  { %18514 = vst [vmem:[#allocation34_spill] sm:$0xff] %v12183_v61  ;;  %1759 = vperm.xlu1 %11070, %v923_v20   ;;  %v12185_v28 = vpop.permute.xlu0 %1540  ;;  %v18521_v20 = vld [vmem:[#allocation16_spill] sm:$0xff] }
 0x23e   :  { %18515 = vst [vmem:[#allocation24_spill] sm:$0xff] %v12185_v28  ;;  %1726 = vperm.xlu0 %11071, %v912_v5   ;;  %v916_v61 = vmul.f32 %v18521_v20, %v12121_v23  ;;  %v931_v20 = vmul.f32 %v18528_v59, %v12121_v23  ;;  %v18536_v59 = vld [vmem:[#allocation47_spill] sm:$0xff] }
 0x240   :  { %v12191_v30 = vpop.permute.xlu1 %1579 }
 0x241   :  { %18518 = vst [vmem:[#allocation36_spill] sm:$0xff] %v12191_v30  ;;  %1765 = vperm.xlu1 %11070, %v925_v24   ;;  %v12193_v2 = vpop.permute.xlu0 %1546  ;;  %v18525_v24 = vld [vmem:[#allocation18_spill] sm:$0xff] }
 0x242   :  { %18519 = vst [vmem:[#allocation13_spill] sm:$0xff] %v12193_v2  ;;  %1732 = vperm.xlu0 %11071, %v914_v52   ;;  %v918_v30 = vmul.f32 %v18525_v24, %v12121_v23  ;;  %v933_v24 = vmul.f32 %v18532_v63, %v12121_v23  ;;  %v18540_v63 = vld [vmem:[#allocation49_spill] sm:$0xff] }
 0x244   :  { %v12199_v28 = vpop.permute.xlu1 %1585 }
 0x245   :  { %18522 = vst [vmem:[#allocation38_spill] sm:$0xff] %v12199_v28  ;;  %1771 = vperm.xlu1 %11070, %v927_v17   ;;  %v12201_v5 = vpop.permute.xlu0 %1552  ;;  %v18529_v17 = vld [vmem:[#allocation19_spill] sm:$0xff] }
 0x246   :  { %18523 = vst [vmem:[#allocation16_spill] sm:$0xff] %v12201_v5  ;;  %1738 = vperm.xlu0 %11071, %v916_v61   ;;  %v920_v28 = vmul.f32 %v18529_v17, %v12121_v23  ;;  %v935_v17 = vmul.f32 %v18536_v59, %v12121_v23  ;;  %v18544_v59 = vld [vmem:[#allocation51_spill] sm:$0xff] }
 0x248   :  { %v12207_v2 = vpop.permute.xlu1 %1591 }
 0x249   :  { %18526 = vst [vmem:[#allocation40_spill] sm:$0xff] %v12207_v2  ;;  %1777 = vperm.xlu1 %11070, %v929_v56   ;;  %v12209_v52 = vpop.permute.xlu0 %1558  ;;  %v18533_v56 = vld [vmem:[#allocation20_spill] sm:$0xff] }
 0x24a   :  { %18527 = vst [vmem:[#allocation18_spill] sm:$0xff] %v12209_v52  ;;  %1744 = vperm.xlu0 %11071, %v918_v30   ;;  %v922_v2 = vmul.f32 %v18533_v56, %v12121_v23  ;;  %v937_v56 = vmul.f32 %v18540_v63, %v12121_v23  ;;  %v18548_v63 = vld [vmem:[#allocation53_spill] sm:$0xff] }
 0x24c   :  { %v12215_v5 = vpop.permute.xlu1 %1597 }
 0x24d   :  { %18530 = vst [vmem:[#allocation43_spill] sm:$0xff] %v12215_v5  ;;  %1783 = vperm.xlu1 %11070, %v931_v20   ;;  %v12217_v61 = vpop.permute.xlu0 %1564  ;;  %v18537_v20 = vld [vmem:[#allocation21_spill] sm:$0xff] }
 0x24e   :  { %18531 = vst [vmem:[#allocation19_spill] sm:$0xff] %v12217_v61  ;;  %1750 = vperm.xlu0 %11071, %v920_v28   ;;  %v924_v5 = vmul.f32 %v18537_v20, %v12121_v23  ;;  %v939_v20 = vmul.f32 %v18544_v59, %v12121_v23  ;;  %v18552_v59 = vld [vmem:[#allocation55_spill] sm:$0xff] }
 0x250   :  { %v12223_v52 = vpop.permute.xlu1 %1603 }
 0x251   :  { %18534 = vst [vmem:[#allocation45_spill] sm:$0xff] %v12223_v52  ;;  %1789 = vperm.xlu1 %11070, %v933_v24   ;;  %v12225_v30 = vpop.permute.xlu0 %1570  ;;  %v18541_v24 = vld [vmem:[#allocation22_spill] sm:$0xff] }
 0x252   :  { %18535 = vst [vmem:[#allocation20_spill] sm:$0xff] %v12225_v30  ;;  %1756 = vperm.xlu0 %11071, %v922_v2   ;;  %v926_v52 = vmul.f32 %v18541_v24, %v12121_v23  ;;  %v941_v24 = vmul.f32 %v18548_v63, %v12121_v23  ;;  %v18556_v63 = vld [vmem:[#allocation57_spill] sm:$0xff] }
 0x254   :  { %v12231_v61 = vpop.permute.xlu1 %1609 }
 0x255   :  { %18538 = vst [vmem:[#allocation47_spill] sm:$0xff] %v12231_v61  ;;  %1795 = vperm.xlu1 %11070, %v935_v17   ;;  %v12233_v28 = vpop.permute.xlu0 %1576  ;;  %v18545_v17 = vld [vmem:[#allocation23_spill] sm:$0xff] }
 0x256   :  { %18539 = vst [vmem:[#allocation21_spill] sm:$0xff] %v12233_v28  ;;  %1762 = vperm.xlu0 %11071, %v924_v5   ;;  %v928_v61 = vmul.f32 %v18545_v17, %v12121_v23  ;;  %v943_v17 = vmul.f32 %v18552_v59, %v12121_v23  ;;  %v18560_v59 = vld [vmem:[#allocation60_spill] sm:$0xff] }
 0x258   :  { %v12239_v30 = vpop.permute.xlu1 %1615 }
 0x259   :  { %18542 = vst [vmem:[#allocation49_spill] sm:$0xff] %v12239_v30  ;;  %1801 = vperm.xlu1 %11070, %v937_v56   ;;  %v12241_v2 = vpop.permute.xlu0 %1582  ;;  %v18549_v56 = vld [vmem:[#allocation26_spill] sm:$0xff] }
 0x25a   :  { %18543 = vst [vmem:[#allocation22_spill] sm:$0xff] %v12241_v2  ;;  %1768 = vperm.xlu0 %11071, %v926_v52   ;;  %v930_v30 = vmul.f32 %v18549_v56, %v12121_v23  ;;  %v945_v56 = vmul.f32 %v18556_v63, %v12121_v23  ;;  %v18564_v63 = vld [vmem:[#allocation62_spill] sm:$0xff] }
 0x25c   :  { %v12247_v28 = vpop.permute.xlu1 %1621 }
 0x25d   :  { %18546 = vst [vmem:[#allocation51_spill] sm:$0xff] %v12247_v28  ;;  %1807 = vperm.xlu1 %11070, %v939_v20   ;;  %v12249_v5 = vpop.permute.xlu0 %1588  ;;  %v18553_v20 = vld [vmem:[#allocation27_spill] sm:$0xff] }
 0x25e   :  { %18547 = vst [vmem:[#allocation23_spill] sm:$0xff] %v12249_v5  ;;  %1774 = vperm.xlu0 %11071, %v928_v61   ;;  %v932_v28 = vmul.f32 %v18553_v20, %v12121_v23  ;;  %v947_v20 = vmul.f32 %v18560_v59, %v12121_v23  ;;  %v18568_v59 = vld [vmem:[#allocation64_spill] sm:$0xff] }
 0x260   :  { %v12255_v2 = vpop.permute.xlu1 %1627 }
 0x261   :  { %18550 = vst [vmem:[#allocation53_spill] sm:$0xff] %v12255_v2  ;;  %1813 = vperm.xlu1 %11070, %v941_v24   ;;  %v12257_v52 = vpop.permute.xlu0 %1594  ;;  %v18557_v24 = vld [vmem:[#allocation29_spill] sm:$0xff] }
 0x262   :  { %18551 = vst [vmem:[#allocation26_spill] sm:$0xff] %v12257_v52  ;;  %1780 = vperm.xlu0 %11071, %v930_v30   ;;  %v934_v2 = vmul.f32 %v18557_v24, %v12121_v23  ;;  %v949_v24 = vmul.f32 %v18564_v63, %v12121_v23  ;;  %v18572_v63 = vld [vmem:[#allocation66_spill] sm:$0xff] }
 0x264   :  { %v12263_v5 = vpop.permute.xlu1 %1633 }
 0x265   :  { %18554 = vst [vmem:[#allocation55_spill] sm:$0xff] %v12263_v5  ;;  %1819 = vperm.xlu1 %11070, %v943_v17   ;;  %v12265_v61 = vpop.permute.xlu0 %1600  ;;  %v18561_v17 = vld [vmem:[#allocation31_spill] sm:$0xff] }
 0x266   :  { %18555 = vst [vmem:[#allocation27_spill] sm:$0xff] %v12265_v61  ;;  %1786 = vperm.xlu0 %11071, %v932_v28   ;;  %v936_v5 = vmul.f32 %v18561_v17, %v12121_v23  ;;  %v951_v17 = vmul.f32 %v18568_v59, %v12121_v23  ;;  %v18576_v59 = vld [vmem:[#allocation68_spill] sm:$0xff] }
 0x268   :  { %v12271_v52 = vpop.permute.xlu1 %1639 }
 0x269   :  { %18558 = vst [vmem:[#allocation57_spill] sm:$0xff] %v12271_v52  ;;  %1825 = vperm.xlu1 %11070, %v945_v56   ;;  %v12273_v30 = vpop.permute.xlu0 %1606  ;;  %v18565_v56 = vld [vmem:[#allocation33_spill] sm:$0xff] }
 0x26a   :  { %18559 = vst [vmem:[#allocation29_spill] sm:$0xff] %v12273_v30  ;;  %1792 = vperm.xlu0 %11071, %v934_v2   ;;  %v938_v52 = vmul.f32 %v18565_v56, %v12121_v23  ;;  %v953_v56 = vmul.f32 %v18572_v63, %v12121_v23  ;;  %v957_v63 = vmul.f32 %v11589_v6, %v12121_v23  ;;  %v18587_v6 = vld [vmem:[#allocation74_spill] sm:$0xff] }
 0x26c   :  { %v12279_v61 = vpop.permute.xlu1 %1645 }
 0x26d   :  { %18562 = vst [vmem:[#allocation60_spill] sm:$0xff] %v12279_v61  ;;  %1831 = vperm.xlu1 %11070, %v947_v20   ;;  %v12281_v28 = vpop.permute.xlu0 %1612  ;;  %v18569_v20 = vld [vmem:[#allocation35_spill] sm:$0xff] }
 0x26e   :  { %18563 = vst [vmem:[#allocation31_spill] sm:$0xff] %v12281_v28  ;;  %1798 = vperm.xlu0 %11071, %v936_v5   ;;  %v940_v61 = vmul.f32 %v18569_v20, %v12121_v23  ;;  %v955_v20 = vmul.f32 %v18576_v59, %v12121_v23  ;;  %v18583_v59 = vld [vmem:[#allocation71_spill] sm:$0xff] }
 0x270   :  { %v12287_v30 = vpop.permute.xlu1 %1651 }
 0x271   :  { %18566 = vst [vmem:[#allocation62_spill] sm:$0xff] %v12287_v30  ;;  %1837 = vperm.xlu1 %11070, %v949_v24   ;;  %v12289_v2 = vpop.permute.xlu0 %1618  ;;  %v18573_v24 = vld [vmem:[#allocation37_spill] sm:$0xff] }
 0x272   :  { %18567 = vst [vmem:[#allocation33_spill] sm:$0xff] %v12289_v2  ;;  %1804 = vperm.xlu0 %11071, %v938_v52   ;;  %v942_v30 = vmul.f32 %v18573_v24, %v12121_v23 }
 0x274   :  { %v12295_v28 = vpop.permute.xlu1 %1657 }
 0x275   :  { %18570 = vst [vmem:[#allocation64_spill] sm:$0xff] %v12295_v28  ;;  %1843 = vperm.xlu1 %11070, %v951_v17   ;;  %v12297_v5 = vpop.permute.xlu0 %1624  ;;  %v18577_v17 = vld [vmem:[#allocation39_spill] sm:$0xff] }
 0x276   :  { %18571 = vst [vmem:[#allocation35_spill] sm:$0xff] %v12297_v5  ;;  %1810 = vperm.xlu0 %11071, %v940_v61   ;;  %v944_v28 = vmul.f32 %v18577_v17, %v12121_v23  ;;  %v959_v17 = vmul.f32 %v18583_v59, %v12121_v23  ;;  %v963_v59 = vmul.f32 %v11614_v3, %v12121_v23  ;;  %v18598_v3 = vld [vmem:[#allocation79_spill] sm:$0xff] }
 0x278   :  { %v12303_v2 = vpop.permute.xlu1 %1663 }
 0x279   :  { %18574 = vst [vmem:[#allocation66_spill] sm:$0xff] %v12303_v2  ;;  %1849 = vperm.xlu1 %11070, %v953_v56   ;;  %v12305_v52 = vpop.permute.xlu0 %1630  ;;  %v18580_v56 = vld [vmem:[#allocation42_spill] sm:$0xff] }
 0x27a   :  { %18575 = vst [vmem:[#allocation37_spill] sm:$0xff] %v12305_v52  ;;  %1816 = vperm.xlu0 %11071, %v942_v30   ;;  %v946_v24 = vmul.f32 %v18580_v56, %v12121_v23  ;;  %v961_v56 = vmul.f32 %v18587_v6, %v12121_v23  ;;  %v18594_v6 = vld [vmem:[#allocation77_spill] sm:$0xff] }
 0x27c   :  { %v12311_v5 = vpop.permute.xlu1 %1669 }
 0x27d   :  { %18578 = vst [vmem:[#allocation68_spill] sm:$0xff] %v12311_v5  ;;  %1855 = vperm.xlu1 %11070, %v955_v20   ;;  %v12313_v61 = vpop.permute.xlu0 %1636  ;;  %v18584_v20 = vld [vmem:[#allocation44_spill] sm:$0xff] }
 0x27e   :  { %18579 = vst [vmem:[#allocation39_spill] sm:$0xff] %v12313_v61  ;;  %1822 = vperm.xlu0 %11071, %v944_v28   ;;  %v948_v5 = vmul.f32 %v18584_v20, %v12121_v23 }
 0x280   :  { %v12319_v2 = vpop.permute.xlu1 %1675 }
 0x281   :  { %18581 = vst [vmem:[#allocation42_spill] sm:$0xff] %v12319_v2  ;;  %1861 = vperm.xlu1 %11070, %v957_v63   ;;  %v12321_v30 = vpop.permute.xlu0 %1642  ;;  %v18588_v63 = vld [vmem:[#allocation46_spill] sm:$0xff] }
 0x282   :  { %18582 = vst [vmem:[#allocation159_spill] sm:$0xff] %v12321_v30  ;;  %1828 = vperm.xlu0 %11071, %v946_v24   ;;  %v950_v2 = vmul.f32 %v18588_v63, %v12121_v23  ;;  %v965_v63 = vmul.f32 %v18594_v6, %v12121_v23  ;;  %v18602_v6 = vld [vmem:[#allocation81_spill] sm:$0xff] }
 0x284   :  { %v12327_v61 = vpop.permute.xlu1 %1681 }
 0x285   :  { %18585 = vst [vmem:[#allocation71_spill] sm:$0xff] %v12327_v61  ;;  %1867 = vperm.xlu1 %11070, %v959_v17   ;;  %v12329_v28 = vpop.permute.xlu0 %1648  ;;  %v18591_v17 = vld [vmem:[#allocation48_spill] sm:$0xff] }
 0x286   :  { %18586 = vst [vmem:[#allocation44_spill] sm:$0xff] %v12329_v28  ;;  %1834 = vperm.xlu0 %11071, %v948_v5   ;;  %v952_v20 = vmul.f32 %v18591_v17, %v12121_v23  ;;  %v967_v17 = vmul.f32 %v18598_v3, %v12121_v23  ;;  %v971_v3 = vmul.f32 %v11642_v39, %v12121_v23  ;;  %v18613_v39 = vld [vmem:[#allocation86_spill] sm:$0xff] }
 0x288   :  { %v12335_v30 = vpop.permute.xlu1 %1687 }
 0x289   :  { %18589 = vst [vmem:[#allocation74_spill] sm:$0xff] %v12335_v30  ;;  %1873 = vperm.xlu1 %11070, %v961_v56   ;;  %v12337_v24 = vpop.permute.xlu0 %1654  ;;  %v18595_v56 = vld [vmem:[#allocation50_spill] sm:$0xff] }
 0x28a   :  { %18590 = vst [vmem:[#allocation46_spill] sm:$0xff] %v12337_v24  ;;  %1840 = vperm.xlu0 %11071, %v950_v2   ;;  %v954_v30 = vmul.f32 %v18595_v56, %v12121_v23  ;;  %v969_v56 = vmul.f32 %v18602_v6, %v12121_v23  ;;  %v18609_v6 = vld [vmem:[#allocation84_spill] sm:$0xff] }
 0x28c   :  { %v12343_v28 = vpop.permute.xlu1 %1693 }
 0x28d   :  { %18592 = vst [vmem:[#allocation48_spill] sm:$0xff] %v12343_v28  ;;  %1879 = vperm.xlu1 %11070, %v963_v59   ;;  %v12345_v5 = vpop.permute.xlu0 %1660  ;;  %v18599_v59 = vld [vmem:[#allocation52_spill] sm:$0xff] }
 0x28e   :  { %18593 = vst [vmem:[#allocation160_spill] sm:$0xff] %v12345_v5  ;;  %1846 = vperm.xlu0 %11071, %v952_v20   ;;  %v956_v28 = vmul.f32 %v18599_v59, %v12121_v23 }
 0x290   :  { %v12351_v24 = vpop.permute.xlu1 %1699 }
 0x291   :  { %18596 = vst [vmem:[#allocation77_spill] sm:$0xff] %v12351_v24  ;;  %1885 = vperm.xlu1 %11070, %v965_v63   ;;  %v12353_v2 = vpop.permute.xlu0 %1666  ;;  %v18603_v63 = vld [vmem:[#allocation54_spill] sm:$0xff] }
 0x292   :  { %18597 = vst [vmem:[#allocation50_spill] sm:$0xff] %v12353_v2  ;;  %1852 = vperm.xlu0 %11071, %v954_v30   ;;  %v958_v24 = vmul.f32 %v18603_v63, %v12121_v23  ;;  %v973_v63 = vmul.f32 %v18609_v6, %v12121_v23  ;;  %v18617_v6 = vld [vmem:[#allocation88_spill] sm:$0xff] }
 0x294   :  { %v12359_v5 = vpop.permute.xlu1 %1705 }
 0x295   :  { %18600 = vst [vmem:[#allocation79_spill] sm:$0xff] %v12359_v5  ;;  %1891 = vperm.xlu1 %11070, %v967_v17   ;;  %v12361_v20 = vpop.permute.xlu0 %1672  ;;  %v18606_v17 = vld [vmem:[#allocation56_spill] sm:$0xff] }
 0x296   :  { %18601 = vst [vmem:[#allocation52_spill] sm:$0xff] %v12361_v20  ;;  %1858 = vperm.xlu0 %11071, %v956_v28   ;;  %v960_v59 = vmul.f32 %v18606_v17, %v12121_v23  ;;  %v975_v17 = vmul.f32 %v18613_v39, %v12121_v23  ;;  %v979_v39 = vmul.f32 %v11672_v54, %v12121_v23  ;;  %v18628_v54 = vld [vmem:[#allocation90_spill] sm:$0xff] }
 0x298   :  { %v12367_v2 = vpop.permute.xlu1 %1711 }
 0x299   :  { %18604 = vst [vmem:[#allocation81_spill] sm:$0xff] %v12367_v2  ;;  %1897 = vperm.xlu1 %11070, %v969_v56   ;;  %v12369_v30 = vpop.permute.xlu0 %1678  ;;  %v18610_v56 = vld [vmem:[#allocation59_spill] sm:$0xff] }
 0x29a   :  { %18605 = vst [vmem:[#allocation54_spill] sm:$0xff] %v12369_v30  ;;  %1864 = vperm.xlu0 %11071, %v958_v24   ;;  %v962_v2 = vmul.f32 %v18610_v56, %v12121_v23  ;;  %v977_v56 = vmul.f32 %v18617_v6, %v12121_v23  ;;  %v18624_v6 = vld [vmem:[#allocation89_spill] sm:$0xff] }
 0x29c   :  { %v12375_v5 = vpop.permute.xlu1 %1717 }
 0x29d   :  { %18607 = vst [vmem:[#allocation56_spill] sm:$0xff] %v12375_v5  ;;  %1903 = vperm.xlu1 %11070, %v971_v3   ;;  %v12377_v28 = vpop.permute.xlu0 %1684  ;;  %v18614_v3 = vld [vmem:[#allocation61_spill] sm:$0xff] }
 0x29e   :  { %18608 = vst [vmem:[#allocation161_spill] sm:$0xff] %v12377_v28  ;;  %1870 = vperm.xlu0 %11071, %v960_v59   ;;  %v964_v5 = vmul.f32 %v18614_v3, %v12121_v23 }
 0x2a0   :  { %v12383_v61 = vpop.permute.xlu1 %1723 }
 0x2a1   :  { %18611 = vst [vmem:[#allocation84_spill] sm:$0xff] %v12383_v61  ;;  %1909 = vperm.xlu1 %11070, %v973_v63   ;;  %v12385_v24 = vpop.permute.xlu0 %1690  ;;  %v18618_v63 = vld [vmem:[#allocation63_spill] sm:$0xff] }
 0x2a2   :  { %18612 = vst [vmem:[#allocation59_spill] sm:$0xff] %v12385_v24  ;;  %1876 = vperm.xlu0 %11071, %v962_v2   ;;  %v966_v61 = vmul.f32 %v18618_v63, %v12121_v23  ;;  %v981_v63 = vmul.f32 %v18624_v6, %v12121_v23  ;;  %v985_v6 = vmul.f32 %v11696_v60, %v12121_v23 }
 0x2a3   :  { %v989_v60 = vmul.f32 %v11712_v27, %v12121_v23  ;;  %v993_v27 = vmul.f32 %v11728_v31, %v12121_v23  ;;  %v997_v31 = vmul.f32 %v11744_v35, %v12121_v23  ;;  %v1001_v35 = vmul.f32 %v11760_v41, %v12121_v23 }
 0x2a4   :  { %v12391_v28 = vpop.permute.xlu1 %1729  ;;  %v1005_v41 = vmul.f32 %v11776_v45, %v12121_v23  ;;  %v998_v45 = vmul.f32 %v11684_v62, %v12121_v23  ;;  %v1013_v62 = vmul.f32 %v11808_v53, %v12121_v23  ;;  %v1006_v53 = vmul.f32 %v11716_v12, %v12121_v23 }
 0x2a5   :  { %18615 = vst [vmem:[#allocation86_spill] sm:$0xff] %v12391_v28  ;;  %1915 = vperm.xlu1 %11070, %v975_v17   ;;  %v12393_v59 = vpop.permute.xlu0 %1696  ;;  %v18621_v17 = vld [vmem:[#allocation65_spill] sm:$0xff]  ;;  %v1021_v12 = vmul.f32 %v11836_v1, %v12121_v23  ;;  %v1014_v1 = vmul.f32 %v11748_v16, %v12121_v23  ;;  %v1029_v16 = vmul.f32 %v11868_v18, %v12121_v23 }
 0x2a6   :  { %18616 = vst [vmem:[#allocation61_spill] sm:$0xff] %v12393_v59  ;;  %1882 = vperm.xlu0 %11071, %v964_v5   ;;  %v968_v3 = vmul.f32 %v18621_v17, %v12121_v23  ;;  %v983_v17 = vmul.f32 %v18628_v54, %v12121_v23  ;;  %v987_v54 = vmul.f32 %v11704_v25, %v12121_v23 }
 0x2a7   :  { %v991_v25 = vmul.f32 %v11720_v29, %v12121_v23  ;;  %v995_v29 = vmul.f32 %v11736_v33, %v12121_v23  ;;  %v999_v33 = vmul.f32 %v11752_v38, %v12121_v23  ;;  %v1003_v38 = vmul.f32 %v11768_v43, %v12121_v23 }
 0x2a8   :  { %v12399_v24 = vpop.permute.xlu1 %1735  ;;  %v1007_v43 = vmul.f32 %v11784_v47, %v12121_v23  ;;  %v1000_v47 = vmul.f32 %v11692_v4, %v12121_v23  ;;  %v1015_v4 = vmul.f32 %v11814_v58, %v12121_v23  ;;  %v1008_v58 = vmul.f32 %v11724_v13, %v12121_v23 }
 0x2a9   :  { %18619 = vst [vmem:[#allocation88_spill] sm:$0xff] %v12399_v24  ;;  %1921 = vperm.xlu1 %11070, %v977_v56   ;;  %v12401_v2 = vpop.permute.xlu0 %1702  ;;  %v18625_v56 = vld [vmem:[#allocation67_spill] sm:$0xff]  ;;  %v1023_v13 = vmul.f32 %v11844_v36, %v12121_v23  ;;  %v1016_v36 = vmul.f32 %v11756_v19, %v12121_v23  ;;  %v1031_v19 = vmul.f32 %v11876_v44, %v12121_v23 }
 0x2aa   :  { %18620 = vst [vmem:[#allocation63_spill] sm:$0xff] %v12401_v2  ;;  %1888 = vperm.xlu0 %11071, %v966_v61   ;;  %v970_v24 = vmul.f32 %v18625_v56, %v12121_v23  ;;  %v1022_v18 = vmul.f32 %v11780_v26, %v12121_v23  ;;  %v1035_v44 = vmul.f32 %v11894_v50, %v12121_v23  ;;  %v12638_v26 = vld [vmem:[%s17992_s1 + $0x1] ss:$4 sm:$0xff] }
 0x2ac   :  { %v12407_v28 = vpop.permute.xlu1 %1741 }
 0x2ad   :  { %18622 = vst [vmem:[#allocation65_spill] sm:$0xff] %v12407_v28  ;;  %1927 = vperm.xlu1 %11070, %v979_v39   ;;  %v12409_v5 = vpop.permute.xlu0 %1708  ;;  %v18629_v39 = vld [vmem:[#allocation69_spill] sm:$0xff] }
 0x2ae   :  { %18623 = vst [vmem:[#allocation162_spill] sm:$0xff] %v12409_v5  ;;  %1894 = vperm.xlu0 %11071, %v968_v3   ;;  %v972_v28 = vmul.f32 %v18629_v39, %v12121_v23 }
 0x2b0   :  { %v12415_v2 = vpop.permute.xlu1 %1747 }
 0x2b1   :  { %18626 = vst [vmem:[#allocation89_spill] sm:$0xff] %v12415_v2  ;;  %1933 = vperm.xlu1 %11070, %v981_v63   ;;  %v12417_v61 = vpop.permute.xlu0 %1714  ;;  %v18632_v63 = vld [vmem:[#allocation70_spill] sm:$0xff] }
 0x2b2   :  { %18627 = vst [vmem:[#allocation67_spill] sm:$0xff] %v12417_v61  ;;  %1900 = vperm.xlu0 %11071, %v970_v24   ;;  %v974_v56 = vmul.f32 %v18632_v63, %v12121_v23 }
 0x2b4   :  { %v12423_v5 = vpop.permute.xlu1 %1753 }
 0x2b5   :  { %18630 = vst [vmem:[#allocation90_spill] sm:$0xff] %v12423_v5  ;;  %1939 = vperm.xlu1 %11070, %v983_v17   ;;  %v12425_v3 = vpop.permute.xlu0 %1720  ;;  %v18635_v17 = vld [vmem:[#allocation73_spill] sm:$0xff] }
 0x2b6   :  { %18631 = vst [vmem:[#allocation69_spill] sm:$0xff] %v12425_v3  ;;  %1906 = vperm.xlu0 %11071, %v972_v28   ;;  %v976_v39 = vmul.f32 %v18635_v17, %v12121_v23 }
 0x2b8   :  { %v12431_v2 = vpop.permute.xlu1 %1759 }
 0x2b9   :  { %18633 = vst [vmem:[#allocation70_spill] sm:$0xff] %v12431_v2  ;;  %1945 = vperm.xlu1 %11070, %v985_v6   ;;  %v12433_v24 = vpop.permute.xlu0 %1726  ;;  %v18638_v6 = vld [vmem:[#allocation75_spill] sm:$0xff] }
 0x2ba   :  { %18634 = vst [vmem:[#allocation163_spill] sm:$0xff] %v12433_v24  ;;  %1912 = vperm.xlu0 %11071, %v974_v56   ;;  %v978_v63 = vmul.f32 %v18638_v6, %v12121_v23 }
 0x2bc   :  { %v12439_v5 = vpop.permute.xlu1 %1765 }
 0x2bd   :  { %18636 = vst [vmem:[#allocation73_spill] sm:$0xff] %v12439_v5  ;;  %1951 = vperm.xlu1 %11070, %v987_v54   ;;  %v12441_v28 = vpop.permute.xlu0 %1732  ;;  %v18641_v54 = vld [vmem:[#allocation76_spill] sm:$0xff] }
 0x2be   :  { %18637 = vst [vmem:[#allocation164_spill] sm:$0xff] %v12441_v28  ;;  %1918 = vperm.xlu0 %11071, %v976_v39   ;;  %v980_v17 = vmul.f32 %v18641_v54, %v12121_v23 }
 0x2c0   :  { %v12447_v2 = vpop.permute.xlu1 %1771 }
 0x2c1   :  { %18639 = vst [vmem:[#allocation75_spill] sm:$0xff] %v12447_v2  ;;  %1957 = vperm.xlu1 %11070, %v989_v60   ;;  %v12449_v56 = vpop.permute.xlu0 %1738  ;;  %v18644_v60 = vld [vmem:[#allocation78_spill] sm:$0xff] }
 0x2c2   :  { %18640 = vst [vmem:[#allocation165_spill] sm:$0xff] %v12449_v56  ;;  %1924 = vperm.xlu0 %11071, %v978_v63   ;;  %v982_v6 = vmul.f32 %v18644_v60, %v12121_v23 }
 0x2c4   :  { %v12455_v5 = vpop.permute.xlu1 %1777 }
 0x2c5   :  { %18642 = vst [vmem:[#allocation76_spill] sm:$0xff] %v12455_v5  ;;  %1963 = vperm.xlu1 %11070, %v991_v25   ;;  %v12457_v39 = vpop.permute.xlu0 %1744  ;;  %v18647_v25 = vld [vmem:[#allocation80_spill] sm:$0xff] }
 0x2c6   :  { %18643 = vst [vmem:[#allocation166_spill] sm:$0xff] %v12457_v39  ;;  %1930 = vperm.xlu0 %11071, %v980_v17   ;;  %v984_v54 = vmul.f32 %v18647_v25, %v12121_v23 }
 0x2c8   :  { %v12463_v61 = vpop.permute.xlu1 %1783 }
 0x2c9   :  { %18645 = vst [vmem:[#allocation78_spill] sm:$0xff] %v12463_v61  ;;  %1969 = vperm.xlu1 %11070, %v993_v27   ;;  %v12465_v63 = vpop.permute.xlu0 %1750  ;;  %v18650_v27 = vld [vmem:[#allocation82_spill] sm:$0xff] }
 0x2ca   :  { %18646 = vst [vmem:[#allocation167_spill] sm:$0xff] %v12465_v63  ;;  %1936 = vperm.xlu0 %11071, %v982_v6   ;;  %v986_v60 = vmul.f32 %v18650_v27, %v12121_v23 }
 0x2cc   :  { %v12471_v5 = vpop.permute.xlu1 %1789 }
 0x2cd   :  { %18648 = vst [vmem:[#allocation80_spill] sm:$0xff] %v12471_v5  ;;  %1975 = vperm.xlu1 %11070, %v995_v29   ;;  %v12473_v17 = vpop.permute.xlu0 %1756  ;;  %v18653_v29 = vld [vmem:[#allocation83_spill] sm:$0xff] }
 0x2ce   :  { %18649 = vst [vmem:[#allocation168_spill] sm:$0xff] %v12473_v17  ;;  %1942 = vperm.xlu0 %11071, %v984_v54   ;;  %v988_v25 = vmul.f32 %v18653_v29, %v12121_v23 }
 0x2d0   :  { %v12479_v61 = vpop.permute.xlu1 %1795 }
 0x2d1   :  { %18651 = vst [vmem:[#allocation82_spill] sm:$0xff] %v12479_v61  ;;  %1981 = vperm.xlu1 %11070, %v997_v31   ;;  %v12481_v6 = vpop.permute.xlu0 %1762  ;;  %v18656_v31 = vld [vmem:[#allocation85_spill] sm:$0xff] }
 0x2d2   :  { %18652 = vst [vmem:[#allocation169_spill] sm:$0xff] %v12481_v6  ;;  %1948 = vperm.xlu0 %11071, %v986_v60   ;;  %v990_v27 = vmul.f32 %v18656_v31, %v12121_v23 }
 0x2d4   :  { %v12487_v5 = vpop.permute.xlu1 %1801 }
 0x2d5   :  { %18654 = vst [vmem:[#allocation83_spill] sm:$0xff] %v12487_v5  ;;  %1987 = vperm.xlu1 %11070, %v999_v33   ;;  %v12489_v54 = vpop.permute.xlu0 %1768  ;;  %v992_v33 = vmul.f32 %v18453_v8, %v12121_v23  ;;  %v996_v8 = vmul.f32 %v11676_v9, %v12121_v23  ;;  %v1011_v9 = vmul.f32 %v11800_v51, %v12121_v23 }
 0x2d6   :  { %18655 = vst [vmem:[#allocation170_spill] sm:$0xff] %v12489_v54  ;;  %1954 = vperm.xlu0 %11071, %v988_v25   ;;  %v1004_v51 = vmul.f32 %v11708_v11, %v12121_v23  ;;  %v1019_v11 = vmul.f32 %v11830_v0, %v12121_v23  ;;  %v1012_v0 = vmul.f32 %v11740_v15, %v12121_v23  ;;  %v18817_v54 = vld [vmem:[#allocation58_spill] sm:$0xff] }
 0x2d7   :  { %v1027_v15 = vmul.f32 %v11860_v57, %v12121_v23  ;;  %v18687_v57 = vld [vmem:[#allocation91_spill] sm:$0xff] }
 0x2d8   :  { %v12495_v61 = vpop.permute.xlu1 %1807 }
 0x2d9   :  { %18657 = vst [vmem:[#allocation85_spill] sm:$0xff] %v12495_v61  ;;  %1993 = vperm.xlu1 %11070, %v1001_v35   ;;  %v12497_v60 = vpop.permute.xlu0 %1774  ;;  %v994_v35 = vmul.f32 %v11668_v55, %v12121_v23  ;;  %v1009_v55 = vmul.f32 %v11792_v49, %v12121_v23  ;;  %v1002_v49 = vmul.f32 %v11700_v7, %v12121_v23 }
 0x2da   :  { %18658 = vst [vmem:[#allocation171_spill] sm:$0xff] %v12497_v60  ;;  %1960 = vperm.xlu0 %11071, %v990_v27   ;;  %v1017_v7 = vmul.f32 %v11822_v10, %v12121_v23  ;;  %v1010_v10 = vmul.f32 %v11732_v14, %v12121_v23  ;;  %v1025_v14 = vmul.f32 %v11852_v37, %v12121_v23 }
 0x2db   :  { %v1018_v37 = vmul.f32 %v11764_v22, %v12121_v23  ;;  %v1033_v22 = vmul.f32 %v11884_v21, %v12121_v23  ;;  %v1037_v21 = vmul.f32 %v11906_v48, %v12121_v23  ;;  %v1030_v48 = vmul.f32 %v11816_v34, %v12121_v23 }
 0x2dc   :  { %v12503_v29 = vpop.permute.xlu1 %1813 }
 0x2dd   :  { %18659 = vst [vmem:[#allocation172_spill] sm:$0xff] %v12503_v29  ;;  %1999 = vperm.xlu1 %11070, %v1003_v38   ;;  %v12505_v25 = vpop.permute.xlu0 %1780 }
 0x2de   :  { %18660 = vst [vmem:[#allocation173_spill] sm:$0xff] %v12505_v25  ;;  %1966 = vperm.xlu0 %11071, %v992_v33  }
 0x2e0   :  { %v12511_v31 = vpop.permute.xlu1 %1819 }
 0x2e1   :  { %18661 = vst [vmem:[#allocation174_spill] sm:$0xff] %v12511_v31  ;;  %2005 = vperm.xlu1 %11070, %v1005_v41   ;;  %v12513_v27 = vpop.permute.xlu0 %1786 }
 0x2e2   :  { %18662 = vst [vmem:[#allocation175_spill] sm:$0xff] %v12513_v27  ;;  %1972 = vperm.xlu0 %11071, %v994_v35  }
 0x2e4   :  { %v12519_v38 = vpop.permute.xlu1 %1825 }
 0x2e5   :  { %18663 = vst [vmem:[#allocation176_spill] sm:$0xff] %v12519_v38  ;;  %2011 = vperm.xlu1 %11070, %v1007_v43   ;;  %v12521_v33 = vpop.permute.xlu0 %1792 }
 0x2e6   :  { %18664 = vst [vmem:[#allocation177_spill] sm:$0xff] %v12521_v33  ;;  %1978 = vperm.xlu0 %11071, %v996_v8  }
 0x2e8   :  { %v12527_v41 = vpop.permute.xlu1 %1831 }
 0x2e9   :  { %18665 = vst [vmem:[#allocation178_spill] sm:$0xff] %v12527_v41  ;;  %2017 = vperm.xlu1 %11070, %v1009_v55   ;;  %v12529_v35 = vpop.permute.xlu0 %1798 }
 0x2ea   :  { %18666 = vst [vmem:[#allocation179_spill] sm:$0xff] %v12529_v35  ;;  %1984 = vperm.xlu0 %11071, %v998_v45  }
 0x2ec   :  { %v12535_v43 = vpop.permute.xlu1 %1837 }
 0x2ed   :  { %18667 = vst [vmem:[#allocation180_spill] sm:$0xff] %v12535_v43  ;;  %2023 = vperm.xlu1 %11070, %v1011_v9   ;;  %v12537_v8 = vpop.permute.xlu0 %1804 }
 0x2ee   :  { %18668 = vst [vmem:[#allocation181_spill] sm:$0xff] %v12537_v8  ;;  %1990 = vperm.xlu0 %11071, %v1000_v47  }
 0x2f0   :  { %v12543_v55 = vpop.permute.xlu1 %1843 }
 0x2f1   :  { %18669 = vst [vmem:[#allocation182_spill] sm:$0xff] %v12543_v55  ;;  %2029 = vperm.xlu1 %11070, %v1013_v62   ;;  %v12545_v45 = vpop.permute.xlu0 %1810 }
 0x2f2   :  { %18670 = vst [vmem:[#allocation183_spill] sm:$0xff] %v12545_v45  ;;  %1996 = vperm.xlu0 %11071, %v1002_v49  }
 0x2f4   :  { %v12551_v9 = vpop.permute.xlu1 %1849 }
 0x2f5   :  { %18671 = vst [vmem:[#allocation184_spill] sm:$0xff] %v12551_v9  ;;  %2035 = vperm.xlu1 %11070, %v1015_v4   ;;  %v12553_v47 = vpop.permute.xlu0 %1816  ;;  %v18749_v9 = vld [vmem:[#allocation9_spill] sm:$0xff] }
 0x2f6   :  { %18672 = vst [vmem:[#allocation185_spill] sm:$0xff] %v12553_v47  ;;  %2002 = vperm.xlu0 %11071, %v1004_v51  }
 0x2f8   :  { %v12559_v62 = vpop.permute.xlu1 %1855 }
 0x2f9   :  { %18673 = vst [vmem:[#allocation186_spill] sm:$0xff] %v12559_v62  ;;  %2041 = vperm.xlu1 %11070, %v1017_v7   ;;  %v12561_v49 = vpop.permute.xlu0 %1822 }
 0x2fa   :  { %18674 = vst [vmem:[#allocation187_spill] sm:$0xff] %v12561_v49  ;;  %2008 = vperm.xlu0 %11071, %v1006_v53  }
 0x2fc   :  { %v12567_v4 = vpop.permute.xlu1 %1861 }
 0x2fd   :  { %18675 = vst [vmem:[#allocation188_spill] sm:$0xff] %v12567_v4  ;;  %2047 = vperm.xlu1 %11070, %v1019_v11   ;;  %v12569_v51 = vpop.permute.xlu0 %1828 }
 0x2fe   :  { %18676 = vst [vmem:[#allocation189_spill] sm:$0xff] %v12569_v51  ;;  %2014 = vperm.xlu0 %11071, %v1008_v58  }
 0x300   :  { %v12575_v7 = vpop.permute.xlu1 %1867 }
 0x301   :  { %18677 = vst [vmem:[#allocation190_spill] sm:$0xff] %v12575_v7  ;;  %2053 = vperm.xlu1 %11070, %v1021_v12   ;;  %v12577_v53 = vpop.permute.xlu0 %1834 }
 0x302   :  { %18678 = vst [vmem:[#allocation191_spill] sm:$0xff] %v12577_v53  ;;  %2020 = vperm.xlu0 %11071, %v1010_v10  }
 0x304   :  { %v12583_v11 = vpop.permute.xlu1 %1873 }
 0x305   :  { %18679 = vst [vmem:[#allocation192_spill] sm:$0xff] %v12583_v11  ;;  %2059 = vperm.xlu1 %11070, %v1023_v13   ;;  %v12585_v58 = vpop.permute.xlu0 %1840 }
 0x306   :  { %18680 = vst [vmem:[#allocation193_spill] sm:$0xff] %v12585_v58  ;;  %2026 = vperm.xlu0 %11071, %v1012_v0  }
 0x308   :  { %v12591_v12 = vpop.permute.xlu1 %1879 }
 0x309   :  { %18681 = vst [vmem:[#allocation194_spill] sm:$0xff] %v12591_v12  ;;  %2065 = vperm.xlu1 %11070, %v1025_v14   ;;  %v12593_v10 = vpop.permute.xlu0 %1846 }
 0x30a   :  { %18682 = vst [vmem:[#allocation195_spill] sm:$0xff] %v12593_v10  ;;  %2032 = vperm.xlu0 %11071, %v1014_v1  }
 0x30c   :  { %v12599_v13 = vpop.permute.xlu1 %1885 }
 0x30d   :  { %18683 = vst [vmem:[#allocation196_spill] sm:$0xff] %v12599_v13  ;;  %2071 = vperm.xlu1 %11070, %v1027_v15   ;;  %v12601_v0 = vpop.permute.xlu0 %1852  ;;  %v1020_v15 = vmul.f32 %v18687_v57, %v12121_v23 }
 0x30e   :  { %18684 = vst [vmem:[#allocation197_spill] sm:$0xff] %v12601_v0  ;;  %2038 = vperm.xlu0 %11071, %v1016_v36  }
 0x310   :  { %v12607_v14 = vpop.permute.xlu1 %1891 }
 0x311   :  { %18685 = vst [vmem:[#allocation198_spill] sm:$0xff] %v12607_v14  ;;  %2077 = vperm.xlu1 %11070, %v1029_v16   ;;  %v12609_v1 = vpop.permute.xlu0 %1858  ;;  %v18732_v14 = vld [vmem:[#allocation8_spill] sm:$0xff] }
 0x312   :  { %18686 = vst [vmem:[#allocation199_spill] sm:$0xff] %v12609_v1  ;;  %2044 = vperm.xlu0 %11071, %v1018_v37  }
 0x314   :  { %v12615_v4 = vpop.permute.xlu1 %1897 }
 0x315   :  { %18688 = vst [vmem:[#allocation91_spill] sm:$0xff] %v12615_v4  ;;  %2083 = vperm.xlu1 %11070, %v1031_v19   ;;  %v12617_v36 = vpop.permute.xlu0 %1864  ;;  %v18692_v19 = vld [vmem:[#allocation92_spill] sm:$0xff] }
 0x316   :  { %18689 = vst [vmem:[#allocation200_spill] sm:$0xff] %v12617_v36  ;;  %2050 = vperm.xlu0 %11071, %v1020_v15   ;;  %v1024_v57 = vmul.f32 %v18692_v19, %v12121_v23 }
 0x318   :  { %v12623_v16 = vpop.permute.xlu1 %1903 }
 0x319   :  { %18690 = vst [vmem:[#allocation201_spill] sm:$0xff] %v12623_v16  ;;  %2089 = vperm.xlu1 %11070, %v1033_v22   ;;  %v12625_v37 = vpop.permute.xlu0 %1870  ;;  %v18695_v22 = vld [vmem:[#allocation93_spill] sm:$0xff] }
 0x31a   :  { %18691 = vst [vmem:[#allocation202_spill] sm:$0xff] %v12625_v37  ;;  %2056 = vperm.xlu0 %11071, %v1022_v18   ;;  %v1026_v50 = vmul.f32 %v18695_v22, %v12121_v23  ;;  %v18800_v37 = vld [vmem:[#allocation41_spill] sm:$0xff] }
 0x31c   :  { %v12631_v1 = vpop.permute.xlu1 %1909 }
 0x31d   :  { %18693 = vst [vmem:[#allocation92_spill] sm:$0xff] %v12631_v1  ;;  %2095 = vperm.xlu1 %11070, %v1035_v44   ;;  %v12633_v15 = vpop.permute.xlu0 %1876  ;;  %v18698_v44 = vld [vmem:[#allocation6_spill] sm:$0xff] }
 0x31e   :  { %18694 = vst [vmem:[#allocation203_spill] sm:$0xff] %v12633_v15  ;;  %2062 = vperm.xlu0 %11071, %v1024_v57   ;;  %v3438_v1 = vrot.slane %v12638_v26, %v18698_v44  ;;  %v1028_v57 = vmul.f32 %v11806_v32, %v12121_v23  ;;  %v18833_v44 = vld [vmem:[#allocation72_spill] sm:$0xff] }
 0x320   :  { %v12644_v18 = vpop.permute.xlu1 %1915 }
 0x321   :  { %18696 = vst [vmem:[#allocation93_spill] sm:$0xff] %v12644_v18  ;;  %2101 = vperm.xlu1 %11070, %v1037_v21   ;;  %v12646_v19 = vpop.permute.xlu0 %1882  ;;  %v18783_v18 = vld [vmem:[#allocation25_spill] sm:$0xff] }
 0x322   :  { %18697 = vst [vmem:[#allocation204_spill] sm:$0xff] %v12646_v19  ;;  %2068 = vperm.xlu0 %11071, %v1026_v50   ;;  %v1032_v50 = vmul.f32 %v11828_v40, %v12121_v23 }
 0x324   :  { %v12652_v16 = vpop.permute.xlu1 %1921 }
 0x325   :  { %18699 = vst [vmem:[#allocation205_spill] sm:$0xff] %v12652_v16  ;;  %3472 = vbcast.lane.b32.xlu1 %v3438_v1, 264  ;;  %v12654_v4 = vpop.permute.xlu0 %1888 }
 0x326   :  { %18700 = vst [vmem:[#allocation206_spill] sm:$0xff] %v12654_v4  ;;  %2074 = vperm.xlu0 %11071, %v1028_v57   ;;  %v1034_v57 = vmul.f32 %v11838_v42, %v12121_v23 }
 0x328   :  { %v12658_v22 = vpop.permute.xlu1 %1927 }
 0x329   :  { %18701 = vst [vmem:[#allocation207_spill] sm:$0xff] %v12658_v22  ;;  %3480 = vbcast.lane.b32.xlu1 %v3438_v1, 280  ;;  %v12660_v21 = vpop.permute.xlu0 %1894 }
 0x32a   :  { %18702 = vst [vmem:[#allocation208_spill] sm:$0xff] %v12660_v21  ;;  %2080 = vperm.xlu0 %11071, %v1030_v48   ;;  %v1036_v48 = vmul.f32 %v11850_v46, %v12121_v23  ;;  %v18715_v23 = vld [vmem:[#allocation7_spill] sm:$0xff] }
 0x32b   :  { %v18766_v21 = vld [vmem:[#allocation15_spill] sm:$0xff] }
 0x32c   :  { %v12664_v62 = vpop.permute.xlu1 %1933 }
 0x32d   :  { %18703 = vst [vmem:[#allocation209_spill] sm:$0xff] %v12664_v62  ;;  %3488 = vbcast.lane.b32.xlu1 %v3438_v1, 296  ;;  %v12666_v32 = vpop.permute.xlu0 %1900 }
 0x32e   :  { %18704 = vst [vmem:[#allocation210_spill] sm:$0xff] %v12666_v32  ;;  %2086 = vperm.xlu0 %11071, %v1032_v50  }
 0x330   :  { %v12670_v0 = vpop.permute.xlu1 %1939 }
 0x331   :  { %18705 = vst [vmem:[#allocation211_spill] sm:$0xff] %v12670_v0  ;;  %3496 = vbcast.lane.b32.xlu1 %v3438_v1, 312  ;;  %v12672_v34 = vpop.permute.xlu0 %1906 }
 0x332   :  { %18706 = vst [vmem:[#allocation212_spill] sm:$0xff] %v12672_v34  ;;  %2092 = vperm.xlu0 %11071, %v1034_v57  }
 0x334   :  { %v12676_v22 = vpop.permute.xlu1 %1945 }
 0x335   :  { %18707 = vst [vmem:[#allocation213_spill] sm:$0xff] %v12676_v22  ;;  %3504 = vbcast.lane.b32.xlu1 %v3438_v1, 328  ;;  %v12678_v40 = vpop.permute.xlu0 %1912 }
 0x336   :  { %18708 = vst [vmem:[#allocation214_spill] sm:$0xff] %v12678_v40  ;;  %2098 = vperm.xlu0 %11071, %v1036_v48   ;;  %v3442_v48 = vrot.slane %v12638_v26, %v18715_v23 }
 0x338   :  { %v12680_v62 = vpop.permute.xlu1 %1951 }
 0x339   :  { %18709 = vst [vmem:[#allocation215_spill] sm:$0xff] %v12680_v62  ;;  %3512 = vbcast.lane.b32.xlu1 %v3438_v1, 344  ;;  %v12682_v50 = vpop.permute.xlu0 %1918 }
 0x33a   :  { %18710 = vst [vmem:[#allocation216_spill] sm:$0xff] %v12682_v50  ;;  %3468 = vbcast.lane.b32.xlu0 %v3438_v1, 256 }
 0x33c   :  { %v12684_v42 = vpop.permute.xlu1 %1957 }
 0x33d   :  { %18711 = vst [vmem:[#allocation217_spill] sm:$0xff] %v12684_v42  ;;  %3520 = vbcast.lane.b32.xlu1 %v3438_v1, 360  ;;  %v12686_v0 = vpop.permute.xlu0 %1924 }
 0x33e   :  { %18712 = vst [vmem:[#allocation218_spill] sm:$0xff] %v12686_v0  ;;  %3476 = vbcast.lane.b32.xlu0 %v3438_v1, 272 }
 0x340   :  { %v12688_v57 = vpop.permute.xlu1 %1963 }
 0x341   :  { %18713 = vst [vmem:[#allocation219_spill] sm:$0xff] %v12688_v57  ;;  %3528 = vbcast.lane.b32.xlu1 %v3438_v1, 376  ;;  %v12690_v46 = vpop.permute.xlu0 %1930 }
 0x342   :  { %18714 = vst [vmem:[#allocation220_spill] sm:$0xff] %v12690_v46  ;;  %3484 = vbcast.lane.b32.xlu0 %v3438_v1, 288 }
 0x344   :  { %v12694_v62 = vpop.permute.xlu1 %1969 }
 0x345   :  { %18716 = vst [vmem:[#allocation221_spill] sm:$0xff] %v12694_v62  ;;  %3535 = vbcast.lane.b32.xlu1 %v3442_v48, 264  ;;  %v12696_v22 = vpop.permute.xlu0 %1936 }
 0x346   :  { %18717 = vst [vmem:[#allocation222_spill] sm:$0xff] %v12696_v22  ;;  %3492 = vbcast.lane.b32.xlu0 %v3438_v1, 304 }
 0x348   :  { %v12698_v42 = vpop.permute.xlu1 %1975 }
 0x349   :  { %18718 = vst [vmem:[#allocation223_spill] sm:$0xff] %v12698_v42  ;;  %3543 = vbcast.lane.b32.xlu1 %v3442_v48, 280  ;;  %v12700_v34 = vpop.permute.xlu0 %1942 }
 0x34a   :  { %18719 = vst [vmem:[#allocation224_spill] sm:$0xff] %v12700_v34  ;;  %3500 = vbcast.lane.b32.xlu0 %v3438_v1, 320 }
 0x34c   :  { %v12702_v57 = vpop.permute.xlu1 %1981 }
 0x34d   :  { %18720 = vst [vmem:[#allocation225_spill] sm:$0xff] %v12702_v57  ;;  %3551 = vbcast.lane.b32.xlu1 %v3442_v48, 296  ;;  %v12704_v32 = vpop.permute.xlu0 %1948 }
 0x34e   :  { %18721 = vst [vmem:[#allocation226_spill] sm:$0xff] %v12704_v32  ;;  %3508 = vbcast.lane.b32.xlu0 %v3438_v1, 336 }
 0x350   :  { %v12706_v46 = vpop.permute.xlu1 %1987 }
 0x351   :  { %18722 = vst [vmem:[#allocation227_spill] sm:$0xff] %v12706_v46  ;;  %3559 = vbcast.lane.b32.xlu1 %v3442_v48, 312  ;;  %v12708_v62 = vpop.permute.xlu0 %1954 }
 0x352   :  { %18723 = vst [vmem:[#allocation228_spill] sm:$0xff] %v12708_v62  ;;  %3516 = vbcast.lane.b32.xlu0 %v3438_v1, 352 }
 0x354   :  { %v12710_v22 = vpop.permute.xlu1 %1993 }
 0x355   :  { %18724 = vst [vmem:[#allocation229_spill] sm:$0xff] %v12710_v22  ;;  %3567 = vbcast.lane.b32.xlu1 %v3442_v48, 328  ;;  %v12712_v42 = vpop.permute.xlu0 %1960 }
 0x356   :  { %18725 = vst [vmem:[#allocation230_spill] sm:$0xff] %v12712_v42  ;;  %3524 = vbcast.lane.b32.xlu0 %v3438_v1, 368  ;;  %v3446_v1 = vrot.slane %v12638_v26, %v18732_v14 }
 0x358   :  { %v12714_v34 = vpop.permute.xlu1 %1999 }
 0x359   :  { %18726 = vst [vmem:[#allocation231_spill] sm:$0xff] %v12714_v34  ;;  %3575 = vbcast.lane.b32.xlu1 %v3442_v48, 344  ;;  %v12716_v57 = vpop.permute.xlu0 %1966 }
 0x35a   :  { %18727 = vst [vmem:[#allocation232_spill] sm:$0xff] %v12716_v57  ;;  %3531 = vbcast.lane.b32.xlu0 %v3442_v48, 256 }
 0x35c   :  { %v12718_v32 = vpop.permute.xlu1 %2005 }
 0x35d   :  { %18728 = vst [vmem:[#allocation233_spill] sm:$0xff] %v12718_v32  ;;  %3583 = vbcast.lane.b32.xlu1 %v3442_v48, 360  ;;  %v12720_v46 = vpop.permute.xlu0 %1972 }
 0x35e   :  { %18729 = vst [vmem:[#allocation234_spill] sm:$0xff] %v12720_v46  ;;  %3539 = vbcast.lane.b32.xlu0 %v3442_v48, 272 }
 0x360   :  { %v12722_v62 = vpop.permute.xlu1 %2011 }
 0x361   :  { %18730 = vst [vmem:[#allocation235_spill] sm:$0xff] %v12722_v62  ;;  %3591 = vbcast.lane.b32.xlu1 %v3442_v48, 376  ;;  %v12724_v22 = vpop.permute.xlu0 %1978 }
 0x362   :  { %18731 = vst [vmem:[#allocation236_spill] sm:$0xff] %v12724_v22  ;;  %3547 = vbcast.lane.b32.xlu0 %v3442_v48, 288 }
 0x364   :  { %v12728_v34 = vpop.permute.xlu1 %2017 }
 0x365   :  { %18733 = vst [vmem:[#allocation237_spill] sm:$0xff] %v12728_v34  ;;  %3598 = vbcast.lane.b32.xlu1 %v3446_v1, 264  ;;  %v12730_v57 = vpop.permute.xlu0 %1984 }
 0x366   :  { %18734 = vst [vmem:[#allocation238_spill] sm:$0xff] %v12730_v57  ;;  %3555 = vbcast.lane.b32.xlu0 %v3442_v48, 304 }
 0x368   :  { %v12732_v32 = vpop.permute.xlu1 %2023 }
 0x369   :  { %18735 = vst [vmem:[#allocation239_spill] sm:$0xff] %v12732_v32  ;;  %3606 = vbcast.lane.b32.xlu1 %v3446_v1, 280  ;;  %v12734_v46 = vpop.permute.xlu0 %1990 }
 0x36a   :  { %18736 = vst [vmem:[#allocation240_spill] sm:$0xff] %v12734_v46  ;;  %3563 = vbcast.lane.b32.xlu0 %v3442_v48, 320 }
 0x36c   :  { %v12736_v62 = vpop.permute.xlu1 %2029 }
 0x36d   :  { %18737 = vst [vmem:[#allocation241_spill] sm:$0xff] %v12736_v62  ;;  %3614 = vbcast.lane.b32.xlu1 %v3446_v1, 296  ;;  %v12738_v22 = vpop.permute.xlu0 %1996 }
 0x36e   :  { %18738 = vst [vmem:[#allocation242_spill] sm:$0xff] %v12738_v22  ;;  %3571 = vbcast.lane.b32.xlu0 %v3442_v48, 336 }
 0x370   :  { %v12740_v42 = vpop.permute.xlu1 %2035 }
 0x371   :  { %18739 = vst [vmem:[#allocation243_spill] sm:$0xff] %v12740_v42  ;;  %3622 = vbcast.lane.b32.xlu1 %v3446_v1, 312  ;;  %v12742_v34 = vpop.permute.xlu0 %2002 }
 0x372   :  { %18740 = vst [vmem:[#allocation244_spill] sm:$0xff] %v12742_v34  ;;  %3579 = vbcast.lane.b32.xlu0 %v3442_v48, 352 }
 0x374   :  { %v12744_v57 = vpop.permute.xlu1 %2041 }
 0x375   :  { %18741 = vst [vmem:[#allocation245_spill] sm:$0xff] %v12744_v57  ;;  %3630 = vbcast.lane.b32.xlu1 %v3446_v1, 328  ;;  %v12746_v32 = vpop.permute.xlu0 %2008 }
 0x376   :  { %18742 = vst [vmem:[#allocation246_spill] sm:$0xff] %v12746_v32  ;;  %3587 = vbcast.lane.b32.xlu0 %v3442_v48, 368  ;;  %v3450_v48 = vrot.slane %v12638_v26, %v18749_v9 }
 0x378   :  { %v12748_v46 = vpop.permute.xlu1 %2047 }
 0x379   :  { %18743 = vst [vmem:[#allocation247_spill] sm:$0xff] %v12748_v46  ;;  %3638 = vbcast.lane.b32.xlu1 %v3446_v1, 344  ;;  %v12750_v62 = vpop.permute.xlu0 %2014 }
 0x37a   :  { %18744 = vst [vmem:[#allocation248_spill] sm:$0xff] %v12750_v62  ;;  %3594 = vbcast.lane.b32.xlu0 %v3446_v1, 256 }
 0x37c   :  { %v12752_v22 = vpop.permute.xlu1 %2053 }
 0x37d   :  { %18745 = vst [vmem:[#allocation249_spill] sm:$0xff] %v12752_v22  ;;  %3646 = vbcast.lane.b32.xlu1 %v3446_v1, 360  ;;  %v12754_v42 = vpop.permute.xlu0 %2020 }
 0x37e   :  { %18746 = vst [vmem:[#allocation250_spill] sm:$0xff] %v12754_v42  ;;  %3602 = vbcast.lane.b32.xlu0 %v3446_v1, 272 }
 0x380   :  { %v12756_v34 = vpop.permute.xlu1 %2059 }
 0x381   :  { %18747 = vst [vmem:[#allocation251_spill] sm:$0xff] %v12756_v34  ;;  %3654 = vbcast.lane.b32.xlu1 %v3446_v1, 376  ;;  %v12758_v57 = vpop.permute.xlu0 %2026 }
 0x382   :  { %18748 = vst [vmem:[#allocation252_spill] sm:$0xff] %v12758_v57  ;;  %3610 = vbcast.lane.b32.xlu0 %v3446_v1, 288 }
 0x384   :  { %v12762_v46 = vpop.permute.xlu1 %2065 }
 0x385   :  { %18750 = vst [vmem:[#allocation253_spill] sm:$0xff] %v12762_v46  ;;  %3661 = vbcast.lane.b32.xlu1 %v3450_v48, 264  ;;  %v12764_v62 = vpop.permute.xlu0 %2032 }
 0x386   :  { %18751 = vst [vmem:[#allocation254_spill] sm:$0xff] %v12764_v62  ;;  %3618 = vbcast.lane.b32.xlu0 %v3446_v1, 304 }
 0x388   :  { %v12766_v22 = vpop.permute.xlu1 %2071 }
 0x389   :  { %18752 = vst [vmem:[#allocation255_spill] sm:$0xff] %v12766_v22  ;;  %3669 = vbcast.lane.b32.xlu1 %v3450_v48, 280  ;;  %v12768_v42 = vpop.permute.xlu0 %2038 }
 0x38a   :  { %18753 = vst [vmem:[#allocation256_spill] sm:$0xff] %v12768_v42  ;;  %3626 = vbcast.lane.b32.xlu0 %v3446_v1, 320 }
 0x38c   :  { %v12770_v34 = vpop.permute.xlu1 %2077 }
 0x38d   :  { %18754 = vst [vmem:[#allocation257_spill] sm:$0xff] %v12770_v34  ;;  %3677 = vbcast.lane.b32.xlu1 %v3450_v48, 296  ;;  %v12772_v57 = vpop.permute.xlu0 %2044 }
 0x38e   :  { %18755 = vst [vmem:[#allocation258_spill] sm:$0xff] %v12772_v57  ;;  %3634 = vbcast.lane.b32.xlu0 %v3446_v1, 336 }
 0x390   :  { %v12774_v32 = vpop.permute.xlu1 %2083 }
 0x391   :  { %18756 = vst [vmem:[#allocation259_spill] sm:$0xff] %v12774_v32  ;;  %3685 = vbcast.lane.b32.xlu1 %v3450_v48, 312  ;;  %v12776_v46 = vpop.permute.xlu0 %2050 }
 0x392   :  { %18757 = vst [vmem:[#allocation260_spill] sm:$0xff] %v12776_v46  ;;  %3642 = vbcast.lane.b32.xlu0 %v3446_v1, 352 }
 0x394   :  { %v12778_v62 = vpop.permute.xlu1 %2089 }
 0x395   :  { %18758 = vst [vmem:[#allocation261_spill] sm:$0xff] %v12778_v62  ;;  %3693 = vbcast.lane.b32.xlu1 %v3450_v48, 328  ;;  %v12780_v22 = vpop.permute.xlu0 %2056 }
 0x396   :  { %18759 = vst [vmem:[#allocation262_spill] sm:$0xff] %v12780_v22  ;;  %3650 = vbcast.lane.b32.xlu0 %v3446_v1, 368  ;;  %v3454_v1 = vrot.slane %v12638_v26, %v18766_v21 }
 0x398   :  { %v12782_v42 = vpop.permute.xlu1 %2095 }
 0x399   :  { %18760 = vst [vmem:[#allocation263_spill] sm:$0xff] %v12782_v42  ;;  %3701 = vbcast.lane.b32.xlu1 %v3450_v48, 344  ;;  %v12784_v34 = vpop.permute.xlu0 %2062 }
 0x39a   :  { %18761 = vst [vmem:[#allocation264_spill] sm:$0xff] %v12784_v34  ;;  %3657 = vbcast.lane.b32.xlu0 %v3450_v48, 256 }
 0x39c   :  { %v12786_v57 = vpop.permute.xlu1 %2101 }
 0x39d   :  { %18762 = vst [vmem:[#allocation265_spill] sm:$0xff] %v12786_v57  ;;  %3709 = vbcast.lane.b32.xlu1 %v3450_v48, 360  ;;  %v12788_v32 = vpop.permute.xlu0 %2068 }
 0x39e   :  { %18763 = vst [vmem:[#allocation266_spill] sm:$0xff] %v12788_v32  ;;  %3665 = vbcast.lane.b32.xlu0 %v3450_v48, 272 }
 0x3a0   :  { %v12790_v46 = vpop.permute.xlu1 %3472 }
 0x3a1   :  { %18764 = vst [vmem:[#allocation267_spill] sm:$0xff] %v12790_v46  ;;  %3717 = vbcast.lane.b32.xlu1 %v3450_v48, 376  ;;  %v12792_v62 = vpop.permute.xlu0 %2074 }
 0x3a2   :  { %18765 = vst [vmem:[#allocation268_spill] sm:$0xff] %v12792_v62  ;;  %3673 = vbcast.lane.b32.xlu0 %v3450_v48, 288 }
 0x3a4   :  { %v12796_v42 = vpop.permute.xlu1 %3480 }
 0x3a5   :  { %18767 = vst [vmem:[#allocation269_spill] sm:$0xff] %v12796_v42  ;;  %3724 = vbcast.lane.b32.xlu1 %v3454_v1, 264  ;;  %v12798_v34 = vpop.permute.xlu0 %2080 }
 0x3a6   :  { %18768 = vst [vmem:[#allocation270_spill] sm:$0xff] %v12798_v34  ;;  %3681 = vbcast.lane.b32.xlu0 %v3450_v48, 304 }
 0x3a8   :  { %v12800_v57 = vpop.permute.xlu1 %3488 }
 0x3a9   :  { %18769 = vst [vmem:[#allocation271_spill] sm:$0xff] %v12800_v57  ;;  %3732 = vbcast.lane.b32.xlu1 %v3454_v1, 280  ;;  %v12802_v32 = vpop.permute.xlu0 %2086 }
 0x3aa   :  { %18770 = vst [vmem:[#allocation272_spill] sm:$0xff] %v12802_v32  ;;  %3689 = vbcast.lane.b32.xlu0 %v3450_v48, 320 }
 0x3ac   :  { %v12804_v22 = vpop.permute.xlu1 %3496 }
 0x3ad   :  { %18771 = vst [vmem:[#allocation273_spill] sm:$0xff] %v12804_v22  ;;  %3740 = vbcast.lane.b32.xlu1 %v3454_v1, 296  ;;  %v12806_v62 = vpop.permute.xlu0 %2092 }
 0x3ae   :  { %18772 = vst [vmem:[#allocation274_spill] sm:$0xff] %v12806_v62  ;;  %3697 = vbcast.lane.b32.xlu0 %v3450_v48, 336 }
 0x3b0   :  { %v12808_v16 = vpop.permute.xlu1 %3504 }
 0x3b1   :  { %18773 = vst [vmem:[#allocation275_spill] sm:$0xff] %v12808_v16  ;;  %3748 = vbcast.lane.b32.xlu1 %v3454_v1, 312  ;;  %v12810_v0 = vpop.permute.xlu0 %2098 }
 0x3b2   :  { %18774 = vst [vmem:[#allocation276_spill] sm:$0xff] %v12810_v0  ;;  %3705 = vbcast.lane.b32.xlu0 %v3450_v48, 352 }
 0x3b4   :  { %v12812_v34 = vpop.permute.xlu1 %3512 }
 0x3b5   :  { %18775 = vst [vmem:[#allocation277_spill] sm:$0xff] %v12812_v34  ;;  %3756 = vbcast.lane.b32.xlu1 %v3454_v1, 328  ;;  %v12814_v13 = vpop.permute.xlu0 %3468 }
 0x3b6   :  { %18776 = vst [vmem:[#allocation278_spill] sm:$0xff] %v12814_v13  ;;  %3713 = vbcast.lane.b32.xlu0 %v3450_v48, 368  ;;  %v3458_v48 = vrot.slane %v12638_v26, %v18783_v18 }
 0x3b8   :  { %v12816_v32 = vpop.permute.xlu1 %3520 }
 0x3b9   :  { %18777 = vst [vmem:[#allocation279_spill] sm:$0xff] %v12816_v32  ;;  %3764 = vbcast.lane.b32.xlu1 %v3454_v1, 344  ;;  %v12818_v29 = vpop.permute.xlu0 %3476 }
 0x3ba   :  { %18778 = vst [vmem:[#allocation280_spill] sm:$0xff] %v12818_v29  ;;  %3720 = vbcast.lane.b32.xlu0 %v3454_v1, 256 }
 0x3bc   :  { %v12820_v62 = vpop.permute.xlu1 %3528 }
 0x3bd   :  { %18779 = vst [vmem:[#allocation281_spill] sm:$0xff] %v12820_v62  ;;  %3772 = vbcast.lane.b32.xlu1 %v3454_v1, 360  ;;  %v12822_v4 = vpop.permute.xlu0 %3484 }
 0x3be   :  { %18780 = vst [vmem:[#allocation282_spill] sm:$0xff] %v12822_v4  ;;  %3728 = vbcast.lane.b32.xlu0 %v3454_v1, 272 }
 0x3c0   :  { %v12824_v0 = vpop.permute.xlu1 %3535 }
 0x3c1   :  { %18781 = vst [vmem:[#allocation283_spill] sm:$0xff] %v12824_v0  ;;  %3780 = vbcast.lane.b32.xlu1 %v3454_v1, 376  ;;  %v12826_v10 = vpop.permute.xlu0 %3492 }
 0x3c2   :  { %18782 = vst [vmem:[#allocation284_spill] sm:$0xff] %v12826_v10  ;;  %3736 = vbcast.lane.b32.xlu0 %v3454_v1, 288 }
 0x3c4   :  { %v12830_v55 = vpop.permute.xlu1 %3543 }
 0x3c5   :  { %18784 = vst [vmem:[#allocation285_spill] sm:$0xff] %v12830_v55  ;;  %3787 = vbcast.lane.b32.xlu1 %v3458_v48, 264  ;;  %v12832_v50 = vpop.permute.xlu0 %3500 }
 0x3c6   :  { %18785 = vst [vmem:[#allocation286_spill] sm:$0xff] %v12832_v50  ;;  %3744 = vbcast.lane.b32.xlu0 %v3454_v1, 304 }
 0x3c8   :  { %v12834_v12 = vpop.permute.xlu1 %3551 }
 0x3c9   :  { %18786 = vst [vmem:[#allocation287_spill] sm:$0xff] %v12834_v12  ;;  %3795 = vbcast.lane.b32.xlu1 %v3458_v48, 280  ;;  %v12836_v40 = vpop.permute.xlu0 %3508 }
 0x3ca   :  { %18787 = vst [vmem:[#allocation288_spill] sm:$0xff] %v12836_v40  ;;  %3752 = vbcast.lane.b32.xlu0 %v3454_v1, 320 }
 0x3cc   :  { %v12838_v19 = vpop.permute.xlu1 %3559 }
 0x3cd   :  { %18788 = vst [vmem:[#allocation289_spill] sm:$0xff] %v12838_v19  ;;  %3803 = vbcast.lane.b32.xlu1 %v3458_v48, 296  ;;  %v12840_v58 = vpop.permute.xlu0 %3516 }
 0x3ce   :  { %18789 = vst [vmem:[#allocation290_spill] sm:$0xff] %v12840_v58  ;;  %3760 = vbcast.lane.b32.xlu0 %v3454_v1, 336 }
 0x3d0   :  { %v12842_v45 = vpop.permute.xlu1 %3567 }
 0x3d1   :  { %18790 = vst [vmem:[#allocation291_spill] sm:$0xff] %v12842_v45  ;;  %3811 = vbcast.lane.b32.xlu1 %v3458_v48, 312  ;;  %v12844_v43 = vpop.permute.xlu0 %3524 }
 0x3d2   :  { %18791 = vst [vmem:[#allocation292_spill] sm:$0xff] %v12844_v43  ;;  %3768 = vbcast.lane.b32.xlu0 %v3454_v1, 352 }
 0x3d4   :  { %v12846_v11 = vpop.permute.xlu1 %3575 }
 0x3d5   :  { %18792 = vst [vmem:[#allocation293_spill] sm:$0xff] %v12846_v11  ;;  %3819 = vbcast.lane.b32.xlu1 %v3458_v48, 328  ;;  %v12848_v61 = vpop.permute.xlu0 %3531 }
 0x3d6   :  { %18793 = vst [vmem:[#allocation294_spill] sm:$0xff] %v12848_v61  ;;  %3776 = vbcast.lane.b32.xlu0 %v3454_v1, 368  ;;  %v3462_v1 = vrot.slane %v12638_v26, %v18800_v37 }
 0x3d8   :  { %v12850_v15 = vpop.permute.xlu1 %3583 }
 0x3d9   :  { %18794 = vst [vmem:[#allocation295_spill] sm:$0xff] %v12850_v15  ;;  %3827 = vbcast.lane.b32.xlu1 %v3458_v48, 344  ;;  %v12852_v41 = vpop.permute.xlu0 %3539 }
 0x3da   :  { %18795 = vst [vmem:[#allocation296_spill] sm:$0xff] %v12852_v41  ;;  %3783 = vbcast.lane.b32.xlu0 %v3458_v48, 256 }
 0x3dc   :  { %v12854_v53 = vpop.permute.xlu1 %3591 }
 0x3dd   :  { %18796 = vst [vmem:[#allocation297_spill] sm:$0xff] %v12854_v53  ;;  %3835 = vbcast.lane.b32.xlu1 %v3458_v48, 360  ;;  %v12856_v8 = vpop.permute.xlu0 %3547 }
 0x3de   :  { %18797 = vst [vmem:[#allocation298_spill] sm:$0xff] %v12856_v8  ;;  %3791 = vbcast.lane.b32.xlu0 %v3458_v48, 272 }
 0x3e0   :  { %v12858_v5 = vpop.permute.xlu1 %3598 }
 0x3e1   :  { %18798 = vst [vmem:[#allocation299_spill] sm:$0xff] %v12858_v5  ;;  %3843 = vbcast.lane.b32.xlu1 %v3458_v48, 376  ;;  %v12860_v7 = vpop.permute.xlu0 %3555 }
 0x3e2   :  { %18799 = vst [vmem:[#allocation300_spill] sm:$0xff] %v12860_v7  ;;  %3799 = vbcast.lane.b32.xlu0 %v3458_v48, 288 }
 0x3e4   :  { %v12864_v38 = vpop.permute.xlu1 %3606 }
 0x3e5   :  { %18801 = vst [vmem:[#allocation301_spill] sm:$0xff] %v12864_v38  ;;  %3850 = vbcast.lane.b32.xlu1 %v3462_v1, 264  ;;  %v12866_v36 = vpop.permute.xlu0 %3563 }
 0x3e6   :  { %18802 = vst [vmem:[#allocation302_spill] sm:$0xff] %v12866_v36  ;;  %3807 = vbcast.lane.b32.xlu0 %v3458_v48, 304 }
 0x3e8   :  { %v12868_v51 = vpop.permute.xlu1 %3614 }
 0x3e9   :  { %18803 = vst [vmem:[#allocation303_spill] sm:$0xff] %v12868_v51  ;;  %3858 = vbcast.lane.b32.xlu1 %v3462_v1, 280  ;;  %v12870_v35 = vpop.permute.xlu0 %3571 }
 0x3ea   :  { %18804 = vst [vmem:[#allocation304_spill] sm:$0xff] %v12870_v35  ;;  %3815 = vbcast.lane.b32.xlu0 %v3458_v48, 320 }
 0x3ec   :  { %v12872_v6 = vpop.permute.xlu1 %3622 }
 0x3ed   :  { %18805 = vst [vmem:[#allocation305_spill] sm:$0xff] %v12872_v6  ;;  %3866 = vbcast.lane.b32.xlu1 %v3462_v1, 296  ;;  %v12874_v31 = vpop.permute.xlu0 %3579 }
 0x3ee   :  { %18806 = vst [vmem:[#allocation306_spill] sm:$0xff] %v12874_v31  ;;  %3823 = vbcast.lane.b32.xlu0 %v3458_v48, 336 }
 0x3f0   :  { %v12876_v49 = vpop.permute.xlu1 %3630 }
 0x3f1   :  { %18807 = vst [vmem:[#allocation307_spill] sm:$0xff] %v12876_v49  ;;  %3874 = vbcast.lane.b32.xlu1 %v3462_v1, 312  ;;  %v12878_v47 = vpop.permute.xlu0 %3587 }
 0x3f2   :  { %18808 = vst [vmem:[#allocation308_spill] sm:$0xff] %v12878_v47  ;;  %3831 = vbcast.lane.b32.xlu0 %v3458_v48, 352 }
 0x3f4   :  { %v12880_v33 = vpop.permute.xlu1 %3638 }
 0x3f5   :  { %18809 = vst [vmem:[#allocation309_spill] sm:$0xff] %v12880_v33  ;;  %3882 = vbcast.lane.b32.xlu1 %v3462_v1, 328  ;;  %v12882_v17 = vpop.permute.xlu0 %3594 }
 0x3f6   :  { %18810 = vst [vmem:[#allocation310_spill] sm:$0xff] %v12882_v17  ;;  %3839 = vbcast.lane.b32.xlu0 %v3458_v48, 368  ;;  %v3466_v48 = vrot.slane %v12638_v26, %v18817_v54 }
 0x3f8   :  { %v12884_v27 = vpop.permute.xlu1 %3646 }
 0x3f9   :  { %18811 = vst [vmem:[#allocation311_spill] sm:$0xff] %v12884_v27  ;;  %3890 = vbcast.lane.b32.xlu1 %v3462_v1, 344  ;;  %v12886_v63 = vpop.permute.xlu0 %3602 }
 0x3fa   :  { %18812 = vst [vmem:[#allocation312_spill] sm:$0xff] %v12886_v63  ;;  %3846 = vbcast.lane.b32.xlu0 %v3462_v1, 256 }
 0x3fc   :  { %v12888_v25 = vpop.permute.xlu1 %3654 }
 0x3fd   :  { %18813 = vst [vmem:[#allocation313_spill] sm:$0xff] %v12888_v25  ;;  %3898 = vbcast.lane.b32.xlu1 %v3462_v1, 360  ;;  %v12890_v39 = vpop.permute.xlu0 %3610 }
 0x3fe   :  { %18814 = vst [vmem:[#allocation314_spill] sm:$0xff] %v12890_v39  ;;  %3854 = vbcast.lane.b32.xlu0 %v3462_v1, 272 }
 0x400   :  { %v12892_v2 = vpop.permute.xlu1 %3661 }
 0x401   :  { %18815 = vst [vmem:[#allocation315_spill] sm:$0xff] %v12892_v2  ;;  %3906 = vbcast.lane.b32.xlu1 %v3462_v1, 376  ;;  %v12894_v60 = vpop.permute.xlu0 %3618 }
 0x402   :  { %18816 = vst [vmem:[#allocation316_spill] sm:$0xff] %v12894_v60  ;;  %3862 = vbcast.lane.b32.xlu0 %v3462_v1, 288 }
 0x404   :  { %v12898_v56 = vpop.permute.xlu1 %3669 }
 0x405   :  { %18818 = vst [vmem:[#allocation317_spill] sm:$0xff] %v12898_v56  ;;  %3913 = vbcast.lane.b32.xlu1 %v3466_v48, 264  ;;  %v12900_v28 = vpop.permute.xlu0 %3626 }
 0x406   :  { %18819 = vst [vmem:[#allocation318_spill] sm:$0xff] %v12900_v28  ;;  %3870 = vbcast.lane.b32.xlu0 %v3462_v1, 304 }
 0x408   :  { %v12902_v59 = vpop.permute.xlu1 %3677 }
 0x409   :  { %18820 = vst [vmem:[#allocation319_spill] sm:$0xff] %v12902_v59  ;;  %3921 = vbcast.lane.b32.xlu1 %v3466_v48, 280  ;;  %v12904_v24 = vpop.permute.xlu0 %3634 }
 0x40a   :  { %18821 = vst [vmem:[#allocation320_spill] sm:$0xff] %v12904_v24  ;;  %3878 = vbcast.lane.b32.xlu0 %v3462_v1, 320 }
 0x40c   :  { %v12906_v3 = vpop.permute.xlu1 %3685 }
 0x40d   :  { %18822 = vst [vmem:[#allocation321_spill] sm:$0xff] %v12906_v3  ;;  %3929 = vbcast.lane.b32.xlu1 %v3466_v48, 296  ;;  %v12908_v30 = vpop.permute.xlu0 %3642 }
 0x40e   :  { %18823 = vst [vmem:[#allocation322_spill] sm:$0xff] %v12908_v30  ;;  %3886 = vbcast.lane.b32.xlu0 %v3462_v1, 336 }
 0x410   :  { %v12910_v26 = vpop.permute.xlu1 %3693 }
 0x411   :  { %18824 = vst [vmem:[#allocation323_spill] sm:$0xff] %v12910_v26  ;;  %3937 = vbcast.lane.b32.xlu1 %v3466_v48, 312  ;;  %v12912_v20 = vpop.permute.xlu0 %3650 }
 0x412   :  { %18825 = vst [vmem:[#allocation324_spill] sm:$0xff] %v12912_v20  ;;  %3894 = vbcast.lane.b32.xlu0 %v3462_v1, 352 }
 0x414   :  { %v12914_v52 = vpop.permute.xlu1 %3701 }
 0x415   :  { %18826 = vst [vmem:[#allocation325_spill] sm:$0xff] %v12914_v52  ;;  %3945 = vbcast.lane.b32.xlu1 %v3466_v48, 328  ;;  %v12916_v54 = vpop.permute.xlu0 %3657  ;;  %v12930_v52 = vrot.slane %v18833_v44, %v18715_v23 }
 0x416   :  { %18827 = vst [vmem:[#allocation326_spill] sm:$0xff] %v12916_v54  ;;  %3902 = vbcast.lane.b32.xlu0 %v3462_v1, 368 }
 0x417   :  { %v4104_v23 = vmul.f32 %v12800_v57, %v12930_v52 }
 0x418   :  { %v12918_v37 = vpop.permute.xlu1 %3709 }
 0x419   :  { %18828 = vst [vmem:[#allocation327_spill] sm:$0xff] %v12918_v37  ;;  %3953 = vbcast.lane.b32.xlu1 %v3466_v48, 344  ;;  %v12920_v18 = vpop.permute.xlu0 %3665 }
 0x41a   :  { %18829 = vst [vmem:[#allocation328_spill] sm:$0xff] %v12920_v18  ;;  %3909 = vbcast.lane.b32.xlu0 %v3466_v48, 256  ;;  %v4100_v18 = vmul.f32 %v12790_v46, %v12930_v52 }
 0x41c   :  { %v12922_v21 = vpop.permute.xlu1 %3717 }
 0x41d   :  { %18830 = vst [vmem:[#allocation329_spill] sm:$0xff] %v12922_v21  ;;  %3961 = vbcast.lane.b32.xlu1 %v3466_v48, 360  ;;  %v12924_v9 = vpop.permute.xlu0 %3673 }
 0x41e   :  { %18831 = vst [vmem:[#allocation330_spill] sm:$0xff] %v12924_v9  ;;  %3917 = vbcast.lane.b32.xlu0 %v3466_v48, 272 }
 0x420   :  { %v12926_v14 = vpop.permute.xlu1 %3724 }
 0x421   :  { %18832 = vst [vmem:[#allocation331_spill] sm:$0xff] %v12926_v14  ;;  %3969 = vbcast.lane.b32.xlu1 %v3466_v48, 376  ;;  %v12932_v1 = vpop.permute.xlu0 %3681  ;;  %v4102_v14 = vmul.f32 %v12796_v42, %v12930_v52 }
 0x422   :  { %18834 = vst [vmem:[#allocation332_spill] sm:$0xff] %v12932_v1  ;;  %3925 = vbcast.lane.b32.xlu0 %v3466_v48, 288 }
 0x424   :  { %v12936_v37 = vpop.permute.xlu1 %3732 }
 0x425   :  { %4615 = vperm.xlu1 %11070, %v4100_v18   ;;  %v12938_v21 = vpop.permute.xlu0 %3689  ;;  %v4106_v18 = vmul.f32 %v12804_v22, %v12930_v52  ;;  %v4099_v22 = vmul.f32 %v12814_v13, %v12930_v52  ;;  %v4114_v13 = vmul.f32 %v12820_v62, %v12930_v52 }
 0x426   :  { %18835 = vst [vmem:[#allocation333_spill] sm:$0xff] %v12938_v21  ;;  %3933 = vbcast.lane.b32.xlu0 %v3466_v48, 304 }
 0x428   :  { %v12942_v9 = vpop.permute.xlu1 %3740 }
 0x429   :  { %18836 = vst [vmem:[#allocation334_spill] sm:$0xff] %v12942_v9  ;;  %4621 = vperm.xlu1 %11070, %v4102_v14   ;;  %v12944_v44 = vpop.permute.xlu0 %3697  ;;  %v4108_v14 = vmul.f32 %v12808_v16, %v12930_v52  ;;  %v4112_v16 = vmul.f32 %v12816_v32, %v12930_v52 }
 0x42a   :  { %18837 = vst [vmem:[#allocation335_spill] sm:$0xff] %v12944_v44  ;;  %3941 = vbcast.lane.b32.xlu0 %v3466_v48, 320 }
 0x42c   :  { %v12948_v1 = vpop.permute.xlu1 %3748 }
 0x42d   :  { %18838 = vst [vmem:[#allocation336_spill] sm:$0xff] %v12948_v1  ;;  %4627 = vperm.xlu1 %11070, %v4104_v23   ;;  %v12950_v46 = vpop.permute.xlu0 %3705  ;;  %v4110_v23 = vmul.f32 %v12812_v34, %v12930_v52 }
 0x42e   :  { %18839 = vst [vmem:[#allocation337_spill] sm:$0xff] %v12950_v46  ;;  %3949 = vbcast.lane.b32.xlu0 %v3466_v48, 336 }
 0x430   :  { %v12954_v21 = vpop.permute.xlu1 %3756 }
 0x431   :  { %18840 = vst [vmem:[#allocation338_spill] sm:$0xff] %v12954_v21  ;;  %4633 = vperm.xlu1 %11070, %v4106_v18   ;;  %v12956_v42 = vpop.permute.xlu0 %3713 }
 0x432   :  { %18841 = vst [vmem:[#allocation339_spill] sm:$0xff] %v12956_v42  ;;  %3957 = vbcast.lane.b32.xlu0 %v3466_v48, 352 }
 0x434   :  { %v12960_v44 = vpop.permute.xlu1 %3764 }
 0x435   :  { %4639 = vperm.xlu1 %11070, %v4108_v14   ;;  %v12962_v57 = vpop.permute.xlu0 %3720  ;;  %v4101_v14 = vmul.f32 %v12818_v29, %v12930_v52  ;;  %v4116_v29 = vmul.f32 %v12824_v0, %v12930_v52 }
 0x436   :  { %18842 = vst [vmem:[#allocation340_spill] sm:$0xff] %v12962_v57  ;;  %3965 = vbcast.lane.b32.xlu0 %v3466_v48, 368 }
 0x438   :  { %v12968_v21 = vpop.permute.xlu1 %3772 }
 0x439   :  { %4645 = vperm.xlu1 %11070, %v4110_v23   ;;  %v12970_v18 = vpop.permute.xlu0 %3728  ;;  %v4103_v23 = vmul.f32 %v12822_v4, %v12930_v52  ;;  %v4118_v4 = vmul.f32 %v12830_v55, %v12930_v52 }
 0x43a   :  { %4612 = vperm.xlu0 %11071, %v4099_v22  }
 0x43c   :  { %v12976_v57 = vpop.permute.xlu1 %3780 }
 0x43d   :  { %4651 = vperm.xlu1 %11070, %v4112_v16   ;;  %v12978_v48 = vpop.permute.xlu0 %3736  ;;  %v4105_v16 = vmul.f32 %v12826_v10, %v12930_v52  ;;  %v4120_v10 = vmul.f32 %v12834_v12, %v12930_v52 }
 0x43e   :  { %4618 = vperm.xlu0 %11071, %v4101_v14  }
 0x440   :  { %v12984_v34 = vpop.permute.xlu1 %3787 }
 0x441   :  { %4657 = vperm.xlu1 %11070, %v4114_v13   ;;  %v12986_v22 = vpop.permute.xlu0 %3744  ;;  %v4107_v13 = vmul.f32 %v12832_v50, %v12930_v52  ;;  %v4122_v50 = vmul.f32 %v12838_v19, %v12930_v52 }
 0x442   :  { %4624 = vperm.xlu0 %11071, %v4103_v23  }
 0x444   :  { %v12992_v32 = vpop.permute.xlu1 %3795 }
 0x445   :  { %4663 = vperm.xlu1 %11070, %v4116_v29   ;;  %v12994_v14 = vpop.permute.xlu0 %3752  ;;  %v4109_v29 = vmul.f32 %v12836_v40, %v12930_v52  ;;  %v4124_v40 = vmul.f32 %v12842_v45, %v12930_v52 }
 0x446   :  { %4630 = vperm.xlu0 %11071, %v4105_v16  }
 0x448   :  { %v13000_v62 = vpop.permute.xlu1 %3803 }
 0x449   :  { %4669 = vperm.xlu1 %11070, %v4118_v4   ;;  %v13002_v23 = vpop.permute.xlu0 %3760  ;;  %v4111_v4 = vmul.f32 %v12840_v58, %v12930_v52  ;;  %v4126_v58 = vmul.f32 %v12846_v11, %v12930_v52 }
 0x44a   :  { %4636 = vperm.xlu0 %11071, %v4107_v13  }
 0x44c   :  { %v13008_v0 = vpop.permute.xlu1 %3811 }
 0x44d   :  { %4675 = vperm.xlu1 %11070, %v4120_v10   ;;  %v13010_v16 = vpop.permute.xlu0 %3768  ;;  %v4113_v10 = vmul.f32 %v12844_v43, %v12930_v52  ;;  %v4128_v43 = vmul.f32 %v12850_v15, %v12930_v52 }
 0x44e   :  { %4642 = vperm.xlu0 %11071, %v4109_v29  }
 0x450   :  { %v13016_v55 = vpop.permute.xlu1 %3819 }
 0x451   :  { %4681 = vperm.xlu1 %11070, %v4122_v50   ;;  %v13018_v13 = vpop.permute.xlu0 %3776  ;;  %v4115_v50 = vmul.f32 %v12848_v61, %v12930_v52  ;;  %v4130_v61 = vmul.f32 %v12854_v53, %v12930_v52 }
 0x452   :  { %4648 = vperm.xlu0 %11071, %v4111_v4  }
 0x454   :  { %v13024_v12 = vpop.permute.xlu1 %3827 }
 0x455   :  { %4687 = vperm.xlu1 %11070, %v4124_v40   ;;  %v13026_v29 = vpop.permute.xlu0 %3783  ;;  %v4117_v40 = vmul.f32 %v12852_v41, %v12930_v52  ;;  %v4132_v41 = vmul.f32 %v12858_v5, %v12930_v52 }
 0x456   :  { %4654 = vperm.xlu0 %11071, %v4113_v10  }
 0x458   :  { %v13032_v19 = vpop.permute.xlu1 %3835 }
 0x459   :  { %4693 = vperm.xlu1 %11070, %v4126_v58   ;;  %v13034_v4 = vpop.permute.xlu0 %3791  ;;  %v4119_v58 = vmul.f32 %v12856_v8, %v12930_v52  ;;  %v4134_v8 = vmul.f32 %v12864_v38, %v12930_v52 }
 0x45a   :  { %4660 = vperm.xlu0 %11071, %v4115_v50  }
 0x45c   :  { %v13040_v45 = vpop.permute.xlu1 %3843 }
 0x45d   :  { %4699 = vperm.xlu1 %11070, %v4128_v43   ;;  %v13042_v10 = vpop.permute.xlu0 %3799  ;;  %v4121_v43 = vmul.f32 %v12860_v7, %v12930_v52  ;;  %v4136_v7 = vmul.f32 %v12868_v51, %v12930_v52 }
 0x45e   :  { %4666 = vperm.xlu0 %11071, %v4117_v40  }
 0x460   :  { %v13048_v11 = vpop.permute.xlu1 %3850 }
 0x461   :  { %4705 = vperm.xlu1 %11070, %v4130_v61   ;;  %v13050_v50 = vpop.permute.xlu0 %3807  ;;  %v4123_v61 = vmul.f32 %v12866_v36, %v12930_v52  ;;  %v4138_v36 = vmul.f32 %v12872_v6, %v12930_v52 }
 0x462   :  { %4672 = vperm.xlu0 %11071, %v4119_v58  }
 0x464   :  { %v13056_v15 = vpop.permute.xlu1 %3858 }
 0x465   :  { %4711 = vperm.xlu1 %11070, %v4132_v41   ;;  %v13058_v40 = vpop.permute.xlu0 %3815  ;;  %v4125_v41 = vmul.f32 %v12870_v35, %v12930_v52  ;;  %v4140_v35 = vmul.f32 %v12876_v49, %v12930_v52 }
 0x466   :  { %4678 = vperm.xlu0 %11071, %v4121_v43  }
 0x468   :  { %v13064_v53 = vpop.permute.xlu1 %3866 }
 0x469   :  { %4717 = vperm.xlu1 %11070, %v4134_v8   ;;  %v13066_v58 = vpop.permute.xlu0 %3823  ;;  %v4127_v8 = vmul.f32 %v12874_v31, %v12930_v52  ;;  %v4142_v31 = vmul.f32 %v12880_v33, %v12930_v52 }
 0x46a   :  { %4684 = vperm.xlu0 %11071, %v4123_v61  }
 0x46c   :  { %v13072_v5 = vpop.permute.xlu1 %3874 }
 0x46d   :  { %4723 = vperm.xlu1 %11070, %v4136_v7   ;;  %v13074_v43 = vpop.permute.xlu0 %3831  ;;  %v4129_v7 = vmul.f32 %v12878_v47, %v12930_v52  ;;  %v4144_v47 = vmul.f32 %v12884_v27, %v12930_v52 }
 0x46e   :  { %4690 = vperm.xlu0 %11071, %v4125_v41  }
 0x470   :  { %v13080_v38 = vpop.permute.xlu1 %3882 }
 0x471   :  { %4729 = vperm.xlu1 %11070, %v4138_v36   ;;  %v13082_v61 = vpop.permute.xlu0 %3839  ;;  %v4131_v36 = vmul.f32 %v12882_v17, %v12930_v52  ;;  %v4146_v17 = vmul.f32 %v12888_v25, %v12930_v52 }
 0x472   :  { %4696 = vperm.xlu0 %11071, %v4127_v8  }
 0x474   :  { %v13088_v51 = vpop.permute.xlu1 %3890 }
 0x475   :  { %4735 = vperm.xlu1 %11070, %v4140_v35   ;;  %v13090_v41 = vpop.permute.xlu0 %3846  ;;  %v4133_v35 = vmul.f32 %v12886_v63, %v12930_v52  ;;  %v4148_v63 = vmul.f32 %v12892_v2, %v12930_v52 }
 0x476   :  { %4702 = vperm.xlu0 %11071, %v4129_v7  }
 0x478   :  { %v13096_v6 = vpop.permute.xlu1 %3898 }
 0x479   :  { %4741 = vperm.xlu1 %11070, %v4142_v31   ;;  %v13098_v8 = vpop.permute.xlu0 %3854  ;;  %v4135_v31 = vmul.f32 %v12890_v39, %v12930_v52  ;;  %v4150_v39 = vmul.f32 %v12898_v56, %v12930_v52 }
 0x47a   :  { %4708 = vperm.xlu0 %11071, %v4131_v36  }
 0x47c   :  { %v13104_v49 = vpop.permute.xlu1 %3906 }
 0x47d   :  { %4747 = vperm.xlu1 %11070, %v4144_v47   ;;  %v13106_v7 = vpop.permute.xlu0 %3862  ;;  %v4137_v47 = vmul.f32 %v12894_v60, %v12930_v52  ;;  %v4152_v60 = vmul.f32 %v12902_v59, %v12930_v52 }
 0x47e   :  { %4714 = vperm.xlu0 %11071, %v4133_v35  }
 0x480   :  { %v13112_v33 = vpop.permute.xlu1 %3913 }
 0x481   :  { %4753 = vperm.xlu1 %11070, %v4146_v17   ;;  %v13114_v36 = vpop.permute.xlu0 %3870  ;;  %v4139_v17 = vmul.f32 %v12900_v28, %v12930_v52  ;;  %v4154_v28 = vmul.f32 %v12906_v3, %v12930_v52 }
 0x482   :  { %4720 = vperm.xlu0 %11071, %v4135_v31  }
 0x484   :  { %v13120_v27 = vpop.permute.xlu1 %3921 }
 0x485   :  { %4759 = vperm.xlu1 %11070, %v4148_v63   ;;  %v13122_v35 = vpop.permute.xlu0 %3878  ;;  %v4141_v63 = vmul.f32 %v12904_v24, %v12930_v52  ;;  %v4156_v24 = vmul.f32 %v12910_v26, %v12930_v52 }
 0x486   :  { %4726 = vperm.xlu0 %11071, %v4137_v47  }
 0x488   :  { %v13128_v25 = vpop.permute.xlu1 %3929 }
 0x489   :  { %4765 = vperm.xlu1 %11070, %v4150_v39   ;;  %v13130_v31 = vpop.permute.xlu0 %3886  ;;  %v4143_v39 = vmul.f32 %v12908_v30, %v12930_v52  ;;  %v18850_v30 = vld [vmem:[#allocation325_spill] sm:$0xff] }
 0x48a   :  { %18843 = vst [vmem:[#allocation341_spill] sm:$0xff] %v13130_v31  ;;  %4732 = vperm.xlu0 %11071, %v4139_v17   ;;  %v4158_v3 = vmul.f32 %v18850_v30, %v12930_v52 }
 0x48c   :  { %v13136_v2 = vpop.permute.xlu1 %3937 }
 0x48d   :  { %18844 = vst [vmem:[#allocation342_spill] sm:$0xff] %v13136_v2  ;;  %4771 = vperm.xlu1 %11070, %v4152_v60   ;;  %v13138_v47 = vpop.permute.xlu0 %3894  ;;  %v4145_v60 = vmul.f32 %v12912_v20, %v12930_v52  ;;  %v18853_v20 = vld [vmem:[#allocation327_spill] sm:$0xff] }
 0x48e   :  { %18845 = vst [vmem:[#allocation343_spill] sm:$0xff] %v13138_v47  ;;  %4738 = vperm.xlu0 %11071, %v4141_v63   ;;  %v4160_v26 = vmul.f32 %v18853_v20, %v12930_v52 }
 0x490   :  { %v13144_v56 = vpop.permute.xlu1 %3945 }
 0x491   :  { %18846 = vst [vmem:[#allocation344_spill] sm:$0xff] %v13144_v56  ;;  %4777 = vperm.xlu1 %11070, %v4154_v28   ;;  %v13146_v17 = vpop.permute.xlu0 %3902  ;;  %v4147_v28 = vmul.f32 %v12916_v54, %v12930_v52  ;;  %v18857_v54 = vld [vmem:[#allocation329_spill] sm:$0xff] }
 0x492   :  { %18847 = vst [vmem:[#allocation345_spill] sm:$0xff] %v13146_v17  ;;  %4744 = vperm.xlu0 %11071, %v4143_v39   ;;  %v4162_v30 = vmul.f32 %v18857_v54, %v12930_v52 }
 0x494   :  { %v13152_v59 = vpop.permute.xlu1 %3953 }
 0x495   :  { %18848 = vst [vmem:[#allocation346_spill] sm:$0xff] %v13152_v59  ;;  %4783 = vperm.xlu1 %11070, %v4156_v24   ;;  %v13154_v63 = vpop.permute.xlu0 %3909  ;;  %v18854_v24 = vld [vmem:[#allocation328_spill] sm:$0xff] }
 0x496   :  { %18849 = vst [vmem:[#allocation347_spill] sm:$0xff] %v13154_v63  ;;  %4750 = vperm.xlu0 %11071, %v4145_v60   ;;  %v4149_v59 = vmul.f32 %v18854_v24, %v12930_v52  ;;  %v18860_v24 = vld [vmem:[#allocation331_spill] sm:$0xff] }
 0x497   :  { %v4164_v20 = vmul.f32 %v18860_v24, %v12930_v52 }
 0x498   :  { %v13160_v17 = vpop.permute.xlu1 %3961 }
 0x499   :  { %18851 = vst [vmem:[#allocation348_spill] sm:$0xff] %v13160_v17  ;;  %4789 = vperm.xlu1 %11070, %v4158_v3   ;;  %v13162_v39 = vpop.permute.xlu0 %3917  ;;  %v18858_v3 = vld [vmem:[#allocation330_spill] sm:$0xff] }
 0x49a   :  { %18852 = vst [vmem:[#allocation349_spill] sm:$0xff] %v13162_v39  ;;  %4756 = vperm.xlu0 %11071, %v4147_v28   ;;  %v4151_v17 = vmul.f32 %v18858_v3, %v12930_v52  ;;  %v4166_v3 = vmul.f32 %v12936_v37, %v12930_v52 }
 0x49c   :  { %v13168_v63 = vpop.permute.xlu1 %3969 }
 0x49d   :  { %18855 = vst [vmem:[#allocation350_spill] sm:$0xff] %v13168_v63  ;;  %4795 = vperm.xlu1 %11070, %v4160_v26   ;;  %v13170_v60 = vpop.permute.xlu0 %3925  ;;  %v18861_v26 = vld [vmem:[#allocation332_spill] sm:$0xff] }
 0x49e   :  { %18856 = vst [vmem:[#allocation351_spill] sm:$0xff] %v13170_v60  ;;  %4762 = vperm.xlu0 %11071, %v4149_v59   ;;  %v4153_v63 = vmul.f32 %v18861_v26, %v12930_v52  ;;  %v4168_v26 = vmul.f32 %v12942_v9, %v12930_v52 }
 0x4a0   :  { %v13176_v39 = vpop.permute.xlu1 %4615 }
 0x4a1   :  { %18859 = vst [vmem:[#allocation352_spill] sm:$0xff] %v13176_v39  ;;  %4801 = vperm.xlu1 %11070, %v4162_v30   ;;  %v13178_v28 = vpop.permute.xlu0 %3933  ;;  %v18863_v30 = vld [vmem:[#allocation333_spill] sm:$0xff] }
 0x4a2   :  { %4768 = vperm.xlu0 %11071, %v4151_v17   ;;  %v4155_v39 = vmul.f32 %v18863_v30, %v12930_v52  ;;  %v4170_v30 = vmul.f32 %v12948_v1, %v12930_v52 }
 0x4a4   :  { %v13184_v60 = vpop.permute.xlu1 %4621 }
 0x4a5   :  { %18862 = vst [vmem:[#allocation353_spill] sm:$0xff] %v13184_v60  ;;  %4807 = vperm.xlu1 %11070, %v4164_v20   ;;  %v13186_v59 = vpop.permute.xlu0 %3941  ;;  %v18865_v20 = vld [vmem:[#allocation335_spill] sm:$0xff] }
 0x4a6   :  { %4774 = vperm.xlu0 %11071, %v4153_v63   ;;  %v4157_v60 = vmul.f32 %v18865_v20, %v12930_v52  ;;  %v18868_v20 = vld [vmem:[#allocation338_spill] sm:$0xff] }
 0x4a7   :  { %v4172_v9 = vmul.f32 %v18868_v20, %v12930_v52 }
 0x4a8   :  { %v13192_v54 = vpop.permute.xlu1 %4627 }
 0x4a9   :  { %18864 = vst [vmem:[#allocation354_spill] sm:$0xff] %v13192_v54  ;;  %4813 = vperm.xlu1 %11070, %v4166_v3   ;;  %v13194_v17 = vpop.permute.xlu0 %3949  ;;  %v4159_v3 = vmul.f32 %v12950_v46, %v12930_v52  ;;  %v4174_v46 = vmul.f32 %v12960_v44, %v12930_v52 }
 0x4aa   :  { %4780 = vperm.xlu0 %11071, %v4155_v39  }
 0x4ac   :  { %v13200_v24 = vpop.permute.xlu1 %4633 }
 0x4ad   :  { %18866 = vst [vmem:[#allocation355_spill] sm:$0xff] %v13200_v24  ;;  %4819 = vperm.xlu1 %11070, %v4168_v26   ;;  %v13202_v63 = vpop.permute.xlu0 %3957  ;;  %v4161_v26 = vmul.f32 %v12956_v42, %v12930_v52  ;;  %v4176_v42 = vmul.f32 %v12968_v21, %v12930_v52 }
 0x4ae   :  { %4786 = vperm.xlu0 %11071, %v4157_v60  }
 0x4b0   :  { %v13208_v54 = vpop.permute.xlu1 %4639 }
 0x4b1   :  { %18867 = vst [vmem:[#allocation356_spill] sm:$0xff] %v13208_v54  ;;  %4825 = vperm.xlu1 %11070, %v4170_v30   ;;  %v13210_v39 = vpop.permute.xlu0 %3965  ;;  %v18871_v30 = vld [vmem:[#allocation340_spill] sm:$0xff] }
 0x4b2   :  { %4792 = vperm.xlu0 %11071, %v4159_v3   ;;  %v4163_v54 = vmul.f32 %v18871_v30, %v12930_v52 }
 0x4b4   :  { %v13216_v24 = vpop.permute.xlu1 %4645 }
 0x4b5   :  { %18869 = vst [vmem:[#allocation338_spill] sm:$0xff] %v13216_v24  ;;  %4831 = vperm.xlu1 %11070, %v4172_v9   ;;  %v13218_v60 = vpop.permute.xlu0 %4612  ;;  %v4165_v9 = vmul.f32 %v12970_v18, %v12930_v52 }
 0x4b6   :  { %18870 = vst [vmem:[#allocation357_spill] sm:$0xff] %v13218_v60  ;;  %4798 = vperm.xlu0 %11071, %v4161_v26   ;;  %v4178_v60 = vmul.f32 %v12976_v57, %v12930_v52 }
 0x4b8   :  { %v13224_v1 = vpop.permute.xlu1 %4651 }
 0x4b9   :  { %18872 = vst [vmem:[#allocation340_spill] sm:$0xff] %v13224_v1  ;;  %4837 = vperm.xlu1 %11070, %v4174_v46   ;;  %v13226_v3 = vpop.permute.xlu0 %4618  ;;  %v4167_v46 = vmul.f32 %v12978_v48, %v12930_v52 }
 0x4ba   :  { %18873 = vst [vmem:[#allocation358_spill] sm:$0xff] %v13226_v3  ;;  %4804 = vperm.xlu0 %11071, %v4163_v54   ;;  %v4180_v3 = vmul.f32 %v12984_v34, %v12930_v52 }
 0x4bc   :  { %v13232_v24 = vpop.permute.xlu1 %4657 }
 0x4bd   :  { %18874 = vst [vmem:[#allocation359_spill] sm:$0xff] %v13232_v24  ;;  %4843 = vperm.xlu1 %11070, %v4176_v42   ;;  %v13234_v26 = vpop.permute.xlu0 %4624  ;;  %v4169_v42 = vmul.f32 %v12986_v22, %v12930_v52 }
 0x4be   :  { %18875 = vst [vmem:[#allocation360_spill] sm:$0xff] %v13234_v26  ;;  %4810 = vperm.xlu0 %11071, %v4165_v9   ;;  %v4182_v26 = vmul.f32 %v12992_v32, %v12930_v52 }
 0x4c0   :  { %v13240_v1 = vpop.permute.xlu1 %4663 }
 0x4c1   :  { %18876 = vst [vmem:[#allocation361_spill] sm:$0xff] %v13240_v1  ;;  %4849 = vperm.xlu1 %11070, %v4178_v60   ;;  %v13242_v54 = vpop.permute.xlu0 %4630  ;;  %v4171_v60 = vmul.f32 %v12994_v14, %v12930_v52 }
 0x4c2   :  { %18877 = vst [vmem:[#allocation362_spill] sm:$0xff] %v13242_v54  ;;  %4816 = vperm.xlu0 %11071, %v4167_v46   ;;  %v4184_v54 = vmul.f32 %v13000_v62, %v12930_v52 }
 0x4c4   :  { %v13248_v24 = vpop.permute.xlu1 %4669 }
 0x4c5   :  { %18878 = vst [vmem:[#allocation363_spill] sm:$0xff] %v13248_v24  ;;  %4855 = vperm.xlu1 %11070, %v4180_v3   ;;  %v13250_v9 = vpop.permute.xlu0 %4636  ;;  %v4173_v3 = vmul.f32 %v13002_v23, %v12930_v52 }
 0x4c6   :  { %18879 = vst [vmem:[#allocation364_spill] sm:$0xff] %v13250_v9  ;;  %4822 = vperm.xlu0 %11071, %v4169_v42   ;;  %v4186_v9 = vmul.f32 %v13008_v0, %v12930_v52 }
 0x4c8   :  { %v13256_v1 = vpop.permute.xlu1 %4675 }
 0x4c9   :  { %18880 = vst [vmem:[#allocation365_spill] sm:$0xff] %v13256_v1  ;;  %4861 = vperm.xlu1 %11070, %v4182_v26   ;;  %v13258_v46 = vpop.permute.xlu0 %4642  ;;  %v4175_v26 = vmul.f32 %v13010_v16, %v12930_v52 }
 0x4ca   :  { %18881 = vst [vmem:[#allocation366_spill] sm:$0xff] %v13258_v46  ;;  %4828 = vperm.xlu0 %11071, %v4171_v60   ;;  %v4188_v46 = vmul.f32 %v13016_v55, %v12930_v52 }
 0x4cc   :  { %v13264_v24 = vpop.permute.xlu1 %4681 }
 0x4cd   :  { %18882 = vst [vmem:[#allocation367_spill] sm:$0xff] %v13264_v24  ;;  %4867 = vperm.xlu1 %11070, %v4184_v54   ;;  %v13266_v42 = vpop.permute.xlu0 %4648  ;;  %v4177_v54 = vmul.f32 %v13018_v13, %v12930_v52 }
 0x4ce   :  { %18883 = vst [vmem:[#allocation368_spill] sm:$0xff] %v13266_v42  ;;  %4834 = vperm.xlu0 %11071, %v4173_v3   ;;  %v4190_v42 = vmul.f32 %v13024_v12, %v12930_v52 }
 0x4d0   :  { %v13272_v1 = vpop.permute.xlu1 %4687 }
 0x4d1   :  { %18884 = vst [vmem:[#allocation369_spill] sm:$0xff] %v13272_v1  ;;  %4873 = vperm.xlu1 %11070, %v4186_v9   ;;  %v13274_v60 = vpop.permute.xlu0 %4654  ;;  %v4179_v9 = vmul.f32 %v13026_v29, %v12930_v52  ;;  %v4192_v1 = vmul.f32 %v13032_v19, %v12930_v52 }
 0x4d2   :  { %18885 = vst [vmem:[#allocation370_spill] sm:$0xff] %v13274_v60  ;;  %4840 = vperm.xlu0 %11071, %v4175_v26  }
 0x4d4   :  { %v13280_v24 = vpop.permute.xlu1 %4693 }
 0x4d5   :  { %18886 = vst [vmem:[#allocation371_spill] sm:$0xff] %v13280_v24  ;;  %4879 = vperm.xlu1 %11070, %v4188_v46   ;;  %v13282_v3 = vpop.permute.xlu0 %4660  ;;  %v4181_v46 = vmul.f32 %v13034_v4, %v12930_v52 }
 0x4d6   :  { %18887 = vst [vmem:[#allocation372_spill] sm:$0xff] %v13282_v3  ;;  %4846 = vperm.xlu0 %11071, %v4177_v54   ;;  %v4194_v3 = vmul.f32 %v13040_v45, %v12930_v52 }
 0x4d8   :  { %v13288_v60 = vpop.permute.xlu1 %4699 }
 0x4d9   :  { %18888 = vst [vmem:[#allocation373_spill] sm:$0xff] %v13288_v60  ;;  %4885 = vperm.xlu1 %11070, %v4190_v42   ;;  %v13290_v26 = vpop.permute.xlu0 %4666  ;;  %v4183_v42 = vmul.f32 %v13042_v10, %v12930_v52 }
 0x4da   :  { %18889 = vst [vmem:[#allocation374_spill] sm:$0xff] %v13290_v26  ;;  %4852 = vperm.xlu0 %11071, %v4179_v9   ;;  %v4196_v26 = vmul.f32 %v13048_v11, %v12930_v52 }
 0x4dc   :  { %v13296_v24 = vpop.permute.xlu1 %4705 }
 0x4dd   :  { %18890 = vst [vmem:[#allocation375_spill] sm:$0xff] %v13296_v24  ;;  %4891 = vperm.xlu1 %11070, %v4192_v1   ;;  %v13298_v54 = vpop.permute.xlu0 %4672  ;;  %v4185_v1 = vmul.f32 %v13050_v50, %v12930_v52 }
 0x4de   :  { %18891 = vst [vmem:[#allocation376_spill] sm:$0xff] %v13298_v54  ;;  %4858 = vperm.xlu0 %11071, %v4181_v46   ;;  %v4198_v54 = vmul.f32 %v13056_v15, %v12930_v52 }
 0x4e0   :  { %v13304_v60 = vpop.permute.xlu1 %4711 }
 0x4e1   :  { %18892 = vst [vmem:[#allocation377_spill] sm:$0xff] %v13304_v60  ;;  %4897 = vperm.xlu1 %11070, %v4194_v3   ;;  %v13306_v9 = vpop.permute.xlu0 %4678  ;;  %v4187_v3 = vmul.f32 %v13058_v40, %v12930_v52  ;;  %v4200_v60 = vmul.f32 %v13064_v53, %v12930_v52 }
 0x4e2   :  { %18893 = vst [vmem:[#allocation378_spill] sm:$0xff] %v13306_v9  ;;  %4864 = vperm.xlu0 %11071, %v4183_v42  }
 0x4e4   :  { %v13312_v24 = vpop.permute.xlu1 %4717 }
 0x4e5   :  { %18894 = vst [vmem:[#allocation379_spill] sm:$0xff] %v13312_v24  ;;  %4903 = vperm.xlu1 %11070, %v4196_v26   ;;  %v13314_v46 = vpop.permute.xlu0 %4684  ;;  %v4189_v26 = vmul.f32 %v13066_v58, %v12930_v52  ;;  %v4202_v24 = vmul.f32 %v13072_v5, %v12930_v52 }
 0x4e6   :  { %18895 = vst [vmem:[#allocation380_spill] sm:$0xff] %v13314_v46  ;;  %4870 = vperm.xlu0 %11071, %v4185_v1  }
 0x4e8   :  { %v13320_v9 = vpop.permute.xlu1 %4723 }
 0x4e9   :  { %18896 = vst [vmem:[#allocation381_spill] sm:$0xff] %v13320_v9  ;;  %4909 = vperm.xlu1 %11070, %v4198_v54   ;;  %v13322_v42 = vpop.permute.xlu0 %4690  ;;  %v4191_v54 = vmul.f32 %v13074_v43, %v12930_v52  ;;  %v4204_v9 = vmul.f32 %v13080_v38, %v12930_v52 }
 0x4ea   :  { %18897 = vst [vmem:[#allocation382_spill] sm:$0xff] %v13322_v42  ;;  %4876 = vperm.xlu0 %11071, %v4187_v3  }
 0x4ec   :  { %v13328_v46 = vpop.permute.xlu1 %4729 }
 0x4ed   :  { %18898 = vst [vmem:[#allocation383_spill] sm:$0xff] %v13328_v46  ;;  %4915 = vperm.xlu1 %11070, %v4200_v60   ;;  %v13330_v1 = vpop.permute.xlu0 %4696  ;;  %v4193_v60 = vmul.f32 %v13082_v61, %v12930_v52  ;;  %v4206_v46 = vmul.f32 %v13088_v51, %v12930_v52 }
 0x4ee   :  { %18899 = vst [vmem:[#allocation384_spill] sm:$0xff] %v13330_v1  ;;  %4882 = vperm.xlu0 %11071, %v4189_v26  }
 0x4f0   :  { %v13336_v42 = vpop.permute.xlu1 %4735 }
 0x4f1   :  { %18900 = vst [vmem:[#allocation385_spill] sm:$0xff] %v13336_v42  ;;  %4921 = vperm.xlu1 %11070, %v4202_v24   ;;  %v13338_v3 = vpop.permute.xlu0 %4702  ;;  %v4195_v24 = vmul.f32 %v13090_v41, %v12930_v52  ;;  %v4208_v42 = vmul.f32 %v13096_v6, %v12930_v52 }
 0x4f2   :  { %18901 = vst [vmem:[#allocation386_spill] sm:$0xff] %v13338_v3  ;;  %4888 = vperm.xlu0 %11071, %v4191_v54  }
 0x4f4   :  { %v13344_v1 = vpop.permute.xlu1 %4741 }
 0x4f5   :  { %18902 = vst [vmem:[#allocation387_spill] sm:$0xff] %v13344_v1  ;;  %4927 = vperm.xlu1 %11070, %v4204_v9   ;;  %v13346_v26 = vpop.permute.xlu0 %4708  ;;  %v4197_v9 = vmul.f32 %v13098_v8, %v12930_v52 }
 0x4f6   :  { %18903 = vst [vmem:[#allocation388_spill] sm:$0xff] %v13346_v26  ;;  %4894 = vperm.xlu0 %11071, %v4193_v60   ;;  %v4210_v26 = vmul.f32 %v13104_v49, %v12930_v52 }
 0x4f8   :  { %v13352_v3 = vpop.permute.xlu1 %4747 }
 0x4f9   :  { %18904 = vst [vmem:[#allocation389_spill] sm:$0xff] %v13352_v3  ;;  %4933 = vperm.xlu1 %11070, %v4206_v46   ;;  %v13354_v54 = vpop.permute.xlu0 %4714  ;;  %v4199_v46 = vmul.f32 %v13106_v7, %v12930_v52 }
 0x4fa   :  { %18905 = vst [vmem:[#allocation390_spill] sm:$0xff] %v13354_v54  ;;  %4900 = vperm.xlu0 %11071, %v4195_v24   ;;  %v4212_v54 = vmul.f32 %v13112_v33, %v12930_v52 }
 0x4fc   :  { %v13360_v1 = vpop.permute.xlu1 %4753 }
 0x4fd   :  { %18906 = vst [vmem:[#allocation391_spill] sm:$0xff] %v13360_v1  ;;  %4939 = vperm.xlu1 %11070, %v4208_v42   ;;  %v13362_v60 = vpop.permute.xlu0 %4720  ;;  %v4201_v42 = vmul.f32 %v13114_v36, %v12930_v52 }
 0x4fe   :  { %18907 = vst [vmem:[#allocation392_spill] sm:$0xff] %v13362_v60  ;;  %4906 = vperm.xlu0 %11071, %v4197_v9   ;;  %v4214_v60 = vmul.f32 %v13120_v27, %v12930_v52 }
 0x500   :  { %v13368_v3 = vpop.permute.xlu1 %4759 }
 0x501   :  { %18908 = vst [vmem:[#allocation393_spill] sm:$0xff] %v13368_v3  ;;  %4945 = vperm.xlu1 %11070, %v4210_v26   ;;  %v13370_v24 = vpop.permute.xlu0 %4726  ;;  %v4203_v26 = vmul.f32 %v13122_v35, %v12930_v52 }
 0x502   :  { %18909 = vst [vmem:[#allocation394_spill] sm:$0xff] %v13370_v24  ;;  %4912 = vperm.xlu0 %11071, %v4199_v46   ;;  %v4216_v24 = vmul.f32 %v13128_v25, %v12930_v52 }
 0x504   :  { %v13376_v1 = vpop.permute.xlu1 %4765 }
 0x505   :  { %18910 = vst [vmem:[#allocation395_spill] sm:$0xff] %v13376_v1  ;;  %4951 = vperm.xlu1 %11070, %v4212_v54   ;;  %v13378_v9 = vpop.permute.xlu0 %4732  ;;  %v4205_v54 = vmul.f32 %v13130_v31, %v12930_v52  ;;  %v18933_v31 = vld [vmem:[#allocation28_spill] sm:$0xff] }
 0x506   :  { %18911 = vst [vmem:[#allocation396_spill] sm:$0xff] %v13378_v9  ;;  %4918 = vperm.xlu0 %11071, %v4201_v42   ;;  %v4218_v9 = vmul.f32 %v13136_v2, %v12930_v52 }
 0x508   :  { %v13384_v3 = vpop.permute.xlu1 %4771 }
 0x509   :  { %18912 = vst [vmem:[#allocation397_spill] sm:$0xff] %v13384_v3  ;;  %4957 = vperm.xlu1 %11070, %v4214_v60   ;;  %v13386_v46 = vpop.permute.xlu0 %4738  ;;  %v4207_v60 = vmul.f32 %v13138_v47, %v12930_v52  ;;  %v18921_v47 = vld [vmem:[#allocation346_spill] sm:$0xff] }
 0x50a   :  { %18913 = vst [vmem:[#allocation398_spill] sm:$0xff] %v13386_v46  ;;  %4924 = vperm.xlu0 %11071, %v4203_v26   ;;  %v4220_v46 = vmul.f32 %v13144_v56, %v12930_v52  ;;  %v4222_v2 = vmul.f32 %v18921_v47, %v12930_v52 }
 0x50c   :  { %v13392_v1 = vpop.permute.xlu1 %4777 }
 0x50d   :  { %18914 = vst [vmem:[#allocation399_spill] sm:$0xff] %v13392_v1  ;;  %4963 = vperm.xlu1 %11070, %v4216_v24   ;;  %v13394_v42 = vpop.permute.xlu0 %4744  ;;  %v18918_v24 = vld [vmem:[#allocation345_spill] sm:$0xff] }
 0x50e   :  { %18915 = vst [vmem:[#allocation400_spill] sm:$0xff] %v13394_v42  ;;  %4930 = vperm.xlu0 %11071, %v4205_v54   ;;  %v4209_v1 = vmul.f32 %v18918_v24, %v12930_v52  ;;  %v18925_v24 = vld [vmem:[#allocation348_spill] sm:$0xff] }
 0x50f   :  { %v4224_v56 = vmul.f32 %v18925_v24, %v12930_v52 }
 0x510   :  { %v13400_v3 = vpop.permute.xlu1 %4783 }
 0x511   :  { %18916 = vst [vmem:[#allocation401_spill] sm:$0xff] %v13400_v3  ;;  %4969 = vperm.xlu1 %11070, %v4218_v9   ;;  %v13402_v26 = vpop.permute.xlu0 %4750  ;;  %v18922_v9 = vld [vmem:[#allocation347_spill] sm:$0xff] }
 0x512   :  { %18917 = vst [vmem:[#allocation402_spill] sm:$0xff] %v13402_v26  ;;  %4936 = vperm.xlu0 %11071, %v4207_v60   ;;  %v4211_v3 = vmul.f32 %v18922_v9, %v12930_v52  ;;  %v18929_v9 = vld [vmem:[#allocation350_spill] sm:$0xff] }
 0x513   :  { %v4226_v47 = vmul.f32 %v18929_v9, %v12930_v52 }
 0x514   :  { %v13408_v42 = vpop.permute.xlu1 %4789 }
 0x515   :  { %18919 = vst [vmem:[#allocation403_spill] sm:$0xff] %v13408_v42  ;;  %4975 = vperm.xlu1 %11070, %v4220_v46   ;;  %v13410_v54 = vpop.permute.xlu0 %4756  ;;  %v18926_v46 = vld [vmem:[#allocation349_spill] sm:$0xff] }
 0x516   :  { %18920 = vst [vmem:[#allocation404_spill] sm:$0xff] %v13410_v54  ;;  %4942 = vperm.xlu0 %11071, %v4209_v1   ;;  %v4213_v42 = vmul.f32 %v18926_v46, %v12930_v52 }
 0x518   :  { %v13416_v26 = vpop.permute.xlu1 %4795 }
 0x519   :  { %18923 = vst [vmem:[#allocation405_spill] sm:$0xff] %v13416_v26  ;;  %4981 = vperm.xlu1 %11070, %v4222_v2   ;;  %v13418_v60 = vpop.permute.xlu0 %4762  ;;  %v18930_v2 = vld [vmem:[#allocation351_spill] sm:$0xff] }
 0x51a   :  { %18924 = vst [vmem:[#allocation406_spill] sm:$0xff] %v13418_v60  ;;  %4948 = vperm.xlu0 %11071, %v4211_v3   ;;  %v4215_v26 = vmul.f32 %v18930_v2, %v12930_v52  ;;  %v18932_v3 = vld [vmem:[#allocation7_spill] sm:$0xff] }
 0x51b   :  { %v13436_v24 = vrot.slane %v18933_v31, %v18932_v3 }
 0x51c   :  { %v13424_v54 = vpop.permute.xlu1 %4801 }
 0x51d   :  { %18927 = vst [vmem:[#allocation407_spill] sm:$0xff] %v13424_v54  ;;  %4987 = vperm.xlu1 %11070, %v4224_v56   ;;  %v13426_v1 = vpop.permute.xlu0 %4768  ;;  %v18935_v56 = vld [vmem:[#allocation267_spill] sm:$0xff] }
 0x51e   :  { %18928 = vst [vmem:[#allocation408_spill] sm:$0xff] %v13426_v1  ;;  %4954 = vperm.xlu0 %11071, %v4213_v42   ;;  %v4228_v54 = vmul.f32 %v18935_v56, %v13436_v24  ;;  %v4217_v42 = vmul.f32 %v13178_v28, %v12930_v52  ;;  %v18941_v56 = vld [vmem:[#allocation271_spill] sm:$0xff] }
 0x51f   :  { %v4232_v3 = vmul.f32 %v18941_v56, %v13436_v24  ;;  %v18947_v56 = vld [vmem:[#allocation275_spill] sm:$0xff] }
 0x520   :  { %v13432_v60 = vpop.permute.xlu1 %4807 }
 0x521   :  { %18931 = vst [vmem:[#allocation350_spill] sm:$0xff] %v13432_v60  ;;  %4993 = vperm.xlu1 %11070, %v4226_v47   ;;  %v13438_v46 = vpop.permute.xlu0 %4774  ;;  %v18938_v60 = vld [vmem:[#allocation269_spill] sm:$0xff]  ;;  %v4219_v47 = vmul.f32 %v13186_v59, %v12930_v52 }
 0x522   :  { %18934 = vst [vmem:[#allocation409_spill] sm:$0xff] %v13438_v46  ;;  %4960 = vperm.xlu0 %11071, %v4215_v26   ;;  %v4230_v31 = vmul.f32 %v18938_v60, %v13436_v24  ;;  %v18944_v60 = vld [vmem:[#allocation273_spill] sm:$0xff] }
 0x524   :  { %v13444_v1 = vpop.permute.xlu1 %4813 }
 0x525   :  { %18936 = vst [vmem:[#allocation267_spill] sm:$0xff] %v13444_v1  ;;  %4999 = vperm.xlu1 %11070, %v4228_v54   ;;  %v13446_v2 = vpop.permute.xlu0 %4780  ;;  %v4221_v54 = vmul.f32 %v13194_v17, %v12930_v52 }
 0x526   :  { %18937 = vst [vmem:[#allocation410_spill] sm:$0xff] %v13446_v2  ;;  %4966 = vperm.xlu0 %11071, %v4217_v42   ;;  %v4234_v2 = vmul.f32 %v18944_v60, %v13436_v24  ;;  %v18950_v60 = vld [vmem:[#allocation277_spill] sm:$0xff] }
 0x528   :  { %v13452_v46 = vpop.permute.xlu1 %4819 }
 0x529   :  { %18939 = vst [vmem:[#allocation269_spill] sm:$0xff] %v13452_v46  ;;  %5005 = vperm.xlu1 %11070, %v4230_v31   ;;  %v13454_v26 = vpop.permute.xlu0 %4786  ;;  %v4223_v31 = vmul.f32 %v13202_v63, %v12930_v52 }
 0x52a   :  { %18940 = vst [vmem:[#allocation411_spill] sm:$0xff] %v13454_v26  ;;  %4972 = vperm.xlu0 %11071, %v4219_v47   ;;  %v4236_v26 = vmul.f32 %v18947_v56, %v13436_v24 }
 0x52c   :  { %v13460_v1 = vpop.permute.xlu1 %4825 }
 0x52d   :  { %18942 = vst [vmem:[#allocation271_spill] sm:$0xff] %v13460_v1  ;;  %5011 = vperm.xlu1 %11070, %v4232_v3   ;;  %v13462_v42 = vpop.permute.xlu0 %4792  ;;  %v4225_v3 = vmul.f32 %v13210_v39, %v12930_v52  ;;  %v18954_v52 = vld [vmem:[#allocation279_spill] sm:$0xff] }
 0x52e   :  { %18943 = vst [vmem:[#allocation412_spill] sm:$0xff] %v13462_v42  ;;  %4978 = vperm.xlu0 %11071, %v4221_v54   ;;  %v4238_v42 = vmul.f32 %v18950_v60, %v13436_v24  ;;  %v4240_v56 = vmul.f32 %v18954_v52, %v13436_v24  ;;  %v18958_v60 = vld [vmem:[#allocation281_spill] sm:$0xff]  ;;  %v18962_v52 = vld [vmem:[#allocation283_spill] sm:$0xff] }
 0x530   :  { %v13468_v46 = vpop.permute.xlu1 %4831 }
 0x531   :  { %18945 = vst [vmem:[#allocation273_spill] sm:$0xff] %v13468_v46  ;;  %5017 = vperm.xlu1 %11070, %v4234_v2   ;;  %v13470_v47 = vpop.permute.xlu0 %4798  ;;  %v18951_v2 = vld [vmem:[#allocation278_spill] sm:$0xff] }
 0x532   :  { %18946 = vst [vmem:[#allocation413_spill] sm:$0xff] %v13470_v47  ;;  %4984 = vperm.xlu0 %11071, %v4223_v31   ;;  %v4227_v46 = vmul.f32 %v18951_v2, %v13436_v24  ;;  %v4242_v2 = vmul.f32 %v18958_v60, %v13436_v24  ;;  %v18966_v60 = vld [vmem:[#allocation285_spill] sm:$0xff] }
 0x534   :  { %v13476_v1 = vpop.permute.xlu1 %4837 }
 0x535   :  { %18948 = vst [vmem:[#allocation275_spill] sm:$0xff] %v13476_v1  ;;  %5023 = vperm.xlu1 %11070, %v4236_v26   ;;  %v13478_v54 = vpop.permute.xlu0 %4804  ;;  %v18955_v26 = vld [vmem:[#allocation280_spill] sm:$0xff] }
 0x536   :  { %18949 = vst [vmem:[#allocation414_spill] sm:$0xff] %v13478_v54  ;;  %4990 = vperm.xlu0 %11071, %v4225_v3   ;;  %v4229_v1 = vmul.f32 %v18955_v26, %v13436_v24  ;;  %v4244_v26 = vmul.f32 %v18962_v52, %v13436_v24  ;;  %v18970_v52 = vld [vmem:[#allocation287_spill] sm:$0xff] }
 0x538   :  { %v13484_v47 = vpop.permute.xlu1 %4843 }
 0x539   :  { %18952 = vst [vmem:[#allocation277_spill] sm:$0xff] %v13484_v47  ;;  %5029 = vperm.xlu1 %11070, %v4238_v42   ;;  %v13486_v31 = vpop.permute.xlu0 %4810  ;;  %v18959_v42 = vld [vmem:[#allocation282_spill] sm:$0xff] }
 0x53a   :  { %18953 = vst [vmem:[#allocation278_spill] sm:$0xff] %v13486_v31  ;;  %4996 = vperm.xlu0 %11071, %v4227_v46   ;;  %v4231_v47 = vmul.f32 %v18959_v42, %v13436_v24  ;;  %v4246_v42 = vmul.f32 %v18966_v60, %v13436_v24  ;;  %v18974_v60 = vld [vmem:[#allocation289_spill] sm:$0xff] }
 0x53c   :  { %v13492_v54 = vpop.permute.xlu1 %4849 }
 0x53d   :  { %18956 = vst [vmem:[#allocation279_spill] sm:$0xff] %v13492_v54  ;;  %5035 = vperm.xlu1 %11070, %v4240_v56   ;;  %v13494_v3 = vpop.permute.xlu0 %4816  ;;  %v18963_v56 = vld [vmem:[#allocation284_spill] sm:$0xff] }
 0x53e   :  { %18957 = vst [vmem:[#allocation280_spill] sm:$0xff] %v13494_v3  ;;  %5002 = vperm.xlu0 %11071, %v4229_v1   ;;  %v4233_v54 = vmul.f32 %v18963_v56, %v13436_v24  ;;  %v4248_v56 = vmul.f32 %v18970_v52, %v13436_v24  ;;  %v18978_v52 = vld [vmem:[#allocation291_spill] sm:$0xff] }
 0x540   :  { %v13500_v31 = vpop.permute.xlu1 %4855 }
 0x541   :  { %18960 = vst [vmem:[#allocation281_spill] sm:$0xff] %v13500_v31  ;;  %5041 = vperm.xlu1 %11070, %v4242_v2   ;;  %v13502_v46 = vpop.permute.xlu0 %4822  ;;  %v18967_v2 = vld [vmem:[#allocation286_spill] sm:$0xff] }
 0x542   :  { %18961 = vst [vmem:[#allocation282_spill] sm:$0xff] %v13502_v46  ;;  %5008 = vperm.xlu0 %11071, %v4231_v47   ;;  %v4235_v31 = vmul.f32 %v18967_v2, %v13436_v24  ;;  %v4250_v2 = vmul.f32 %v18974_v60, %v13436_v24  ;;  %v18982_v60 = vld [vmem:[#allocation293_spill] sm:$0xff] }
 0x544   :  { %v13508_v3 = vpop.permute.xlu1 %4861 }
 0x545   :  { %18964 = vst [vmem:[#allocation283_spill] sm:$0xff] %v13508_v3  ;;  %5047 = vperm.xlu1 %11070, %v4244_v26   ;;  %v13510_v1 = vpop.permute.xlu0 %4828  ;;  %v18971_v26 = vld [vmem:[#allocation288_spill] sm:$0xff] }
 0x546   :  { %18965 = vst [vmem:[#allocation284_spill] sm:$0xff] %v13510_v1  ;;  %5014 = vperm.xlu0 %11071, %v4233_v54   ;;  %v4237_v3 = vmul.f32 %v18971_v26, %v13436_v24  ;;  %v4252_v26 = vmul.f32 %v18978_v52, %v13436_v24  ;;  %v18986_v52 = vld [vmem:[#allocation295_spill] sm:$0xff] }
 0x548   :  { %v13516_v46 = vpop.permute.xlu1 %4867 }
 0x549   :  { %18968 = vst [vmem:[#allocation285_spill] sm:$0xff] %v13516_v46  ;;  %5053 = vperm.xlu1 %11070, %v4246_v42   ;;  %v13518_v47 = vpop.permute.xlu0 %4834  ;;  %v18975_v42 = vld [vmem:[#allocation290_spill] sm:$0xff] }
 0x54a   :  { %18969 = vst [vmem:[#allocation286_spill] sm:$0xff] %v13518_v47  ;;  %5020 = vperm.xlu0 %11071, %v4235_v31   ;;  %v4239_v46 = vmul.f32 %v18975_v42, %v13436_v24  ;;  %v4254_v42 = vmul.f32 %v18982_v60, %v13436_v24  ;;  %v18990_v60 = vld [vmem:[#allocation297_spill] sm:$0xff] }
 0x54c   :  { %v13524_v1 = vpop.permute.xlu1 %4873 }
 0x54d   :  { %18972 = vst [vmem:[#allocation287_spill] sm:$0xff] %v13524_v1  ;;  %5059 = vperm.xlu1 %11070, %v4248_v56   ;;  %v13526_v54 = vpop.permute.xlu0 %4840  ;;  %v18979_v56 = vld [vmem:[#allocation292_spill] sm:$0xff] }
 0x54e   :  { %18973 = vst [vmem:[#allocation288_spill] sm:$0xff] %v13526_v54  ;;  %5026 = vperm.xlu0 %11071, %v4237_v3   ;;  %v4241_v1 = vmul.f32 %v18979_v56, %v13436_v24  ;;  %v4256_v56 = vmul.f32 %v18986_v52, %v13436_v24  ;;  %v18994_v52 = vld [vmem:[#allocation299_spill] sm:$0xff] }
 0x550   :  { %v13532_v47 = vpop.permute.xlu1 %4879 }
 0x551   :  { %18976 = vst [vmem:[#allocation289_spill] sm:$0xff] %v13532_v47  ;;  %5065 = vperm.xlu1 %11070, %v4250_v2   ;;  %v13534_v31 = vpop.permute.xlu0 %4846  ;;  %v18983_v2 = vld [vmem:[#allocation294_spill] sm:$0xff] }
 0x552   :  { %18977 = vst [vmem:[#allocation290_spill] sm:$0xff] %v13534_v31  ;;  %5032 = vperm.xlu0 %11071, %v4239_v46   ;;  %v4243_v47 = vmul.f32 %v18983_v2, %v13436_v24  ;;  %v4258_v2 = vmul.f32 %v18990_v60, %v13436_v24  ;;  %v18998_v60 = vld [vmem:[#allocation301_spill] sm:$0xff] }
 0x554   :  { %v13540_v54 = vpop.permute.xlu1 %4885 }
 0x555   :  { %18980 = vst [vmem:[#allocation291_spill] sm:$0xff] %v13540_v54  ;;  %5071 = vperm.xlu1 %11070, %v4252_v26   ;;  %v13542_v3 = vpop.permute.xlu0 %4852  ;;  %v18987_v26 = vld [vmem:[#allocation296_spill] sm:$0xff] }
 0x556   :  { %18981 = vst [vmem:[#allocation292_spill] sm:$0xff] %v13542_v3  ;;  %5038 = vperm.xlu0 %11071, %v4241_v1   ;;  %v4245_v54 = vmul.f32 %v18987_v26, %v13436_v24  ;;  %v4260_v26 = vmul.f32 %v18994_v52, %v13436_v24  ;;  %v19002_v52 = vld [vmem:[#allocation303_spill] sm:$0xff] }
 0x558   :  { %v13548_v31 = vpop.permute.xlu1 %4891 }
 0x559   :  { %18984 = vst [vmem:[#allocation293_spill] sm:$0xff] %v13548_v31  ;;  %5077 = vperm.xlu1 %11070, %v4254_v42   ;;  %v13550_v46 = vpop.permute.xlu0 %4858  ;;  %v18991_v42 = vld [vmem:[#allocation298_spill] sm:$0xff] }
 0x55a   :  { %18985 = vst [vmem:[#allocation294_spill] sm:$0xff] %v13550_v46  ;;  %5044 = vperm.xlu0 %11071, %v4243_v47   ;;  %v4247_v31 = vmul.f32 %v18991_v42, %v13436_v24  ;;  %v4262_v42 = vmul.f32 %v18998_v60, %v13436_v24  ;;  %v19006_v60 = vld [vmem:[#allocation305_spill] sm:$0xff] }
 0x55c   :  { %v13556_v3 = vpop.permute.xlu1 %4897 }
 0x55d   :  { %18988 = vst [vmem:[#allocation295_spill] sm:$0xff] %v13556_v3  ;;  %5083 = vperm.xlu1 %11070, %v4256_v56   ;;  %v13558_v1 = vpop.permute.xlu0 %4864  ;;  %v18995_v56 = vld [vmem:[#allocation300_spill] sm:$0xff] }
 0x55e   :  { %18989 = vst [vmem:[#allocation296_spill] sm:$0xff] %v13558_v1  ;;  %5050 = vperm.xlu0 %11071, %v4245_v54   ;;  %v4249_v3 = vmul.f32 %v18995_v56, %v13436_v24  ;;  %v4264_v56 = vmul.f32 %v19002_v52, %v13436_v24  ;;  %v19010_v52 = vld [vmem:[#allocation307_spill] sm:$0xff] }
 0x560   :  { %v13564_v46 = vpop.permute.xlu1 %4903 }
 0x561   :  { %18992 = vst [vmem:[#allocation297_spill] sm:$0xff] %v13564_v46  ;;  %5089 = vperm.xlu1 %11070, %v4258_v2   ;;  %v13566_v47 = vpop.permute.xlu0 %4870  ;;  %v18999_v2 = vld [vmem:[#allocation302_spill] sm:$0xff] }
 0x562   :  { %18993 = vst [vmem:[#allocation298_spill] sm:$0xff] %v13566_v47  ;;  %5056 = vperm.xlu0 %11071, %v4247_v31   ;;  %v4251_v46 = vmul.f32 %v18999_v2, %v13436_v24  ;;  %v4266_v2 = vmul.f32 %v19006_v60, %v13436_v24  ;;  %v19014_v60 = vld [vmem:[#allocation309_spill] sm:$0xff] }
 0x564   :  { %v13572_v1 = vpop.permute.xlu1 %4909 }
 0x565   :  { %18996 = vst [vmem:[#allocation299_spill] sm:$0xff] %v13572_v1  ;;  %5095 = vperm.xlu1 %11070, %v4260_v26   ;;  %v13574_v54 = vpop.permute.xlu0 %4876  ;;  %v19003_v26 = vld [vmem:[#allocation304_spill] sm:$0xff] }
 0x566   :  { %18997 = vst [vmem:[#allocation300_spill] sm:$0xff] %v13574_v54  ;;  %5062 = vperm.xlu0 %11071, %v4249_v3   ;;  %v4253_v1 = vmul.f32 %v19003_v26, %v13436_v24  ;;  %v4268_v26 = vmul.f32 %v19010_v52, %v13436_v24  ;;  %v19018_v52 = vld [vmem:[#allocation311_spill] sm:$0xff] }
 0x568   :  { %v13580_v47 = vpop.permute.xlu1 %4915 }
 0x569   :  { %19000 = vst [vmem:[#allocation301_spill] sm:$0xff] %v13580_v47  ;;  %5101 = vperm.xlu1 %11070, %v4262_v42   ;;  %v13582_v31 = vpop.permute.xlu0 %4882  ;;  %v19007_v42 = vld [vmem:[#allocation306_spill] sm:$0xff] }
 0x56a   :  { %19001 = vst [vmem:[#allocation302_spill] sm:$0xff] %v13582_v31  ;;  %5068 = vperm.xlu0 %11071, %v4251_v46   ;;  %v4255_v47 = vmul.f32 %v19007_v42, %v13436_v24  ;;  %v4270_v42 = vmul.f32 %v19014_v60, %v13436_v24  ;;  %v19022_v60 = vld [vmem:[#allocation313_spill] sm:$0xff] }
 0x56c   :  { %v13588_v54 = vpop.permute.xlu1 %4921 }
 0x56d   :  { %19004 = vst [vmem:[#allocation303_spill] sm:$0xff] %v13588_v54  ;;  %5107 = vperm.xlu1 %11070, %v4264_v56   ;;  %v13590_v3 = vpop.permute.xlu0 %4888  ;;  %v19011_v56 = vld [vmem:[#allocation308_spill] sm:$0xff] }
 0x56e   :  { %19005 = vst [vmem:[#allocation304_spill] sm:$0xff] %v13590_v3  ;;  %5074 = vperm.xlu0 %11071, %v4253_v1   ;;  %v4257_v54 = vmul.f32 %v19011_v56, %v13436_v24  ;;  %v4272_v56 = vmul.f32 %v19018_v52, %v13436_v24  ;;  %v19026_v52 = vld [vmem:[#allocation315_spill] sm:$0xff] }
 0x570   :  { %v13596_v31 = vpop.permute.xlu1 %4927 }
 0x571   :  { %19008 = vst [vmem:[#allocation305_spill] sm:$0xff] %v13596_v31  ;;  %5113 = vperm.xlu1 %11070, %v4266_v2   ;;  %v13598_v46 = vpop.permute.xlu0 %4894  ;;  %v19015_v2 = vld [vmem:[#allocation310_spill] sm:$0xff] }
 0x572   :  { %19009 = vst [vmem:[#allocation306_spill] sm:$0xff] %v13598_v46  ;;  %5080 = vperm.xlu0 %11071, %v4255_v47   ;;  %v4259_v31 = vmul.f32 %v19015_v2, %v13436_v24  ;;  %v4274_v2 = vmul.f32 %v19022_v60, %v13436_v24  ;;  %v19030_v60 = vld [vmem:[#allocation317_spill] sm:$0xff] }
 0x574   :  { %v13604_v3 = vpop.permute.xlu1 %4933 }
 0x575   :  { %19012 = vst [vmem:[#allocation307_spill] sm:$0xff] %v13604_v3  ;;  %5119 = vperm.xlu1 %11070, %v4268_v26   ;;  %v13606_v1 = vpop.permute.xlu0 %4900  ;;  %v19019_v26 = vld [vmem:[#allocation312_spill] sm:$0xff] }
 0x576   :  { %19013 = vst [vmem:[#allocation308_spill] sm:$0xff] %v13606_v1  ;;  %5086 = vperm.xlu0 %11071, %v4257_v54   ;;  %v4261_v3 = vmul.f32 %v19019_v26, %v13436_v24  ;;  %v4276_v26 = vmul.f32 %v19026_v52, %v13436_v24  ;;  %v19034_v52 = vld [vmem:[#allocation319_spill] sm:$0xff] }
 0x578   :  { %v13612_v46 = vpop.permute.xlu1 %4939 }
 0x579   :  { %19016 = vst [vmem:[#allocation309_spill] sm:$0xff] %v13612_v46  ;;  %5125 = vperm.xlu1 %11070, %v4270_v42   ;;  %v13614_v47 = vpop.permute.xlu0 %4906  ;;  %v19023_v42 = vld [vmem:[#allocation314_spill] sm:$0xff] }
 0x57a   :  { %19017 = vst [vmem:[#allocation310_spill] sm:$0xff] %v13614_v47  ;;  %5092 = vperm.xlu0 %11071, %v4259_v31   ;;  %v4263_v46 = vmul.f32 %v19023_v42, %v13436_v24  ;;  %v4278_v42 = vmul.f32 %v19030_v60, %v13436_v24  ;;  %v19038_v60 = vld [vmem:[#allocation321_spill] sm:$0xff] }
 0x57c   :  { %v13620_v1 = vpop.permute.xlu1 %4945 }
 0x57d   :  { %19020 = vst [vmem:[#allocation311_spill] sm:$0xff] %v13620_v1  ;;  %5131 = vperm.xlu1 %11070, %v4272_v56   ;;  %v13622_v54 = vpop.permute.xlu0 %4912  ;;  %v19027_v56 = vld [vmem:[#allocation316_spill] sm:$0xff] }
 0x57e   :  { %19021 = vst [vmem:[#allocation312_spill] sm:$0xff] %v13622_v54  ;;  %5098 = vperm.xlu0 %11071, %v4261_v3   ;;  %v4265_v1 = vmul.f32 %v19027_v56, %v13436_v24  ;;  %v4280_v56 = vmul.f32 %v19034_v52, %v13436_v24  ;;  %v19042_v52 = vld [vmem:[#allocation323_spill] sm:$0xff] }
 0x580   :  { %v13628_v47 = vpop.permute.xlu1 %4951 }
 0x581   :  { %19024 = vst [vmem:[#allocation313_spill] sm:$0xff] %v13628_v47  ;;  %5137 = vperm.xlu1 %11070, %v4274_v2   ;;  %v13630_v31 = vpop.permute.xlu0 %4918  ;;  %v19031_v2 = vld [vmem:[#allocation318_spill] sm:$0xff] }
 0x582   :  { %19025 = vst [vmem:[#allocation314_spill] sm:$0xff] %v13630_v31  ;;  %5104 = vperm.xlu0 %11071, %v4263_v46   ;;  %v4267_v47 = vmul.f32 %v19031_v2, %v13436_v24  ;;  %v4282_v2 = vmul.f32 %v19038_v60, %v13436_v24  ;;  %v19046_v60 = vld [vmem:[#allocation325_spill] sm:$0xff] }
 0x584   :  { %v13636_v54 = vpop.permute.xlu1 %4957 }
 0x585   :  { %19028 = vst [vmem:[#allocation315_spill] sm:$0xff] %v13636_v54  ;;  %5143 = vperm.xlu1 %11070, %v4276_v26   ;;  %v13638_v3 = vpop.permute.xlu0 %4924  ;;  %v19035_v26 = vld [vmem:[#allocation320_spill] sm:$0xff] }
 0x586   :  { %19029 = vst [vmem:[#allocation316_spill] sm:$0xff] %v13638_v3  ;;  %5110 = vperm.xlu0 %11071, %v4265_v1   ;;  %v4269_v54 = vmul.f32 %v19035_v26, %v13436_v24  ;;  %v4284_v26 = vmul.f32 %v19042_v52, %v13436_v24  ;;  %v19050_v52 = vld [vmem:[#allocation327_spill] sm:$0xff] }
 0x588   :  { %v13644_v31 = vpop.permute.xlu1 %4963 }
 0x589   :  { %19032 = vst [vmem:[#allocation317_spill] sm:$0xff] %v13644_v31  ;;  %5149 = vperm.xlu1 %11070, %v4278_v42   ;;  %v13646_v46 = vpop.permute.xlu0 %4930  ;;  %v19039_v42 = vld [vmem:[#allocation322_spill] sm:$0xff] }
 0x58a   :  { %19033 = vst [vmem:[#allocation318_spill] sm:$0xff] %v13646_v46  ;;  %5116 = vperm.xlu0 %11071, %v4267_v47   ;;  %v4271_v31 = vmul.f32 %v19039_v42, %v13436_v24  ;;  %v4286_v42 = vmul.f32 %v19046_v60, %v13436_v24  ;;  %v19054_v60 = vld [vmem:[#allocation329_spill] sm:$0xff] }
 0x58c   :  { %v13652_v3 = vpop.permute.xlu1 %4969 }
 0x58d   :  { %19036 = vst [vmem:[#allocation319_spill] sm:$0xff] %v13652_v3  ;;  %5155 = vperm.xlu1 %11070, %v4280_v56   ;;  %v13654_v1 = vpop.permute.xlu0 %4936  ;;  %v19043_v56 = vld [vmem:[#allocation324_spill] sm:$0xff] }
 0x58e   :  { %19037 = vst [vmem:[#allocation320_spill] sm:$0xff] %v13654_v1  ;;  %5122 = vperm.xlu0 %11071, %v4269_v54   ;;  %v4273_v3 = vmul.f32 %v19043_v56, %v13436_v24  ;;  %v4288_v56 = vmul.f32 %v19050_v52, %v13436_v24  ;;  %v19058_v52 = vld [vmem:[#allocation331_spill] sm:$0xff] }
 0x590   :  { %v13660_v46 = vpop.permute.xlu1 %4975 }
 0x591   :  { %19040 = vst [vmem:[#allocation321_spill] sm:$0xff] %v13660_v46  ;;  %5161 = vperm.xlu1 %11070, %v4282_v2   ;;  %v13662_v47 = vpop.permute.xlu0 %4942  ;;  %v19047_v2 = vld [vmem:[#allocation326_spill] sm:$0xff] }
 0x592   :  { %19041 = vst [vmem:[#allocation322_spill] sm:$0xff] %v13662_v47  ;;  %5128 = vperm.xlu0 %11071, %v4271_v31   ;;  %v4275_v46 = vmul.f32 %v19047_v2, %v13436_v24  ;;  %v4290_v2 = vmul.f32 %v19054_v60, %v13436_v24  ;;  %v4294_v60 = vmul.f32 %v12936_v37, %v13436_v24  ;;  %v19069_v37 = vld [vmem:[#allocation336_spill] sm:$0xff] }
 0x594   :  { %v13668_v1 = vpop.permute.xlu1 %4981 }
 0x595   :  { %19044 = vst [vmem:[#allocation323_spill] sm:$0xff] %v13668_v1  ;;  %5167 = vperm.xlu1 %11070, %v4284_v26   ;;  %v13670_v54 = vpop.permute.xlu0 %4948  ;;  %v19051_v26 = vld [vmem:[#allocation328_spill] sm:$0xff] }
 0x596   :  { %19045 = vst [vmem:[#allocation324_spill] sm:$0xff] %v13670_v54  ;;  %5134 = vperm.xlu0 %11071, %v4273_v3   ;;  %v4277_v1 = vmul.f32 %v19051_v26, %v13436_v24  ;;  %v4292_v26 = vmul.f32 %v19058_v52, %v13436_v24  ;;  %v19065_v52 = vld [vmem:[#allocation334_spill] sm:$0xff] }
 0x598   :  { %v13676_v47 = vpop.permute.xlu1 %4987 }
 0x599   :  { %19048 = vst [vmem:[#allocation325_spill] sm:$0xff] %v13676_v47  ;;  %5173 = vperm.xlu1 %11070, %v4286_v42   ;;  %v13678_v31 = vpop.permute.xlu0 %4954  ;;  %v19055_v42 = vld [vmem:[#allocation330_spill] sm:$0xff] }
 0x59a   :  { %19049 = vst [vmem:[#allocation326_spill] sm:$0xff] %v13678_v31  ;;  %5140 = vperm.xlu0 %11071, %v4275_v46   ;;  %v4279_v47 = vmul.f32 %v19055_v42, %v13436_v24 }
 0x59c   :  { %v13684_v54 = vpop.permute.xlu1 %4993 }
 0x59d   :  { %19052 = vst [vmem:[#allocation327_spill] sm:$0xff] %v13684_v54  ;;  %5179 = vperm.xlu1 %11070, %v4288_v56   ;;  %v13686_v3 = vpop.permute.xlu0 %4960  ;;  %v19059_v56 = vld [vmem:[#allocation332_spill] sm:$0xff] }
 0x59e   :  { %19053 = vst [vmem:[#allocation328_spill] sm:$0xff] %v13686_v3  ;;  %5146 = vperm.xlu0 %11071, %v4277_v1   ;;  %v4281_v54 = vmul.f32 %v19059_v56, %v13436_v24  ;;  %v4296_v56 = vmul.f32 %v19065_v52, %v13436_v24  ;;  %v4300_v52 = vmul.f32 %v18868_v20, %v13436_v24 }
 0x59f   :  { %v4304_v20 = vmul.f32 %v12968_v21, %v13436_v24  ;;  %v4308_v21 = vmul.f32 %v12984_v34, %v13436_v24  ;;  %v4312_v34 = vmul.f32 %v13000_v62, %v13436_v24  ;;  %v4316_v62 = vmul.f32 %v13016_v55, %v13436_v24 }
 0x5a0   :  { %v13692_v31 = vpop.permute.xlu1 %4999  ;;  %v4320_v55 = vmul.f32 %v13032_v19, %v13436_v24  ;;  %v4324_v19 = vmul.f32 %v13048_v11, %v13436_v24  ;;  %v4328_v11 = vmul.f32 %v13064_v53, %v13436_v24  ;;  %v4332_v53 = vmul.f32 %v13080_v38, %v13436_v24 }
 0x5a1   :  { %19056 = vst [vmem:[#allocation329_spill] sm:$0xff] %v13692_v31  ;;  %5185 = vperm.xlu1 %11070, %v4290_v2   ;;  %v13694_v46 = vpop.permute.xlu0 %4966  ;;  %v19062_v2 = vld [vmem:[#allocation333_spill] sm:$0xff]  ;;  %v4336_v38 = vmul.f32 %v13096_v6, %v13436_v24  ;;  %v4340_v6 = vmul.f32 %v13112_v33, %v13436_v24  ;;  %v4344_v33 = vmul.f32 %v13128_v25, %v13436_v24  ;;  %v19125_v25 = vld [vmem:[#allocation344_spill] sm:$0xff] }
 0x5a2   :  { %19057 = vst [vmem:[#allocation330_spill] sm:$0xff] %v13694_v46  ;;  %5152 = vperm.xlu0 %11071, %v4279_v47   ;;  %v4283_v42 = vmul.f32 %v19062_v2, %v13436_v24  ;;  %v4298_v2 = vmul.f32 %v19069_v37, %v13436_v24  ;;  %v4302_v37 = vmul.f32 %v12960_v44, %v13436_v24 }
 0x5a3   :  { %v4306_v44 = vmul.f32 %v12976_v57, %v13436_v24  ;;  %v4310_v57 = vmul.f32 %v12992_v32, %v13436_v24  ;;  %v4314_v32 = vmul.f32 %v13008_v0, %v13436_v24  ;;  %v4318_v0 = vmul.f32 %v13024_v12, %v13436_v24 }
 0x5a4   :  { %v13700_v3 = vpop.permute.xlu1 %5005  ;;  %v4322_v12 = vmul.f32 %v13040_v45, %v13436_v24  ;;  %v4326_v45 = vmul.f32 %v13056_v15, %v13436_v24  ;;  %v4330_v15 = vmul.f32 %v13072_v5, %v13436_v24  ;;  %v4334_v5 = vmul.f32 %v13088_v51, %v13436_v24 }
 0x5a5   :  { %19060 = vst [vmem:[#allocation331_spill] sm:$0xff] %v13700_v3  ;;  %5191 = vperm.xlu1 %11070, %v4292_v26   ;;  %v13702_v1 = vpop.permute.xlu0 %4972  ;;  %v19066_v26 = vld [vmem:[#allocation335_spill] sm:$0xff]  ;;  %v4338_v51 = vmul.f32 %v13104_v49, %v13436_v24  ;;  %v4342_v49 = vmul.f32 %v13120_v27, %v13436_v24  ;;  %v19121_v27 = vld [vmem:[#allocation342_spill] sm:$0xff] }
 0x5a6   :  { %19061 = vst [vmem:[#allocation332_spill] sm:$0xff] %v13702_v1  ;;  %5158 = vperm.xlu0 %11071, %v4281_v54   ;;  %v4285_v3 = vmul.f32 %v19066_v26, %v13436_v24 }
 0x5a8   :  { %v13708_v46 = vpop.permute.xlu1 %5011 }
 0x5a9   :  { %19063 = vst [vmem:[#allocation333_spill] sm:$0xff] %v13708_v46  ;;  %5197 = vperm.xlu1 %11070, %v4294_v60   ;;  %v13710_v47 = vpop.permute.xlu0 %4978  ;;  %v19070_v60 = vld [vmem:[#allocation337_spill] sm:$0xff] }
 0x5aa   :  { %19064 = vst [vmem:[#allocation415_spill] sm:$0xff] %v13710_v47  ;;  %5164 = vperm.xlu0 %11071, %v4283_v42   ;;  %v4287_v46 = vmul.f32 %v19070_v60, %v13436_v24 }
 0x5ac   :  { %v13716_v1 = vpop.permute.xlu1 %5017 }
 0x5ad   :  { %19067 = vst [vmem:[#allocation334_spill] sm:$0xff] %v13716_v1  ;;  %5203 = vperm.xlu1 %11070, %v4296_v56   ;;  %v13718_v54 = vpop.permute.xlu0 %4984  ;;  %v19073_v56 = vld [vmem:[#allocation339_spill] sm:$0xff] }
 0x5ae   :  { %19068 = vst [vmem:[#allocation335_spill] sm:$0xff] %v13718_v54  ;;  %5170 = vperm.xlu0 %11071, %v4285_v3   ;;  %v4289_v26 = vmul.f32 %v19073_v56, %v13436_v24 }
 0x5b0   :  { %v13724_v47 = vpop.permute.xlu1 %5023 }
 0x5b1   :  { %19071 = vst [vmem:[#allocation336_spill] sm:$0xff] %v13724_v47  ;;  %5209 = vperm.xlu1 %11070, %v4298_v2   ;;  %v13726_v42 = vpop.permute.xlu0 %4990  ;;  %v4291_v2 = vmul.f32 %v18871_v30, %v13436_v24  ;;  %v4295_v30 = vmul.f32 %v12978_v48, %v13436_v24  ;;  %v4299_v48 = vmul.f32 %v12994_v14, %v13436_v24 }
 0x5b2   :  { %19072 = vst [vmem:[#allocation337_spill] sm:$0xff] %v13726_v42  ;;  %5176 = vperm.xlu0 %11071, %v4287_v46   ;;  %v4303_v14 = vmul.f32 %v13010_v16, %v13436_v24  ;;  %v4307_v16 = vmul.f32 %v13026_v29, %v13436_v24  ;;  %v4311_v29 = vmul.f32 %v13042_v10, %v13436_v24 }
 0x5b3   :  { %v4315_v10 = vmul.f32 %v13058_v40, %v13436_v24  ;;  %v4319_v40 = vmul.f32 %v13074_v43, %v13436_v24  ;;  %v4323_v43 = vmul.f32 %v13090_v41, %v13436_v24  ;;  %v4327_v41 = vmul.f32 %v13106_v7, %v13436_v24 }
 0x5b4   :  { %v13732_v54 = vpop.permute.xlu1 %5029  ;;  %v4331_v7 = vmul.f32 %v13122_v35, %v13436_v24  ;;  %v4346_v35 = vmul.f32 %v19121_v27, %v13436_v24  ;;  %v19129_v27 = vld [vmem:[#allocation346_spill] sm:$0xff] }
 0x5b5   :  { %19074 = vst [vmem:[#allocation339_spill] sm:$0xff] %v13732_v54  ;;  %5215 = vperm.xlu1 %11070, %v4300_v52   ;;  %v13734_v3 = vpop.permute.xlu0 %4996  ;;  %v4293_v52 = vmul.f32 %v12970_v18, %v13436_v24  ;;  %v4297_v18 = vmul.f32 %v12986_v22, %v13436_v24  ;;  %v4301_v22 = vmul.f32 %v13002_v23, %v13436_v24 }
 0x5b6   :  { %19075 = vst [vmem:[#allocation416_spill] sm:$0xff] %v13734_v3  ;;  %5182 = vperm.xlu0 %11071, %v4289_v26   ;;  %v4305_v23 = vmul.f32 %v13018_v13, %v13436_v24  ;;  %v4309_v13 = vmul.f32 %v13034_v4, %v13436_v24  ;;  %v4313_v4 = vmul.f32 %v13050_v50, %v13436_v24 }
 0x5b7   :  { %v4317_v50 = vmul.f32 %v13066_v58, %v13436_v24  ;;  %v4321_v58 = vmul.f32 %v13082_v61, %v13436_v24  ;;  %v4325_v61 = vmul.f32 %v13098_v8, %v13436_v24  ;;  %v4329_v8 = vmul.f32 %v13114_v36, %v13436_v24  ;;  %v19118_v36 = vld [vmem:[#allocation341_spill] sm:$0xff] }
 0x5b8   :  { %v13740_v60 = vpop.permute.xlu1 %5035 }
 0x5b9   :  { %19076 = vst [vmem:[#allocation417_spill] sm:$0xff] %v13740_v60  ;;  %5221 = vperm.xlu1 %11070, %v4302_v37   ;;  %v13742_v46 = vpop.permute.xlu0 %5002 }
 0x5ba   :  { %19077 = vst [vmem:[#allocation418_spill] sm:$0xff] %v13742_v46  ;;  %5188 = vperm.xlu0 %11071, %v4291_v2  }
 0x5bc   :  { %v13748_v56 = vpop.permute.xlu1 %5041 }
 0x5bd   :  { %19078 = vst [vmem:[#allocation419_spill] sm:$0xff] %v13748_v56  ;;  %5227 = vperm.xlu1 %11070, %v4304_v20   ;;  %v13750_v26 = vpop.permute.xlu0 %5008 }
 0x5be   :  { %19079 = vst [vmem:[#allocation420_spill] sm:$0xff] %v13750_v26  ;;  %5194 = vperm.xlu0 %11071, %v4293_v52  }
 0x5c0   :  { %v13756_v37 = vpop.permute.xlu1 %5047 }
 0x5c1   :  { %19080 = vst [vmem:[#allocation421_spill] sm:$0xff] %v13756_v37  ;;  %5233 = vperm.xlu1 %11070, %v4306_v44   ;;  %v13758_v2 = vpop.permute.xlu0 %5014 }
 0x5c2   :  { %19081 = vst [vmem:[#allocation422_spill] sm:$0xff] %v13758_v2  ;;  %5200 = vperm.xlu0 %11071, %v4295_v30  }
 0x5c4   :  { %v13764_v20 = vpop.permute.xlu1 %5053 }
 0x5c5   :  { %19082 = vst [vmem:[#allocation423_spill] sm:$0xff] %v13764_v20  ;;  %5239 = vperm.xlu1 %11070, %v4308_v21   ;;  %v13766_v52 = vpop.permute.xlu0 %5020 }
 0x5c6   :  { %19083 = vst [vmem:[#allocation424_spill] sm:$0xff] %v13766_v52  ;;  %5206 = vperm.xlu0 %11071, %v4297_v18  }
 0x5c8   :  { %v13772_v44 = vpop.permute.xlu1 %5059 }
 0x5c9   :  { %19084 = vst [vmem:[#allocation425_spill] sm:$0xff] %v13772_v44  ;;  %5245 = vperm.xlu1 %11070, %v4310_v57   ;;  %v13774_v30 = vpop.permute.xlu0 %5026 }
 0x5ca   :  { %19085 = vst [vmem:[#allocation426_spill] sm:$0xff] %v13774_v30  ;;  %5212 = vperm.xlu0 %11071, %v4299_v48  }
 0x5cc   :  { %v13780_v21 = vpop.permute.xlu1 %5065 }
 0x5cd   :  { %19086 = vst [vmem:[#allocation427_spill] sm:$0xff] %v13780_v21  ;;  %5251 = vperm.xlu1 %11070, %v4312_v34   ;;  %v13782_v18 = vpop.permute.xlu0 %5032 }
 0x5ce   :  { %19087 = vst [vmem:[#allocation428_spill] sm:$0xff] %v13782_v18  ;;  %5218 = vperm.xlu0 %11071, %v4301_v22  }
 0x5d0   :  { %v13788_v57 = vpop.permute.xlu1 %5071 }
 0x5d1   :  { %19088 = vst [vmem:[#allocation429_spill] sm:$0xff] %v13788_v57  ;;  %5257 = vperm.xlu1 %11070, %v4314_v32   ;;  %v13790_v48 = vpop.permute.xlu0 %5038 }
 0x5d2   :  { %19089 = vst [vmem:[#allocation430_spill] sm:$0xff] %v13790_v48  ;;  %5224 = vperm.xlu0 %11071, %v4303_v14  }
 0x5d4   :  { %v13796_v34 = vpop.permute.xlu1 %5077 }
 0x5d5   :  { %19090 = vst [vmem:[#allocation431_spill] sm:$0xff] %v13796_v34  ;;  %5263 = vperm.xlu1 %11070, %v4316_v62   ;;  %v13798_v22 = vpop.permute.xlu0 %5044 }
 0x5d6   :  { %19091 = vst [vmem:[#allocation432_spill] sm:$0xff] %v13798_v22  ;;  %5230 = vperm.xlu0 %11071, %v4305_v23  }
 0x5d8   :  { %v13804_v32 = vpop.permute.xlu1 %5083 }
 0x5d9   :  { %19092 = vst [vmem:[#allocation433_spill] sm:$0xff] %v13804_v32  ;;  %5269 = vperm.xlu1 %11070, %v4318_v0   ;;  %v13806_v14 = vpop.permute.xlu0 %5050 }
 0x5da   :  { %19093 = vst [vmem:[#allocation434_spill] sm:$0xff] %v13806_v14  ;;  %5236 = vperm.xlu0 %11071, %v4307_v16  }
 0x5dc   :  { %v13812_v62 = vpop.permute.xlu1 %5089 }
 0x5dd   :  { %19094 = vst [vmem:[#allocation435_spill] sm:$0xff] %v13812_v62  ;;  %5275 = vperm.xlu1 %11070, %v4320_v55   ;;  %v13814_v23 = vpop.permute.xlu0 %5056 }
 0x5de   :  { %19095 = vst [vmem:[#allocation436_spill] sm:$0xff] %v13814_v23  ;;  %5242 = vperm.xlu0 %11071, %v4309_v13  }
 0x5e0   :  { %v13820_v0 = vpop.permute.xlu1 %5095 }
 0x5e1   :  { %19096 = vst [vmem:[#allocation437_spill] sm:$0xff] %v13820_v0  ;;  %5281 = vperm.xlu1 %11070, %v4322_v12   ;;  %v13822_v16 = vpop.permute.xlu0 %5062 }
 0x5e2   :  { %19097 = vst [vmem:[#allocation438_spill] sm:$0xff] %v13822_v16  ;;  %5248 = vperm.xlu0 %11071, %v4311_v29  }
 0x5e4   :  { %v13828_v55 = vpop.permute.xlu1 %5101 }
 0x5e5   :  { %19098 = vst [vmem:[#allocation439_spill] sm:$0xff] %v13828_v55  ;;  %5287 = vperm.xlu1 %11070, %v4324_v19   ;;  %v13830_v13 = vpop.permute.xlu0 %5068 }
 0x5e6   :  { %19099 = vst [vmem:[#allocation440_spill] sm:$0xff] %v13830_v13  ;;  %5254 = vperm.xlu0 %11071, %v4313_v4  }
 0x5e8   :  { %v13836_v12 = vpop.permute.xlu1 %5107 }
 0x5e9   :  { %19100 = vst [vmem:[#allocation441_spill] sm:$0xff] %v13836_v12  ;;  %5293 = vperm.xlu1 %11070, %v4326_v45   ;;  %v13838_v29 = vpop.permute.xlu0 %5074 }
 0x5ea   :  { %19101 = vst [vmem:[#allocation442_spill] sm:$0xff] %v13838_v29  ;;  %5260 = vperm.xlu0 %11071, %v4315_v10  }
 0x5ec   :  { %v13844_v19 = vpop.permute.xlu1 %5113 }
 0x5ed   :  { %19102 = vst [vmem:[#allocation443_spill] sm:$0xff] %v13844_v19  ;;  %5299 = vperm.xlu1 %11070, %v4328_v11   ;;  %v13846_v4 = vpop.permute.xlu0 %5080 }
 0x5ee   :  { %19103 = vst [vmem:[#allocation444_spill] sm:$0xff] %v13846_v4  ;;  %5266 = vperm.xlu0 %11071, %v4317_v50   ;;  %v19225_v4 = vld [vmem:[#allocation25_spill] sm:$0xff] }
 0x5f0   :  { %v13852_v45 = vpop.permute.xlu1 %5119 }
 0x5f1   :  { %19104 = vst [vmem:[#allocation445_spill] sm:$0xff] %v13852_v45  ;;  %5305 = vperm.xlu1 %11070, %v4330_v15   ;;  %v13854_v10 = vpop.permute.xlu0 %5086  ;;  %v19208_v45 = vld [vmem:[#allocation15_spill] sm:$0xff] }
 0x5f2   :  { %19105 = vst [vmem:[#allocation446_spill] sm:$0xff] %v13854_v10  ;;  %5272 = vperm.xlu0 %11071, %v4319_v40  }
 0x5f4   :  { %v13860_v11 = vpop.permute.xlu1 %5125 }
 0x5f5   :  { %19106 = vst [vmem:[#allocation447_spill] sm:$0xff] %v13860_v11  ;;  %5311 = vperm.xlu1 %11070, %v4332_v53   ;;  %v13862_v50 = vpop.permute.xlu0 %5092 }
 0x5f6   :  { %19107 = vst [vmem:[#allocation448_spill] sm:$0xff] %v13862_v50  ;;  %5278 = vperm.xlu0 %11071, %v4321_v58  }
 0x5f8   :  { %v13868_v15 = vpop.permute.xlu1 %5131 }
 0x5f9   :  { %19108 = vst [vmem:[#allocation449_spill] sm:$0xff] %v13868_v15  ;;  %5317 = vperm.xlu1 %11070, %v4334_v5   ;;  %v13870_v40 = vpop.permute.xlu0 %5098 }
 0x5fa   :  { %19109 = vst [vmem:[#allocation450_spill] sm:$0xff] %v13870_v40  ;;  %5284 = vperm.xlu0 %11071, %v4323_v43  }
 0x5fc   :  { %v13876_v53 = vpop.permute.xlu1 %5137 }
 0x5fd   :  { %19110 = vst [vmem:[#allocation451_spill] sm:$0xff] %v13876_v53  ;;  %5323 = vperm.xlu1 %11070, %v4336_v38   ;;  %v13878_v58 = vpop.permute.xlu0 %5104 }
 0x5fe   :  { %19111 = vst [vmem:[#allocation452_spill] sm:$0xff] %v13878_v58  ;;  %5290 = vperm.xlu0 %11071, %v4325_v61  }
 0x600   :  { %v13884_v5 = vpop.permute.xlu1 %5143 }
 0x601   :  { %19112 = vst [vmem:[#allocation453_spill] sm:$0xff] %v13884_v5  ;;  %5329 = vperm.xlu1 %11070, %v4338_v51   ;;  %v13886_v43 = vpop.permute.xlu0 %5110 }
 0x602   :  { %19113 = vst [vmem:[#allocation454_spill] sm:$0xff] %v13886_v43  ;;  %5296 = vperm.xlu0 %11071, %v4327_v41  }
 0x604   :  { %v13892_v38 = vpop.permute.xlu1 %5149 }
 0x605   :  { %19114 = vst [vmem:[#allocation455_spill] sm:$0xff] %v13892_v38  ;;  %5335 = vperm.xlu1 %11070, %v4340_v6   ;;  %v13894_v61 = vpop.permute.xlu0 %5116  ;;  %v4333_v6 = vmul.f32 %v19118_v36, %v13436_v24  ;;  %v4348_v36 = vmul.f32 %v19125_v25, %v13436_v24  ;;  %v19133_v25 = vld [vmem:[#allocation348_spill] sm:$0xff] }
 0x606   :  { %19115 = vst [vmem:[#allocation456_spill] sm:$0xff] %v13894_v61  ;;  %5302 = vperm.xlu0 %11071, %v4329_v8  }
 0x608   :  { %v13900_v51 = vpop.permute.xlu1 %5155 }
 0x609   :  { %19116 = vst [vmem:[#allocation457_spill] sm:$0xff] %v13900_v51  ;;  %5341 = vperm.xlu1 %11070, %v4342_v49   ;;  %v13902_v41 = vpop.permute.xlu0 %5122  ;;  %v19122_v49 = vld [vmem:[#allocation343_spill] sm:$0xff]  ;;  %v19242_v51 = vld [vmem:[#allocation41_spill] sm:$0xff] }
 0x60a   :  { %19117 = vst [vmem:[#allocation458_spill] sm:$0xff] %v13902_v41  ;;  %5308 = vperm.xlu0 %11071, %v4331_v7   ;;  %v4335_v53 = vmul.f32 %v19122_v49, %v13436_v24  ;;  %v4350_v49 = vmul.f32 %v19129_v27, %v13436_v24  ;;  %v13947_v27 = vld [vmem:[%s17992_s1 + $0x2] ss:$4 sm:$0xff] }
 0x60c   :  { %v13908_v42 = vpop.permute.xlu1 %5161 }
 0x60d   :  { %19119 = vst [vmem:[#allocation341_spill] sm:$0xff] %v13908_v42  ;;  %5347 = vperm.xlu1 %11070, %v4344_v33   ;;  %v13910_v8 = vpop.permute.xlu0 %5128  ;;  %v19126_v33 = vld [vmem:[#allocation345_spill] sm:$0xff] }
 0x60e   :  { %19120 = vst [vmem:[#allocation459_spill] sm:$0xff] %v13910_v8  ;;  %5314 = vperm.xlu0 %11071, %v4333_v6   ;;  %v4337_v62 = vmul.f32 %v19126_v33, %v13436_v24  ;;  %v4352_v33 = vmul.f32 %v19133_v25, %v13436_v24 }
 0x610   :  { %v13916_v15 = vpop.permute.xlu1 %5167 }
 0x611   :  { %19123 = vst [vmem:[#allocation342_spill] sm:$0xff] %v13916_v15  ;;  %5353 = vperm.xlu1 %11070, %v4346_v35   ;;  %v13918_v7 = vpop.permute.xlu0 %5134  ;;  %v19130_v35 = vld [vmem:[#allocation347_spill] sm:$0xff] }
 0x612   :  { %19124 = vst [vmem:[#allocation343_spill] sm:$0xff] %v13918_v7  ;;  %5320 = vperm.xlu0 %11071, %v4335_v53   ;;  %v4339_v11 = vmul.f32 %v19130_v35, %v13436_v24 }
 0x614   :  { %v13924_v56 = vpop.permute.xlu1 %5173 }
 0x615   :  { %19127 = vst [vmem:[#allocation344_spill] sm:$0xff] %v13924_v56  ;;  %5359 = vperm.xlu1 %11070, %v4348_v36   ;;  %v13926_v6 = vpop.permute.xlu0 %5140  ;;  %v19134_v36 = vld [vmem:[#allocation349_spill] sm:$0xff] }
 0x616   :  { %19128 = vst [vmem:[#allocation345_spill] sm:$0xff] %v13926_v6  ;;  %5326 = vperm.xlu0 %11071, %v4337_v62   ;;  %v4341_v8 = vmul.f32 %v19134_v36, %v13436_v24  ;;  %v19259_v6 = vld [vmem:[#allocation58_spill] sm:$0xff] }
 0x618   :  { %v13932_v7 = vpop.permute.xlu1 %5179 }
 0x619   :  { %19131 = vst [vmem:[#allocation346_spill] sm:$0xff] %v13932_v7  ;;  %5365 = vperm.xlu1 %11070, %v4350_v49   ;;  %v13934_v53 = vpop.permute.xlu0 %5146  ;;  %v19137_v49 = vld [vmem:[#allocation351_spill] sm:$0xff] }
 0x61a   :  { %19132 = vst [vmem:[#allocation347_spill] sm:$0xff] %v13934_v53  ;;  %5332 = vperm.xlu0 %11071, %v4339_v11   ;;  %v4354_v11 = vmul.f32 %v18929_v9, %v13436_v24  ;;  %v4343_v35 = vmul.f32 %v19137_v49, %v13436_v24  ;;  %v4347_v9 = vmul.f32 %v13186_v59, %v13436_v24 }
 0x61c   :  { %v13940_v32 = vpop.permute.xlu1 %5185 }
 0x61d   :  { %19135 = vst [vmem:[#allocation348_spill] sm:$0xff] %v13940_v32  ;;  %5371 = vperm.xlu1 %11070, %v4352_v33   ;;  %v13942_v62 = vpop.permute.xlu0 %5152  ;;  %v19140_v33 = vld [vmem:[#allocation6_spill] sm:$0xff] }
 0x61e   :  { %19136 = vst [vmem:[#allocation349_spill] sm:$0xff] %v13942_v62  ;;  %5338 = vperm.xlu0 %11071, %v4341_v8   ;;  %v6681_v32 = vrot.slane %v13947_v27, %v19140_v33  ;;  %v4345_v8 = vmul.f32 %v13178_v28, %v13436_v24  ;;  %v19275_v33 = vld [vmem:[#allocation72_spill] sm:$0xff] }
 0x620   :  { %v13953_v25 = vpop.permute.xlu1 %5191 }
 0x621   :  { %19138 = vst [vmem:[#allocation351_spill] sm:$0xff] %v13953_v25  ;;  %5377 = vperm.xlu1 %11070, %v4354_v11   ;;  %v13955_v36 = vpop.permute.xlu0 %5158 }
 0x622   :  { %19139 = vst [vmem:[#allocation460_spill] sm:$0xff] %v13955_v36  ;;  %5344 = vperm.xlu0 %11071, %v4343_v35   ;;  %v4349_v35 = vmul.f32 %v13194_v17, %v13436_v24 }
 0x624   :  { %v13961_v7 = vpop.permute.xlu1 %5197 }
 0x625   :  { %19141 = vst [vmem:[#allocation461_spill] sm:$0xff] %v13961_v7  ;;  %6715 = vbcast.lane.b32.xlu1 %v6681_v32, 264  ;;  %v13963_v10 = vpop.permute.xlu0 %5164 }
 0x626   :  { %19142 = vst [vmem:[#allocation462_spill] sm:$0xff] %v13963_v10  ;;  %5350 = vperm.xlu0 %11071, %v4345_v8   ;;  %v4351_v8 = vmul.f32 %v13202_v63, %v13436_v24 }
 0x628   :  { %v13967_v49 = vpop.permute.xlu1 %5203 }
 0x629   :  { %19143 = vst [vmem:[#allocation463_spill] sm:$0xff] %v13967_v49  ;;  %6723 = vbcast.lane.b32.xlu1 %v6681_v32, 280  ;;  %v13969_v11 = vpop.permute.xlu0 %5170 }
 0x62a   :  { %19144 = vst [vmem:[#allocation464_spill] sm:$0xff] %v13969_v11  ;;  %5356 = vperm.xlu0 %11071, %v4347_v9   ;;  %v4353_v9 = vmul.f32 %v13210_v39, %v13436_v24  ;;  %v19157_v24 = vld [vmem:[#allocation7_spill] sm:$0xff] }
 0x62c   :  { %v13973_v25 = vpop.permute.xlu1 %5209 }
 0x62d   :  { %19145 = vst [vmem:[#allocation465_spill] sm:$0xff] %v13973_v25  ;;  %6731 = vbcast.lane.b32.xlu1 %v6681_v32, 296  ;;  %v13975_v28 = vpop.permute.xlu0 %5176 }
 0x62e   :  { %19146 = vst [vmem:[#allocation466_spill] sm:$0xff] %v13975_v28  ;;  %5362 = vperm.xlu0 %11071, %v4349_v35  }
 0x630   :  { %v13979_v7 = vpop.permute.xlu1 %5215 }
 0x631   :  { %19147 = vst [vmem:[#allocation467_spill] sm:$0xff] %v13979_v7  ;;  %6739 = vbcast.lane.b32.xlu1 %v6681_v32, 312  ;;  %v13981_v59 = vpop.permute.xlu0 %5182 }
 0x632   :  { %19148 = vst [vmem:[#allocation468_spill] sm:$0xff] %v13981_v59  ;;  %5368 = vperm.xlu0 %11071, %v4351_v8   ;;  %v19191_v59 = vld [vmem:[#allocation9_spill] sm:$0xff] }
 0x634   :  { %v13985_v49 = vpop.permute.xlu1 %5221 }
 0x635   :  { %19149 = vst [vmem:[#allocation469_spill] sm:$0xff] %v13985_v49  ;;  %6747 = vbcast.lane.b32.xlu1 %v6681_v32, 328  ;;  %v13987_v17 = vpop.permute.xlu0 %5188 }
 0x636   :  { %19150 = vst [vmem:[#allocation470_spill] sm:$0xff] %v13987_v17  ;;  %5374 = vperm.xlu0 %11071, %v4353_v9   ;;  %v6685_v9 = vrot.slane %v13947_v27, %v19157_v24  ;;  %v19174_v17 = vld [vmem:[#allocation8_spill] sm:$0xff] }
 0x638   :  { %v13989_v25 = vpop.permute.xlu1 %5227 }
 0x639   :  { %19151 = vst [vmem:[#allocation471_spill] sm:$0xff] %v13989_v25  ;;  %6755 = vbcast.lane.b32.xlu1 %v6681_v32, 344  ;;  %v13991_v35 = vpop.permute.xlu0 %5194 }
 0x63a   :  { %19152 = vst [vmem:[#allocation472_spill] sm:$0xff] %v13991_v35  ;;  %6711 = vbcast.lane.b32.xlu0 %v6681_v32, 256 }
 0x63c   :  { %v13993_v63 = vpop.permute.xlu1 %5233 }
 0x63d   :  { %19153 = vst [vmem:[#allocation473_spill] sm:$0xff] %v13993_v63  ;;  %6763 = vbcast.lane.b32.xlu1 %v6681_v32, 360  ;;  %v13995_v7 = vpop.permute.xlu0 %5200 }
 0x63e   :  { %19154 = vst [vmem:[#allocation474_spill] sm:$0xff] %v13995_v7  ;;  %6719 = vbcast.lane.b32.xlu0 %v6681_v32, 272 }
 0x640   :  { %v13997_v8 = vpop.permute.xlu1 %5239 }
 0x641   :  { %19155 = vst [vmem:[#allocation475_spill] sm:$0xff] %v13997_v8  ;;  %6771 = vbcast.lane.b32.xlu1 %v6681_v32, 376  ;;  %v13999_v39 = vpop.permute.xlu0 %5206 }
 0x642   :  { %19156 = vst [vmem:[#allocation476_spill] sm:$0xff] %v13999_v39  ;;  %6727 = vbcast.lane.b32.xlu0 %v6681_v32, 288 }
 0x644   :  { %v14003_v25 = vpop.permute.xlu1 %5245 }
 0x645   :  { %19158 = vst [vmem:[#allocation477_spill] sm:$0xff] %v14003_v25  ;;  %6778 = vbcast.lane.b32.xlu1 %v6685_v9, 264  ;;  %v14005_v49 = vpop.permute.xlu0 %5212 }
 0x646   :  { %19159 = vst [vmem:[#allocation478_spill] sm:$0xff] %v14005_v49  ;;  %6735 = vbcast.lane.b32.xlu0 %v6681_v32, 304 }
 0x648   :  { %v14007_v63 = vpop.permute.xlu1 %5251 }
 0x649   :  { %19160 = vst [vmem:[#allocation479_spill] sm:$0xff] %v14007_v63  ;;  %6786 = vbcast.lane.b32.xlu1 %v6685_v9, 280  ;;  %v14009_v7 = vpop.permute.xlu0 %5218 }
 0x64a   :  { %19161 = vst [vmem:[#allocation480_spill] sm:$0xff] %v14009_v7  ;;  %6743 = vbcast.lane.b32.xlu0 %v6681_v32, 320 }
 0x64c   :  { %v14011_v8 = vpop.permute.xlu1 %5257 }
 0x64d   :  { %19162 = vst [vmem:[#allocation481_spill] sm:$0xff] %v14011_v8  ;;  %6794 = vbcast.lane.b32.xlu1 %v6685_v9, 296  ;;  %v14013_v39 = vpop.permute.xlu0 %5224 }
 0x64e   :  { %19163 = vst [vmem:[#allocation482_spill] sm:$0xff] %v14013_v39  ;;  %6751 = vbcast.lane.b32.xlu0 %v6681_v32, 336 }
 0x650   :  { %v14015_v35 = vpop.permute.xlu1 %5263 }
 0x651   :  { %19164 = vst [vmem:[#allocation483_spill] sm:$0xff] %v14015_v35  ;;  %6802 = vbcast.lane.b32.xlu1 %v6685_v9, 312  ;;  %v14017_v25 = vpop.permute.xlu0 %5230 }
 0x652   :  { %19165 = vst [vmem:[#allocation484_spill] sm:$0xff] %v14017_v25  ;;  %6759 = vbcast.lane.b32.xlu0 %v6681_v32, 352 }
 0x654   :  { %v14019_v49 = vpop.permute.xlu1 %5269 }
 0x655   :  { %19166 = vst [vmem:[#allocation485_spill] sm:$0xff] %v14019_v49  ;;  %6810 = vbcast.lane.b32.xlu1 %v6685_v9, 328  ;;  %v14021_v63 = vpop.permute.xlu0 %5236 }
 0x656   :  { %19167 = vst [vmem:[#allocation486_spill] sm:$0xff] %v14021_v63  ;;  %6767 = vbcast.lane.b32.xlu0 %v6681_v32, 368  ;;  %v6689_v32 = vrot.slane %v13947_v27, %v19174_v17 }
 0x658   :  { %v14023_v7 = vpop.permute.xlu1 %5275 }
 0x659   :  { %19168 = vst [vmem:[#allocation487_spill] sm:$0xff] %v14023_v7  ;;  %6818 = vbcast.lane.b32.xlu1 %v6685_v9, 344  ;;  %v14025_v8 = vpop.permute.xlu0 %5242 }
 0x65a   :  { %19169 = vst [vmem:[#allocation488_spill] sm:$0xff] %v14025_v8  ;;  %6774 = vbcast.lane.b32.xlu0 %v6685_v9, 256 }
 0x65c   :  { %v14027_v39 = vpop.permute.xlu1 %5281 }
 0x65d   :  { %19170 = vst [vmem:[#allocation489_spill] sm:$0xff] %v14027_v39  ;;  %6826 = vbcast.lane.b32.xlu1 %v6685_v9, 360  ;;  %v14029_v35 = vpop.permute.xlu0 %5248 }
 0x65e   :  { %19171 = vst [vmem:[#allocation490_spill] sm:$0xff] %v14029_v35  ;;  %6782 = vbcast.lane.b32.xlu0 %v6685_v9, 272 }
 0x660   :  { %v14031_v25 = vpop.permute.xlu1 %5287 }
 0x661   :  { %19172 = vst [vmem:[#allocation491_spill] sm:$0xff] %v14031_v25  ;;  %6834 = vbcast.lane.b32.xlu1 %v6685_v9, 376  ;;  %v14033_v49 = vpop.permute.xlu0 %5254 }
 0x662   :  { %19173 = vst [vmem:[#allocation492_spill] sm:$0xff] %v14033_v49  ;;  %6790 = vbcast.lane.b32.xlu0 %v6685_v9, 288 }
 0x664   :  { %v14037_v7 = vpop.permute.xlu1 %5293 }
 0x665   :  { %19175 = vst [vmem:[#allocation493_spill] sm:$0xff] %v14037_v7  ;;  %6841 = vbcast.lane.b32.xlu1 %v6689_v32, 264  ;;  %v14039_v8 = vpop.permute.xlu0 %5260 }
 0x666   :  { %19176 = vst [vmem:[#allocation494_spill] sm:$0xff] %v14039_v8  ;;  %6798 = vbcast.lane.b32.xlu0 %v6685_v9, 304 }
 0x668   :  { %v14041_v39 = vpop.permute.xlu1 %5299 }
 0x669   :  { %19177 = vst [vmem:[#allocation495_spill] sm:$0xff] %v14041_v39  ;;  %6849 = vbcast.lane.b32.xlu1 %v6689_v32, 280  ;;  %v14043_v35 = vpop.permute.xlu0 %5266 }
 0x66a   :  { %19178 = vst [vmem:[#allocation496_spill] sm:$0xff] %v14043_v35  ;;  %6806 = vbcast.lane.b32.xlu0 %v6685_v9, 320 }
 0x66c   :  { %v14045_v25 = vpop.permute.xlu1 %5305 }
 0x66d   :  { %19179 = vst [vmem:[#allocation497_spill] sm:$0xff] %v14045_v25  ;;  %6857 = vbcast.lane.b32.xlu1 %v6689_v32, 296  ;;  %v14047_v49 = vpop.permute.xlu0 %5272 }
 0x66e   :  { %19180 = vst [vmem:[#allocation498_spill] sm:$0xff] %v14047_v49  ;;  %6814 = vbcast.lane.b32.xlu0 %v6685_v9, 336 }
 0x670   :  { %v14049_v63 = vpop.permute.xlu1 %5311 }
 0x671   :  { %19181 = vst [vmem:[#allocation499_spill] sm:$0xff] %v14049_v63  ;;  %6865 = vbcast.lane.b32.xlu1 %v6689_v32, 312  ;;  %v14051_v7 = vpop.permute.xlu0 %5278 }
 0x672   :  { %19182 = vst [vmem:[#allocation500_spill] sm:$0xff] %v14051_v7  ;;  %6822 = vbcast.lane.b32.xlu0 %v6685_v9, 352 }
 0x674   :  { %v14053_v8 = vpop.permute.xlu1 %5317 }
 0x675   :  { %19183 = vst [vmem:[#allocation501_spill] sm:$0xff] %v14053_v8  ;;  %6873 = vbcast.lane.b32.xlu1 %v6689_v32, 328  ;;  %v14055_v39 = vpop.permute.xlu0 %5284 }
 0x676   :  { %19184 = vst [vmem:[#allocation502_spill] sm:$0xff] %v14055_v39  ;;  %6830 = vbcast.lane.b32.xlu0 %v6685_v9, 368  ;;  %v6693_v9 = vrot.slane %v13947_v27, %v19191_v59 }
 0x678   :  { %v14057_v35 = vpop.permute.xlu1 %5323 }
 0x679   :  { %19185 = vst [vmem:[#allocation503_spill] sm:$0xff] %v14057_v35  ;;  %6881 = vbcast.lane.b32.xlu1 %v6689_v32, 344  ;;  %v14059_v25 = vpop.permute.xlu0 %5290 }
 0x67a   :  { %19186 = vst [vmem:[#allocation504_spill] sm:$0xff] %v14059_v25  ;;  %6837 = vbcast.lane.b32.xlu0 %v6689_v32, 256 }
 0x67c   :  { %v14061_v49 = vpop.permute.xlu1 %5329 }
 0x67d   :  { %19187 = vst [vmem:[#allocation505_spill] sm:$0xff] %v14061_v49  ;;  %6889 = vbcast.lane.b32.xlu1 %v6689_v32, 360  ;;  %v14063_v63 = vpop.permute.xlu0 %5296 }
 0x67e   :  { %19188 = vst [vmem:[#allocation506_spill] sm:$0xff] %v14063_v63  ;;  %6845 = vbcast.lane.b32.xlu0 %v6689_v32, 272 }
 0x680   :  { %v14065_v7 = vpop.permute.xlu1 %5335 }
 0x681   :  { %19189 = vst [vmem:[#allocation507_spill] sm:$0xff] %v14065_v7  ;;  %6897 = vbcast.lane.b32.xlu1 %v6689_v32, 376  ;;  %v14067_v8 = vpop.permute.xlu0 %5302 }
 0x682   :  { %19190 = vst [vmem:[#allocation508_spill] sm:$0xff] %v14067_v8  ;;  %6853 = vbcast.lane.b32.xlu0 %v6689_v32, 288 }
 0x684   :  { %v14071_v35 = vpop.permute.xlu1 %5341 }
 0x685   :  { %19192 = vst [vmem:[#allocation509_spill] sm:$0xff] %v14071_v35  ;;  %6904 = vbcast.lane.b32.xlu1 %v6693_v9, 264  ;;  %v14073_v25 = vpop.permute.xlu0 %5308 }
 0x686   :  { %19193 = vst [vmem:[#allocation510_spill] sm:$0xff] %v14073_v25  ;;  %6861 = vbcast.lane.b32.xlu0 %v6689_v32, 304 }
 0x688   :  { %v14075_v49 = vpop.permute.xlu1 %5347 }
 0x689   :  { %19194 = vst [vmem:[#allocation511_spill] sm:$0xff] %v14075_v49  ;;  %6912 = vbcast.lane.b32.xlu1 %v6693_v9, 280  ;;  %v14077_v63 = vpop.permute.xlu0 %5314 }
 0x68a   :  { %19195 = vst [vmem:[#allocation512_spill] sm:$0xff] %v14077_v63  ;;  %6869 = vbcast.lane.b32.xlu0 %v6689_v32, 320 }
 0x68c   :  { %v14079_v7 = vpop.permute.xlu1 %5353 }
 0x68d   :  { %19196 = vst [vmem:[#allocation513_spill] sm:$0xff] %v14079_v7  ;;  %6920 = vbcast.lane.b32.xlu1 %v6693_v9, 296  ;;  %v14081_v8 = vpop.permute.xlu0 %5320 }
 0x68e   :  { %19197 = vst [vmem:[#allocation514_spill] sm:$0xff] %v14081_v8  ;;  %6877 = vbcast.lane.b32.xlu0 %v6689_v32, 336 }
 0x690   :  { %v14083_v39 = vpop.permute.xlu1 %5359 }
 0x691   :  { %19198 = vst [vmem:[#allocation515_spill] sm:$0xff] %v14083_v39  ;;  %6928 = vbcast.lane.b32.xlu1 %v6693_v9, 312  ;;  %v14085_v35 = vpop.permute.xlu0 %5326 }
 0x692   :  { %19199 = vst [vmem:[#allocation516_spill] sm:$0xff] %v14085_v35  ;;  %6885 = vbcast.lane.b32.xlu0 %v6689_v32, 352 }
 0x694   :  { %v14087_v25 = vpop.permute.xlu1 %5365 }
 0x695   :  { %19200 = vst [vmem:[#allocation517_spill] sm:$0xff] %v14087_v25  ;;  %6936 = vbcast.lane.b32.xlu1 %v6693_v9, 328  ;;  %v14089_v49 = vpop.permute.xlu0 %5332 }
 0x696   :  { %19201 = vst [vmem:[#allocation518_spill] sm:$0xff] %v14089_v49  ;;  %6893 = vbcast.lane.b32.xlu0 %v6689_v32, 368  ;;  %v6697_v32 = vrot.slane %v13947_v27, %v19208_v45 }
 0x698   :  { %v14091_v63 = vpop.permute.xlu1 %5371 }
 0x699   :  { %19202 = vst [vmem:[#allocation519_spill] sm:$0xff] %v14091_v63  ;;  %6944 = vbcast.lane.b32.xlu1 %v6693_v9, 344  ;;  %v14093_v7 = vpop.permute.xlu0 %5338 }
 0x69a   :  { %19203 = vst [vmem:[#allocation520_spill] sm:$0xff] %v14093_v7  ;;  %6900 = vbcast.lane.b32.xlu0 %v6693_v9, 256 }
 0x69c   :  { %v14095_v8 = vpop.permute.xlu1 %5377 }
 0x69d   :  { %19204 = vst [vmem:[#allocation521_spill] sm:$0xff] %v14095_v8  ;;  %6952 = vbcast.lane.b32.xlu1 %v6693_v9, 360  ;;  %v14097_v39 = vpop.permute.xlu0 %5344 }
 0x69e   :  { %19205 = vst [vmem:[#allocation522_spill] sm:$0xff] %v14097_v39  ;;  %6908 = vbcast.lane.b32.xlu0 %v6693_v9, 272 }
 0x6a0   :  { %v14099_v35 = vpop.permute.xlu1 %6715 }
 0x6a1   :  { %19206 = vst [vmem:[#allocation523_spill] sm:$0xff] %v14099_v35  ;;  %6960 = vbcast.lane.b32.xlu1 %v6693_v9, 376  ;;  %v14101_v25 = vpop.permute.xlu0 %5350 }
 0x6a2   :  { %19207 = vst [vmem:[#allocation524_spill] sm:$0xff] %v14101_v25  ;;  %6916 = vbcast.lane.b32.xlu0 %v6693_v9, 288 }
 0x6a4   :  { %v14105_v63 = vpop.permute.xlu1 %6723 }
 0x6a5   :  { %19209 = vst [vmem:[#allocation525_spill] sm:$0xff] %v14105_v63  ;;  %6967 = vbcast.lane.b32.xlu1 %v6697_v32, 264  ;;  %v14107_v7 = vpop.permute.xlu0 %5356 }
 0x6a6   :  { %19210 = vst [vmem:[#allocation526_spill] sm:$0xff] %v14107_v7  ;;  %6924 = vbcast.lane.b32.xlu0 %v6693_v9, 304 }
 0x6a8   :  { %v14109_v8 = vpop.permute.xlu1 %6731 }
 0x6a9   :  { %19211 = vst [vmem:[#allocation527_spill] sm:$0xff] %v14109_v8  ;;  %6975 = vbcast.lane.b32.xlu1 %v6697_v32, 280  ;;  %v14111_v39 = vpop.permute.xlu0 %5362 }
 0x6aa   :  { %19212 = vst [vmem:[#allocation528_spill] sm:$0xff] %v14111_v39  ;;  %6932 = vbcast.lane.b32.xlu0 %v6693_v9, 320 }
 0x6ac   :  { %v14113_v49 = vpop.permute.xlu1 %6739 }
 0x6ad   :  { %19213 = vst [vmem:[#allocation529_spill] sm:$0xff] %v14113_v49  ;;  %6983 = vbcast.lane.b32.xlu1 %v6697_v32, 296  ;;  %v14115_v25 = vpop.permute.xlu0 %5368 }
 0x6ae   :  { %19214 = vst [vmem:[#allocation530_spill] sm:$0xff] %v14115_v25  ;;  %6940 = vbcast.lane.b32.xlu0 %v6693_v9, 336 }
 0x6b0   :  { %v14117_v41 = vpop.permute.xlu1 %6747 }
 0x6b1   :  { %19215 = vst [vmem:[#allocation531_spill] sm:$0xff] %v14117_v41  ;;  %6991 = vbcast.lane.b32.xlu1 %v6697_v32, 312  ;;  %v14119_v48 = vpop.permute.xlu0 %5374 }
 0x6b2   :  { %19216 = vst [vmem:[#allocation532_spill] sm:$0xff] %v14119_v48  ;;  %6948 = vbcast.lane.b32.xlu0 %v6693_v9, 352 }
 0x6b4   :  { %v14121_v7 = vpop.permute.xlu1 %6755 }
 0x6b5   :  { %19217 = vst [vmem:[#allocation533_spill] sm:$0xff] %v14121_v7  ;;  %6999 = vbcast.lane.b32.xlu1 %v6697_v32, 328  ;;  %v14123_v56 = vpop.permute.xlu0 %6711 }
 0x6b6   :  { %19218 = vst [vmem:[#allocation534_spill] sm:$0xff] %v14123_v56  ;;  %6956 = vbcast.lane.b32.xlu0 %v6693_v9, 368  ;;  %v6701_v9 = vrot.slane %v13947_v27, %v19225_v4 }
 0x6b8   :  { %v14125_v39 = vpop.permute.xlu1 %6763 }
 0x6b9   :  { %19219 = vst [vmem:[#allocation535_spill] sm:$0xff] %v14125_v39  ;;  %7007 = vbcast.lane.b32.xlu1 %v6697_v32, 344  ;;  %v14127_v60 = vpop.permute.xlu0 %6719 }
 0x6ba   :  { %19220 = vst [vmem:[#allocation536_spill] sm:$0xff] %v14127_v60  ;;  %6963 = vbcast.lane.b32.xlu0 %v6697_v32, 256 }
 0x6bc   :  { %v14129_v25 = vpop.permute.xlu1 %6771 }
 0x6bd   :  { %19221 = vst [vmem:[#allocation537_spill] sm:$0xff] %v14129_v25  ;;  %7015 = vbcast.lane.b32.xlu1 %v6697_v32, 360  ;;  %v14131_v28 = vpop.permute.xlu0 %6727 }
 0x6be   :  { %19222 = vst [vmem:[#allocation538_spill] sm:$0xff] %v14131_v28  ;;  %6971 = vbcast.lane.b32.xlu0 %v6697_v32, 272 }
 0x6c0   :  { %v14133_v48 = vpop.permute.xlu1 %6778 }
 0x6c1   :  { %19223 = vst [vmem:[#allocation539_spill] sm:$0xff] %v14133_v48  ;;  %7023 = vbcast.lane.b32.xlu1 %v6697_v32, 376  ;;  %v14135_v34 = vpop.permute.xlu0 %6735 }
 0x6c2   :  { %19224 = vst [vmem:[#allocation540_spill] sm:$0xff] %v14135_v34  ;;  %6979 = vbcast.lane.b32.xlu0 %v6697_v32, 288 }
 0x6c4   :  { %v14139_v19 = vpop.permute.xlu1 %6786 }
 0x6c5   :  { %19226 = vst [vmem:[#allocation541_spill] sm:$0xff] %v14139_v19  ;;  %7030 = vbcast.lane.b32.xlu1 %v6701_v9, 264  ;;  %v14141_v61 = vpop.permute.xlu0 %6743 }
 0x6c6   :  { %19227 = vst [vmem:[#allocation542_spill] sm:$0xff] %v14141_v61  ;;  %6987 = vbcast.lane.b32.xlu0 %v6697_v32, 304 }
 0x6c8   :  { %v14143_v15 = vpop.permute.xlu1 %6794 }
 0x6c9   :  { %19228 = vst [vmem:[#allocation543_spill] sm:$0xff] %v14143_v15  ;;  %7038 = vbcast.lane.b32.xlu1 %v6701_v9, 280  ;;  %v14145_v18 = vpop.permute.xlu0 %6751 }
 0x6ca   :  { %19229 = vst [vmem:[#allocation544_spill] sm:$0xff] %v14145_v18  ;;  %6995 = vbcast.lane.b32.xlu0 %v6697_v32, 320 }
 0x6cc   :  { %v14147_v11 = vpop.permute.xlu1 %6802 }
 0x6cd   :  { %19230 = vst [vmem:[#allocation545_spill] sm:$0xff] %v14147_v11  ;;  %7046 = vbcast.lane.b32.xlu1 %v6701_v9, 296  ;;  %v14149_v54 = vpop.permute.xlu0 %6759 }
 0x6ce   :  { %19231 = vst [vmem:[#allocation546_spill] sm:$0xff] %v14149_v54  ;;  %7003 = vbcast.lane.b32.xlu0 %v6697_v32, 336 }
 0x6d0   :  { %v14151_v12 = vpop.permute.xlu1 %6810 }
 0x6d1   :  { %19232 = vst [vmem:[#allocation547_spill] sm:$0xff] %v14151_v12  ;;  %7054 = vbcast.lane.b32.xlu1 %v6701_v9, 312  ;;  %v14153_v57 = vpop.permute.xlu0 %6767 }
 0x6d2   :  { %19233 = vst [vmem:[#allocation548_spill] sm:$0xff] %v14153_v57  ;;  %7011 = vbcast.lane.b32.xlu0 %v6697_v32, 352 }
 0x6d4   :  { %v14155_v43 = vpop.permute.xlu1 %6818 }
 0x6d5   :  { %19234 = vst [vmem:[#allocation549_spill] sm:$0xff] %v14155_v43  ;;  %7062 = vbcast.lane.b32.xlu1 %v6701_v9, 328  ;;  %v14157_v29 = vpop.permute.xlu0 %6774 }
 0x6d6   :  { %19235 = vst [vmem:[#allocation550_spill] sm:$0xff] %v14157_v29  ;;  %7019 = vbcast.lane.b32.xlu0 %v6697_v32, 368  ;;  %v6705_v32 = vrot.slane %v13947_v27, %v19242_v51 }
 0x6d8   :  { %v14159_v42 = vpop.permute.xlu1 %6826 }
 0x6d9   :  { %19236 = vst [vmem:[#allocation551_spill] sm:$0xff] %v14159_v42  ;;  %7070 = vbcast.lane.b32.xlu1 %v6701_v9, 344  ;;  %v14161_v10 = vpop.permute.xlu0 %6782 }
 0x6da   :  { %19237 = vst [vmem:[#allocation552_spill] sm:$0xff] %v14161_v10  ;;  %7026 = vbcast.lane.b32.xlu0 %v6701_v9, 256 }
 0x6dc   :  { %v14163_v55 = vpop.permute.xlu1 %6834 }
 0x6dd   :  { %19238 = vst [vmem:[#allocation553_spill] sm:$0xff] %v14163_v55  ;;  %7078 = vbcast.lane.b32.xlu1 %v6701_v9, 360  ;;  %v14165_v21 = vpop.permute.xlu0 %6790 }
 0x6de   :  { %19239 = vst [vmem:[#allocation554_spill] sm:$0xff] %v14165_v21  ;;  %7034 = vbcast.lane.b32.xlu0 %v6701_v9, 272 }
 0x6e0   :  { %v14167_v58 = vpop.permute.xlu1 %6841 }
 0x6e1   :  { %19240 = vst [vmem:[#allocation555_spill] sm:$0xff] %v14167_v58  ;;  %7086 = vbcast.lane.b32.xlu1 %v6701_v9, 376  ;;  %v14169_v13 = vpop.permute.xlu0 %6798 }
 0x6e2   :  { %19241 = vst [vmem:[#allocation556_spill] sm:$0xff] %v14169_v13  ;;  %7042 = vbcast.lane.b32.xlu0 %v6701_v9, 288 }
 0x6e4   :  { %v14173_v30 = vpop.permute.xlu1 %6849 }
 0x6e5   :  { %19243 = vst [vmem:[#allocation557_spill] sm:$0xff] %v14173_v30  ;;  %7093 = vbcast.lane.b32.xlu1 %v6705_v32, 264  ;;  %v14175_v36 = vpop.permute.xlu0 %6806 }
 0x6e6   :  { %19244 = vst [vmem:[#allocation558_spill] sm:$0xff] %v14175_v36  ;;  %7050 = vbcast.lane.b32.xlu0 %v6701_v9, 304 }
 0x6e8   :  { %v14177_v0 = vpop.permute.xlu1 %6857 }
 0x6e9   :  { %19245 = vst [vmem:[#allocation559_spill] sm:$0xff] %v14177_v0  ;;  %7101 = vbcast.lane.b32.xlu1 %v6705_v32, 280  ;;  %v14179_v44 = vpop.permute.xlu0 %6814 }
 0x6ea   :  { %19246 = vst [vmem:[#allocation560_spill] sm:$0xff] %v14179_v44  ;;  %7058 = vbcast.lane.b32.xlu0 %v6701_v9, 320 }
 0x6ec   :  { %v14181_v40 = vpop.permute.xlu1 %6865 }
 0x6ed   :  { %19247 = vst [vmem:[#allocation561_spill] sm:$0xff] %v14181_v40  ;;  %7109 = vbcast.lane.b32.xlu1 %v6705_v32, 296  ;;  %v14183_v16 = vpop.permute.xlu0 %6822 }
 0x6ee   :  { %19248 = vst [vmem:[#allocation562_spill] sm:$0xff] %v14183_v16  ;;  %7066 = vbcast.lane.b32.xlu0 %v6701_v9, 336 }
 0x6f0   :  { %v14185_v38 = vpop.permute.xlu1 %6873 }
 0x6f1   :  { %19249 = vst [vmem:[#allocation563_spill] sm:$0xff] %v14185_v38  ;;  %7117 = vbcast.lane.b32.xlu1 %v6705_v32, 312  ;;  %v14187_v50 = vpop.permute.xlu0 %6830 }
 0x6f2   :  { %19250 = vst [vmem:[#allocation564_spill] sm:$0xff] %v14187_v50  ;;  %7074 = vbcast.lane.b32.xlu0 %v6701_v9, 352 }
 0x6f4   :  { %v14189_v47 = vpop.permute.xlu1 %6881 }
 0x6f5   :  { %19251 = vst [vmem:[#allocation565_spill] sm:$0xff] %v14189_v47  ;;  %7125 = vbcast.lane.b32.xlu1 %v6705_v32, 328  ;;  %v14191_v62 = vpop.permute.xlu0 %6837 }
 0x6f6   :  { %19252 = vst [vmem:[#allocation566_spill] sm:$0xff] %v14191_v62  ;;  %7082 = vbcast.lane.b32.xlu0 %v6701_v9, 368  ;;  %v6709_v9 = vrot.slane %v13947_v27, %v19259_v6 }
 0x6f8   :  { %v14193_v52 = vpop.permute.xlu1 %6889 }
 0x6f9   :  { %19253 = vst [vmem:[#allocation567_spill] sm:$0xff] %v14193_v52  ;;  %7133 = vbcast.lane.b32.xlu1 %v6705_v32, 344  ;;  %v14195_v20 = vpop.permute.xlu0 %6845 }
 0x6fa   :  { %19254 = vst [vmem:[#allocation568_spill] sm:$0xff] %v14195_v20  ;;  %7089 = vbcast.lane.b32.xlu0 %v6705_v32, 256 }
 0x6fc   :  { %v14197_v23 = vpop.permute.xlu1 %6897 }
 0x6fd   :  { %19255 = vst [vmem:[#allocation569_spill] sm:$0xff] %v14197_v23  ;;  %7141 = vbcast.lane.b32.xlu1 %v6705_v32, 360  ;;  %v14199_v1 = vpop.permute.xlu0 %6853 }
 0x6fe   :  { %19256 = vst [vmem:[#allocation570_spill] sm:$0xff] %v14199_v1  ;;  %7097 = vbcast.lane.b32.xlu0 %v6705_v32, 272 }
 0x700   :  { %v14201_v5 = vpop.permute.xlu1 %6904 }
 0x701   :  { %19257 = vst [vmem:[#allocation571_spill] sm:$0xff] %v14201_v5  ;;  %7149 = vbcast.lane.b32.xlu1 %v6705_v32, 376  ;;  %v14203_v53 = vpop.permute.xlu0 %6861 }
 0x702   :  { %19258 = vst [vmem:[#allocation572_spill] sm:$0xff] %v14203_v53  ;;  %7105 = vbcast.lane.b32.xlu0 %v6705_v32, 288 }
 0x704   :  { %v14207_v2 = vpop.permute.xlu1 %6912 }
 0x705   :  { %19260 = vst [vmem:[#allocation573_spill] sm:$0xff] %v14207_v2  ;;  %7156 = vbcast.lane.b32.xlu1 %v6709_v9, 264  ;;  %v14209_v37 = vpop.permute.xlu0 %6869 }
 0x706   :  { %19261 = vst [vmem:[#allocation574_spill] sm:$0xff] %v14209_v37  ;;  %7113 = vbcast.lane.b32.xlu0 %v6705_v32, 304 }
 0x708   :  { %v14211_v14 = vpop.permute.xlu1 %6920 }
 0x709   :  { %19262 = vst [vmem:[#allocation575_spill] sm:$0xff] %v14211_v14  ;;  %7164 = vbcast.lane.b32.xlu1 %v6709_v9, 280  ;;  %v14213_v22 = vpop.permute.xlu0 %6877 }
 0x70a   :  { %19263 = vst [vmem:[#allocation576_spill] sm:$0xff] %v14213_v22  ;;  %7121 = vbcast.lane.b32.xlu0 %v6705_v32, 320 }
 0x70c   :  { %v14215_v26 = vpop.permute.xlu1 %6928 }
 0x70d   :  { %19264 = vst [vmem:[#allocation577_spill] sm:$0xff] %v14215_v26  ;;  %7172 = vbcast.lane.b32.xlu1 %v6709_v9, 296  ;;  %v14217_v31 = vpop.permute.xlu0 %6885 }
 0x70e   :  { %19265 = vst [vmem:[#allocation578_spill] sm:$0xff] %v14217_v31  ;;  %7129 = vbcast.lane.b32.xlu0 %v6705_v32, 336 }
 0x710   :  { %v14219_v27 = vpop.permute.xlu1 %6936 }
 0x711   :  { %19266 = vst [vmem:[#allocation579_spill] sm:$0xff] %v14219_v27  ;;  %7180 = vbcast.lane.b32.xlu1 %v6709_v9, 312  ;;  %v14221_v6 = vpop.permute.xlu0 %6893 }
 0x712   :  { %19267 = vst [vmem:[#allocation580_spill] sm:$0xff] %v14221_v6  ;;  %7137 = vbcast.lane.b32.xlu0 %v6705_v32, 352 }
 0x714   :  { %v14223_v46 = vpop.permute.xlu1 %6944 }
 0x715   :  { %19268 = vst [vmem:[#allocation581_spill] sm:$0xff] %v14223_v46  ;;  %7188 = vbcast.lane.b32.xlu1 %v6709_v9, 328  ;;  %v14225_v3 = vpop.permute.xlu0 %6900  ;;  %v14239_v46 = vrot.slane %v19275_v33, %v19174_v17 }
 0x716   :  { %19269 = vst [vmem:[#allocation582_spill] sm:$0xff] %v14225_v3  ;;  %7145 = vbcast.lane.b32.xlu0 %v6705_v32, 368 }
 0x717   :  { %19276 = vst [vmem:[#allocation72_spill] sm:$0xff] %v14239_v46  ;;  %v7347_v17 = vmul.f32 %v14109_v8, %v14239_v46 }
 0x718   :  { %v14227_v51 = vpop.permute.xlu1 %6952 }
 0x719   :  { %19270 = vst [vmem:[#allocation583_spill] sm:$0xff] %v14227_v51  ;;  %7196 = vbcast.lane.b32.xlu1 %v6709_v9, 344  ;;  %v14229_v4 = vpop.permute.xlu0 %6908 }
 0x71a   :  { %19271 = vst [vmem:[#allocation584_spill] sm:$0xff] %v14229_v4  ;;  %7152 = vbcast.lane.b32.xlu0 %v6709_v9, 256  ;;  %v7343_v4 = vmul.f32 %v14099_v35, %v14239_v46 }
 0x71c   :  { %v14231_v45 = vpop.permute.xlu1 %6960 }
 0x71d   :  { %19272 = vst [vmem:[#allocation585_spill] sm:$0xff] %v14231_v45  ;;  %7204 = vbcast.lane.b32.xlu1 %v6709_v9, 360  ;;  %v14233_v59 = vpop.permute.xlu0 %6916 }
 0x71e   :  { %19273 = vst [vmem:[#allocation586_spill] sm:$0xff] %v14233_v59  ;;  %7160 = vbcast.lane.b32.xlu0 %v6709_v9, 272 }
 0x720   :  { %v14235_v24 = vpop.permute.xlu1 %6967 }
 0x721   :  { %19274 = vst [vmem:[#allocation587_spill] sm:$0xff] %v14235_v24  ;;  %7212 = vbcast.lane.b32.xlu1 %v6709_v9, 376  ;;  %v14241_v32 = vpop.permute.xlu0 %6924  ;;  %v7345_v24 = vmul.f32 %v14105_v63, %v14239_v46 }
 0x722   :  { %19277 = vst [vmem:[#allocation588_spill] sm:$0xff] %v14241_v32  ;;  %7168 = vbcast.lane.b32.xlu0 %v6709_v9, 288 }
 0x724   :  { %v14245_v51 = vpop.permute.xlu1 %6975 }
 0x725   :  { %19278 = vst [vmem:[#allocation589_spill] sm:$0xff] %v14245_v51  ;;  %7858 = vperm.xlu1 %11070, %v7343_v4   ;;  %v14247_v45 = vpop.permute.xlu0 %6932  ;;  %v7349_v4 = vmul.f32 %v14113_v49, %v14239_v46  ;;  %v7342_v49 = vmul.f32 %v14123_v56, %v14239_v46 }
 0x726   :  { %19279 = vst [vmem:[#allocation590_spill] sm:$0xff] %v14247_v45  ;;  %7176 = vbcast.lane.b32.xlu0 %v6709_v9, 304 }
 0x728   :  { %v14251_v59 = vpop.permute.xlu1 %6983 }
 0x729   :  { %19280 = vst [vmem:[#allocation591_spill] sm:$0xff] %v14251_v59  ;;  %7864 = vperm.xlu1 %11070, %v7345_v24   ;;  %v14253_v33 = vpop.permute.xlu0 %6940  ;;  %v7351_v24 = vmul.f32 %v14117_v41, %v14239_v46  ;;  %v7355_v41 = vmul.f32 %v14125_v39, %v14239_v46  ;;  %v7359_v39 = vmul.f32 %v14133_v48, %v14239_v46 }
 0x72a   :  { %19281 = vst [vmem:[#allocation592_spill] sm:$0xff] %v14253_v33  ;;  %7184 = vbcast.lane.b32.xlu0 %v6709_v9, 320 }
 0x72c   :  { %v14257_v32 = vpop.permute.xlu1 %6991 }
 0x72d   :  { %19282 = vst [vmem:[#allocation593_spill] sm:$0xff] %v14257_v32  ;;  %7870 = vperm.xlu1 %11070, %v7347_v17   ;;  %v14259_v35 = vpop.permute.xlu0 %6948  ;;  %v7353_v17 = vmul.f32 %v14121_v7, %v14239_v46  ;;  %v7357_v7 = vmul.f32 %v14129_v25, %v14239_v46  ;;  %v7361_v25 = vmul.f32 %v14139_v19, %v14239_v46 }
 0x72e   :  { %7192 = vbcast.lane.b32.xlu0 %v6709_v9, 336 }
 0x730   :  { %v14263_v45 = vpop.permute.xlu1 %6999 }
 0x731   :  { %19283 = vst [vmem:[#allocation594_spill] sm:$0xff] %v14263_v45  ;;  %7876 = vperm.xlu1 %11070, %v7349_v4   ;;  %v14265_v63 = vpop.permute.xlu0 %6956 }
 0x732   :  { %7200 = vbcast.lane.b32.xlu0 %v6709_v9, 352 }
 0x734   :  { %v14269_v33 = vpop.permute.xlu1 %7007 }
 0x735   :  { %19284 = vst [vmem:[#allocation595_spill] sm:$0xff] %v14269_v33  ;;  %7882 = vperm.xlu1 %11070, %v7351_v24   ;;  %v14271_v8 = vpop.permute.xlu0 %6963  ;;  %v7344_v24 = vmul.f32 %v14127_v60, %v14239_v46 }
 0x736   :  { %19285 = vst [vmem:[#allocation596_spill] sm:$0xff] %v14271_v8  ;;  %7208 = vbcast.lane.b32.xlu0 %v6709_v9, 368 }
 0x738   :  { %v14277_v45 = vpop.permute.xlu1 %7015 }
 0x739   :  { %19286 = vst [vmem:[#allocation597_spill] sm:$0xff] %v14277_v45  ;;  %7888 = vperm.xlu1 %11070, %v7353_v17   ;;  %v14279_v4 = vpop.permute.xlu0 %6971  ;;  %v7346_v17 = vmul.f32 %v14131_v28, %v14239_v46 }
 0x73a   :  { %19287 = vst [vmem:[#allocation598_spill] sm:$0xff] %v14279_v4  ;;  %7855 = vperm.xlu0 %11071, %v7342_v49  }
 0x73c   :  { %v14285_v8 = vpop.permute.xlu1 %7023 }
 0x73d   :  { %19288 = vst [vmem:[#allocation599_spill] sm:$0xff] %v14285_v8  ;;  %7894 = vperm.xlu1 %11070, %v7355_v41   ;;  %v14287_v9 = vpop.permute.xlu0 %6979  ;;  %v7348_v41 = vmul.f32 %v14135_v34, %v14239_v46  ;;  %v7363_v34 = vmul.f32 %v14143_v15, %v14239_v46 }
 0x73e   :  { %7861 = vperm.xlu0 %11071, %v7344_v24  }
 0x740   :  { %v14293_v56 = vpop.permute.xlu1 %7030 }
 0x741   :  { %7900 = vperm.xlu1 %11070, %v7357_v7   ;;  %v14295_v49 = vpop.permute.xlu0 %6987  ;;  %v7350_v7 = vmul.f32 %v14141_v61, %v14239_v46  ;;  %v7365_v61 = vmul.f32 %v14147_v11, %v14239_v46 }
 0x742   :  { %19289 = vst [vmem:[#allocation600_spill] sm:$0xff] %v14295_v49  ;;  %7867 = vperm.xlu0 %11071, %v7346_v17  }
 0x744   :  { %v14301_v60 = vpop.permute.xlu1 %7038 }
 0x745   :  { %7906 = vperm.xlu1 %11070, %v7359_v39   ;;  %v14303_v24 = vpop.permute.xlu0 %6995  ;;  %v7352_v39 = vmul.f32 %v14145_v18, %v14239_v46  ;;  %v7367_v18 = vmul.f32 %v14151_v12, %v14239_v46 }
 0x746   :  { %19290 = vst [vmem:[#allocation601_spill] sm:$0xff] %v14303_v24  ;;  %7873 = vperm.xlu0 %11071, %v7348_v41  }
 0x748   :  { %v14309_v28 = vpop.permute.xlu1 %7046 }
 0x749   :  { %19291 = vst [vmem:[#allocation602_spill] sm:$0xff] %v14309_v28  ;;  %7912 = vperm.xlu1 %11070, %v7361_v25   ;;  %v14311_v17 = vpop.permute.xlu0 %7003  ;;  %v7354_v25 = vmul.f32 %v14149_v54, %v14239_v46  ;;  %v7369_v54 = vmul.f32 %v14155_v43, %v14239_v46  ;;  %v7373_v43 = vmul.f32 %v14163_v55, %v14239_v46 }
 0x74a   :  { %19292 = vst [vmem:[#allocation603_spill] sm:$0xff] %v14311_v17  ;;  %7879 = vperm.xlu0 %11071, %v7350_v7   ;;  %v7377_v55 = vmul.f32 %v14173_v30, %v14239_v46 }
 0x74c   :  { %v14317_v48 = vpop.permute.xlu1 %7054 }
 0x74d   :  { %19293 = vst [vmem:[#allocation604_spill] sm:$0xff] %v14317_v48  ;;  %7918 = vperm.xlu1 %11070, %v7363_v34   ;;  %v14319_v41 = vpop.permute.xlu0 %7011  ;;  %v7356_v34 = vmul.f32 %v14153_v57, %v14239_v46  ;;  %v7371_v57 = vmul.f32 %v14159_v42, %v14239_v46  ;;  %v7375_v42 = vmul.f32 %v14167_v58, %v14239_v46 }
 0x74e   :  { %19294 = vst [vmem:[#allocation605_spill] sm:$0xff] %v14319_v41  ;;  %7885 = vperm.xlu0 %11071, %v7352_v39  }
 0x750   :  { %v14325_v19 = vpop.permute.xlu1 %7062 }
 0x751   :  { %19295 = vst [vmem:[#allocation606_spill] sm:$0xff] %v14325_v19  ;;  %7924 = vperm.xlu1 %11070, %v7365_v61   ;;  %v14327_v7 = vpop.permute.xlu0 %7019  ;;  %v7358_v61 = vmul.f32 %v14157_v29, %v14239_v46 }
 0x752   :  { %19296 = vst [vmem:[#allocation607_spill] sm:$0xff] %v14327_v7  ;;  %7891 = vperm.xlu0 %11071, %v7354_v25  }
 0x754   :  { %v14333_v15 = vpop.permute.xlu1 %7070 }
 0x755   :  { %19297 = vst [vmem:[#allocation608_spill] sm:$0xff] %v14333_v15  ;;  %7930 = vperm.xlu1 %11070, %v7367_v18   ;;  %v14335_v39 = vpop.permute.xlu0 %7026  ;;  %v7360_v18 = vmul.f32 %v14161_v10, %v14239_v46 }
 0x756   :  { %7897 = vperm.xlu0 %11071, %v7356_v34  }
 0x758   :  { %v14341_v11 = vpop.permute.xlu1 %7078 }
 0x759   :  { %19298 = vst [vmem:[#allocation609_spill] sm:$0xff] %v14341_v11  ;;  %7936 = vperm.xlu1 %11070, %v7369_v54   ;;  %v14343_v25 = vpop.permute.xlu0 %7034  ;;  %v7362_v54 = vmul.f32 %v14165_v21, %v14239_v46 }
 0x75a   :  { %7903 = vperm.xlu0 %11071, %v7358_v61  }
 0x75c   :  { %v14349_v12 = vpop.permute.xlu1 %7086 }
 0x75d   :  { %19299 = vst [vmem:[#allocation610_spill] sm:$0xff] %v14349_v12  ;;  %7942 = vperm.xlu1 %11070, %v7371_v57   ;;  %v14351_v34 = vpop.permute.xlu0 %7042  ;;  %v7364_v57 = vmul.f32 %v14169_v13, %v14239_v46  ;;  %v7379_v13 = vmul.f32 %v14177_v0, %v14239_v46 }
 0x75e   :  { %7909 = vperm.xlu0 %11071, %v7360_v18  }
 0x760   :  { %v14357_v29 = vpop.permute.xlu1 %7093 }
 0x761   :  { %7948 = vperm.xlu1 %11070, %v7373_v43   ;;  %v14359_v61 = vpop.permute.xlu0 %7050  ;;  %v7366_v43 = vmul.f32 %v14175_v36, %v14239_v46  ;;  %v7381_v36 = vmul.f32 %v14181_v40, %v14239_v46 }
 0x762   :  { %19300 = vst [vmem:[#allocation611_spill] sm:$0xff] %v14359_v61  ;;  %7915 = vperm.xlu0 %11071, %v7362_v54  }
 0x764   :  { %v14365_v10 = vpop.permute.xlu1 %7101 }
 0x765   :  { %19301 = vst [vmem:[#allocation612_spill] sm:$0xff] %v14365_v10  ;;  %7954 = vperm.xlu1 %11070, %v7375_v42   ;;  %v14367_v18 = vpop.permute.xlu0 %7058  ;;  %v7368_v42 = vmul.f32 %v14179_v44, %v14239_v46  ;;  %v7383_v44 = vmul.f32 %v14185_v38, %v14239_v46 }
 0x766   :  { %19302 = vst [vmem:[#allocation613_spill] sm:$0xff] %v14367_v18  ;;  %7921 = vperm.xlu0 %11071, %v7364_v57  }
 0x768   :  { %v14373_v21 = vpop.permute.xlu1 %7109 }
 0x769   :  { %19303 = vst [vmem:[#allocation614_spill] sm:$0xff] %v14373_v21  ;;  %7960 = vperm.xlu1 %11070, %v7377_v55   ;;  %v14375_v54 = vpop.permute.xlu0 %7066  ;;  %v7370_v55 = vmul.f32 %v14183_v16, %v14239_v46  ;;  %v7385_v16 = vmul.f32 %v14189_v47, %v14239_v46  ;;  %v7389_v47 = vmul.f32 %v14197_v23, %v14239_v46 }
 0x76a   :  { %19304 = vst [vmem:[#allocation615_spill] sm:$0xff] %v14375_v54  ;;  %7927 = vperm.xlu0 %11071, %v7366_v43   ;;  %v7393_v23 = vmul.f32 %v14207_v2, %v14239_v46 }
 0x76c   :  { %v14381_v58 = vpop.permute.xlu1 %7117 }
 0x76d   :  { %19305 = vst [vmem:[#allocation616_spill] sm:$0xff] %v14381_v58  ;;  %7966 = vperm.xlu1 %11070, %v7379_v13   ;;  %v14383_v57 = vpop.permute.xlu0 %7074  ;;  %v7372_v13 = vmul.f32 %v14187_v50, %v14239_v46  ;;  %v7387_v50 = vmul.f32 %v14193_v52, %v14239_v46  ;;  %v7391_v52 = vmul.f32 %v14201_v5, %v14239_v46 }
 0x76e   :  { %19306 = vst [vmem:[#allocation617_spill] sm:$0xff] %v14383_v57  ;;  %7933 = vperm.xlu0 %11071, %v7368_v42  }
 0x770   :  { %v14389_v30 = vpop.permute.xlu1 %7125 }
 0x771   :  { %19307 = vst [vmem:[#allocation618_spill] sm:$0xff] %v14389_v30  ;;  %7972 = vperm.xlu1 %11070, %v7381_v36   ;;  %v14391_v43 = vpop.permute.xlu0 %7082  ;;  %v7374_v36 = vmul.f32 %v14191_v62, %v14239_v46 }
 0x772   :  { %19308 = vst [vmem:[#allocation619_spill] sm:$0xff] %v14391_v43  ;;  %7939 = vperm.xlu0 %11071, %v7370_v55  }
 0x774   :  { %v14397_v0 = vpop.permute.xlu1 %7133 }
 0x775   :  { %19309 = vst [vmem:[#allocation620_spill] sm:$0xff] %v14397_v0  ;;  %7978 = vperm.xlu1 %11070, %v7383_v44   ;;  %v14399_v42 = vpop.permute.xlu0 %7089  ;;  %v7376_v44 = vmul.f32 %v14195_v20, %v14239_v46 }
 0x776   :  { %19310 = vst [vmem:[#allocation621_spill] sm:$0xff] %v14399_v42  ;;  %7945 = vperm.xlu0 %11071, %v7372_v13  }
 0x778   :  { %v14405_v40 = vpop.permute.xlu1 %7141 }
 0x779   :  { %19311 = vst [vmem:[#allocation622_spill] sm:$0xff] %v14405_v40  ;;  %7984 = vperm.xlu1 %11070, %v7385_v16   ;;  %v14407_v55 = vpop.permute.xlu0 %7097  ;;  %v7378_v16 = vmul.f32 %v14199_v1, %v14239_v46 }
 0x77a   :  { %7951 = vperm.xlu0 %11071, %v7374_v36  }
 0x77c   :  { %v14413_v38 = vpop.permute.xlu1 %7149 }
 0x77d   :  { %19312 = vst [vmem:[#allocation623_spill] sm:$0xff] %v14413_v38  ;;  %7990 = vperm.xlu1 %11070, %v7387_v50   ;;  %v14415_v13 = vpop.permute.xlu0 %7105  ;;  %v7380_v50 = vmul.f32 %v14203_v53, %v14239_v46  ;;  %v7395_v53 = vmul.f32 %v14211_v14, %v14239_v46 }
 0x77e   :  { %19313 = vst [vmem:[#allocation624_spill] sm:$0xff] %v14415_v13  ;;  %7957 = vperm.xlu0 %11071, %v7376_v44  }
 0x780   :  { %v14421_v62 = vpop.permute.xlu1 %7156 }
 0x781   :  { %7996 = vperm.xlu1 %11070, %v7389_v47   ;;  %v14423_v36 = vpop.permute.xlu0 %7113  ;;  %v7382_v47 = vmul.f32 %v14209_v37, %v14239_v46  ;;  %v7397_v37 = vmul.f32 %v14215_v26, %v14239_v46 }
 0x782   :  { %19314 = vst [vmem:[#allocation625_spill] sm:$0xff] %v14423_v36  ;;  %7963 = vperm.xlu0 %11071, %v7378_v16  }
 0x784   :  { %v14429_v20 = vpop.permute.xlu1 %7164 }
 0x785   :  { %19315 = vst [vmem:[#allocation626_spill] sm:$0xff] %v14429_v20  ;;  %8002 = vperm.xlu1 %11070, %v7391_v52   ;;  %v14431_v44 = vpop.permute.xlu0 %7121  ;;  %v7384_v52 = vmul.f32 %v14213_v22, %v14239_v46  ;;  %v7399_v22 = vmul.f32 %v14219_v27, %v14239_v46 }
 0x786   :  { %19316 = vst [vmem:[#allocation627_spill] sm:$0xff] %v14431_v44  ;;  %7969 = vperm.xlu0 %11071, %v7380_v50  }
 0x788   :  { %v14437_v1 = vpop.permute.xlu1 %7172 }
 0x789   :  { %19317 = vst [vmem:[#allocation628_spill] sm:$0xff] %v14437_v1  ;;  %8008 = vperm.xlu1 %11070, %v7393_v23   ;;  %v14439_v16 = vpop.permute.xlu0 %7129  ;;  %v7386_v23 = vmul.f32 %v14217_v31, %v14239_v46  ;;  %v19325_v31 = vld [vmem:[#allocation581_spill] sm:$0xff] }
 0x78a   :  { %19318 = vst [vmem:[#allocation629_spill] sm:$0xff] %v14439_v16  ;;  %7975 = vperm.xlu0 %11071, %v7382_v47   ;;  %v7401_v26 = vmul.f32 %v19325_v31, %v14239_v46  ;;  %v19332_v31 = vld [vmem:[#allocation585_spill] sm:$0xff] }
 0x78c   :  { %v14445_v5 = vpop.permute.xlu1 %7180 }
 0x78d   :  { %19319 = vst [vmem:[#allocation630_spill] sm:$0xff] %v14445_v5  ;;  %8014 = vperm.xlu1 %11070, %v7395_v53   ;;  %v14447_v50 = vpop.permute.xlu0 %7137  ;;  %v7388_v53 = vmul.f32 %v14221_v6, %v14239_v46  ;;  %v19328_v6 = vld [vmem:[#allocation583_spill] sm:$0xff] }
 0x78e   :  { %19320 = vst [vmem:[#allocation631_spill] sm:$0xff] %v14447_v50  ;;  %7981 = vperm.xlu0 %11071, %v7384_v52   ;;  %v7403_v27 = vmul.f32 %v19328_v6, %v14239_v46  ;;  %v19336_v6 = vld [vmem:[#allocation587_spill] sm:$0xff] }
 0x790   :  { %v14453_v2 = vpop.permute.xlu1 %7188 }
 0x791   :  { %19321 = vst [vmem:[#allocation632_spill] sm:$0xff] %v14453_v2  ;;  %8020 = vperm.xlu1 %11070, %v7397_v37   ;;  %v14455_v47 = vpop.permute.xlu0 %7145  ;;  %v7390_v37 = vmul.f32 %v14225_v3, %v14239_v46  ;;  %v7405_v3 = vmul.f32 %v19332_v31, %v14239_v46  ;;  %v7409_v31 = vmul.f32 %v14245_v51, %v14239_v46 }
 0x792   :  { %19322 = vst [vmem:[#allocation633_spill] sm:$0xff] %v14455_v47  ;;  %7987 = vperm.xlu0 %11071, %v7386_v23   ;;  %v7413_v51 = vmul.f32 %v14257_v32, %v14239_v46 }
 0x794   :  { %v14461_v14 = vpop.permute.xlu1 %7196 }
 0x795   :  { %19323 = vst [vmem:[#allocation634_spill] sm:$0xff] %v14461_v14  ;;  %8026 = vperm.xlu1 %11070, %v7399_v22   ;;  %v14463_v52 = vpop.permute.xlu0 %7152  ;;  %v19329_v22 = vld [vmem:[#allocation584_spill] sm:$0xff] }
 0x796   :  { %19324 = vst [vmem:[#allocation635_spill] sm:$0xff] %v14463_v52  ;;  %7993 = vperm.xlu0 %11071, %v7388_v53   ;;  %v7392_v14 = vmul.f32 %v19329_v22, %v14239_v46  ;;  %v7407_v22 = vmul.f32 %v19336_v6, %v14239_v46  ;;  %v7411_v6 = vmul.f32 %v14251_v59, %v14239_v46  ;;  %v19348_v59 = vld [vmem:[#allocation594_spill] sm:$0xff] }
 0x798   :  { %v14469_v47 = vpop.permute.xlu1 %7204 }
 0x799   :  { %19326 = vst [vmem:[#allocation636_spill] sm:$0xff] %v14469_v47  ;;  %8032 = vperm.xlu1 %11070, %v7401_v26   ;;  %v14471_v23 = vpop.permute.xlu0 %7160  ;;  %v19333_v26 = vld [vmem:[#allocation586_spill] sm:$0xff] }
 0x79a   :  { %19327 = vst [vmem:[#allocation637_spill] sm:$0xff] %v14471_v23  ;;  %7999 = vperm.xlu0 %11071, %v7390_v37   ;;  %v7394_v47 = vmul.f32 %v19333_v26, %v14239_v46 }
 0x79c   :  { %v14477_v52 = vpop.permute.xlu1 %7212 }
 0x79d   :  { %19330 = vst [vmem:[#allocation638_spill] sm:$0xff] %v14477_v52  ;;  %8038 = vperm.xlu1 %11070, %v7403_v27   ;;  %v14479_v53 = vpop.permute.xlu0 %7168  ;;  %v19337_v27 = vld [vmem:[#allocation588_spill] sm:$0xff] }
 0x79e   :  { %19331 = vst [vmem:[#allocation639_spill] sm:$0xff] %v14479_v53  ;;  %8005 = vperm.xlu0 %11071, %v7392_v14   ;;  %v7396_v52 = vmul.f32 %v19337_v27, %v14239_v46 }
 0x7a0   :  { %v14485_v23 = vpop.permute.xlu1 %7858 }
 0x7a1   :  { %19334 = vst [vmem:[#allocation640_spill] sm:$0xff] %v14485_v23  ;;  %8044 = vperm.xlu1 %11070, %v7405_v3   ;;  %v14487_v37 = vpop.permute.xlu0 %7176  ;;  %v19340_v3 = vld [vmem:[#allocation590_spill] sm:$0xff] }
 0x7a2   :  { %19335 = vst [vmem:[#allocation641_spill] sm:$0xff] %v14487_v37  ;;  %8011 = vperm.xlu0 %11071, %v7394_v47   ;;  %v7398_v23 = vmul.f32 %v19340_v3, %v14239_v46 }
 0x7a4   :  { %v14493_v53 = vpop.permute.xlu1 %7864 }
 0x7a5   :  { %19338 = vst [vmem:[#allocation642_spill] sm:$0xff] %v14493_v53  ;;  %8050 = vperm.xlu1 %11070, %v7407_v22   ;;  %v14495_v14 = vpop.permute.xlu0 %7184  ;;  %v19343_v22 = vld [vmem:[#allocation592_spill] sm:$0xff] }
 0x7a6   :  { %19339 = vst [vmem:[#allocation643_spill] sm:$0xff] %v14495_v14  ;;  %8017 = vperm.xlu0 %11071, %v7396_v52   ;;  %v7400_v53 = vmul.f32 %v19343_v22, %v14239_v46  ;;  %v7415_v22 = vmul.f32 %v19348_v59, %v14239_v46  ;;  %v7419_v59 = vmul.f32 %v14277_v45, %v14239_v46 }
 0x7a7   :  { %v7423_v45 = vmul.f32 %v14293_v56, %v14239_v46 }
 0x7a8   :  { %v14501_v26 = vpop.permute.xlu1 %7870 }
 0x7a9   :  { %19341 = vst [vmem:[#allocation590_spill] sm:$0xff] %v14501_v26  ;;  %8056 = vperm.xlu1 %11070, %v7409_v31   ;;  %v14503_v47 = vpop.permute.xlu0 %7192  ;;  %v7402_v31 = vmul.f32 %v14259_v35, %v14239_v46 }
 0x7aa   :  { %19342 = vst [vmem:[#allocation644_spill] sm:$0xff] %v14503_v47  ;;  %8023 = vperm.xlu0 %11071, %v7398_v23  }
 0x7ac   :  { %v14509_v27 = vpop.permute.xlu1 %7876 }
 0x7ad   :  { %19344 = vst [vmem:[#allocation645_spill] sm:$0xff] %v14509_v27  ;;  %8062 = vperm.xlu1 %11070, %v7411_v6   ;;  %v14511_v52 = vpop.permute.xlu0 %7200  ;;  %v7404_v6 = vmul.f32 %v14265_v63, %v14239_v46  ;;  %v7417_v27 = vmul.f32 %v14269_v33, %v14239_v46  ;;  %v7421_v33 = vmul.f32 %v14285_v8, %v14239_v46 }
 0x7ae   :  { %19345 = vst [vmem:[#allocation646_spill] sm:$0xff] %v14511_v52  ;;  %8029 = vperm.xlu0 %11071, %v7400_v53  }
 0x7b0   :  { %v14517_v26 = vpop.permute.xlu1 %7882 }
 0x7b1   :  { %19346 = vst [vmem:[#allocation647_spill] sm:$0xff] %v14517_v26  ;;  %8068 = vperm.xlu1 %11070, %v7413_v51   ;;  %v14519_v23 = vpop.permute.xlu0 %7208  ;;  %v19351_v51 = vld [vmem:[#allocation596_spill] sm:$0xff] }
 0x7b2   :  { %19347 = vst [vmem:[#allocation648_spill] sm:$0xff] %v14519_v23  ;;  %8035 = vperm.xlu0 %11071, %v7402_v31   ;;  %v7406_v26 = vmul.f32 %v19351_v51, %v14239_v46 }
 0x7b4   :  { %v14525_v52 = vpop.permute.xlu1 %7888 }
 0x7b5   :  { %19349 = vst [vmem:[#allocation649_spill] sm:$0xff] %v14525_v52  ;;  %8074 = vperm.xlu1 %11070, %v7415_v22   ;;  %v14527_v53 = vpop.permute.xlu0 %7855  ;;  %v7408_v22 = vmul.f32 %v14279_v4, %v14239_v46 }
 0x7b6   :  { %19350 = vst [vmem:[#allocation650_spill] sm:$0xff] %v14527_v53  ;;  %8041 = vperm.xlu0 %11071, %v7404_v6  }
 0x7b8   :  { %v14533_v23 = vpop.permute.xlu1 %7894 }
 0x7b9   :  { %19352 = vst [vmem:[#allocation596_spill] sm:$0xff] %v14533_v23  ;;  %8080 = vperm.xlu1 %11070, %v7417_v27   ;;  %v14535_v31 = vpop.permute.xlu0 %7861  ;;  %v7410_v27 = vmul.f32 %v14287_v9, %v14239_v46 }
 0x7ba   :  { %19353 = vst [vmem:[#allocation651_spill] sm:$0xff] %v14535_v31  ;;  %8047 = vperm.xlu0 %11071, %v7406_v26   ;;  %v19395_v31 = vld [vmem:[#allocation97_spill] sm:$0xff] }
 0x7bc   :  { %v14541_v52 = vpop.permute.xlu1 %7900 }
 0x7bd   :  { %19354 = vst [vmem:[#allocation652_spill] sm:$0xff] %v14541_v52  ;;  %8086 = vperm.xlu1 %11070, %v7419_v59   ;;  %v14543_v6 = vpop.permute.xlu0 %7867  ;;  %v7412_v59 = vmul.f32 %v14295_v49, %v14239_v46 }
 0x7be   :  { %19355 = vst [vmem:[#allocation653_spill] sm:$0xff] %v14543_v6  ;;  %8053 = vperm.xlu0 %11071, %v7408_v22   ;;  %v7425_v6 = vmul.f32 %v14301_v60, %v14239_v46 }
 0x7c0   :  { %v14549_v23 = vpop.permute.xlu1 %7906 }
 0x7c1   :  { %19356 = vst [vmem:[#allocation654_spill] sm:$0xff] %v14549_v23  ;;  %8092 = vperm.xlu1 %11070, %v7421_v33   ;;  %v14551_v26 = vpop.permute.xlu0 %7873  ;;  %v7414_v33 = vmul.f32 %v14303_v24, %v14239_v46  ;;  %v7427_v23 = vmul.f32 %v14309_v28, %v14239_v46 }
 0x7c2   :  { %19357 = vst [vmem:[#allocation655_spill] sm:$0xff] %v14551_v26  ;;  %8059 = vperm.xlu0 %11071, %v7410_v27  }
 0x7c4   :  { %v14557_v52 = vpop.permute.xlu1 %7912 }
 0x7c5   :  { %19358 = vst [vmem:[#allocation656_spill] sm:$0xff] %v14557_v52  ;;  %8098 = vperm.xlu1 %11070, %v7423_v45   ;;  %v14559_v22 = vpop.permute.xlu0 %7879  ;;  %v7416_v45 = vmul.f32 %v14311_v17, %v14239_v46  ;;  %v7429_v52 = vmul.f32 %v14317_v48, %v14239_v46 }
 0x7c6   :  { %19359 = vst [vmem:[#allocation657_spill] sm:$0xff] %v14559_v22  ;;  %8065 = vperm.xlu0 %11071, %v7412_v59  }
 0x7c8   :  { %v14565_v26 = vpop.permute.xlu1 %7918 }
 0x7c9   :  { %19360 = vst [vmem:[#allocation658_spill] sm:$0xff] %v14565_v26  ;;  %8104 = vperm.xlu1 %11070, %v7425_v6   ;;  %v14567_v27 = vpop.permute.xlu0 %7885  ;;  %v7418_v6 = vmul.f32 %v14319_v41, %v14239_v46  ;;  %v7431_v26 = vmul.f32 %v14325_v19, %v14239_v46  ;;  %v7447_v41 = vmul.f32 %v14389_v30, %v14239_v46 }
 0x7ca   :  { %19361 = vst [vmem:[#allocation659_spill] sm:$0xff] %v14567_v27  ;;  %8071 = vperm.xlu0 %11071, %v7414_v33  }
 0x7cc   :  { %v14573_v22 = vpop.permute.xlu1 %7924 }
 0x7cd   :  { %19362 = vst [vmem:[#allocation660_spill] sm:$0xff] %v14573_v22  ;;  %8110 = vperm.xlu1 %11070, %v7427_v23   ;;  %v14575_v59 = vpop.permute.xlu0 %7891  ;;  %v7420_v23 = vmul.f32 %v14327_v7, %v14239_v46  ;;  %v7433_v22 = vmul.f32 %v14333_v15, %v14239_v46  ;;  %v7437_v15 = vmul.f32 %v14349_v12, %v14239_v46 }
 0x7ce   :  { %19363 = vst [vmem:[#allocation661_spill] sm:$0xff] %v14575_v59  ;;  %8077 = vperm.xlu0 %11071, %v7416_v45  }
 0x7d0   :  { %v14581_v27 = vpop.permute.xlu1 %7930 }
 0x7d1   :  { %19364 = vst [vmem:[#allocation662_spill] sm:$0xff] %v14581_v27  ;;  %8116 = vperm.xlu1 %11070, %v7429_v52   ;;  %v14583_v33 = vpop.permute.xlu0 %7897  ;;  %v7422_v52 = vmul.f32 %v14335_v39, %v14239_v46  ;;  %v7435_v27 = vmul.f32 %v14341_v11, %v14239_v46 }
 0x7d2   :  { %19365 = vst [vmem:[#allocation663_spill] sm:$0xff] %v14583_v33  ;;  %8083 = vperm.xlu0 %11071, %v7418_v6  }
 0x7d4   :  { %v14589_v59 = vpop.permute.xlu1 %7936 }
 0x7d5   :  { %19366 = vst [vmem:[#allocation664_spill] sm:$0xff] %v14589_v59  ;;  %8122 = vperm.xlu1 %11070, %v7431_v26   ;;  %v14591_v45 = vpop.permute.xlu0 %7903  ;;  %v7424_v26 = vmul.f32 %v14343_v25, %v14239_v46 }
 0x7d6   :  { %19367 = vst [vmem:[#allocation665_spill] sm:$0xff] %v14591_v45  ;;  %8089 = vperm.xlu0 %11071, %v7420_v23  }
 0x7d8   :  { %v14597_v33 = vpop.permute.xlu1 %7942 }
 0x7d9   :  { %19368 = vst [vmem:[#allocation666_spill] sm:$0xff] %v14597_v33  ;;  %8128 = vperm.xlu1 %11070, %v7433_v22   ;;  %v14599_v6 = vpop.permute.xlu0 %7909  ;;  %v7426_v22 = vmul.f32 %v14351_v34, %v14239_v46 }
 0x7da   :  { %19369 = vst [vmem:[#allocation667_spill] sm:$0xff] %v14599_v6  ;;  %8095 = vperm.xlu0 %11071, %v7422_v52   ;;  %v7439_v6 = vmul.f32 %v14357_v29, %v14239_v46 }
 0x7dc   :  { %v14605_v59 = vpop.permute.xlu1 %7948 }
 0x7dd   :  { %19370 = vst [vmem:[#allocation668_spill] sm:$0xff] %v14605_v59  ;;  %8134 = vperm.xlu1 %11070, %v7435_v27   ;;  %v14607_v23 = vpop.permute.xlu0 %7915  ;;  %v7428_v27 = vmul.f32 %v14359_v61, %v14239_v46  ;;  %v19398_v61 = vld [vmem:[#allocation116_spill] sm:$0xff] }
 0x7de   :  { %19371 = vst [vmem:[#allocation669_spill] sm:$0xff] %v14607_v23  ;;  %8101 = vperm.xlu0 %11071, %v7424_v26   ;;  %v19375_v26 = vlaneseq }
 0x7e0   :  { %v14613_v33 = vpop.permute.xlu1 %7954  ;;  %v14624_v23 = vand.u32 127, %v19375_v26  ;;  %v19379_v26 = vld [vmem:[#allocation5_spill] sm:$0xff] }
 0x7e1   :  { %19372 = vst [vmem:[#allocation670_spill] sm:$0xff] %v14613_v33  ;;  %8140 = vperm.xlu1 %11070, %v7437_v15   ;;  %v14615_v52 = vpop.permute.xlu0 %7921  ;;  %v7430_v33 = vmul.f32 %v14367_v18, %v14239_v46  ;;  %v7445_v18 = vmul.f32 %v14381_v58, %v14239_v46 }
 0x7e2   :  { %19373 = vst [vmem:[#allocation671_spill] sm:$0xff] %v14615_v52  ;;  %8107 = vperm.xlu0 %11071, %v7426_v22   ;;  %v2109_v15 = vadd.s32 4294967288, %v14624_v23  ;;  %v7441_v22 = vmul.f32 %v14365_v10, %v14239_v46  ;;  %v2158_v30 = vadd.s32 4294967232, %v14624_v23 }
 0x7e4   :  { %v14621_v59 = vpop.permute.xlu1 %7960 }
 0x7e5   :  { %19374 = vst [vmem:[#allocation672_spill] sm:$0xff] %v14621_v59  ;;  %8146 = vperm.xlu1 %11070, %v7439_v6   ;;  %v14626_v12 = vpop.permute.xlu0 %7927  ;;  %v14638_v59 = vsub.s32 %v2109_v15, %v19379_v26  ;;  %v7443_v6 = vmul.f32 %v14373_v21, %v14239_v46  ;;  %v19382_v15 = vld [vmem:[#allocation102_spill] sm:$0xff] }
 0x7e6   :  { %19376 = vst [vmem:[#allocation673_spill] sm:$0xff] %v14626_v12  ;;  %8113 = vperm.xlu0 %11071, %v7428_v27   ;;  %v2116_v27 = vadd.s32 4294967280, %v14624_v23  ;;  %v7432_v12 = vmul.f32 %v14375_v54, %v14239_v46 }
 0x7e8   :  { %v14633_v52 = vpop.permute.xlu1 %7966  ;;  %v14659_v54 = vsub.s32 %v2116_v27, %v19379_v26 }
 0x7e9   :  { %19377 = vst [vmem:[#allocation674_spill] sm:$0xff] %v14633_v52  ;;  %8152 = vperm.xlu1 %11070, %v7441_v22   ;;  %v14635_v11 = vpop.permute.xlu0 %7933  ;;  %v14649_v52 = vsub.s32 %v14624_v23, %v19379_v26 }
 0x7ea   :  { %19378 = vst [vmem:[#allocation675_spill] sm:$0xff] %v14635_v11  ;;  %8119 = vperm.xlu0 %11071, %v7430_v33   ;;  %v2123_v33 = vadd.s32 4294967272, %v14624_v23  ;;  %v2113_v11 = vrot.slane %v19382_v15, %v14638_v59 }
 0x7eb   :  { %v2217_v24 = vrot.slane %v19398_v61, %v14649_v52 }
 0x7ec   :  { %v14645_v45 = vpop.permute.xlu1 %7972  ;;  %v14671_v15 = vsub.s32 %v2123_v33, %v19379_v26  ;;  %v2137_v33 = vadd.s32 4294967256, %v14624_v23 }
 0x7ed   :  { %19380 = vst [vmem:[#allocation5_spill] sm:$0xff] %v14645_v45  ;;  %8158 = vperm.xlu1 %11070, %v7443_v6   ;;  %v14651_v22 = vpop.permute.xlu0 %7939  ;;  %v2130_v45 = vadd.s32 4294967264, %v14624_v23  ;;  %v7434_v6 = vmul.f32 %v14383_v57, %v14239_v46 }
 0x7ee   :  { %19381 = vst [vmem:[#allocation676_spill] sm:$0xff] %v14651_v22  ;;  %8125 = vperm.xlu0 %11071, %v7432_v12   ;;  %v19384_v12 = vld [vmem:[#allocation94_spill] sm:$0xff] }
 0x7ef   :  { %v2108_v22 = vrot.slane %v19384_v12, %v14649_v52  ;;  %v14677_v57 = vsub.s32 %v2130_v45, %v19379_v26  ;;  %v19386_v12 = vld [vmem:[#allocation95_spill] sm:$0xff]  ;;  %v2151_v45 = vadd.s32 4294967240, %v14624_v23 }
 0x7f0   :  { %v14664_v7 = vpop.permute.xlu1 %7978 }
 0x7f1   :  { %19383 = vst [vmem:[#allocation102_spill] sm:$0xff] %v14664_v7  ;;  %8164 = vperm.xlu1 %11070, %v7445_v18   ;;  %v14668_v19 = vpop.permute.xlu0 %7945  ;;  %v2115_v27 = vsel %vm2114_vm1, %v2113_v11, %v2108_v22  ;;  %v2144_v7 = vadd.s32 4294967248, %v14624_v23  ;;  %v2120_v18 = vrot.slane %v19386_v12, %v14659_v54  ;;  %v19389_v12 = vld [vmem:[#allocation96_spill] sm:$0xff] }
 0x7f2   :  { %19385 = vst [vmem:[#allocation94_spill] sm:$0xff] %v14668_v19  ;;  %8131 = vperm.xlu0 %11071, %v7434_v6   ;;  %v7436_v6 = vmul.f32 %v14391_v43, %v14239_v46  ;;  %v2127_v17 = vrot.slane %v19389_v12, %v14671_v15  ;;  %v7449_v43 = vmul.f32 %v14397_v0, %v14239_v46 }
 0x7f3   :  { %v2122_v22 = vsel %vm2121_vm2, %v2120_v18, %v2115_v27  ;;  %v7438_v27 = vmul.f32 %v14399_v42, %v14239_v46  ;;  %v14713_v0 = vsub.s32 %v2151_v45, %v19379_v26  ;;  %v2179_v45 = vadd.s32 4294967208, %v14624_v23 }
 0x7f4   :  { %v14684_v19 = vpop.permute.xlu1 %7984  ;;  %v2129_v8 = vsel %vm2128_vm3, %v2127_v17, %v2122_v22 }
 0x7f5   :  { %19387 = vst [vmem:[#allocation95_spill] sm:$0xff] %v14684_v19  ;;  %8170 = vperm.xlu1 %11070, %v7447_v41   ;;  %v14687_v11 = vpop.permute.xlu0 %7951  ;;  %v14697_v19 = vsub.s32 %v2144_v7, %v19379_v26  ;;  %v19390_v41 = vld [vmem:[#allocation104_spill] sm:$0xff]  ;;  %v2165_v7 = vadd.s32 4294967224, %v14624_v23 }
 0x7f6   :  { %19388 = vst [vmem:[#allocation677_spill] sm:$0xff] %v14687_v11  ;;  %8137 = vperm.xlu0 %11071, %v7436_v6   ;;  %v2134_v11 = vrot.slane %v19390_v41, %v14677_v57  ;;  %v14706_v6 = vsub.s32 %v2137_v33, %v19379_v26  ;;  %v14716_v41 = vsub.s32 %v2158_v30, %v19379_v26  ;;  %v2186_v30 = vadd.s32 4294967200, %v14624_v23 }
 0x7f7   :  { %v7451_v33 = vmul.f32 %v14405_v40, %v14239_v46 }
 0x7f8   :  { %v14703_v18 = vpop.permute.xlu1 %7990  ;;  %v2136_v17 = vsel %vm2135_vm4, %v2134_v11, %v2129_v8  ;;  %v2141_v58 = vrot.slane %v19395_v31, %v14706_v6  ;;  %v14735_v8 = vsub.s32 %v2165_v7, %v19379_v26  ;;  %v2193_v11 = vadd.s32 4294967192, %v14624_v23  ;;  %v19397_v7 = vld [vmem:[#allocation108_spill] sm:$0xff] }
 0x7f9   :  { %19391 = vst [vmem:[#allocation96_spill] sm:$0xff] %v14703_v18  ;;  %8176 = vperm.xlu1 %11070, %v7449_v43   ;;  %v14709_v12 = vpop.permute.xlu0 %7957  ;;  %v2172_v18 = vadd.s32 4294967216, %v14624_v23  ;;  %v19393_v43 = vld [vmem:[#allocation106_spill] sm:$0xff]  ;;  %v7453_v31 = vmul.f32 %v14413_v38, %v14239_v46  ;;  %v14765_v61 = vsub.s32 %v2186_v30, %v19379_v26  ;;  %v7455_v30 = vmul.f32 %v14421_v62, %v14239_v46 }
 0x7fa   :  { %19392 = vst [vmem:[#allocation104_spill] sm:$0xff] %v14709_v12  ;;  %8143 = vperm.xlu0 %11071, %v7438_v27   ;;  %v2148_v22 = vrot.slane %v19393_v43, %v14697_v19  ;;  %v7440_v27 = vmul.f32 %v14407_v55, %v14239_v46  ;;  %v2200_v43 = vadd.s32 4294967184, %v14624_v23  ;;  %v2143_v48 = vsel %vm2142_vm5, %v2141_v58, %v2136_v17  ;;  %v19400_v58 = vld [vmem:[#allocation98_spill] sm:$0xff] }
 0x7fb   :  { %v14741_v53 = vsub.s32 %v2172_v18, %v19379_v26  ;;  %v14756_v18 = vsub.s32 %v2179_v45, %v19379_v26  ;;  %v2155_v17 = vrot.slane %v19400_v58, %v14713_v0  ;;  %v14768_v38 = vsub.s32 %v2193_v11, %v19379_v26  ;;  %v19403_v45 = vld [vmem:[#allocation105_spill] sm:$0xff]  ;;  %v19404_v11 = vld [vmem:[#allocation110_spill] sm:$0xff] }
 0x7fc   :  { %v14726_v12 = vpop.permute.xlu1 %7996  ;;  %v2221_v21 = vrot.slane %v19403_v45, %v14638_v59  ;;  %v7444_v45 = vmul.f32 %v14423_v36, %v14239_v46 }
 0x7fd   :  { %19394 = vst [vmem:[#allocation106_spill] sm:$0xff] %v14726_v12  ;;  %8182 = vperm.xlu1 %11070, %v7451_v33   ;;  %v14732_v40 = vpop.permute.xlu0 %7963  ;;  %v2207_v12 = vadd.s32 4294967176, %v14624_v23  ;;  %v2150_v33 = vsel %vm2149_vm6, %v2148_v22, %v2143_v48  ;;  %v7442_v23 = vmul.f32 %v14415_v13, %v14239_v46  ;;  %v19401_v48 = vld [vmem:[#allocation118_spill] sm:$0xff] }
 0x7fe   :  { %19396 = vst [vmem:[#allocation97_spill] sm:$0xff] %v14732_v40  ;;  %8149 = vperm.xlu0 %11071, %v7440_v27   ;;  %v2162_v40 = vrot.slane %v19397_v7, %v14716_v41  ;;  %v2226_v22 = vrot.slane %v19401_v48, %v14659_v54 }
 0x7ff   :  { %v14776_v58 = vsub.s32 %v2207_v12, %v19379_v26 }
 0x800   :  { %v14753_v27 = vpop.permute.xlu1 %8002 }
 0x801   :  { %19399 = vst [vmem:[#allocation108_spill] sm:$0xff] %v14753_v27  ;;  %8188 = vperm.xlu1 %11070, %v7453_v31   ;;  %v14762_v7 = vpop.permute.xlu0 %7969  ;;  %v14771_v27 = vsub.s32 %v2200_v43, %v19379_v26  ;;  %v2157_v31 = vsel %vm2156_vm7, %v2155_v17, %v2150_v33  ;;  %v2222_v43 = vsel %vm2114_vm1, %v2221_v21, %v2217_v24  ;;  %v19406_v26 = vld [vmem:[#allocation99_spill] sm:$0xff] }
 0x802   :  { %19402 = vst [vmem:[#allocation116_spill] sm:$0xff] %v14762_v7  ;;  %8155 = vperm.xlu0 %11071, %v7442_v23   ;;  %v2164_v48 = vsel %vm2163_vm8, %v2162_v40, %v2157_v31  ;;  %v2176_v7 = vrot.slane %v19404_v11, %v14741_v53  ;;  %v2169_v12 = vrot.slane %v19406_v26, %v14735_v8  ;;  %v19407_v17 = vld [vmem:[#allocation119_spill] sm:$0xff]  ;;  %v19409_v31 = vld [vmem:[#allocation8_spill] sm:$0xff] }
 0x803   :  { %v2227_v33 = vsel %vm2121_vm2, %v2226_v22, %v2222_v43  ;;  %v2236_v28 = vrot.slane %v19407_v17, %v14677_v57  ;;  %v19410_v11 = vld [vmem:[#allocation28_spill] sm:$0xff]  ;;  %v19412_v24 = vld [vmem:[#allocation107_spill] sm:$0xff]  ;;  %v7457_v22 = vmul.f32 %v14429_v20, %v14239_v46 }
 0x804   :  { %v14787_v23 = vpop.permute.xlu1 %8008  ;;  %v14798_v21 = vrot.slane %v19410_v11, %v19409_v31  ;;  %v2231_v36 = vrot.slane %v19412_v24, %v14671_v15  ;;  %v2171_v26 = vsel %vm2170_vm9, %v2169_v12, %v2164_v48  ;;  %v19413_v43 = vld [vmem:[#allocation112_spill] sm:$0xff]  ;;  %v7446_v24 = vmul.f32 %v14431_v44, %v14239_v46  ;;  %v19420_v44 = vld [vmem:[#allocation109_spill] sm:$0xff] }
 0x805   :  { %19405 = vst [vmem:[#allocation98_spill] sm:$0xff] %v14787_v23  ;;  %8194 = vperm.xlu1 %11070, %v7455_v30   ;;  %v14794_v40 = vpop.permute.xlu0 %7975  ;;  %v2178_v30 = vsel %vm2177_vm10, %v2176_v7, %v2171_v26  ;;  %v2190_v17 = vrot.slane %v19413_v43, %v14765_v61  ;;  %v19416_v23 = vld [vmem:[#allocation121_spill] sm:$0xff]  ;;  %v19417_v7 = vld [vmem:[#allocation131_spill] sm:$0xff] }
 0x806   :  { %19408 = vst [vmem:[#allocation118_spill] sm:$0xff] %v14794_v40  ;;  %19411 = vst [vmem:[#allocation105_spill] sm:$0xff] %v14798_v21  ;;  %8161 = vperm.xlu0 %11071, %v7444_v45   ;;  %v2232_v11 = vsel %vm2128_vm3, %v2231_v36, %v2227_v33  ;;  %v19415_v45 = vld [vmem:[#allocation100_spill] sm:$0xff]  ;;  %v2246_v20 = vrot.slane %v19416_v23, %v14697_v19  ;;  %v2296_v26 = vrot.slane %v19417_v7, %v14649_v52  ;;  %v19419_v36 = vld [vmem:[#allocation101_spill] sm:$0xff] }
 0x807   :  { %v2183_v48 = vrot.slane %v19415_v45, %v14756_v18  ;;  %v2237_v12 = vsel %vm2135_vm4, %v2236_v28, %v2232_v11  ;;  %v2197_v33 = vrot.slane %v19419_v36, %v14768_v38  ;;  %v19421_v45 = vld [vmem:[#allocation133_spill] sm:$0xff]  ;;  %v19422_v28 = vld [vmem:[#allocation103_spill] sm:$0xff] }
 0x808   :  { %v14811_v40 = vpop.permute.xlu1 %8014  ;;  %v2305_v32 = vrot.slane %v19421_v45, %v14659_v54  ;;  %v2211_v23 = vrot.slane %v19422_v28, %v14776_v58 }
 0x809   :  { %19414 = vst [vmem:[#allocation110_spill] sm:$0xff] %v14811_v40  ;;  %8200 = vperm.xlu1 %11070, %v7457_v22   ;;  %v14820_v43 = vpop.permute.xlu0 %7981  ;;  %v2241_v40 = vrot.slane %v19420_v44, %v14706_v6  ;;  %v2185_v11 = vsel %vm2184_vm11, %v2183_v48, %v2178_v30  ;;  %v19423_v22 = vld [vmem:[#allocation120_spill] sm:$0xff]  ;;  %v19424_v44 = vld [vmem:[#allocation114_spill] sm:$0xff]  ;;  %v19426_v48 = vld [vmem:[#allocation123_spill] sm:$0xff] }
 0x80a   :  { %19418 = vst [vmem:[#allocation99_spill] sm:$0xff] %v14820_v43  ;;  %8167 = vperm.xlu0 %11071, %v7446_v24   ;;  %v2300_v7 = vrot.slane %v19423_v22, %v14638_v59  ;;  %v7459_v43 = vmul.f32 %v14437_v1, %v14239_v46  ;;  %v2192_v36 = vsel %vm2191_vm12, %v2190_v17, %v2185_v11  ;;  %v19427_v1 = vld [vmem:[#allocation147_spill] sm:$0xff] }
 0x80b   :  { %v2204_v13 = vrot.slane %v19424_v44, %v14771_v27  ;;  %v2242_v42 = vsel %vm2142_vm5, %v2241_v40, %v2237_v12  ;;  %v7448_v24 = vmul.f32 %v14439_v16, %v14239_v46  ;;  %v2256_v28 = vrot.slane %v19426_v48, %v14716_v41  ;;  %v19429_v40 = vld [vmem:[#allocation111_spill] sm:$0xff] }
 0x80c   :  { %v14841_v45 = vpop.permute.xlu1 %8020  ;;  %v2247_v30 = vsel %vm2149_vm6, %v2246_v20, %v2242_v42  ;;  %v2301_v22 = vsel %vm2114_vm1, %v2300_v7, %v2296_v26  ;;  %v2375_v17 = vrot.slane %v19427_v1, %v14649_v52  ;;  %v2251_v12 = vrot.slane %v19429_v40, %v14713_v0  ;;  %v19431_v20 = vld [vmem:[#allocation149_spill] sm:$0xff]  ;;  %v19432_v7 = vld [vmem:[#allocation122_spill] sm:$0xff] }
 0x80d   :  { %19425 = vst [vmem:[#allocation119_spill] sm:$0xff] %v14841_v45  ;;  %8206 = vperm.xlu1 %11070, %v7459_v43   ;;  %v14849_v11 = vpop.permute.xlu0 %7987  ;;  %v2306_v44 = vsel %vm2121_vm2, %v2305_v32, %v2301_v22  ;;  %v19430_v45 = vld [vmem:[#allocation135_spill] sm:$0xff]  ;;  %v2384_v42 = vrot.slane %v19431_v20, %v14659_v54  ;;  %v2199_v26 = vsel %vm2198_vm13, %v2197_v33, %v2192_v36  ;;  %v19433_v43 = vld [vmem:[#allocation136_spill] sm:$0xff]  ;;  %v19434_v32 = vld [vmem:[#allocation113_spill] sm:$0xff] }
 0x80e   :  { %19428 = vst [vmem:[#allocation8_spill] sm:$0xff] %v14849_v11  ;;  %v2315_v16 = vrot.slane %v19430_v45, %v14677_v57  ;;  %8173 = vperm.xlu0 %11071, %v7448_v24   ;;  %v2310_v1 = vrot.slane %v19432_v7, %v14671_v15  ;;  %v2379_v48 = vrot.slane %v19433_v43, %v14638_v59  ;;  %v19436_v20 = vld [vmem:[#allocation125_spill] sm:$0xff] }
 0x80f   :  { %v7461_v40 = vmul.f32 %v14445_v5, %v14239_v46  ;;  %v2261_v22 = vrot.slane %v19434_v32, %v14735_v8  ;;  %v2206_v45 = vsel %vm2205_vm14, %v2204_v13, %v2199_v26  ;;  %v2252_v11 = vsel %vm2156_vm7, %v2251_v12, %v2247_v30  ;;  %v19438_v30 = vld [vmem:[#allocation137_spill] sm:$0xff] }
 0x810   :  { %v7450_v24 = vmul.f32 %v14447_v50, %v14239_v46  ;;  %v14871_v33 = vpop.permute.xlu1 %8026  ;;  %v2257_v36 = vsel %vm2163_vm8, %v2256_v28, %v2252_v11  ;;  %v2266_v7 = vrot.slane %v19436_v20, %v14741_v53  ;;  %v2311_v43 = vsel %vm2128_vm3, %v2310_v1, %v2306_v44  ;;  %v19439_v50 = vld [vmem:[#allocation151_spill] sm:$0xff]  ;;  %v19440_v44 = vld [vmem:[#allocation124_spill] sm:$0xff]  ;;  %v19441_v1 = vld [vmem:[#allocation138_spill] sm:$0xff] }
 0x811   :  { %19435 = vst [vmem:[#allocation28_spill] sm:$0xff] %v14871_v33  ;;  %v2380_v5 = vsel %vm2114_vm1, %v2379_v48, %v2375_v17  ;;  %8212 = vperm.xlu1 %11070, %v7461_v40   ;;  %v14878_v32 = vpop.permute.xlu0 %7993  ;;  %v2316_v13 = vsel %vm2135_vm4, %v2315_v16, %v2311_v43  ;;  %v2325_v12 = vrot.slane %v19438_v30, %v14697_v19  ;;  %v19442_v40 = vld [vmem:[#allocation115_spill] sm:$0xff] }
 0x812   :  { %19437 = vst [vmem:[#allocation107_spill] sm:$0xff] %v14878_v32  ;;  %v2385_v26 = vsel %vm2121_vm2, %v2384_v42, %v2380_v5  ;;  %v2394_v28 = vrot.slane %v19439_v50, %v14677_v57  ;;  %8179 = vperm.xlu0 %11071, %v7450_v24   ;;  %v14887_v11 = vsel %vm2212_vm15, %v2211_v23, %v2206_v45  ;;  %v19443_v5 = vld [vmem:[#allocation117_spill] sm:$0xff]  ;;  %v19446_v30 = vld [vmem:[#allocation127_spill] sm:$0xff] }
 0x813   :  { %v2320_v17 = vrot.slane %v19440_v44, %v14706_v6  ;;  %v2389_v48 = vrot.slane %v19441_v1, %v14671_v15  ;;  %v7463_v16 = vmul.f32 %v14453_v2, %v14239_v46  ;;  %v2271_v20 = vrot.slane %v19442_v40, %v14756_v18  ;;  %v19444_v23 = vld [vmem:[#allocation633_spill] sm:$0xff] }
 0x814   :  { %v2281_v42 = vrot.slane %v19443_v5, %v14768_v38  ;;  %v2262_v50 = vsel %vm2170_vm9, %v2261_v22, %v2257_v36  ;;  %v7452_v45 = vmul.f32 %v19444_v23, %v14239_v46  ;;  %v14902_v24 = vpop.permute.xlu1 %8032  ;;  %v2276_v44 = vrot.slane %v19446_v30, %v14765_v61  ;;  %v19448_v22 = vld [vmem:[#allocation139_spill] sm:$0xff]  ;;  %v19458_v23 = vld [vmem:[#allocation152_spill] sm:$0xff] }
 0x815   :  { %19445 = vst [vmem:[#allocation112_spill] sm:$0xff] %v14902_v24  ;;  %v2267_v43 = vsel %vm2177_vm10, %v2266_v7, %v2262_v50  ;;  %v2321_v1 = vsel %vm2142_vm5, %v2320_v17, %v2316_v13  ;;  %v2390_v32 = vsel %vm2128_vm3, %v2389_v48, %v2385_v26  ;;  %8218 = vperm.xlu1 %11070, %v7463_v16   ;;  %v14909_v40 = vpop.permute.xlu0 %7999  ;;  %v19449_v24 = vld [vmem:[#allocation153_spill] sm:$0xff]  ;;  %v19450_v50 = vld [vmem:[#allocation126_spill] sm:$0xff]  ;;  %v19451_v13 = vld [vmem:[#allocation140_spill] sm:$0xff] }
 0x816   :  { %19447 = vst [vmem:[#allocation100_spill] sm:$0xff] %v14909_v40  ;;  %v2326_v5 = vsel %vm2149_vm6, %v2325_v12, %v2321_v1  ;;  %v2335_v36 = vrot.slane %v19448_v22, %v14716_v41  ;;  %v2395_v33 = vsel %vm2135_vm4, %v2394_v28, %v2390_v32  ;;  %v2404_v7 = vrot.slane %v19449_v24, %v14697_v19  ;;  %v19452_v17 = vld [vmem:[#allocation158_spill] sm:$0xff]  ;;  %v19454_v1 = vld [vmem:[#allocation87_spill] sm:$0xff] }
 0x817   :  { %8185 = vperm.xlu0 %11071, %v7452_v45   ;;  %v2330_v30 = vrot.slane %v19450_v50, %v14713_v0  ;;  %v2399_v26 = vrot.slane %v19451_v13, %v14706_v6  ;;  %v2454_v48 = vrot.slane %v19452_v17, %v14649_v52  ;;  %v19453_v12 = vld [vmem:[#allocation550_spill] sm:$0xff]  ;;  %v2272_v32 = vsel %vm2184_vm11, %v2271_v20, %v2267_v43  ;;  %v19456_v24 = vld [vmem:[#allocation635_spill] sm:$0xff]  ;;  %v19460_v43 = vld [vmem:[#allocation141_spill] sm:$0xff] }
 0x818   :  { %v7486_v16 = vmul.f32 %v19453_v12, %v14798_v21  ;;  %v19455_v28 = vld [vmem:[#allocation10_spill] sm:$0xff]  ;;  %v7454_v50 = vmul.f32 %v19456_v24, %v14239_v46  ;;  %v14932_v40 = vpop.permute.xlu1 %8038  ;;  %v2277_v13 = vsel %vm2191_vm12, %v2276_v44, %v2272_v32  ;;  %v2458_v12 = vrot.slane %v19458_v23, %v14638_v59  ;;  %v19465_v32 = vld [vmem:[#allocation129_spill] sm:$0xff] }
 0x819   :  { %v2463_v45 = vrot.slane %v19455_v28, %v14659_v54  ;;  %19457 = vst [vmem:[#allocation121_spill] sm:$0xff] %v14932_v40  ;;  %v2331_v17 = vsel %vm2156_vm7, %v2330_v30, %v2326_v5  ;;  %v2400_v2 = vsel %vm2142_vm5, %v2399_v26, %v2395_v33  ;;  %v14939_v22 = vpop.permute.xlu0 %8005  ;;  %v2345_v28 = vrot.slane %v19460_v43, %v14741_v53  ;;  %v19461_v40 = vld [vmem:[#allocation154_spill] sm:$0xff]  ;;  %v19462_v5 = vld [vmem:[#allocation128_spill] sm:$0xff] }
 0x81a   :  { %8287 = vperm.xlu1 %11070, %v7486_v16   ;;  %19459 = vst [vmem:[#allocation131_spill] sm:$0xff] %v14939_v22  ;;  %v2336_v20 = vsel %vm2163_vm8, %v2335_v36, %v2331_v17  ;;  %v2405_v49 = vsel %vm2149_vm6, %v2404_v7, %v2400_v2  ;;  %v2414_v44 = vrot.slane %v19461_v40, %v14716_v41  ;;  %v19463_v23 = vld [vmem:[#allocation142_spill] sm:$0xff]  ;;  %v19466_v7 = vld [vmem:[#allocation24_spill] sm:$0xff] }
 0x81b   :  { %8191 = vperm.xlu0 %11071, %v7454_v50   ;;  %v2340_v30 = vrot.slane %v19462_v5, %v14735_v8  ;;  %v2409_v33 = vrot.slane %v19463_v23, %v14713_v0  ;;  %v2459_v26 = vsel %vm2114_vm1, %v2458_v12, %v2454_v48  ;;  %v19464_v16 = vld [vmem:[#allocation534_spill] sm:$0xff]  ;;  %v2286_v17 = vrot.slane %v19465_v32, %v14771_v27  ;;  %v19467_v50 = vld [vmem:[#allocation637_spill] sm:$0xff]  ;;  %v19469_v12 = vld [vmem:[#allocation11_spill] sm:$0xff] }
 0x81c   :  { %v7470_v36 = vmul.f32 %v19464_v16, %v14798_v21  ;;  %v2464_v2 = vsel %vm2121_vm2, %v2463_v45, %v2459_v26  ;;  %v2473_v40 = vrot.slane %v19466_v7, %v14677_v57  ;;  %v7456_v43 = vmul.f32 %v19467_v50, %v14239_v46  ;;  %v14961_v5 = vpop.permute.xlu1 %8044  ;;  %v19471_v26 = vld [vmem:[#allocation143_spill] sm:$0xff] }
 0x81d   :  { %19468 = vst [vmem:[#allocation101_spill] sm:$0xff] %v14961_v5  ;;  %v2282_v23 = vsel %vm2198_vm13, %v2281_v42, %v2277_v13  ;;  %v2341_v48 = vsel %vm2170_vm9, %v2340_v30, %v2336_v20  ;;  %v2468_v16 = vrot.slane %v19469_v12, %v14671_v15  ;;  %v2410_v22 = vsel %vm2156_vm7, %v2409_v33, %v2405_v49  ;;  %v14968_v32 = vpop.permute.xlu0 %8011  ;;  %v19472_v5 = vld [vmem:[#allocation155_spill] sm:$0xff]  ;;  %v19473_v13 = vld [vmem:[#allocation130_spill] sm:$0xff]  ;;  %v19474_v30 = vld [vmem:[#allocation144_spill] sm:$0xff] }
 0x81e   :  { %8239 = vperm.xlu1 %11070, %v7470_v36   ;;  %19470 = vst [vmem:[#allocation109_spill] sm:$0xff] %v14968_v32  ;;  %v2346_v45 = vsel %vm2177_vm10, %v2345_v28, %v2341_v48  ;;  %v2355_v7 = vrot.slane %v19471_v26, %v14765_v61  ;;  %v2415_v50 = vsel %vm2163_vm8, %v2414_v44, %v2410_v22  ;;  %v19475_v36 = vld [vmem:[#allocation552_spill] sm:$0xff]  ;;  %v19476_v44 = vld [vmem:[#allocation13_spill] sm:$0xff] }
 0x81f   :  { %v2424_v42 = vrot.slane %v19472_v5, %v14741_v53  ;;  %8197 = vperm.xlu0 %11071, %v7456_v43   ;;  %v2350_v20 = vrot.slane %v19473_v13, %v14756_v18  ;;  %v2419_v49 = vrot.slane %v19474_v30, %v14735_v8  ;;  %v2469_v33 = vsel %vm2128_vm3, %v2468_v16, %v2464_v2  ;;  %v19477_v43 = vld [vmem:[#allocation639_spill] sm:$0xff]  ;;  %v19479_v13 = vld [vmem:[#allocation132_spill] sm:$0xff]  ;;  %v19483_v32 = vld [vmem:[#allocation21_spill] sm:$0xff] }
 0x820   :  { %v7488_v28 = vmul.f32 %v19475_v36, %v14798_v21  ;;  %v14984_v48 = vsel %vm2205_vm14, %v2286_v17, %v2282_v23  ;;  %v2474_v22 = vsel %vm2135_vm4, %v2473_v40, %v2469_v33  ;;  %v2483_v5 = vrot.slane %v19476_v44, %v14697_v19  ;;  %v14991_v26 = vpop.permute.xlu1 %8050  ;;  %v19480_v16 = vld [vmem:[#allocation12_spill] sm:$0xff] }
 0x821   :  { %v7458_v12 = vmul.f32 %v19477_v43, %v14239_v46  ;;  %19478 = vst [vmem:[#allocation133_spill] sm:$0xff] %v14991_v26  ;;  %v2360_v30 = vrot.slane %v19479_v13, %v14768_v38  ;;  %v2351_v2 = vsel %vm2184_vm11, %v2350_v20, %v2346_v45  ;;  %v2478_v36 = vrot.slane %v19480_v16, %v14706_v6  ;;  %v14999_v40 = vpop.permute.xlu0 %8017  ;;  %v19482_v44 = vld [vmem:[#allocation156_spill] sm:$0xff]  ;;  %v19484_v45 = vld [vmem:[#allocation146_spill] sm:$0xff] }
 0x822   :  { %v2420_v17 = vsel %vm2170_vm9, %v2419_v49, %v2415_v50  ;;  %8293 = vperm.xlu1 %11070, %v7488_v28   ;;  %19481 = vst [vmem:[#allocation103_spill] sm:$0xff] %v14999_v40  ;;  %v2356_v23 = vsel %vm2191_vm12, %v2355_v7, %v2351_v2  ;;  %v2434_v26 = vrot.slane %v19482_v44, %v14765_v61  ;;  %v19485_v50 = vld [vmem:[#allocation22_spill] sm:$0xff]  ;;  %v19486_v28 = vld [vmem:[#allocation541_spill] sm:$0xff]  ;;  %v19488_v44 = vld [vmem:[#allocation16_spill] sm:$0xff] }
 0x823   :  { %v2425_v33 = vsel %vm2177_vm10, %v2424_v42, %v2420_v17  ;;  %v2533_v13 = vrot.slane %v19483_v32, %v14649_v52  ;;  %8203 = vperm.xlu0 %11071, %v7458_v12   ;;  %v2429_v20 = vrot.slane %v19484_v45, %v14756_v18  ;;  %v2479_v16 = vsel %vm2142_vm5, %v2478_v36, %v2474_v22  ;;  %v19487_v42 = vld [vmem:[#allocation36_spill] sm:$0xff]  ;;  %v19490_v36 = vld [vmem:[#allocation145_spill] sm:$0xff] }
 0x824   :  { %v2542_v49 = vrot.slane %v19485_v50, %v14659_v54  ;;  %v7489_v7 = vmul.f32 %v19486_v28, %v14798_v21  ;;  %v2537_v2 = vrot.slane %v19487_v42, %v14638_v59  ;;  %v2484_v17 = vsel %vm2149_vm6, %v2483_v5, %v2479_v16  ;;  %v15021_v45 = vpop.permute.xlu1 %8056  ;;  %v19491_v28 = vld [vmem:[#allocation14_spill] sm:$0xff]  ;;  %v19493_v16 = vld [vmem:[#allocation148_spill] sm:$0xff] }
 0x825   :  { %v2493_v32 = vrot.slane %v19488_v44, %v14716_v41  ;;  %v7460_v12 = vmul.f32 %v14487_v37, %v14239_v46  ;;  %19489 = vst [vmem:[#allocation120_spill] sm:$0xff] %v15021_v45  ;;  %v2361_v22 = vsel %vm2198_vm13, %v2360_v30, %v2356_v23  ;;  %v2365_v50 = vrot.slane %v19490_v36, %v14771_v27  ;;  %v15029_v5 = vpop.permute.xlu0 %8023  ;;  %v19494_v45 = vld [vmem:[#allocation157_spill] sm:$0xff] }
 0x826   :  { %v2488_v40 = vrot.slane %v19491_v28, %v14713_v0  ;;  %v2430_v42 = vsel %vm2184_vm11, %v2429_v20, %v2425_v33  ;;  %8296 = vperm.xlu1 %11070, %v7489_v7   ;;  %19492 = vst [vmem:[#allocation114_spill] sm:$0xff] %v15029_v5  ;;  %v2439_v44 = vrot.slane %v19493_v16, %v14768_v38  ;;  %v19495_v33 = vld [vmem:[#allocation23_spill] sm:$0xff]  ;;  %v19497_v16 = vld [vmem:[#allocation38_spill] sm:$0xff] }
 0x827   :  { %v2435_v37 = vsel %vm2191_vm12, %v2434_v26, %v2430_v42  ;;  %v2444_v43 = vrot.slane %v19494_v45, %v14771_v27  ;;  %v2538_v30 = vsel %vm2114_vm1, %v2537_v2, %v2533_v13  ;;  %8209 = vperm.xlu0 %11071, %v7460_v12   ;;  %v2552_v20 = vrot.slane %v19495_v33, %v14677_v57  ;;  %v19496_v7 = vld [vmem:[#allocation571_spill] sm:$0xff]  ;;  %v19498_v45 = vld [vmem:[#allocation18_spill] sm:$0xff]  ;;  %v19501_v12 = vld [vmem:[#allocation17_spill] sm:$0xff] }
 0x828   :  { %v2489_v23 = vsel %vm2156_vm7, %v2488_v40, %v2484_v17  ;;  %v2543_v36 = vsel %vm2121_vm2, %v2542_v49, %v2538_v30  ;;  %v7519_v28 = vmul.f32 %v19496_v7, %v14798_v21  ;;  %v2547_v5 = vrot.slane %v19497_v16, %v14671_v15  ;;  %v15050_v40 = vpop.permute.xlu1 %8062  ;;  %v19500_v49 = vld [vmem:[#allocation134_spill] sm:$0xff] }
 0x829   :  { %v2494_v26 = vsel %vm2163_vm8, %v2493_v32, %v2489_v23  ;;  %v2503_v42 = vrot.slane %v19498_v45, %v14741_v53  ;;  %v7462_v13 = vmul.f32 %v14495_v14, %v14239_v46  ;;  %19499 = vst [vmem:[#allocation123_spill] sm:$0xff] %v15050_v40  ;;  %v2370_v2 = vrot.slane %v19500_v49, %v14776_v58  ;;  %v15058_v32 = vpop.permute.xlu0 %8029  ;;  %v19503_v23 = vld [vmem:[#allocation150_spill] sm:$0xff]  ;;  %v19504_v45 = vld [vmem:[#allocation40_spill] sm:$0xff] }
 0x82a   :  { %v2366_v17 = vsel %vm2205_vm14, %v2365_v50, %v2361_v22  ;;  %v2498_v30 = vrot.slane %v19501_v12, %v14735_v8  ;;  %v2440_v33 = vsel %vm2198_vm13, %v2439_v44, %v2435_v37  ;;  %8386 = vperm.xlu1 %11070, %v7519_v28   ;;  %19502 = vst [vmem:[#allocation147_spill] sm:$0xff] %v15058_v32  ;;  %v19505_v37 = vld [vmem:[#allocation26_spill] sm:$0xff] }
 0x82b   :  { %v2449_v7 = vrot.slane %v19503_v23, %v14776_v58  ;;  %v2445_v16 = vsel %vm2205_vm14, %v2444_v43, %v2440_v33  ;;  %v2557_v40 = vrot.slane %v19504_v45, %v14706_v6  ;;  %v2548_v49 = vsel %vm2128_vm3, %v2547_v5, %v2543_v36  ;;  %8215 = vperm.xlu0 %11071, %v7462_v13   ;;  %v19506_v28 = vld [vmem:[#allocation554_spill] sm:$0xff]  ;;  %v19507_v43 = vld [vmem:[#allocation19_spill] sm:$0xff] }
 0x82c   :  { %v2499_v22 = vsel %vm2170_vm9, %v2498_v30, %v2494_v26  ;;  %v2553_v50 = vsel %vm2135_vm4, %v2552_v20, %v2548_v49  ;;  %v2562_v44 = vrot.slane %v19505_v37, %v14697_v19  ;;  %v7490_v12 = vmul.f32 %v19506_v28, %v14798_v21  ;;  %v19508_v45 = vld [vmem:[#allocation35_spill] sm:$0xff]  ;;  %v15079_v36 = vpop.permute.xlu1 %8068  ;;  %v19510_v26 = vld [vmem:[#allocation30_spill] sm:$0xff]  ;;  %v19511_v30 = vld [vmem:[#allocation37_spill] sm:$0xff] }
 0x82d   :  { %v2504_v23 = vsel %vm2177_vm10, %v2503_v42, %v2499_v22  ;;  %v2513_v33 = vrot.slane %v19507_v43, %v14765_v61  ;;  %v2612_v32 = vrot.slane %v19508_v45, %v14649_v52  ;;  %v7464_v5 = vmul.f32 %v14503_v47, %v14239_v46  ;;  %19509 = vst [vmem:[#allocation111_spill] sm:$0xff] %v15079_v36  ;;  %v15088_v49 = vpop.permute.xlu0 %8035  ;;  %v19514_v28 = vld [vmem:[#allocation32_spill] sm:$0xff]  ;;  %v19531_v47 = vld [vmem:[#allocation45_spill] sm:$0xff] }
 0x82e   :  { %v15082_v20 = vsel %vm2212_vm15, %v2370_v2, %v2366_v17  ;;  %v2508_v13 = vrot.slane %v19510_v26, %v14756_v18  ;;  %v2621_v42 = vrot.slane %v19511_v30, %v14659_v54  ;;  %8299 = vperm.xlu1 %11070, %v7490_v12   ;;  %19512 = vst [vmem:[#allocation135_spill] sm:$0xff] %v15088_v49  ;;  %v19515_v17 = vld [vmem:[#allocation53_spill] sm:$0xff] }
 0x82f   :  { %v19513_v22 = vrot.slane %v19454_v1, %v14776_v58  ;;  %v2518_v2 = vrot.slane %v19514_v28, %v14768_v38  ;;  %v2616_v43 = vrot.slane %v19515_v17, %v14638_v59  ;;  %v2558_v45 = vsel %vm2142_vm5, %v2557_v40, %v2553_v50  ;;  %8221 = vperm.xlu0 %11071, %v7464_v5   ;;  %v19516_v1 = vld [vmem:[#allocation27_spill] sm:$0xff] }
 0x830   :  { %v15103_v12 = vsel %vm2212_vm15, %v2449_v7, %v2445_v16  ;;  %v2509_v26 = vsel %vm2184_vm11, %v2508_v13, %v2504_v23  ;;  %v2563_v30 = vsel %vm2149_vm6, %v2562_v44, %v2558_v45  ;;  %v19518_v28 = vld [vmem:[#allocation43_spill] sm:$0xff]  ;;  %v15117_v50 = vpop.permute.xlu1 %8074  ;;  %v19521_v44 = vld [vmem:[#allocation20_spill] sm:$0xff] }
 0x831   :  { %v15095_v37 = vsel %vm2212_vm15, %v19513_v22, %v14984_v48  ;;  %v2572_v48 = vrot.slane %v19516_v1, %v14716_v41  ;;  %v19517_v22 = vld [vmem:[#allocation555_spill] sm:$0xff]  ;;  %v2567_v49 = vrot.slane %v19518_v28, %v14713_v0  ;;  %v2514_v17 = vsel %vm2191_vm12, %v2513_v33, %v2509_v26  ;;  %19520 = vst [vmem:[#allocation149_spill] sm:$0xff] %v15117_v50  ;;  %v19523_v1 = vld [vmem:[#allocation52_spill] sm:$0xff]  ;;  %v15126_v33 = vpop.permute.xlu0 %8041 }
 0x832   :  { %v7503_v36 = vmul.f32 %v19517_v22, %v14798_v21  ;;  %v2617_v40 = vsel %vm2114_vm1, %v2616_v43, %v2612_v32  ;;  %v19519_v7 = vld [vmem:[#allocation539_spill] sm:$0xff]  ;;  %v2523_v23 = vrot.slane %v19521_v44, %v14771_v27  ;;  %v2691_v22 = vrot.slane %v19523_v1, %v14649_v52  ;;  %19524 = vst [vmem:[#allocation122_spill] sm:$0xff] %v15126_v33  ;;  %v19525_v32 = vld [vmem:[#allocation34_spill] sm:$0xff] }
 0x833   :  { %v7487_v16 = vmul.f32 %v19519_v7, %v14798_v21  ;;  %v2622_v5 = vsel %vm2121_vm2, %v2621_v42, %v2617_v40  ;;  %v19522_v13 = vld [vmem:[#allocation39_spill] sm:$0xff]  ;;  %v2528_v43 = vrot.slane %v19525_v32, %v14776_v58  ;;  %v2568_v7 = vsel %vm2156_vm7, %v2567_v49, %v2563_v30  ;;  %v19527_v44 = vld [vmem:[#allocation54_spill] sm:$0xff] }
 0x834   :  { %v2631_v45 = vrot.slane %v19522_v13, %v14677_v57  ;;  %8338 = vperm.xlu1 %11070, %v7503_v36   ;;  %v19526_v26 = vld [vmem:[#allocation55_spill] sm:$0xff]  ;;  %v2700_v42 = vrot.slane %v19527_v44, %v14659_v54  ;;  %v2573_v40 = vsel %vm2163_vm8, %v2572_v48, %v2568_v7  ;;  %v19528_v13 = vld [vmem:[#allocation29_spill] sm:$0xff]  ;;  %v19529_v36 = vld [vmem:[#allocation42_spill] sm:$0xff]  ;;  %v2519_v49 = vsel %vm2198_vm13, %v2518_v2, %v2514_v17  ;;  %v15148_v48 = vpop.permute.xlu1 %8080 }
 0x835   :  { %v2626_v28 = vrot.slane %v19526_v26, %v14671_v15  ;;  %8290 = vperm.xlu0 %11071, %v7487_v16   ;;  %v2582_v1 = vrot.slane %v19528_v13, %v14741_v53  ;;  %v2695_v50 = vrot.slane %v19529_v36, %v14638_v59  ;;  %v19530_v33 = vld [vmem:[#allocation538_spill] sm:$0xff]  ;;  %v2577_v26 = vrot.slane %v19531_v47, %v14735_v8  ;;  %v19532_v16 = vld [vmem:[#allocation523_spill] sm:$0xff]  ;;  %v15155_v47 = vpop.permute.xlu0 %8047  ;;  %v19536_v2 = vld [vmem:[#allocation57_spill] sm:$0xff] }
 0x836   :  { %v7474_v32 = vmul.f32 %v19530_v33, %v14798_v21  ;;  %v7471_v44 = vmul.f32 %v19532_v16, %v14798_v21  ;;  %19533 = vst [vmem:[#allocation136_spill] sm:$0xff] %v15148_v48  ;;  %v2524_v7 = vsel %vm2205_vm14, %v2523_v23, %v2519_v49  ;;  %v19534_v36 = vld [vmem:[#allocation159_spill] sm:$0xff]  ;;  %19535 = vst [vmem:[#allocation113_spill] sm:$0xff] %v15155_v47  ;;  %v19537_v16 = vld [vmem:[#allocation161_spill] sm:$0xff] }
 0x837   :  { %v2627_v30 = vsel %vm2128_vm3, %v2626_v28, %v2622_v5  ;;  %v2641_v14 = vrot.slane %v19534_v36, %v14697_v19  ;;  %v2696_v33 = vsel %vm2114_vm1, %v2695_v50, %v2691_v22  ;;  %v2636_v17 = vrot.slane %v19536_v2, %v14706_v6  ;;  %v19538_v49 = vld [vmem:[#allocation31_spill] sm:$0xff] }
 0x838   :  { %v2632_v13 = vsel %vm2135_vm4, %v2631_v45, %v2627_v30  ;;  %8251 = vperm.xlu1 %11070, %v7474_v32   ;;  %v2578_v5 = vsel %vm2170_vm9, %v2577_v26, %v2573_v40  ;;  %v2701_v28 = vsel %vm2121_vm2, %v2700_v42, %v2696_v33  ;;  %v2710_v23 = vrot.slane %v19537_v16, %v14677_v57  ;;  %v19539_v50 = vld [vmem:[#allocation71_spill] sm:$0xff]  ;;  %v19540_v32 = vld [vmem:[#allocation568_spill] sm:$0xff]  ;;  %v15178_v33 = vpop.permute.xlu1 %8086 }
 0x839   :  { %8242 = vperm.xlu0 %11071, %v7471_v44   ;;  %v2583_v45 = vsel %vm2177_vm10, %v2582_v1, %v2578_v5  ;;  %v2592_v30 = vrot.slane %v19538_v49, %v14765_v61  ;;  %v2705_v22 = vrot.slane %v19539_v50, %v14671_v15  ;;  %v7504_v36 = vmul.f32 %v19540_v32, %v14798_v21  ;;  %v19542_v42 = vld [vmem:[#allocation47_spill] sm:$0xff]  ;;  %v19543_v44 = vld [vmem:[#allocation536_spill] sm:$0xff]  ;;  %v19545_v5 = vld [vmem:[#allocation49_spill] sm:$0xff] }
 0x83a   :  { %v15171_v2 = vsel %vm2212_vm15, %v2528_v43, %v2524_v7  ;;  %v2587_v40 = vrot.slane %v19542_v42, %v14756_v18  ;;  %v2637_v26 = vsel %vm2142_vm5, %v2636_v17, %v2632_v13  ;;  %v7472_v1 = vmul.f32 %v19543_v44, %v14798_v21  ;;  %19544 = vst [vmem:[#allocation137_spill] sm:$0xff] %v15178_v33  ;;  %v19546_v50 = vld [vmem:[#allocation44_spill] sm:$0xff]  ;;  %v15186_v7 = vpop.permute.xlu0 %8053  ;;  %v19549_v33 = vld [vmem:[#allocation59_spill] sm:$0xff] }
 0x83b   :  { %19541 = vst [vmem:[#allocation125_spill] sm:$0xff] %v15171_v2  ;;  %v2597_v16 = vrot.slane %v19545_v5, %v14768_v38  ;;  %v2642_v49 = vsel %vm2149_vm6, %v2641_v14, %v2637_v26  ;;  %v2651_v32 = vrot.slane %v19546_v50, %v14716_v41  ;;  %v2706_v43 = vsel %vm2128_vm3, %v2705_v22, %v2701_v28  ;;  %v19548_v13 = vld [vmem:[#allocation60_spill] sm:$0xff]  ;;  %v19550_v14 = vld [vmem:[#allocation51_spill] sm:$0xff]  ;;  %v19551_v28 = vld [vmem:[#allocation74_spill] sm:$0xff] }
 0x83c   :  { %8341 = vperm.xlu1 %11070, %v7504_v36   ;;  %19547 = vst [vmem:[#allocation151_spill] sm:$0xff] %v15186_v7  ;;  %v2646_v17 = vrot.slane %v19548_v13, %v14713_v0  ;;  %v2588_v42 = vsel %vm2184_vm11, %v2587_v40, %v2583_v45  ;;  %v2711_v44 = vsel %vm2135_vm4, %v2710_v23, %v2706_v43  ;;  %v19552_v36 = vld [vmem:[#allocation527_spill] sm:$0xff]  ;;  %v19553_v13 = vld [vmem:[#allocation33_spill] sm:$0xff]  ;;  %v19561_v7 = vld [vmem:[#allocation62_spill] sm:$0xff] }
 0x83d   :  { %v2720_v5 = vrot.slane %v19549_v33, %v14697_v19  ;;  %8245 = vperm.xlu0 %11071, %v7472_v1   ;;  %v2607_v26 = vrot.slane %v19550_v14, %v14776_v58  ;;  %v2593_v50 = vsel %vm2191_vm12, %v2592_v30, %v2588_v42  ;;  %v2715_v22 = vrot.slane %v19551_v28, %v14706_v6  ;;  %v19554_v40 = vld [vmem:[#allocation69_spill] sm:$0xff]  ;;  %v19556_v30 = vld [vmem:[#allocation582_spill] sm:$0xff]  ;;  %v15213_v42 = vpop.permute.xlu1 %8092 }
 0x83e   :  { %v7475_v48 = vmul.f32 %v19552_v36, %v14798_v21  ;;  %v2602_v45 = vrot.slane %v19553_v13, %v14771_v27  ;;  %v2647_v23 = vsel %vm2156_vm7, %v2646_v17, %v2642_v49  ;;  %v2770_v33 = vrot.slane %v19554_v40, %v14649_v52  ;;  %v15209_v1 = vld [vmem:[%s17993_s2] sm:$0xff]  ;;  %19557 = vst [vmem:[#allocation138_spill] sm:$0xff] %v15213_v42  ;;  %v19558_v28 = vld [vmem:[#allocation46_spill] sm:$0xff]  ;;  %v19559_v17 = vld [vmem:[#allocation163_spill] sm:$0xff]  ;;  %v15221_v40 = vpop.permute.xlu0 %8059 }
 0x83f   :  { %19555 = vst [vmem:[#allocation124_spill] sm:$0xff] %v15209_v1  ;;  %v7518_v43 = vmul.f32 %v19556_v30, %v14798_v21  ;;  %v2652_v14 = vsel %vm2163_vm8, %v2651_v32, %v2647_v23  ;;  %v2661_v36 = vrot.slane %v19558_v28, %v14741_v53  ;;  %v2716_v49 = vsel %vm2142_vm5, %v2715_v22, %v2711_v44  ;;  %v19562_v30 = vld [vmem:[#allocation84_spill] sm:$0xff]  ;;  %v19563_v32 = vld [vmem:[#allocation61_spill] sm:$0xff] }
 0x840   :  { %v2779_v13 = vrot.slane %v19559_v17, %v14659_v54  ;;  %8254 = vperm.xlu1 %11070, %v7475_v48   ;;  %19560 = vst [vmem:[#allocation115_spill] sm:$0xff] %v15221_v40  ;;  %v2656_v47 = vrot.slane %v19561_v7, %v14735_v8  ;;  %v2774_v2 = vrot.slane %v19562_v30, %v14638_v59  ;;  %v19564_v22 = vld [vmem:[#allocation48_spill] sm:$0xff]  ;;  %v19565_v48 = vld [vmem:[#allocation557_spill] sm:$0xff]  ;;  %v19566_v40 = vld [vmem:[#allocation6_spill] sm:$0xff] }
 0x841   :  { %v2721_v42 = vsel %vm2149_vm6, %v2720_v5, %v2716_v49  ;;  %v2730_v23 = vrot.slane %v19563_v32, %v14716_v41  ;;  %8383 = vperm.xlu0 %11071, %v7518_v43   ;;  %v2598_v44 = vsel %vm2198_vm13, %v2597_v16, %v2593_v50  ;;  %v2725_v28 = vrot.slane %v19564_v22, %v14713_v0  ;;  %v19567_v49 = vld [vmem:[#allocation525_spill] sm:$0xff]  ;;  %v15242_v32 = vpop.permute.xlu1 %8098 }
 0x842   :  { %v7505_v17 = vmul.f32 %v19565_v48, %v14798_v21  ;;  %v2603_v46 = vsel %vm2205_vm14, %v2602_v45, %v2598_v44  ;;  %v2657_v30 = vsel %vm2170_vm9, %v2656_v47, %v2652_v14  ;;  %v2775_v5 = vsel %vm2114_vm1, %v2774_v2, %v2770_v33  ;;  %19568 = vst [vmem:[#allocation117_spill] sm:$0xff] %v15242_v32  ;;  %v19569_v48 = vld [vmem:[#allocation164_spill] sm:$0xff]  ;;  %v15249_v45 = vpop.permute.xlu0 %8065  ;;  %v19572_v33 = vld [vmem:[#allocation86_spill] sm:$0xff] }
 0x843   :  { %v7473_v43 = vmul.f32 %v19567_v49, %v14798_v21  ;;  %v2662_v16 = vsel %vm2177_vm10, %v2661_v36, %v2657_v30  ;;  %v2726_v50 = vsel %vm2156_vm7, %v2725_v28, %v2721_v42  ;;  %v2780_v22 = vsel %vm2121_vm2, %v2779_v13, %v2775_v5  ;;  %19570 = vst [vmem:[#allocation127_spill] sm:$0xff] %v15249_v45  ;;  %v19571_v47 = vld [vmem:[#allocation64_spill] sm:$0xff]  ;;  %v19573_v36 = vld [vmem:[#allocation63_spill] sm:$0xff] }
 0x844   :  { %v2789_v7 = vrot.slane %v19569_v48, %v14677_v57  ;;  %8344 = vperm.xlu1 %11070, %v7505_v17   ;;  %v2666_v2 = vrot.slane %v19571_v47, %v14756_v18  ;;  %v2784_v14 = vrot.slane %v19572_v33, %v14671_v15  ;;  %v2731_v44 = vsel %vm2163_vm8, %v2730_v23, %v2726_v50  ;;  %v19575_v13 = vld [vmem:[#allocation160_spill] sm:$0xff]  ;;  %v19576_v17 = vld [vmem:[#allocation77_spill] sm:$0xff]  ;;  %v19578_v47 = vld [vmem:[#allocation66_spill] sm:$0xff] }
 0x845   :  { %v2740_v30 = vrot.slane %v19573_v36, %v14741_v53  ;;  %8248 = vperm.xlu0 %11071, %v7473_v43   ;;  %v15259_v42 = vsel %vm2212_vm15, %v2607_v26, %v2603_v46  ;;  %v2671_v28 = vrot.slane %v19575_v13, %v14765_v61  ;;  %v2735_v5 = vrot.slane %v19576_v17, %v14735_v8  ;;  %v19577_v49 = vld [vmem:[#allocation540_spill] sm:$0xff]  ;;  %v19579_v43 = vld [vmem:[#allocation566_spill] sm:$0xff]  ;;  %v15273_v26 = vpop.permute.xlu1 %8104  ;;  %v19581_v17 = vld [vmem:[#allocation165_spill] sm:$0xff] }
 0x846   :  { %19574 = vst [vmem:[#allocation139_spill] sm:$0xff] %v15259_v42  ;;  %v7476_v48 = vmul.f32 %v19577_v49, %v14798_v21  ;;  %v2676_v33 = vrot.slane %v19578_v47, %v14768_v38  ;;  %v2667_v23 = vsel %vm2184_vm11, %v2666_v2, %v2662_v16  ;;  %v2785_v50 = vsel %vm2128_vm3, %v2784_v14, %v2780_v22  ;;  %v19582_v49 = vld [vmem:[#allocation170_spill] sm:$0xff]  ;;  %v15281_v47 = vpop.permute.xlu0 %8071  ;;  %v19584_v16 = vld [vmem:[#allocation88_spill] sm:$0xff] }
 0x847   :  { %v7502_v46 = vmul.f32 %v19579_v43, %v14798_v21  ;;  %19580 = vst [vmem:[#allocation153_spill] sm:$0xff] %v15273_v26  ;;  %v2736_v36 = vsel %vm2170_vm9, %v2735_v5, %v2731_v44  ;;  %v2790_v13 = vsel %vm2135_vm4, %v2789_v7, %v2785_v50  ;;  %v2799_v45 = vrot.slane %v19581_v17, %v14697_v19  ;;  %v19585_v14 = vld [vmem:[#allocation162_spill] sm:$0xff]  ;;  %v19586_v44 = vld [vmem:[#allocation171_spill] sm:$0xff] }
 0x848   :  { %v2849_v32 = vrot.slane %v19582_v49, %v14649_v52  ;;  %8257 = vperm.xlu1 %11070, %v7476_v48   ;;  %19583 = vst [vmem:[#allocation126_spill] sm:$0xff] %v15281_v47  ;;  %v2794_v22 = vrot.slane %v19584_v16, %v14706_v6  ;;  %v2741_v2 = vsel %vm2177_vm10, %v2740_v30, %v2736_v36  ;;  %v19587_v50 = vld [vmem:[#allocation79_spill] sm:$0xff]  ;;  %v19589_v47 = vld [vmem:[#allocation570_spill] sm:$0xff] }
 0x849   :  { %v2750_v43 = vrot.slane %v19585_v14, %v14765_v61  ;;  %v2858_v7 = vrot.slane %v19586_v44, %v14659_v54  ;;  %8335 = vperm.xlu0 %11071, %v7502_v46   ;;  %v2672_v5 = vsel %vm2191_vm12, %v2671_v28, %v2667_v23  ;;  %v2745_v17 = vrot.slane %v19587_v50, %v14756_v18  ;;  %v19588_v48 = vld [vmem:[#allocation75_spill] sm:$0xff]  ;;  %v19590_v30 = vld [vmem:[#allocation50_spill] sm:$0xff]  ;;  %v19591_v14 = vld [vmem:[#allocation65_spill] sm:$0xff]  ;;  %v15304_v23 = vpop.permute.xlu1 %8110 }
 0x84a   :  { %v2853_v49 = vrot.slane %v19588_v48, %v14638_v59  ;;  %v7506_v16 = vmul.f32 %v19589_v47, %v14798_v21  ;;  %v2681_v36 = vrot.slane %v19590_v30, %v14771_v27  ;;  %v2804_v26 = vrot.slane %v19591_v14, %v14713_v0  ;;  %v19592_v46 = vld [vmem:[#allocation584_spill] sm:$0xff]  ;;  %19593 = vst [vmem:[#allocation140_spill] sm:$0xff] %v15304_v23  ;;  %v19594_v42 = vld [vmem:[#allocation166_spill] sm:$0xff]  ;;  %v15311_v30 = vpop.permute.xlu0 %8077  ;;  %v19597_v23 = vld [vmem:[#allocation173_spill] sm:$0xff] }
 0x84b   :  { %v2795_v44 = vsel %vm2142_vm5, %v2794_v22, %v2790_v13  ;;  %v7520_v28 = vmul.f32 %v19592_v46, %v14798_v21  ;;  %v2746_v50 = vsel %vm2184_vm11, %v2745_v17, %v2741_v2  ;;  %v2809_v47 = vrot.slane %v19594_v42, %v14716_v41  ;;  %19595 = vst [vmem:[#allocation158_spill] sm:$0xff] %v15311_v30  ;;  %v19596_v13 = vld [vmem:[#allocation67_spill] sm:$0xff]  ;;  %v19598_v42 = vld [vmem:[#allocation81_spill] sm:$0xff] }
 0x84c   :  { %v2800_v48 = vsel %vm2149_vm6, %v2799_v45, %v2795_v44  ;;  %v2854_v10 = vsel %vm2114_vm1, %v2853_v49, %v2849_v32  ;;  %8347 = vperm.xlu1 %11070, %v7506_v16   ;;  %v2751_v14 = vsel %vm2191_vm12, %v2750_v43, %v2746_v50  ;;  %v2760_v22 = vrot.slane %v19596_v13, %v14771_v27  ;;  %v19599_v32 = vld [vmem:[#allocation76_spill] sm:$0xff]  ;;  %v19600_v16 = vld [vmem:[#allocation529_spill] sm:$0xff] }
 0x84d   :  { %v2859_v46 = vsel %vm2121_vm2, %v2858_v7, %v2854_v10  ;;  %v2868_v2 = vrot.slane %v19597_v23, %v14677_v57  ;;  %8389 = vperm.xlu0 %11071, %v7520_v28   ;;  %v2677_v45 = vsel %vm2198_vm13, %v2676_v33, %v2672_v5  ;;  %v2755_v17 = vrot.slane %v19598_v42, %v14768_v38  ;;  %v19601_v44 = vld [vmem:[#allocation68_spill] sm:$0xff]  ;;  %v19602_v28 = vld [vmem:[#allocation543_spill] sm:$0xff]  ;;  %v15332_v33 = vpop.permute.xlu1 %8116 }
 0x84e   :  { %v2863_v49 = vrot.slane %v19599_v32, %v14671_v15  ;;  %v7477_v43 = vmul.f32 %v19600_v16, %v14798_v21  ;;  %v2686_v50 = vrot.slane %v19601_v44, %v14776_v58  ;;  %v2682_v10 = vsel %vm2205_vm14, %v2681_v36, %v2677_v45  ;;  %19603 = vst [vmem:[#allocation550_spill] sm:$0xff] %v15332_v33  ;;  %v19604_v42 = vld [vmem:[#allocation167_spill] sm:$0xff]  ;;  %v15339_v44 = vpop.permute.xlu0 %8083  ;;  %v19606_v36 = vld [vmem:[#allocation89_spill] sm:$0xff] }
 0x84f   :  { %v2805_v7 = vsel %vm2156_vm7, %v2804_v26, %v2800_v48  ;;  %v7491_v23 = vmul.f32 %v19602_v28, %v14798_v21  ;;  %v2756_v5 = vsel %vm2198_vm13, %v2755_v17, %v2751_v14  ;;  %v2819_v32 = vrot.slane %v19604_v42, %v14741_v53  ;;  %19605 = vst [vmem:[#allocation87_spill] sm:$0xff] %v15339_v44  ;;  %v19607_v28 = vld [vmem:[#allocation175_spill] sm:$0xff] }
 0x850   :  { %v2810_v13 = vsel %vm2163_vm8, %v2809_v47, %v2805_v7  ;;  %v2864_v16 = vsel %vm2128_vm3, %v2863_v49, %v2859_v46  ;;  %8260 = vperm.xlu1 %11070, %v7477_v43   ;;  %v2814_v26 = vrot.slane %v19606_v36, %v14735_v8  ;;  %v2761_v48 = vsel %vm2205_vm14, %v2760_v22, %v2756_v5  ;;  %v19608_v47 = vld [vmem:[#allocation56_spill] sm:$0xff]  ;;  %v19609_v7 = vld [vmem:[#allocation78_spill] sm:$0xff]  ;;  %v19610_v49 = vld [vmem:[#allocation559_spill] sm:$0xff] }
 0x851   :  { %v2869_v45 = vsel %vm2135_vm4, %v2868_v2, %v2864_v16  ;;  %v2878_v14 = vrot.slane %v19607_v28, %v14697_v19  ;;  %8302 = vperm.xlu0 %11071, %v7491_v23   ;;  %v2765_v17 = vrot.slane %v19608_v47, %v14776_v58  ;;  %v2873_v46 = vrot.slane %v19609_v7, %v14706_v6  ;;  %v19611_v42 = vld [vmem:[#allocation7_spill] sm:$0xff]  ;;  %v19613_v5 = vld [vmem:[#allocation573_spill] sm:$0xff]  ;;  %v15361_v16 = vpop.permute.xlu1 %8122 }
 0x852   :  { %v7507_v43 = vmul.f32 %v19610_v49, %v14798_v21  ;;  %v15356_v22 = vsel %vm2212_vm15, %v2686_v50, %v2682_v10  ;;  %v2815_v2 = vsel %vm2170_vm9, %v2814_v26, %v2810_v13  ;;  %v7521_v23 = vmul.f32 %v19613_v5, %v14798_v21  ;;  %19614 = vst [vmem:[#allocation152_spill] sm:$0xff] %v15361_v16  ;;  %v19616_v49 = vld [vmem:[#allocation168_spill] sm:$0xff]  ;;  %v15372_v10 = vpop.permute.xlu0 %8089  ;;  %v19618_v13 = vld [vmem:[#allocation90_spill] sm:$0xff]  ;;  %v19619_v28 = vld [vmem:[#allocation177_spill] sm:$0xff] }
 0x853   :  { %19612 = vst [vmem:[#allocation10_spill] sm:$0xff] %v15356_v22  ;;  %v15366_v47 = vsel %vm2212_vm15, %v2765_v17, %v2761_v48  ;;  %v2820_v7 = vsel %vm2177_vm10, %v2819_v32, %v2815_v2  ;;  %v2829_v36 = vrot.slane %v19616_v49, %v14765_v61  ;;  %v2874_v50 = vsel %vm2142_vm5, %v2873_v46, %v2869_v45  ;;  %v19620_v48 = vld [vmem:[#allocation185_spill] sm:$0xff]  ;;  %v19621_v32 = vld [vmem:[#allocation70_spill] sm:$0xff]  ;;  %v19622_v45 = vld [vmem:[#allocation80_spill] sm:$0xff] }
 0x854   :  { %19615 = vst [vmem:[#allocation141_spill] sm:$0xff] %v15366_v47  ;;  %8350 = vperm.xlu1 %11070, %v7507_v43   ;;  %19617 = vst [vmem:[#allocation154_spill] sm:$0xff] %v15372_v10  ;;  %v2824_v26 = vrot.slane %v19618_v13, %v14756_v18  ;;  %v2879_v5 = vsel %vm2149_vm6, %v2878_v14, %v2874_v50  ;;  %v2888_v44 = vrot.slane %v19619_v28, %v14716_v41  ;;  %v19623_v43 = vld [vmem:[#allocation187_spill] sm:$0xff]  ;;  %v19624_v13 = vld [vmem:[#allocation542_spill] sm:$0xff] }
 0x855   :  { %v2928_v17 = vrot.slane %v19620_v48, %v14649_v52  ;;  %8392 = vperm.xlu0 %11071, %v7521_v23   ;;  %v2834_v2 = vrot.slane %v19621_v32, %v14768_v38  ;;  %v2883_v46 = vrot.slane %v19622_v45, %v14713_v0  ;;  %v2937_v49 = vrot.slane %v19623_v43, %v14659_v54  ;;  %v19625_v14 = vld [vmem:[#allocation73_spill] sm:$0xff]  ;;  %v19626_v48 = vld [vmem:[#allocation174_spill] sm:$0xff]  ;;  %v19627_v16 = vld [vmem:[#allocation556_spill] sm:$0xff]  ;;  %v15396_v30 = vpop.permute.xlu1 %8128 }
 0x856   :  { %v7478_v10 = vmul.f32 %v19624_v13, %v14798_v21  ;;  %v2844_v50 = vrot.slane %v19625_v14, %v14776_v58  ;;  %v2825_v28 = vsel %vm2184_vm11, %v2824_v26, %v2820_v7  ;;  %v2932_v23 = vrot.slane %v19626_v48, %v14638_v59  ;;  %19628 = vst [vmem:[#allocation128_spill] sm:$0xff] %v15396_v30  ;;  %v19629_v43 = vld [vmem:[#allocation169_spill] sm:$0xff]  ;;  %v15402_v47 = vpop.permute.xlu0 %8095  ;;  %v19632_v26 = vld [vmem:[#allocation82_spill] sm:$0xff]  ;;  %v19633_v30 = vld [vmem:[#allocation179_spill] sm:$0xff] }
 0x857   :  { %v7492_v32 = vmul.f32 %v19627_v16, %v14798_v21  ;;  %v2830_v45 = vsel %vm2191_vm12, %v2829_v36, %v2825_v28  ;;  %v2839_v33 = vrot.slane %v19629_v43, %v14771_v27  ;;  %v2884_v13 = vsel %vm2156_vm7, %v2883_v46, %v2879_v5  ;;  %19630 = vst [vmem:[#allocation142_spill] sm:$0xff] %v15402_v47  ;;  %v19631_v14 = vld [vmem:[#allocation9_spill] sm:$0xff]  ;;  %v19635_v28 = vld [vmem:[#allocation200_spill] sm:$0xff]  ;;  %v19641_v47 = vld [vmem:[#allocation190_spill] sm:$0xff] }
 0x858   :  { %8263 = vperm.xlu1 %11070, %v7478_v10   ;;  %v2893_v48 = vrot.slane %v19632_v26, %v14735_v8  ;;  %v2889_v16 = vsel %vm2163_vm8, %v2888_v44, %v2884_v13  ;;  %v2898_v22 = vrot.slane %v19633_v30, %v14741_v53  ;;  %v2933_v36 = vsel %vm2114_vm1, %v2932_v23, %v2928_v17  ;;  %v19634_v10 = vld [vmem:[#allocation189_spill] sm:$0xff]  ;;  %v19636_v7 = vld [vmem:[#allocation572_spill] sm:$0xff]  ;;  %v19638_v17 = vld [vmem:[#allocation202_spill] sm:$0xff] }
 0x859   :  { %8305 = vperm.xlu0 %11071, %v7492_v32   ;;  %v2938_v5 = vsel %vm2121_vm2, %v2937_v49, %v2933_v36  ;;  %v2947_v46 = vrot.slane %v19634_v10, %v14677_v57  ;;  %v3007_v43 = vrot.slane %v19635_v28, %v14649_v52  ;;  %v7508_v26 = vmul.f32 %v19636_v7, %v14798_v21  ;;  %v19637_v13 = vld [vmem:[#allocation176_spill] sm:$0xff]  ;;  %v19639_v32 = vld [vmem:[#allocation586_spill] sm:$0xff]  ;;  %v15426_v36 = vpop.permute.xlu1 %8134 }
 0x85a   :  { %v2835_v44 = vsel %vm2198_vm13, %v2834_v2, %v2830_v45  ;;  %v2942_v30 = vrot.slane %v19637_v13, %v14671_v15  ;;  %v3016_v23 = vrot.slane %v19638_v17, %v14659_v54  ;;  %v7522_v49 = vmul.f32 %v19639_v32, %v14798_v21  ;;  %19640 = vst [vmem:[#allocation534_spill] sm:$0xff] %v15426_v36  ;;  %v15434_v45 = vpop.permute.xlu0 %8101  ;;  %v19644_v13 = vld [vmem:[#allocation83_spill] sm:$0xff]  ;;  %v19645_v36 = vld [vmem:[#allocation181_spill] sm:$0xff] }
 0x85b   :  { %v2840_v10 = vsel %vm2205_vm14, %v2839_v33, %v2835_v44  ;;  %v2894_v28 = vsel %vm2170_vm9, %v2893_v48, %v2889_v16  ;;  %v3011_v7 = vrot.slane %v19641_v47, %v14638_v59  ;;  %19643 = vst [vmem:[#allocation129_spill] sm:$0xff] %v15434_v45  ;;  %v2903_v17 = vrot.slane %v19644_v13, %v14756_v18  ;;  %v19646_v47 = vld [vmem:[#allocation191_spill] sm:$0xff]  ;;  %v19648_v13 = vld [vmem:[#allocation178_spill] sm:$0xff] }
 0x85c   :  { %8353 = vperm.xlu1 %11070, %v7508_v26   ;;  %v2899_v32 = vsel %vm2177_vm10, %v2898_v22, %v2894_v28  ;;  %v2908_v4 = vrot.slane %v19645_v36, %v14765_v61  ;;  %v2943_v33 = vsel %vm2128_vm3, %v2942_v30, %v2938_v5  ;;  %v2957_v16 = vrot.slane %v19646_v47, %v14697_v19  ;;  %v19647_v44 = vld [vmem:[#allocation531_spill] sm:$0xff]  ;;  %v19650_v5 = vld [vmem:[#allocation545_spill] sm:$0xff]  ;;  %v19653_v47 = vld [vmem:[#allocation192_spill] sm:$0xff] }
 0x85d   :  { %8395 = vperm.xlu0 %11071, %v7522_v49   ;;  %v2948_v48 = vsel %vm2135_vm4, %v2947_v46, %v2943_v33  ;;  %v3012_v26 = vsel %vm2114_vm1, %v3011_v7, %v3007_v43  ;;  %v7479_v2 = vmul.f32 %v19647_v44, %v14798_v21  ;;  %v2952_v45 = vrot.slane %v19648_v13, %v14706_v6  ;;  %v19649_v36 = vld [vmem:[#allocation203_spill] sm:$0xff]  ;;  %v15455_v46 = vpop.permute.xlu1 %8140  ;;  %v19652_v43 = vld [vmem:[#allocation85_spill] sm:$0xff] }
 0x85e   :  { %v3017_v22 = vsel %vm2121_vm2, %v3016_v23, %v3012_v26  ;;  %v3026_v28 = vrot.slane %v19649_v36, %v14677_v57  ;;  %v7493_v30 = vmul.f32 %v19650_v5, %v14798_v21  ;;  %19651 = vst [vmem:[#allocation24_spill] sm:$0xff] %v15455_v46  ;;  %v2845_v49 = vsel %vm2212_vm15, %v2844_v50, %v2840_v10  ;;  %v15463_v23 = vpop.permute.xlu0 %8107  ;;  %v19655_v26 = vld [vmem:[#allocation180_spill] sm:$0xff]  ;;  %v19656_v5 = vld [vmem:[#allocation183_spill] sm:$0xff] }
 0x85f   :  { %v2913_v7 = vrot.slane %v19652_v43, %v14768_v38  ;;  %v2904_v33 = vsel %vm2184_vm11, %v2903_v17, %v2899_v32  ;;  %v3021_v44 = vrot.slane %v19653_v47, %v14671_v15  ;;  %19654 = vst [vmem:[#allocation11_spill] sm:$0xff] %v15463_v23  ;;  %v2962_v13 = vrot.slane %v19655_v26, %v14713_v0  ;;  %v19657_v17 = vld [vmem:[#allocation193_spill] sm:$0xff] }
 0x860   :  { %8266 = vperm.xlu1 %11070, %v7479_v2   ;;  %v2909_v36 = vsel %vm2191_vm12, %v2908_v4, %v2904_v33  ;;  %v2918_v46 = vrot.slane %v19656_v5, %v14771_v27  ;;  %v2953_v50 = vsel %vm2142_vm5, %v2952_v45, %v2948_v48  ;;  %v2967_v32 = vrot.slane %v19657_v17, %v14716_v41  ;;  %v19658_v43 = vld [vmem:[#allocation561_spill] sm:$0xff]  ;;  %v19659_v4 = vld [vmem:[#allocation204_spill] sm:$0xff]  ;;  %v19660_v5 = vld [vmem:[#allocation214_spill] sm:$0xff] }
 0x861   :  { %8308 = vperm.xlu0 %11071, %v7493_v30   ;;  %v2958_v10 = vsel %vm2149_vm6, %v2957_v16, %v2953_v50  ;;  %v3022_v2 = vsel %vm2128_vm3, %v3021_v44, %v3017_v22  ;;  %v7509_v47 = vmul.f32 %v19658_v43, %v14798_v21  ;;  %v3036_v33 = vrot.slane %v19659_v4, %v14697_v19  ;;  %v19661_v45 = vld [vmem:[#allocation575_spill] sm:$0xff]  ;;  %v15484_v16 = vpop.permute.xlu1 %8146  ;;  %v19663_v22 = vld [vmem:[#allocation194_spill] sm:$0xff]  ;;  %v19664_v50 = vld [vmem:[#allocation216_spill] sm:$0xff] }
 0x862   :  { %v3027_v26 = vsel %vm2135_vm4, %v3026_v28, %v3022_v2  ;;  %v3086_v23 = vrot.slane %v19660_v5, %v14649_v52  ;;  %v7523_v48 = vmul.f32 %v19661_v45, %v14798_v21  ;;  %19662 = vst [vmem:[#allocation143_spill] sm:$0xff] %v15484_v16  ;;  %v2914_v30 = vsel %vm2198_vm13, %v2913_v7, %v2909_v36  ;;  %v15491_v28 = vpop.permute.xlu0 %8113  ;;  %v19666_v43 = vld [vmem:[#allocation182_spill] sm:$0xff]  ;;  %v19667_v7 = vld [vmem:[#allocation93_spill] sm:$0xff] }
 0x863   :  { %v3031_v44 = vrot.slane %v19663_v22, %v14706_v6  ;;  %v3095_v17 = vrot.slane %v19664_v50, %v14659_v54  ;;  %19665 = vst [vmem:[#allocation155_spill] sm:$0xff] %v15491_v28  ;;  %v3400_v2 = vsel %vm3399_vm0, %v2845_v49, %v14887_v11  ;;  %v2972_v4 = vrot.slane %v19666_v43, %v14735_v8  ;;  %v19669_v11 = vld [vmem:[#allocation544_spill] sm:$0xff] }
 0x864   :  { %8356 = vperm.xlu1 %11070, %v7509_v47   ;;  %v2919_v5 = vsel %vm2205_vm14, %v2918_v46, %v2914_v30  ;;  %v2963_v45 = vsel %vm2156_vm7, %v2962_v13, %v2958_v10  ;;  %v3090_v36 = vrot.slane %v19667_v7, %v14638_v59  ;;  %v19668_v47 = vld [vmem:[#allocation195_spill] sm:$0xff]  ;;  %v7480_v49 = vmul.f32 %v19669_v11, %v14798_v21  ;;  %v19670_v46 = vld [vmem:[#allocation206_spill] sm:$0xff] }
 0x865   :  { %8398 = vperm.xlu0 %11071, %v7523_v48   ;;  %v2968_v22 = vsel %vm2163_vm8, %v2967_v32, %v2963_v45  ;;  %v2977_v50 = vrot.slane %v19668_v47, %v14741_v53  ;;  %v3032_v16 = vsel %vm2142_vm5, %v3031_v44, %v3027_v26  ;;  %v3046_v30 = vrot.slane %v19670_v46, %v14716_v41  ;;  %v19671_v10 = vld [vmem:[#allocation558_spill] sm:$0xff]  ;;  %v15513_v7 = vpop.permute.xlu1 %8152  ;;  %v11072_v32 = vld [vmem:[#allocation2 + $0x74] ss:$8 sps:$4 sm:$0xff]   ;;  %v11074_v45 = vld [vmem:[#allocation2 + $0x70] ss:$8 sps:$4 sm:$0xff]  }
 0x866   :  { %v3037_v43 = vsel %vm2149_vm6, %v3036_v33, %v3032_v16  ;;  %v3091_v13 = vsel %vm2114_vm1, %v3090_v36, %v3086_v23  ;;  %v7494_v48 = vmul.f32 %v19671_v10, %v14798_v21  ;;  %19672 = vst [vmem:[#allocation130_spill] sm:$0xff] %v15513_v7  ;;  %v19673_v47 = vld [vmem:[#allocation172_spill] sm:$0xff]  ;;  %v19675_v16 = vld [vmem:[#allocation218_spill] sm:$0xff]  ;;  %v15522_v23 = vpop.permute.xlu0 %8119  ;;  %v2973_v36 = vsel %vm2170_vm9, %v2972_v4, %v2968_v22  ;;  %v19677_v10 = vld [vmem:[#allocation205_spill] sm:$0xff] }
 0x867   :  { %v2923_v26 = vrot.slane %v19673_v47, %v14776_v58  ;;  %v19674_v44 = vld [vmem:[#allocation196_spill] sm:$0xff]  ;;  %v3096_v33 = vsel %vm2121_vm2, %v3095_v17, %v3091_v13  ;;  %v3105_v46 = vrot.slane %v19675_v16, %v14677_v57  ;;  %19676 = vst [vmem:[#allocation144_spill] sm:$0xff] %v15522_v23  ;;  %v3100_v7 = vrot.slane %v19677_v10, %v14671_v15 }
 0x868   :  { %v3041_v11 = vrot.slane %v19674_v44, %v14713_v0  ;;  %8269 = vperm.xlu1 %11070, %v7480_v49   ;;  %10698 = vmatprep.subr.bf16.mxu0 %v11072_v32  ;;  %v19678_v47 = vrot.slane %v15209_v1, %v19566_v40  ;;  %v2978_v17 = vsel %vm2177_vm10, %v2977_v50, %v2973_v36  ;;  %v19679_v49 = vld [vmem:[#allocation574_spill] sm:$0xff] }
 0x869   :  { %8311 = vperm.xlu0 %11071, %v7494_v48   ;;  %v7510_v44 = vmul.f32 %v19679_v49, %v14798_v21  ;;  %10699 = vmatpush1.bf16.msra.mxu0 %v11074_v45  ;;  %v2924_v4 = vsel %vm2212_vm15, %v2923_v26, %v2919_v5  ;;  %v19680_v48 = vld [vmem:[#allocation208_spill] sm:$0xff]  ;;  %v3101_v16 = vsel %vm2128_vm3, %v3100_v7, %v3096_v33  ;;  %v11075_v50 = vld [vmem:[#allocation2 + $0x64] ss:$8 sps:$4 sm:$0xff]  }
 0x86a   :  { %v15530_v28 = vadd.f32 %v3400_v2, %v19678_v47  ;;  %v3042_v13 = vsel %vm2156_vm7, %v3041_v11, %v3037_v43  ;;  %v3056_v32 = vrot.slane %v19680_v48, %v14741_v53  ;;  %v19681_v2 = vld [vmem:[#allocation588_spill] sm:$0xff]  ;;  %v15543_v47 = vpop.permute.xlu1 %8158  ;;  %v11077_v43 = vld [vmem:[#allocation2 + $0x60] ss:$8 sps:$4 sm:$0xff]   ;;  %v15552_v7 = vpop.permute.xlu0 %8125  ;;  %v19688_v48 = vld [vmem:[#allocation207_spill] sm:$0xff]  ;;  %10700 = vmatprep.subr.bf16.mxu0 %v11075_v50 }
 0x86b   :  { %v3047_v22 = vsel %vm2163_vm8, %v3046_v30, %v3042_v13  ;;  %v7524_v10 = vmul.f32 %v19681_v2, %v14798_v21  ;;  %19682 = vst [vmem:[#allocation552_spill] sm:$0xff] %v15543_v47  ;;  %v19683_v11 = vld [vmem:[#allocation184_spill] sm:$0xff]  ;;  %v19684_v45 = vld [vmem:[#allocation198_spill] sm:$0xff]  ;;  %v3106_v30 = vsel %vm2135_vm4, %v3105_v46, %v3101_v16  ;;  %19686 = vst [vmem:[#allocation13_spill] sm:$0xff] %v15552_v7 }
 0x86c   :  { %v2982_v36 = vrot.slane %v19683_v11, %v14756_v18  ;;  %v3051_v5 = vrot.slane %v19684_v45, %v14735_v8  ;;  %v19685_v26 = vld [vmem:[#allocation220_spill] sm:$0xff]  ;;  %8359 = vperm.xlu1 %11070, %v7510_v44   ;;  %v19687_v33 = vld [vmem:[#allocation197_spill] sm:$0xff]  ;;  %v3110_v2 = vrot.slane %v19688_v48, %v14706_v6  ;;  %v15560_v11 = vsel %vm3399_vm0, %v2924_v4, %v15095_v37  ;;  %v19689_v46 = vld [vmem:[#allocation186_spill] sm:$0xff] }
 0x86d   :  { %v3115_v13 = vrot.slane %v19685_v26, %v14697_v19  ;;  %v2987_v49 = vrot.slane %v19687_v33, %v14765_v61  ;;  %8401 = vperm.xlu0 %11071, %v7524_v10   ;;  %v2992_v16 = vrot.slane %v19689_v46, %v14768_v38  ;;  %v19690_v26 = vld [vmem:[#allocation533_spill] sm:$0xff]  ;;  %10701 = vmatpush1.bf16.msra.mxu0 %v11077_v43  ;;  %v19691_v10 = vld [vmem:[#allocation210_spill] sm:$0xff]  ;;  %v19692_v37 = vld [vmem:[#allocation547_spill] sm:$0xff] }
 0x86e   :  { %v2983_v45 = vsel %vm2184_vm11, %v2982_v36, %v2978_v17  ;;  %v3052_v44 = vsel %vm2170_vm9, %v3051_v5, %v3047_v22  ;;  %v7481_v40 = vmul.f32 %v19690_v26, %v14798_v21  ;;  %v3066_v50 = vrot.slane %v19691_v10, %v14765_v61  ;;  %v15574_v47 = vpop.permute.xlu1 %8164  ;;  %v11078_v46 = vld [vmem:[#allocation2 + $0x54] ss:$8 sps:$4 sm:$0xff]   ;;  %v11080_v17 = vld [vmem:[#allocation2 + $0x50] ss:$8 sps:$4 sm:$0xff]   ;;  %v19695_v43 = vld [vmem:[#allocation222_spill] sm:$0xff] }
 0x86f   :  { %v3057_v33 = vsel %vm2177_vm10, %v3056_v32, %v3052_v44  ;;  %v3111_v48 = vsel %vm2142_vm5, %v3110_v2, %v3106_v30  ;;  %v7495_v4 = vmul.f32 %v19692_v37, %v14798_v21  ;;  %19693 = vst [vmem:[#allocation132_spill] sm:$0xff] %v15574_v47  ;;  %v19694_v22 = vld [vmem:[#allocation91_spill] sm:$0xff]  ;;  %v3125_v32 = vrot.slane %v19695_v43, %v14716_v41  ;;  %v19696_v44 = vld [vmem:[#allocation230_spill] sm:$0xff]  ;;  %v15583_v30 = vpop.permute.xlu0 %8131  ;;  %v19698_v10 = vld [vmem:[#allocation209_spill] sm:$0xff] }
 0x870   :  { %v3061_v36 = vrot.slane %v19694_v22, %v14756_v18  ;;  %v3116_v5 = vsel %vm2149_vm6, %v3115_v13, %v3111_v48  ;;  %v3165_v26 = vrot.slane %v19696_v44, %v14649_v52  ;;  %8272 = vperm.xlu1 %11070, %v7481_v40   ;;  %19697 = vst [vmem:[#allocation12_spill] sm:$0xff] %v15583_v30  ;;  %v19699_v47 = vld [vmem:[#allocation232_spill] sm:$0xff]  ;;  %v19700_v13 = vld [vmem:[#allocation199_spill] sm:$0xff] }
 0x871   :  { %v2988_v2 = vsel %vm2191_vm12, %v2987_v49, %v2983_v45  ;;  %v3120_v37 = vrot.slane %v19698_v10, %v14713_v0  ;;  %v3174_v7 = vrot.slane %v19699_v47, %v14659_v54  ;;  %8314 = vperm.xlu0 %11071, %v7495_v4   ;;  %10702 = vmatprep.subr.bf16.mxu0 %v11078_v46  ;;  %v19701_v43 = vld [vmem:[#allocation219_spill] sm:$0xff]  ;;  %v19703_v49 = vld [vmem:[#allocation201_spill] sm:$0xff] }
 0x872   :  { %v2997_v48 = vrot.slane %v19700_v13, %v14771_v27  ;;  %v3062_v22 = vsel %vm2184_vm11, %v3061_v36, %v3057_v33  ;;  %v3169_v40 = vrot.slane %v19701_v43, %v14638_v59  ;;  %v19702_v44 = vld [vmem:[#allocation563_spill] sm:$0xff]  ;;  %10703 = vmatpush1.bf16.msra.mxu0 %v11080_v17  ;;  %v3071_v45 = vrot.slane %v19703_v49, %v14768_v38  ;;  %v19704_v4 = vld [vmem:[#allocation577_spill] sm:$0xff]  ;;  %v15603_v13 = vpop.permute.xlu1 %8170  ;;  %v19706_v43 = vld [vmem:[#allocation212_spill] sm:$0xff] }
 0x873   :  { %v7511_v30 = vmul.f32 %v19702_v44, %v14798_v21  ;;  %v3067_v10 = vsel %vm2191_vm12, %v3066_v50, %v3062_v22  ;;  %v3121_v47 = vsel %vm2156_vm7, %v3120_v37, %v3116_v5  ;;  %v7525_v46 = vmul.f32 %v19704_v4, %v14798_v21  ;;  %19705 = vst [vmem:[#allocation156_spill] sm:$0xff] %v15603_v13  ;;  %v11081_v33 = vld [vmem:[#allocation2 + $0x44] ss:$8 sps:$4 sm:$0xff]   ;;  %v11083_v36 = vld [vmem:[#allocation2 + $0x40] ss:$8 sps:$4 sm:$0xff]   ;;  %v19707_v17 = vld [vmem:[#allocation224_spill] sm:$0xff]  ;;  %v15611_v50 = vpop.permute.xlu0 %8137 }
 0x874   :  { %v3076_v23 = vrot.slane %v19706_v43, %v14771_v27  ;;  %v3126_v44 = vsel %vm2163_vm8, %v3125_v32, %v3121_v47  ;;  %v3135_v24 = vrot.slane %v19707_v17, %v14741_v53  ;;  %v3170_v49 = vsel %vm2114_vm1, %v3169_v40, %v3165_v26  ;;  %19708 = vst [vmem:[#allocation21_spill] sm:$0xff] %v15611_v50  ;;  %v19709_v5 = vld [vmem:[#allocation211_spill] sm:$0xff]  ;;  %v19710_v4 = vld [vmem:[#allocation234_spill] sm:$0xff]  ;;  %v19711_v32 = vld [vmem:[#allocation188_spill] sm:$0xff] }
 0x875   :  { %8362 = vperm.xlu1 %11070, %v7511_v30   ;;  %v3130_v37 = vrot.slane %v19709_v5, %v14735_v8  ;;  %v3175_v22 = vsel %vm2121_vm2, %v3174_v7, %v3170_v49  ;;  %v3184_v13 = vrot.slane %v19710_v4, %v14677_v57  ;;  %8404 = vperm.xlu0 %11071, %v7525_v46   ;;  %v19712_v26 = vld [vmem:[#allocation221_spill] sm:$0xff]  ;;  %v19713_v40 = vld [vmem:[#allocation546_spill] sm:$0xff]  ;;  %v19714_v46 = vld [vmem:[#allocation560_spill] sm:$0xff] }
 0x876   :  { %10704 = vmatprep.subr.bf16.mxu0 %v11081_v33  ;;  %v3002_v47 = vrot.slane %v19711_v32, %v14776_v58  ;;  %v2993_v43 = vsel %vm2198_vm13, %v2992_v16, %v2988_v2  ;;  %v3179_v30 = vrot.slane %v19712_v26, %v14671_v15  ;;  %v7482_v17 = vmul.f32 %v19713_v40, %v14798_v21  ;;  %v15630_v4 = vpop.permute.xlu1 %8176  ;;  %v11084_v32 = vld [vmem:[#allocation2 + $0x174] ss:$8 sps:$4 sm:$0xff]   ;;  %v11088_v2 = vld [vmem:[#allocation2 + $0x170] ss:$8 sps:$4 sm:$0xff]  }
 0x877   :  { %10705 = vmatpush1.bf16.msra.mxu0 %v11083_v36  ;;  %v2998_v5 = vsel %vm2205_vm14, %v2997_v48, %v2993_v43  ;;  %v3072_v7 = vsel %vm2198_vm13, %v3071_v45, %v3067_v10  ;;  %v3131_v49 = vsel %vm2170_vm9, %v3130_v37, %v3126_v44  ;;  %v7496_v33 = vmul.f32 %v19714_v46, %v14798_v21  ;;  %v11086_v16 = vld [vmem:[#allocation2 + $0x34] ss:$8 sps:$4 sm:$0xff]   ;;  %v19716_v36 = vld [vmem:[#allocation226_spill] sm:$0xff]  ;;  %v15637_v45 = vpop.permute.xlu0 %8143  ;;  %v11089_v10 = vld [vmem:[#allocation2 + $0x30] ss:$8 sps:$4 sm:$0xff]  }
 0x878   :  { %19715 = vst [vmem:[#allocation146_spill] sm:$0xff] %v15630_v4  ;;  %v3077_v26 = vsel %vm2205_vm14, %v3076_v23, %v3072_v7  ;;  %v3136_v50 = vsel %vm2177_vm10, %v3135_v24, %v3131_v49  ;;  %v3145_v40 = vrot.slane %v19716_v36, %v14765_v61  ;;  %v3180_v48 = vsel %vm2128_vm3, %v3179_v30, %v3175_v22  ;;  %v19718_v44 = vld [vmem:[#allocation213_spill] sm:$0xff]  ;;  %v19719_v46 = vld [vmem:[#allocation236_spill] sm:$0xff]  ;;  %v19721_v7 = vld [vmem:[#allocation223_spill] sm:$0xff] }
 0x879   :  { %8275 = vperm.xlu1 %11070, %v7482_v17   ;;  %19717 = vst [vmem:[#allocation22_spill] sm:$0xff] %v15637_v45  ;;  %v3140_v37 = vrot.slane %v19718_v44, %v14756_v18  ;;  %v3185_v43 = vsel %vm2135_vm4, %v3184_v13, %v3180_v48  ;;  %v3194_v4 = vrot.slane %v19719_v46, %v14697_v19  ;;  %v19720_v24 = vld [vmem:[#allocation92_spill] sm:$0xff]  ;;  %v11092_v48 = vld [vmem:[#allocation2 + $0x24] ss:$8 sps:$4 sm:$0xff]   ;;  %v11094_v44 = vld [vmem:[#allocation2 + $0x160] ss:$8 sps:$4 sm:$0xff]  }
 0x87a   :  { %8317 = vperm.xlu0 %11071, %v7496_v33   ;;  %10739 = vmatprep.subr.bf16.mxu1 %v11084_v32  ;;  %v3081_v23 = vrot.slane %v19720_v24, %v14776_v58  ;;  %v3189_v22 = vrot.slane %v19721_v7, %v14706_v6  ;;  %v19722_v30 = vld [vmem:[#allocation576_spill] sm:$0xff]  ;;  %v3003_v49 = vsel %vm2212_vm15, %v3002_v47, %v2998_v5  ;;  %v15654_v33 = vpop.permute.xlu1 %8182  ;;  %v11090_v32 = vld [vmem:[#allocation2 + $0x164] ss:$8 sps:$4 sm:$0xff]  }
 0x87b   :  { %v7512_v17 = vmul.f32 %v19722_v30, %v14798_v21  ;;  %10706 = vmatprep.subr.bf16.mxu0 %v11086_v16  ;;  %10740 = vmatpush1.bf16.msra.mxu1 %v11088_v2  ;;  %v3141_v13 = vsel %vm2184_vm11, %v3140_v37, %v3136_v50  ;;  %v7526_v36 = vmul.f32 %v19340_v3, %v14798_v21  ;;  %v19725_v16 = vld [vmem:[#allocation215_spill] sm:$0xff]  ;;  %v15666_v3 = vpop.permute.xlu0 %8149  ;;  %v11095_v2 = vld [vmem:[#allocation2 + $0x20] ss:$8 sps:$4 sm:$0xff]   ;;  %v19727_v37 = vld [vmem:[#allocation228_spill] sm:$0xff] }
 0x87c   :  { %19723 = vst [vmem:[#allocation541_spill] sm:$0xff] %v15654_v33  ;;  %10707 = vmatpush1.bf16.msra.mxu0 %v11089_v10  ;;  %v19724_v46 = vrot.slane %v15209_v1, %v19611_v42  ;;  %v3150_v47 = vrot.slane %v19725_v16, %v14768_v38  ;;  %v3146_v50 = vsel %vm2191_vm12, %v3145_v40, %v3141_v13  ;;  %19726 = vst [vmem:[#allocation36_spill] sm:$0xff] %v15666_v3  ;;  %v19729_v40 = vld [vmem:[#allocation225_spill] sm:$0xff]  ;;  %v19775_v45 = vld [vmem:[#allocation352_spill] sm:$0xff] }
 0x87d   :  { %v3190_v5 = vsel %vm2142_vm5, %v3189_v22, %v3185_v43  ;;  %8365 = vperm.xlu1 %11070, %v7512_v17   ;;  %v3082_v10 = vsel %vm2212_vm15, %v3081_v23, %v3077_v26  ;;  %v3155_v7 = vrot.slane %v19727_v37, %v14771_v27  ;;  %10741 = vmatprep.subr.bf16.mxu1 %v11090_v32  ;;  %v19730_v43 = vld [vmem:[#allocation246_spill] sm:$0xff]  ;;  %v19731_v17 = vld [vmem:[#allocation535_spill] sm:$0xff]  ;;  %v19732_v26 = vld [vmem:[#allocation248_spill] sm:$0xff] }
 0x87e   :  { %v15660_v24 = vadd.f32 %v15560_v11, %v19724_v46  ;;  %v3195_v30 = vsel %vm2149_vm6, %v3194_v4, %v3190_v5  ;;  %v19728_v11 = vld [vmem:[#allocation238_spill] sm:$0xff]  ;;  %8407 = vperm.xlu0 %11071, %v7526_v36   ;;  %v3199_v13 = vrot.slane %v19729_v40, %v14713_v0  ;;  %v3244_v22 = vrot.slane %v19730_v43, %v14649_v52  ;;  %v19733_v4 = vld [vmem:[#allocation549_spill] sm:$0xff]  ;;  %v15684_v37 = vpop.permute.xlu1 %8188  ;;  %v11096_v36 = vld [vmem:[#allocation2 + $0x154] ss:$8 sps:$4 sm:$0xff]  }
 0x87f   :  { %v3204_v46 = vrot.slane %v19728_v11, %v14716_v41  ;;  %v7483_v16 = vmul.f32 %v19731_v17, %v14798_v21  ;;  %10708 = vmatprep.subr.bf16.mxu0 %v11092_v48  ;;  %10742 = vmatpush1.bf16.msra.mxu1 %v11094_v44  ;;  %v3253_v23 = vrot.slane %v19732_v26, %v14659_v54  ;;  %v11098_v32 = vld [vmem:[#allocation2 + $0x14] ss:$8 sps:$4 sm:$0xff]   ;;  %v11100_v11 = vld [vmem:[#allocation2 + $0x150] ss:$8 sps:$4 sm:$0xff]   ;;  %v19738_v33 = vld [vmem:[#allocation217_spill] sm:$0xff] }
 0x880   :  { %v7497_v5 = vmul.f32 %v19733_v4, %v14798_v21  ;;  %19734 = vst [vmem:[#allocation16_spill] sm:$0xff] %v15684_v37  ;;  %10709 = vmatpush1.bf16.msra.mxu0 %v11095_v2  ;;  %v3402_v40 = vsel %vm3399_vm0, %v3003_v49, %v15082_v20  ;;  %v3151_v48 = vsel %vm2198_vm13, %v3150_v47, %v3146_v50  ;;  %v19736_v44 = vld [vmem:[#allocation235_spill] sm:$0xff]  ;;  %v15694_v4 = vpop.permute.xlu0 %8155  ;;  %v19739_v47 = vld [vmem:[#allocation240_spill] sm:$0xff] }
 0x881   :  { %v3248_v26 = vrot.slane %v19736_v44, %v14638_v59  ;;  %v3200_v42 = vsel %vm2156_vm7, %v3199_v13, %v3195_v30  ;;  %8278 = vperm.xlu1 %11070, %v7483_v16   ;;  %19737 = vst [vmem:[#allocation145_spill] sm:$0xff] %v15694_v4  ;;  %v11101_v2 = vld [vmem:[#allocation2 + $0x10] ss:$8 sps:$4 sm:$0xff]   ;;  %v3403_v37 = vsel %vm3399_vm0, %v3082_v10, %v15103_v12  ;;  %v19740_v13 = vld [vmem:[#allocation565_spill] sm:$0xff] }
 0x882   :  { %v3160_v20 = vrot.slane %v19738_v33, %v14776_v58  ;;  %v3156_v49 = vsel %vm2205_vm14, %v3155_v7, %v3151_v48  ;;  %v3205_v17 = vsel %vm2163_vm8, %v3204_v46, %v3200_v42  ;;  %8320 = vperm.xlu0 %11071, %v7497_v5   ;;  %10743 = vmatprep.subr.bf16.mxu1 %v11096_v36  ;;  %v19741_v12 = vld [vmem:[#allocation227_spill] sm:$0xff]  ;;  %v19742_v7 = vld [vmem:[#allocation250_spill] sm:$0xff]  ;;  %v15714_v36 = vpop.permute.xlu1 %8194 }
 0x883   :  { %v3214_v50 = vrot.slane %v19739_v47, %v14741_v53  ;;  %v3249_v30 = vsel %vm2114_vm1, %v3248_v26, %v3244_v22  ;;  %v7513_v16 = vmul.f32 %v19740_v13, %v14798_v21  ;;  %10710 = vmatprep.subr.bf16.mxu0 %v11098_v32  ;;  %10744 = vmatpush1.bf16.msra.mxu1 %v11100_v11  ;;  %v19743_v46 = vld [vmem:[#allocation579_spill] sm:$0xff]  ;;  %v11102_v22 = vld [vmem:[#allocation2 + $0x144] ss:$8 sps:$4 sm:$0xff]   ;;  %v11106_v44 = vld [vmem:[#allocation2 + $0x140] ss:$8 sps:$4 sm:$0xff]  }
 0x884   :  { %v3209_v10 = vrot.slane %v19741_v12, %v14735_v8  ;;  %v3254_v33 = vsel %vm2121_vm2, %v3253_v23, %v3249_v30  ;;  %v3263_v42 = vrot.slane %v19742_v7, %v14677_v57  ;;  %v7527_v5 = vmul.f32 %v19743_v46, %v14798_v21  ;;  %19744 = vst [vmem:[#allocation14_spill] sm:$0xff] %v15714_v36  ;;  %v11104_v48 = vld [vmem:[#allocation2 + $0x4] ss:$8 sps:$4 sm:$0xff]   ;;  %v15720_v23 = vpop.permute.xlu0 %8161  ;;  %v11107_v30 = vld [vmem:[#allocation2] ss:$8 sps:$4 sm:$0xff]  }
 0x885   :  { %10711 = vmatpush1.bf16.msra.mxu0 %v11101_v2  ;;  %v19745_v32 = vld [vmem:[#allocation237_spill] sm:$0xff]  ;;  %8368 = vperm.xlu1 %11070, %v7513_v16   ;;  %19747 = vst [vmem:[#allocation148_spill] sm:$0xff] %v15720_v23  ;;  %v19748_v13 = vrot.slane %v15209_v1, %v19631_v14  ;;  %v19749_v2 = vrot.slane %v15209_v1, %v19409_v31  ;;  %v19754_v31 = vld [vmem:[#allocation231_spill] sm:$0xff] }
 0x886   :  { %v3258_v11 = vrot.slane %v19745_v32, %v14671_v15  ;;  %v15733_v46 = vsel %vm2212_vm15, %v3160_v20, %v3156_v49  ;;  %v19752_v32 = vld [vmem:[#allocation229_spill] sm:$0xff]  ;;  %v3210_v16 = vsel %vm2170_vm9, %v3209_v10, %v3205_v17  ;;  %8410 = vperm.xlu0 %11071, %v7527_v5   ;;  %10745 = vmatprep.subr.bf16.mxu1 %v11102_v22  ;;  %v19755_v49 = vld [vmem:[#allocation252_spill] sm:$0xff]  ;;  %v19756_v17 = vld [vmem:[#allocation562_spill] sm:$0xff]  ;;  %v15749_v5 = vpop.permute.xlu1 %8200 }
 0x887   :  { %v15725_v12 = vadd.f32 %v3403_v37, %v19748_v13  ;;  %v15730_v7 = vadd.f32 %v3402_v40, %v19749_v2  ;;  %19751 = vst [vmem:[#allocation23_spill] sm:$0xff] %v15733_v46  ;;  %v3219_v47 = vrot.slane %v19752_v32, %v14756_v18  ;;  %v3215_v26 = vsel %vm2177_vm10, %v3214_v50, %v3210_v16  ;;  %v19753_v37 = vld [vmem:[#allocation548_spill] sm:$0xff] }
 0x888   :  { %v3259_v14 = vsel %vm2128_vm3, %v3258_v11, %v3254_v33  ;;  %v7484_v13 = vmul.f32 %v19753_v37, %v14798_v21  ;;  %10712 = vmatprep.subr.bf16.mxu0 %v11104_v48  ;;  %10746 = vmatpush1.bf16.msra.mxu1 %v11106_v44  ;;  %v3229_v40 = vrot.slane %v19754_v31, %v14768_v38  ;;  %v11108_v50 = vld [vmem:[#allocation2 + $0x134] ss:$8 sps:$4 sm:$0xff]   ;;  %v11112_v22 = vld [vmem:[#allocation2 + $0x130] ss:$8 sps:$4 sm:$0xff]   ;;  %v15759_v31 = vpop.permute.xlu0 %8167 }
 0x889   :  { %19750 = vst [vmem:[#allocation157_spill] sm:$0xff] %v15730_v7  ;;  %v3264_v20 = vsel %vm2135_vm4, %v3263_v42, %v3259_v14  ;;  %v3273_v2 = vrot.slane %v19755_v49, %v14697_v19  ;;  %v7498_v10 = vmul.f32 %v19756_v17, %v14798_v21  ;;  %19757 = vst [vmem:[#allocation571_spill] sm:$0xff] %v15749_v5  ;;  %10713 = vmatpush1.bf16.msra.mxu0 %v11107_v30  ;;  %v11110_v33 = vld [vmem:[#allocation2 + $0xf4] ss:$8 sps:$4 sm:$0xff]   ;;  %v19760_v42 = vld [vmem:[#allocation242_spill] sm:$0xff] }
 0x88a   :  { %v19759_v11 = vld [vmem:[#allocation239_spill] sm:$0xff]  ;;  %v3224_v16 = vrot.slane %v19760_v42, %v14765_v61  ;;  %v19761_v14 = vld [vmem:[#allocation262_spill] sm:$0xff]  ;;  %8281 = vperm.xlu1 %11070, %v7484_v13   ;;  %19762 = vst [vmem:[#allocation38_spill] sm:$0xff] %v15759_v31  ;;  %v19763_v30 = vld [vmem:[#allocation241_spill] sm:$0xff]  ;;  %v3220_v5 = vsel %vm2184_vm11, %v3219_v47, %v3215_v26  ;;  %10747 = vmatprep.subr.bf16.mxu1 %v11108_v50  ;;  %v15778_v4 = vpop.permute.xlu1 %8206 }
 0x88b   :  { %v3268_v32 = vrot.slane %v19759_v11, %v14706_v6  ;;  %v3323_v37 = vrot.slane %v19761_v14, %v14649_v52  ;;  %v11113_v49 = vld [vmem:[#allocation2 + $0xf0] ss:$8 sps:$4 sm:$0xff]   ;;  %v3278_v17 = vrot.slane %v19763_v30, %v14713_v0  ;;  %8323 = vperm.xlu0 %11071, %v7498_v10   ;;  %v19766_v13 = vld [vmem:[#allocation578_spill] sm:$0xff]  ;;  %10714 = vmatprep.subr.bf16.mxu0 %v11110_v33  ;;  %v19768_v47 = vld [vmem:[#allocation357_spill] sm:$0xff] }
 0x88c   :  { %v19764_v44 = vld [vmem:[#allocation264_spill] sm:$0xff]  ;;  %v19765_v11 = vld [vmem:[#allocation251_spill] sm:$0xff]  ;;  %v7514_v14 = vmul.f32 %v19766_v13, %v14798_v21  ;;  %10748 = vmatpush1.bf16.msra.mxu1 %v11112_v22  ;;  %v19767_v30 = vld [vmem:[#allocation254_spill] sm:$0xff]  ;;  %19770 = vst [vmem:[#allocation18_spill] sm:$0xff] %v15778_v4  ;;  %v3225_v33 = vsel %vm2191_vm12, %v3224_v16, %v3220_v5  ;;  %v5386_v5 = vrot.slane %v19775_v45, %v14638_v59 }
 0x88d   :  { %v3332_v36 = vrot.slane %v19764_v44, %v14659_v54  ;;  %v3327_v42 = vrot.slane %v19765_v11, %v14638_v59  ;;  %v3269_v23 = vsel %vm2142_vm5, %v3268_v32, %v3264_v20  ;;  %v3283_v26 = vrot.slane %v19767_v30, %v14716_v41  ;;  %v19769_v10 = vld [vmem:[#allocation592_spill] sm:$0xff]  ;;  %10715 = vmatpush2.bf16.msra.mxu0 %v11113_v49  ;;  %v11114_v20 = vld [vmem:[#allocation2 + $0x124] ss:$8 sps:$4 sm:$0xff]   ;;  %v11118_v11 = vld [vmem:[#allocation2 + $0x120] ss:$8 sps:$4 sm:$0xff]  }
 0x88e   :  { %v3274_v31 = vsel %vm2149_vm6, %v3273_v2, %v3269_v23  ;;  %v5382_v44 = vrot.slane %v19768_v47, %v14649_v52  ;;  %v7528_v50 = vmul.f32 %v19769_v10, %v14798_v21  ;;  %v11116_v32 = vld [vmem:[#allocation2 + $0xe4] ss:$8 sps:$4 sm:$0xff]   ;;  %v19771_v22 = vld [vmem:[#allocation243_spill] sm:$0xff]  ;;  %8371 = vperm.xlu1 %11070, %v7514_v14   ;;  %v15786_v47 = vpop.permute.xlu0 %8173  ;;  %v11119_v10 = vld [vmem:[#allocation2 + $0xe0] ss:$8 sps:$4 sm:$0xff]   ;;  %10749 = vmatprep.subr.bf16.mxu1 %v11114_v20  ;;  %v15803_v20 = vpop.permute.xlu1 %8212 }
 0x88f   :  { %v3288_v23 = vrot.slane %v19771_v22, %v14735_v8  ;;  %v3328_v2 = vsel %vm2114_vm1, %v3327_v42, %v3323_v37  ;;  %v19772_v13 = vld [vmem:[#allocation358_spill] sm:$0xff]  ;;  %19773 = vst [vmem:[#allocation134_spill] sm:$0xff] %v15786_v47  ;;  %v19776_v16 = vld [vmem:[#allocation253_spill] sm:$0xff]  ;;  %v3279_v42 = vsel %vm2156_vm7, %v3278_v17, %v3274_v31  ;;  %10716 = vmatprep.subr.bf16.mxu0 %v11116_v32  ;;  %v19778_v45 = vld [vmem:[#allocation551_spill] sm:$0xff] }
 0x890   :  { %v5391_v30 = vrot.slane %v19772_v13, %v14659_v54  ;;  %v3333_v4 = vsel %vm2121_vm2, %v3332_v36, %v3328_v2  ;;  %v19774_v49 = vld [vmem:[#allocation266_spill] sm:$0xff]  ;;  %8413 = vperm.xlu0 %11071, %v7528_v50   ;;  %v3337_v37 = vrot.slane %v19776_v16, %v14671_v15  ;;  %v19777_v14 = vld [vmem:[#allocation537_spill] sm:$0xff]  ;;  %10750 = vmatpush1.bf16.msra.mxu1 %v11118_v11  ;;  %v11122_v16 = vld [vmem:[#allocation2 + $0xd4] ss:$8 sps:$4 sm:$0xff]  }
 0x891   :  { %v3342_v3 = vrot.slane %v19774_v49, %v14677_v57  ;;  %v7485_v22 = vmul.f32 %v19777_v14, %v14798_v21  ;;  %v3230_v36 = vsel %vm2198_vm13, %v3229_v40, %v3225_v33  ;;  %v3284_v2 = vsel %vm2163_vm8, %v3283_v26, %v3279_v42  ;;  %19779 = vst [vmem:[#allocation17_spill] sm:$0xff] %v15803_v20  ;;  %v11120_v49 = vld [vmem:[#allocation2 + $0x114] ss:$8 sps:$4 sm:$0xff]   ;;  %v11124_v31 = vld [vmem:[#allocation2 + $0x110] ss:$8 sps:$4 sm:$0xff]  }
 0x892   :  { %v5387_v13 = vsel %vm2114_vm1, %v5386_v5, %v5382_v44  ;;  %v7499_v50 = vmul.f32 %v19778_v45, %v14798_v21  ;;  %10717 = vmatpush2.bf16.msra.mxu0 %v11119_v10  ;;  %v19780_v17 = vld [vmem:[#allocation256_spill] sm:$0xff]  ;;  %v3338_v32 = vsel %vm2128_vm3, %v3337_v37, %v3333_v4  ;;  %v15811_v44 = vpop.permute.xlu0 %8179  ;;  %v19784_v45 = vld [vmem:[#allocation353_spill] sm:$0xff]  ;;  %10751 = vmatprep.subr.bf16.mxu1 %v11120_v49  ;;  %v19786_v37 = vld [vmem:[#allocation255_spill] sm:$0xff] }
 0x893   :  { %v3293_v14 = vrot.slane %v19780_v17, %v14741_v53  ;;  %v5392_v40 = vsel %vm2121_vm2, %v5391_v30, %v5387_v13  ;;  %v19781_v26 = vld [vmem:[#allocation360_spill] sm:$0xff]  ;;  %8284 = vperm.xlu1 %11070, %v7485_v22   ;;  %19782 = vst [vmem:[#allocation150_spill] sm:$0xff] %v15811_v44  ;;  %v3343_v5 = vsel %vm2135_vm4, %v3342_v3, %v3338_v32  ;;  %v19787_v3 = vld [vmem:[#allocation245_spill] sm:$0xff]  ;;  %v19892_v48 = vld [vmem:[#allocation635_spill] sm:$0xff] }
 0x894   :  { %v5401_v11 = vrot.slane %v19781_v26, %v14677_v57  ;;  %v11125_v33 = vld [vmem:[#allocation2 + $0xd0] ss:$8 sps:$4 sm:$0xff]   ;;  %v5396_v20 = vrot.slane %v19784_v45, %v14671_v15  ;;  %8326 = vperm.xlu0 %11071, %v7499_v50   ;;  %v3347_v13 = vrot.slane %v19786_v37, %v14706_v6  ;;  %v7532_v22 = vmul.f32 %v14265_v63, %v14798_v21  ;;  %v19788_v50 = vld [vmem:[#allocation581_spill] sm:$0xff] }
 0x895   :  { %v19783_v10 = vld [vmem:[#allocation268_spill] sm:$0xff]  ;;  %10718 = vmatprep.subr.bf16.mxu0 %v11122_v16  ;;  %10752 = vmatpush1.bf16.msra.mxu1 %v11124_v31  ;;  %v3298_v17 = vrot.slane %v19787_v3, %v14756_v18  ;;  %v3289_v32 = vsel %vm2170_vm9, %v3288_v23, %v3284_v2  ;;  %v7529_v49 = vmul.f32 %v19788_v50, %v14798_v21  ;;  %v11126_v45 = vld [vmem:[#allocation2 + $0x104] ss:$8 sps:$4 sm:$0xff]   ;;  %v11130_v37 = vld [vmem:[#allocation2 + $0x100] ss:$8 sps:$4 sm:$0xff]  }
 0x896   :  { %v3352_v42 = vrot.slane %v19783_v10, %v14697_v19  ;;  %v19785_v4 = vld [vmem:[#allocation244_spill] sm:$0xff]  ;;  %v5397_v26 = vsel %vm2128_vm3, %v5396_v20, %v5392_v40  ;;  %v15830_v10 = vpop.permute.xlu1 %8218  ;;  %10719 = vmatpush2.bf16.msra.mxu0 %v11125_v33  ;;  %v3294_v63 = vsel %vm2177_vm10, %v3293_v14, %v3289_v32  ;;  %v3348_v16 = vsel %vm2142_vm5, %v3347_v13, %v3343_v5  ;;  %v19790_v3 = vld [vmem:[#allocation362_spill] sm:$0xff]  ;;  %v15837_v2 = vpop.permute.xlu0 %8185  ;;  %v19796_v13 = vld [vmem:[#allocation585_spill] sm:$0xff] }
 0x897   :  { %v3234_v30 = vrot.slane %v19785_v4, %v14771_v27  ;;  %19789 = vst [vmem:[#allocation40_spill] sm:$0xff] %v15830_v10  ;;  %v11128_v4 = vld [vmem:[#allocation2 + $0xc4] ss:$8 sps:$4 sm:$0xff]   ;;  %v5402_v31 = vsel %vm2135_vm4, %v5401_v11, %v5397_v26  ;;  %v5411_v23 = vrot.slane %v19790_v3, %v14697_v19  ;;  %8425 = vperm.xlu1 %11070, %v7532_v22   ;;  %19791 = vst [vmem:[#allocation26_spill] sm:$0xff] %v15837_v2  ;;  %v11131_v20 = vld [vmem:[#allocation2 + $0xc0] ss:$8 sps:$4 sm:$0xff]  }
 0x898   :  { %v3353_v40 = vsel %vm2149_vm6, %v3352_v42, %v3348_v16  ;;  %v19792_v33 = vld [vmem:[#allocation270_spill] sm:$0xff]  ;;  %8416 = vperm.xlu0 %11071, %v7529_v49   ;;  %10753 = vmatprep.subr.bf16.mxu1 %v11126_v45  ;;  %v19795_v11 = vld [vmem:[#allocation257_spill] sm:$0xff]  ;;  %v7533_v22 = vmul.f32 %v19796_v13, %v14798_v21  ;;  %v3299_v42 = vsel %vm2184_vm11, %v3298_v17, %v3294_v63  ;;  %v19798_v49 = vld [vmem:[#allocation564_spill] sm:$0xff] }
 0x899   :  { %v3362_v50 = vrot.slane %v19792_v33, %v14716_v41  ;;  %v19793_v10 = vld [vmem:[#allocation354_spill] sm:$0xff]  ;;  %v15845_v14 = vsel %vm2205_vm14, %v3234_v30, %v3230_v36  ;;  %v3357_v5 = vrot.slane %v19795_v11, %v14713_v0  ;;  %10720 = vmatprep.subr.bf16.mxu0 %v11128_v4  ;;  %10754 = vmatpush1.bf16.msra.mxu1 %v11130_v37  ;;  %v11132_v30 = vld [vmem:[#allocation2 + $0x1f4] ss:$8 sps:$4 sm:$0xff]   ;;  %v11136_v3 = vld [vmem:[#allocation2 + $0x1f0] ss:$8 sps:$4 sm:$0xff]  }
 0x89a   :  { %v5406_v44 = vrot.slane %v19793_v10, %v14706_v6  ;;  %19794 = vst [vmem:[#allocation554_spill] sm:$0xff] %v15845_v14  ;;  %v19797_v32 = vld [vmem:[#allocation258_spill] sm:$0xff]  ;;  %v7500_v45 = vmul.f32 %v19798_v49, %v14798_v21  ;;  %v15857_v36 = vpop.permute.xlu1 %8287  ;;  %10721 = vmatpush2.bf16.msra.mxu0 %v11131_v20  ;;  %v11134_v16 = vld [vmem:[#allocation2 + $0xb4] ss:$8 sps:$4 sm:$0xff]   ;;  %10755 = vmatprep.subr.bf16.mxu1 %v11132_v30 }
 0x89b   :  { %v3303_v26 = vrot.slane %v19797_v32, %v14765_v61  ;;  %v3358_v33 = vsel %vm2156_vm7, %v3357_v5, %v3353_v40  ;;  %v19799_v17 = vld [vmem:[#allocation364_spill] sm:$0xff]  ;;  %8428 = vperm.xlu1 %11070, %v7533_v22   ;;  %v19802_v20 = vld [vmem:[#allocation355_spill] sm:$0xff]  ;;  %v19803_v49 = vld [vmem:[#allocation374_spill] sm:$0xff]  ;;  %v7550_v22 = vmul.f32 %v14335_v39, %v14798_v21  ;;  %10722 = vmatprep.subr.bf16.mxu0 %v11134_v16 }
 0x89c   :  { %v5407_v10 = vsel %vm2142_vm5, %v5406_v44, %v5402_v31  ;;  %v5421_v37 = vrot.slane %v19799_v17, %v14716_v41  ;;  %v19800_v63 = vld [vmem:[#allocation372_spill] sm:$0xff]  ;;  %v15865_v44 = vpop.permute.xlu0 %8191  ;;  %v3363_v13 = vsel %vm2163_vm8, %v3362_v50, %v3358_v33  ;;  %v5416_v32 = vrot.slane %v19802_v20, %v14713_v0  ;;  %8329 = vperm.xlu0 %11071, %v7500_v45  }
 0x89d   :  { %v5412_v4 = vsel %vm2149_vm6, %v5411_v23, %v5407_v10  ;;  %v5461_v11 = vrot.slane %v19800_v63, %v14649_v52  ;;  %19801 = vst [vmem:[#allocation19_spill] sm:$0xff] %v15865_v44  ;;  %v11137_v31 = vld [vmem:[#allocation2 + $0xb0] ss:$8 sps:$4 sm:$0xff]   ;;  %v5470_v40 = vrot.slane %v19803_v49, %v14659_v54  ;;  %v19805_v10 = vld [vmem:[#allocation361_spill] sm:$0xff]  ;;  %10756 = vmatpush2.bf16.msra.mxu1 %v11136_v3 }
 0x89e   :  { %v19804_v23 = vld [vmem:[#allocation259_spill] sm:$0xff]  ;;  %v5465_v17 = vrot.slane %v19805_v10, %v14638_v59  ;;  %v15881_v63 = vsel %vm2191_vm12, %v3303_v26, %v3299_v42  ;;  %v5417_v45 = vsel %vm2156_vm7, %v5416_v32, %v5412_v4  ;;  %v7530_v30 = vmul.f32 %v14259_v35, %v14798_v21  ;;  %v15886_v20 = vpop.permute.xlu1 %8239  ;;  %10723 = vmatpush2.bf16.msra.mxu0 %v11137_v31  ;;  %v11138_v49 = vld [vmem:[#allocation2 + $0x1e4] ss:$8 sps:$4 sm:$0xff]   ;;  %v11142_v10 = vld [vmem:[#allocation2 + $0x1e0] ss:$8 sps:$4 sm:$0xff]  }
 0x89f   :  { %v3367_v5 = vrot.slane %v19804_v23, %v14735_v8  ;;  %19807 = vst [vmem:[#allocation35_spill] sm:$0xff] %v15881_v63  ;;  %v11140_v23 = vld [vmem:[#allocation2 + $0xa4] ss:$8 sps:$4 sm:$0xff]   ;;  %v19808_v16 = vld [vmem:[#allocation356_spill] sm:$0xff]  ;;  %v5422_v42 = vsel %vm2163_vm8, %v5421_v37, %v5417_v45  ;;  %8479 = vperm.xlu1 %11070, %v7550_v22   ;;  %v11143_v35 = vld [vmem:[#allocation2 + $0xa0] ss:$8 sps:$4 sm:$0xff]   ;;  %10757 = vmatprep.subr.bf16.mxu1 %v11138_v49 }
 0x8a0   :  { %v5426_v3 = vrot.slane %v19808_v16, %v14735_v8  ;;  %v5466_v26 = vsel %vm2114_vm1, %v5465_v17, %v5461_v11  ;;  %v15895_v4 = vpop.permute.xlu0 %8197  ;;  %v19810_v32 = vld [vmem:[#allocation366_spill] sm:$0xff]  ;;  %v19811_v2 = vld [vmem:[#allocation376_spill] sm:$0xff]  ;;  %8419 = vperm.xlu0 %11071, %v7530_v30   ;;  %v19812_v37 = vld [vmem:[#allocation363_spill] sm:$0xff]  ;;  %v7534_v22 = vmul.f32 %v19351_v51, %v14798_v21  ;;  %10724 = vmatprep.subr.bf16.mxu0 %v11140_v23 }
 0x8a1   :  { %v15889_v39 = vsel %vm2170_vm9, %v3367_v5, %v3363_v13  ;;  %19809 = vst [vmem:[#allocation30_spill] sm:$0xff] %v15895_v4  ;;  %v5431_v31 = vrot.slane %v19810_v32, %v14741_v53  ;;  %v5471_v33 = vsel %vm2121_vm2, %v5470_v40, %v5466_v26  ;;  %v5480_v13 = vrot.slane %v19811_v2, %v14677_v57  ;;  %v11144_v5 = vld [vmem:[#allocation2 + $0x1d4] ss:$8 sps:$4 sm:$0xff]   ;;  %v11148_v32 = vld [vmem:[#allocation2 + $0x1d0] ss:$8 sps:$4 sm:$0xff]   ;;  %v19815_v2 = vld [vmem:[#allocation390_spill] sm:$0xff] }
 0x8a2   :  { %v11146_v16 = vld [vmem:[#allocation2 + $0x94] ss:$8 sps:$4 sm:$0xff]   ;;  %v5475_v45 = vrot.slane %v19812_v37, %v14671_v15  ;;  %10758 = vmatpush2.bf16.msra.mxu1 %v11142_v10  ;;  %v5549_v30 = vrot.slane %v19815_v2, %v14659_v54  ;;  %v19816_v49 = vld [vmem:[#allocation553_spill] sm:$0xff]  ;;  %v15914_v4 = vpop.permute.xlu1 %8293  ;;  %10725 = vmatpush2.bf16.msra.mxu0 %v11143_v35  ;;  %v11149_v37 = vld [vmem:[#allocation2 + $0x90] ss:$8 sps:$4 sm:$0xff]  }
 0x8a3   :  { %v19813_v11 = vld [vmem:[#allocation388_spill] sm:$0xff]  ;;  %v7501_v47 = vmul.f32 %v19816_v49, %v14798_v21  ;;  %10759 = vmatprep.subr.bf16.mxu1 %v11144_v5  ;;  %v19817_v23 = vld [vmem:[#allocation377_spill] sm:$0xff]  ;;  %8431 = vperm.xlu1 %11070, %v7534_v22   ;;  %v19820_v5 = vld [vmem:[#allocation378_spill] sm:$0xff] }
 0x8a4   :  { %v5540_v17 = vrot.slane %v19813_v11, %v14649_v52  ;;  %v19814_v40 = vld [vmem:[#allocation272_spill] sm:$0xff]  ;;  %v5427_v11 = vsel %vm2170_vm9, %v5426_v3, %v5422_v42  ;;  %v5476_v51 = vsel %vm2128_vm3, %v5475_v45, %v5471_v33  ;;  %v5544_v10 = vrot.slane %v19817_v23, %v14638_v59  ;;  %v15920_v26 = vpop.permute.xlu0 %8203  ;;  %10726 = vmatprep.subr.bf16.mxu0 %v11146_v16  ;;  %v19821_v33 = vld [vmem:[#allocation338_spill] sm:$0xff]  ;;  %v19822_v42 = vld [vmem:[#allocation365_spill] sm:$0xff] }
 0x8a5   :  { %19818 = vst [vmem:[#allocation37_spill] sm:$0xff] %v15920_v26  ;;  %v5432_v2 = vsel %vm2177_vm10, %v5431_v31, %v5427_v11  ;;  %v19819_v49 = vld [vmem:[#allocation368_spill] sm:$0xff]  ;;  %v5481_v35 = vsel %vm2135_vm4, %v5480_v13, %v5476_v51  ;;  %v5490_v43 = vrot.slane %v19820_v5, %v14697_v19  ;;  %8332 = vperm.xlu0 %11071, %v7501_v47   ;;  %v19825_v23 = vld [vmem:[#allocation583_spill] sm:$0xff] }
 0x8a6   :  { %v5441_v44 = vrot.slane %v19819_v49, %v14765_v61  ;;  %v5436_v3 = vrot.slane %v19821_v33, %v14756_v18  ;;  %v5485_v45 = vrot.slane %v19822_v42, %v14706_v6  ;;  %v5545_v22 = vsel %vm2114_vm1, %v5544_v10, %v5540_v17  ;;  %10760 = vmatpush2.bf16.msra.mxu1 %v11148_v32  ;;  %v19823_v16 = vld [vmem:[#allocation340_spill] sm:$0xff]  ;;  %v15942_v5 = vpop.permute.xlu1 %8296  ;;  %v11150_v33 = vld [vmem:[#allocation2 + $0x1c4] ss:$8 sps:$4 sm:$0xff]   ;;  %v11154_v10 = vld [vmem:[#allocation2 + $0x1c0] ss:$8 sps:$4 sm:$0xff]  }
 0x8a7   :  { %v7552_v31 = vmul.f32 %v14343_v25, %v14798_v21  ;;  %v5446_v11 = vrot.slane %v19823_v16, %v14768_v38  ;;  %v5550_v13 = vsel %vm2121_vm2, %v5549_v30, %v5545_v22  ;;  %v19824_v51 = vld [vmem:[#allocation392_spill] sm:$0xff]  ;;  %v7531_v49 = vmul.f32 %v19825_v23, %v14798_v21  ;;  %10727 = vmatpush2.bf16.msra.mxu0 %v11149_v37  ;;  %v11152_v17 = vld [vmem:[#allocation2 + $0x84] ss:$8 sps:$4 sm:$0xff]   ;;  %v19826_v25 = vld [vmem:[#allocation359_spill] sm:$0xff] }
 0x8a8   :  { %v5559_v47 = vrot.slane %v19824_v51, %v14677_v57  ;;  %v5437_v42 = vsel %vm2184_vm11, %v5436_v3, %v5432_v2  ;;  %v5486_v16 = vsel %vm2142_vm5, %v5485_v45, %v5481_v35  ;;  %v19827_v30 = vld [vmem:[#allocation379_spill] sm:$0xff]  ;;  %v15950_v51 = vpop.permute.xlu0 %8209  ;;  %v11155_v23 = vld [vmem:[#allocation2 + $0x80] ss:$8 sps:$4 sm:$0xff]   ;;  %10761 = vmatprep.subr.bf16.mxu1 %v11150_v33  ;;  %v19830_v2 = vld [vmem:[#allocation380_spill] sm:$0xff]  ;;  %v7553_v45 = vmul.f32 %v14301_v60, %v14798_v21 }
 0x8a9   :  { %v5554_v22 = vrot.slane %v19827_v30, %v14671_v15  ;;  %8485 = vperm.xlu1 %11070, %v7552_v31   ;;  %19828 = vst [vmem:[#allocation32_spill] sm:$0xff] %v15950_v51  ;;  %v19829_v26 = vld [vmem:[#allocation367_spill] sm:$0xff]  ;;  %v5442_v1 = vsel %vm2191_vm12, %v5441_v44, %v5437_v42  ;;  %v5491_v46 = vsel %vm2149_vm6, %v5490_v43, %v5486_v16  ;;  %v19832_v44 = vld [vmem:[#allocation404_spill] sm:$0xff]  ;;  %v19835_v60 = vld [vmem:[#allocation369_spill] sm:$0xff] }
 0x8aa   :  { %v5495_v37 = vrot.slane %v19829_v26, %v14713_v0  ;;  %8422 = vperm.xlu0 %11071, %v7531_v49   ;;  %v5500_v3 = vrot.slane %v19830_v2, %v14716_v41  ;;  %10728 = vmatprep.subr.bf16.mxu0 %v11152_v17  ;;  %v19831_v26 = vld [vmem:[#allocation394_spill] sm:$0xff]  ;;  %v5619_v43 = vrot.slane %v19832_v44, %v14649_v52  ;;  %v19833_v49 = vld [vmem:[#allocation567_spill] sm:$0xff]  ;;  %v15968_v42 = vpop.permute.xlu1 %8386  ;;  %v19840_v32 = vld [vmem:[#allocation393_spill] sm:$0xff] }
 0x8ab   :  { %v5555_v35 = vsel %vm2128_vm3, %v5554_v22, %v5550_v13  ;;  %10762 = vmatpush2.bf16.msra.mxu1 %v11154_v10  ;;  %v5569_v30 = vrot.slane %v19831_v26, %v14697_v19  ;;  %v7515_v33 = vmul.f32 %v19833_v49, %v14798_v21  ;;  %19834 = vst [vmem:[#allocation53_spill] sm:$0xff] %v15968_v42  ;;  %v11156_v13 = vld [vmem:[#allocation2 + $0x1b4] ss:$8 sps:$4 sm:$0xff]   ;;  %v11158_v16 = vld [vmem:[#allocation2 + $0x1b0] ss:$8 sps:$4 sm:$0xff]   ;;  %v19836_v10 = vld [vmem:[#allocation370_spill] sm:$0xff] }
 0x8ac   :  { %v5560_v31 = vsel %vm2135_vm4, %v5559_v47, %v5555_v35  ;;  %10729 = vmatpush2.bf16.msra.mxu0 %v11155_v23  ;;  %v5505_v17 = vrot.slane %v19835_v60, %v14735_v8  ;;  %v5451_v47 = vrot.slane %v19836_v10, %v14771_v27  ;;  %v19837_v22 = vld [vmem:[#allocation381_spill] sm:$0xff]  ;;  %v19838_v35 = vld [vmem:[#allocation406_spill] sm:$0xff]  ;;  %v15978_v44 = vpop.permute.xlu0 %8215  ;;  %v5447_v49 = vsel %vm2198_vm13, %v5446_v11, %v5442_v1 }
 0x8ad   :  { %v5564_v2 = vrot.slane %v19837_v22, %v14706_v6  ;;  %v5628_v26 = vrot.slane %v19838_v35, %v14659_v54  ;;  %8488 = vperm.xlu1 %11070, %v7553_v45   ;;  %19839 = vst [vmem:[#allocation27_spill] sm:$0xff] %v15978_v44  ;;  %v5496_v23 = vsel %vm2156_vm7, %v5495_v37, %v5491_v46  ;;  %v19841_v10 = vld [vmem:[#allocation382_spill] sm:$0xff]  ;;  %v19842_v46 = vld [vmem:[#allocation396_spill] sm:$0xff] }
 0x8ae   :  { %v5623_v51 = vrot.slane %v19840_v32, %v14638_v59  ;;  %8374 = vperm.xlu0 %11071, %v7515_v33   ;;  %10763 = vmatprep.subr.bf16.mxu1 %v11156_v13  ;;  %v5501_v60 = vsel %vm2163_vm8, %v5500_v3, %v5496_v23  ;;  %v5510_v22 = vrot.slane %v19841_v10, %v14741_v53  ;;  %v19843_v37 = vld [vmem:[#allocation580_spill] sm:$0xff]  ;;  %v15996_v3 = vpop.permute.xlu1 %8299  ;;  %v11159_v13 = vld [vmem:[#allocation2 + $0x1a4] ss:$8 sps:$4 sm:$0xff]   ;;  %v11161_v35 = vld [vmem:[#allocation2 + $0x1a0] ss:$8 sps:$4 sm:$0xff]  }
 0x8af   :  { %v5565_v50 = vsel %vm2142_vm5, %v5564_v2, %v5560_v31  ;;  %v7583_v45 = vmul.f32 %v14421_v62, %v14798_v21  ;;  %10764 = vmatpush2.bf16.msra.mxu1 %v11158_v16  ;;  %v5579_v11 = vrot.slane %v19842_v46, %v14716_v41  ;;  %v7516_v33 = vmul.f32 %v19843_v37, %v14798_v21  ;;  %v19845_v2 = vld [vmem:[#allocation383_spill] sm:$0xff] }
 0x8b0   :  { %v5570_v1 = vsel %vm2149_vm6, %v5569_v30, %v5565_v50  ;;  %v5624_v32 = vsel %vm2114_vm1, %v5623_v51, %v5619_v43  ;;  %19844 = vst [vmem:[#allocation555_spill] sm:$0xff] %v15996_v3  ;;  %v5452_v31 = vsel %vm2205_vm14, %v5451_v47, %v5447_v49  ;;  %v5574_v62 = vrot.slane %v19845_v2, %v14713_v0  ;;  %v19846_v50 = vld [vmem:[#allocation408_spill] sm:$0xff]  ;;  %v16004_v23 = vpop.permute.xlu0 %8221  ;;  %v19848_v51 = vld [vmem:[#allocation371_spill] sm:$0xff] }
 0x8b1   :  { %v5629_v16 = vsel %vm2121_vm2, %v5628_v26, %v5624_v32  ;;  %v5638_v30 = vrot.slane %v19846_v50, %v14677_v57  ;;  %8578 = vperm.xlu1 %11070, %v7583_v45   ;;  %19847 = vst [vmem:[#allocation43_spill] sm:$0xff] %v16004_v23  ;;  %v5515_v43 = vrot.slane %v19848_v51, %v14756_v18  ;;  %v19849_v46 = vld [vmem:[#allocation395_spill] sm:$0xff]  ;;  %v19850_v26 = vld [vmem:[#allocation384_spill] sm:$0xff] }
 0x8b2   :  { %v5506_v10 = vsel %vm2170_vm9, %v5505_v17, %v5501_v60  ;;  %v5633_v37 = vrot.slane %v19849_v46, %v14671_v15  ;;  %8377 = vperm.xlu0 %11071, %v7516_v33   ;;  %10765 = vmatprep.subr.bf16.mxu1 %v11159_v13  ;;  %v5520_v49 = vrot.slane %v19850_v26, %v14765_v61  ;;  %v19851_v17 = vld [vmem:[#allocation398_spill] sm:$0xff]  ;;  %v19852_v33 = vld [vmem:[#allocation569_spill] sm:$0xff]  ;;  %v11162_v51 = vld [vmem:[#allocation2 + $0x194] ss:$8 sps:$4 sm:$0xff]  }
 0x8b3   :  { %v5511_v47 = vsel %vm2177_vm10, %v5510_v22, %v5506_v10  ;;  %v5575_v32 = vsel %vm2156_vm7, %v5574_v62, %v5570_v1  ;;  %v7554_v45 = vmul.f32 %v14351_v34, %v14798_v21  ;;  %10766 = vmatpush2.bf16.msra.mxu1 %v11161_v35  ;;  %v5589_v60 = vrot.slane %v19851_v17, %v14741_v53  ;;  %v16023_v22 = vpop.permute.xlu1 %8338  ;;  %v11164_v10 = vld [vmem:[#allocation2 + $0x190] ss:$8 sps:$4 sm:$0xff]  }
 0x8b4   :  { %v5580_v2 = vsel %vm2163_vm8, %v5579_v11, %v5575_v32  ;;  %v5634_v50 = vsel %vm2128_vm3, %v5633_v37, %v5629_v16  ;;  %v7517_v13 = vmul.f32 %v19852_v33, %v14798_v21  ;;  %19853 = vst [vmem:[#allocation539_spill] sm:$0xff] %v16023_v22  ;;  %v19854_v1 = vrot.slane %v19814_v40, %v14741_v53  ;;  %v19856_v11 = vld [vmem:[#allocation385_spill] sm:$0xff]  ;;  %v16037_v37 = vpop.permute.xlu0 %8290 }
 0x8b5   :  { %v5584_v35 = vrot.slane %v19856_v11, %v14735_v8  ;;  %v5639_v62 = vsel %vm2135_vm4, %v5638_v30, %v5634_v50  ;;  %v19857_v16 = vld [vmem:[#allocation409_spill] sm:$0xff]  ;;  %8491 = vperm.xlu1 %11070, %v7554_v45   ;;  %v19858_v26 = vrot.slane %v19826_v25, %v14776_v58  ;;  %10767 = vmatprep.subr.bf16.mxu1 %v11162_v51 }
 0x8b6   :  { %v16030_v34 = vsel %vm2177_vm10, %v19854_v1, %v15889_v39  ;;  %v5648_v46 = vrot.slane %v19857_v16, %v14697_v19  ;;  %v5516_v39 = vsel %vm2184_vm11, %v5515_v43, %v5511_v47  ;;  %v19859_v40 = vld [vmem:[#allocation397_spill] sm:$0xff]  ;;  %8380 = vperm.xlu0 %11071, %v7517_v13   ;;  %v7567_v25 = vmul.f32 %v14357_v29, %v14798_v21  ;;  %v19861_v43 = vld [vmem:[#allocation400_spill] sm:$0xff]  ;;  %v19863_v29 = vld [vmem:[#allocation410_spill] sm:$0xff] }
 0x8b7   :  { %19855 = vst [vmem:[#allocation20_spill] sm:$0xff] %v16030_v34  ;;  %v16043_v32 = vsel %vm2212_vm15, %v19858_v26, %v5452_v31  ;;  %v5643_v17 = vrot.slane %v19859_v40, %v14706_v6  ;;  %v19860_v30 = vld [vmem:[#allocation373_spill] sm:$0xff]  ;;  %v5521_v45 = vsel %vm2191_vm12, %v5520_v49, %v5516_v39  ;;  %v5585_v33 = vsel %vm2170_vm9, %v5584_v35, %v5580_v2  ;;  %v16060_v51 = vpop.permute.xlu1 %8251  ;;  %v19862_v49 = vld [vmem:[#allocation387_spill] sm:$0xff]  ;;  %v19866_v40 = vld [vmem:[#allocation386_spill] sm:$0xff] }
 0x8b8   :  { %v5525_v50 = vrot.slane %v19860_v30, %v14768_v38  ;;  %10768 = vmatpush2.bf16.msra.mxu1 %v11164_v10  ;;  %v5590_v31 = vsel %vm2177_vm10, %v5589_v60, %v5585_v33  ;;  %v5599_v47 = vrot.slane %v19861_v43, %v14765_v61  ;;  %v7551_v13 = vmul.f32 %v14293_v56, %v14798_v21  ;;  %v19864_v60 = vld [vmem:[#allocation416_spill] sm:$0xff]  ;;  %v16069_v16 = vpop.permute.xlu0 %8242  ;;  %v11167_v26 = vld [vmem:[#allocation2 + $0x180] ss:$8 sps:$4 sm:$0xff]   ;;  %v19865_v56 = vld [vmem:[#allocation375_spill] sm:$0xff] }
 0x8b9   :  { %v5644_v1 = vsel %vm2142_vm5, %v5643_v17, %v5639_v62  ;;  %v5594_v11 = vrot.slane %v19862_v49, %v14756_v18  ;;  %v5658_v10 = vrot.slane %v19863_v29, %v14716_v41  ;;  %v6014_v35 = vrot.slane %v19864_v60, %v14649_v52  ;;  %8530 = vperm.xlu1 %11070, %v7567_v25   ;;  %v11165_v62 = vld [vmem:[#allocation2 + $0x184] ss:$8 sps:$4 sm:$0xff]   ;;  %v19867_v30 = vld [vmem:[#allocation399_spill] sm:$0xff] }
 0x8ba   :  { %v5649_v2 = vsel %vm2149_vm6, %v5648_v46, %v5644_v1  ;;  %v5530_v17 = vrot.slane %v19866_v40, %v14771_v27  ;;  %v5653_v46 = vrot.slane %v19867_v30, %v14713_v0  ;;  %v19868_v33 = vld [vmem:[#allocation418_spill] sm:$0xff]  ;;  %8482 = vperm.xlu0 %11071, %v7551_v13   ;;  %v5526_v1 = vsel %vm2198_vm13, %v5525_v50, %v5521_v45  ;;  %v19869_v49 = vld [vmem:[#allocation329_spill] sm:$0xff]  ;;  %v19871_v13 = vld [vmem:[#allocation587_spill] sm:$0xff] }
 0x8bb   :  { %v6023_v43 = vrot.slane %v19868_v33, %v14659_v54  ;;  %v5595_v25 = vsel %vm2184_vm11, %v5594_v11, %v5590_v31  ;;  %v6018_v29 = vrot.slane %v19869_v49, %v14638_v59  ;;  %v7538_v60 = vmul.f32 %v14287_v9, %v14798_v21  ;;  %10769 = vmatprep.subr.bf16.mxu1 %v11165_v62  ;;  %v19870_v39 = vld [vmem:[#allocation402_spill] sm:$0xff]  ;;  %v16091_v50 = vpop.permute.xlu1 %8341  ;;  %v19873_v45 = vld [vmem:[#allocation389_spill] sm:$0xff]  ;;  %v19874_v9 = vld [vmem:[#allocation411_spill] sm:$0xff] }
 0x8bc   :  { %v5600_v40 = vsel %vm2191_vm12, %v5599_v47, %v5595_v25  ;;  %v5609_v30 = vrot.slane %v19870_v39, %v14771_v27  ;;  %v5654_v23 = vsel %vm2156_vm7, %v5653_v46, %v5649_v2  ;;  %v7535_v33 = vmul.f32 %v19871_v13, %v14798_v21  ;;  %19872 = vst [vmem:[#allocation39_spill] sm:$0xff] %v16091_v50  ;;  %v16099_v39 = vpop.permute.xlu0 %8245  ;;  %v19875_v46 = vld [vmem:[#allocation401_spill] sm:$0xff]  ;;  %v19876_v49 = vld [vmem:[#allocation420_spill] sm:$0xff] }
 0x8bd   :  { %10770 = vmatpush2.bf16.msra.mxu1 %v11167_v26  ;;  %v5604_v31 = vrot.slane %v19873_v45, %v14768_v38  ;;  %v5659_v11 = vsel %vm2163_vm8, %v5658_v10, %v5654_v23  ;;  %v5668_v62 = vrot.slane %v19874_v9, %v14741_v53  ;;  %v6019_v47 = vsel %vm2114_vm1, %v6018_v29, %v6014_v35  ;;  %v19877_v23 = vld [vmem:[#allocation391_spill] sm:$0xff] }
 0x8be   :  { %8443 = vperm.xlu1 %11070, %v7538_v60   ;;  %v16102_v2 = vsel %vm2205_vm14, %v5530_v17, %v5526_v1  ;;  %v5663_v25 = vrot.slane %v19875_v46, %v14735_v8  ;;  %v6024_v26 = vsel %vm2121_vm2, %v6023_v43, %v6019_v47  ;;  %v6033_v13 = vrot.slane %v19876_v49, %v14677_v57  ;;  %v19878_v29 = vld [vmem:[#allocation331_spill] sm:$0xff] }
 0x8bf   :  { %8434 = vperm.xlu0 %11071, %v7535_v33   ;;  %v5605_v35 = vsel %vm2198_vm13, %v5604_v31, %v5600_v40  ;;  %v6028_v60 = vrot.slane %v19878_v29, %v14671_v15  ;;  %v7568_v17 = vmul.f32 %v14407_v55, %v14798_v21  ;;  %v19879_v43 = vld [vmem:[#allocation403_spill] sm:$0xff]  ;;  %v19880_v33 = vld [vmem:[#allocation598_spill] sm:$0xff]  ;;  %v16124_v46 = vpop.permute.xlu1 %8254  ;;  %v19881_v31 = vld [vmem:[#allocation412_spill] sm:$0xff] }
 0x8c0   :  { %v16117_v1 = vsel %vm2205_vm14, %v5609_v30, %v5605_v35  ;;  %v5673_v45 = vrot.slane %v19879_v43, %v14756_v18  ;;  %v5664_v9 = vsel %vm2170_vm9, %v5663_v25, %v5659_v11  ;;  %v7536_v47 = vmul.f32 %v19880_v33, %v14798_v21  ;;  %v19882_v30 = vld [vmem:[#allocation432_spill] sm:$0xff]  ;;  %v16132_v29 = vpop.permute.xlu0 %8383  ;;  %v19883_v11 = vld [vmem:[#allocation405_spill] sm:$0xff]  ;;  %v19884_v43 = vld [vmem:[#allocation407_spill] sm:$0xff] }
 0x8c1   :  { %v5669_v40 = vsel %vm2177_vm10, %v5668_v62, %v5664_v9  ;;  %v5678_v49 = vrot.slane %v19881_v31, %v14765_v61  ;;  %v6029_v55 = vsel %vm2128_vm3, %v6028_v60, %v6024_v26  ;;  %v6093_v35 = vrot.slane %v19882_v30, %v14649_v52  ;;  %v19885_v62 = vld [vmem:[#allocation434_spill] sm:$0xff]  ;;  %v19886_v26 = vld [vmem:[#allocation421_spill] sm:$0xff]  ;;  %v19889_v25 = vld [vmem:[#allocation591_spill] sm:$0xff] }
 0x8c2   :  { %8533 = vperm.xlu1 %11070, %v7568_v17   ;;  %v6034_v10 = vsel %vm2135_vm4, %v6033_v13, %v6029_v55  ;;  %v6102_v9 = vrot.slane %v19885_v62, %v14659_v54  ;;  %v6097_v60 = vrot.slane %v19886_v26, %v14638_v59  ;;  %v19887_v31 = vld [vmem:[#allocation422_spill] sm:$0xff]  ;;  %v19888_v30 = vld [vmem:[#allocation345_spill] sm:$0xff]  ;;  %v7539_v63 = vmul.f32 %v19889_v25, %v14798_v21  ;;  %v19891_v62 = vld [vmem:[#allocation347_spill] sm:$0xff] }
 0x8c3   :  { %8437 = vperm.xlu0 %11071, %v7536_v47   ;;  %v6043_v17 = vrot.slane %v19887_v31, %v14697_v19  ;;  %v6251_v44 = vrot.slane %v19888_v30, %v14649_v52  ;;  %v5674_v33 = vsel %vm2184_vm11, %v5673_v45, %v5669_v40  ;;  %v19890_v13 = vld [vmem:[#allocation333_spill] sm:$0xff]  ;;  %v6260_v47 = vrot.slane %v19891_v62, %v14659_v54  ;;  %v16156_v14 = vpop.permute.xlu1 %8344  ;;  %v19896_v62 = vld [vmem:[#allocation334_spill] sm:$0xff] }
 0x8c4   :  { %v6038_v55 = vrot.slane %v19890_v13, %v14706_v6  ;;  %v7582_v26 = vmul.f32 %v19892_v48, %v14798_v21  ;;  %19893 = vst [vmem:[#allocation52_spill] sm:$0xff] %v16156_v14  ;;  %v16159_v31 = vsel %vm2191_vm12, %v5678_v49, %v5674_v33  ;;  %v19894_v30 = vld [vmem:[#allocation413_spill] sm:$0xff]  ;;  %v6098_v25 = vsel %vm2114_vm1, %v6097_v60, %v6093_v35  ;;  %v16166_v13 = vpop.permute.xlu0 %8248  ;;  %v19897_v49 = vld [vmem:[#allocation436_spill] sm:$0xff]  ;;  %v19898_v35 = vld [vmem:[#allocation423_spill] sm:$0xff] }
 0x8c5   :  { %v19895_v45 = vld [vmem:[#allocation453_spill] sm:$0xff]  ;;  %v6048_v7 = vrot.slane %v19896_v62, %v14713_v0  ;;  %v6103_v14 = vsel %vm2121_vm2, %v6102_v9, %v6098_v25  ;;  %v6112_v33 = vrot.slane %v19897_v49, %v14677_v57  ;;  %v6107_v60 = vrot.slane %v19898_v35, %v14671_v15  ;;  %v19900_v62 = vld [vmem:[#allocation424_spill] sm:$0xff] }
 0x8c6   :  { %v6255_v40 = vrot.slane %v19895_v45, %v14638_v59  ;;  %8446 = vperm.xlu1 %11070, %v7539_v63   ;;  %v6039_v48 = vsel %vm2142_vm5, %v6038_v55, %v6034_v10  ;;  %v19899_v45 = vld [vmem:[#allocation612_spill] sm:$0xff]  ;;  %v6053_v22 = vrot.slane %v19900_v62, %v14716_v41  ;;  %v19901_v9 = vld [vmem:[#allocation349_spill] sm:$0xff] }
 0x8c7   :  { %8575 = vperm.xlu0 %11071, %v7582_v26   ;;  %v6044_v34 = vsel %vm2149_vm6, %v6043_v17, %v6039_v48  ;;  %v7569_v50 = vmul.f32 %v19899_v45, %v14798_v21  ;;  %v6270_v55 = vrot.slane %v19901_v9, %v14677_v57  ;;  %v19902_v26 = vld [vmem:[#allocation589_spill] sm:$0xff]  ;;  %v16187_v17 = vpop.permute.xlu1 %8257  ;;  %v19904_v48 = vld [vmem:[#allocation336_spill] sm:$0xff]  ;;  %v19906_v45 = vld [vmem:[#allocation455_spill] sm:$0xff] }
 0x8c8   :  { %v6256_v63 = vsel %vm2114_vm1, %v6255_v40, %v6251_v44  ;;  %v7537_v25 = vmul.f32 %v19902_v26, %v14798_v21  ;;  %19903 = vst [vmem:[#allocation34_spill] sm:$0xff] %v16187_v17  ;;  %v6058_v49 = vrot.slane %v19904_v48, %v14735_v8  ;;  %v6108_v44 = vsel %vm2128_vm3, %v6107_v60, %v6103_v14  ;;  %v19905_v40 = vld [vmem:[#allocation448_spill] sm:$0xff]  ;;  %v19908_v26 = vld [vmem:[#allocation438_spill] sm:$0xff]  ;;  %v19910_v14 = vld [vmem:[#allocation425_spill] sm:$0xff] }
 0x8c9   :  { %v6261_v10 = vsel %vm2121_vm2, %v6260_v47, %v6256_v63  ;;  %v6172_v35 = vrot.slane %v19905_v40, %v14649_v52  ;;  %v6265_v62 = vrot.slane %v19906_v45, %v14671_v15  ;;  %v16196_v47 = vpop.permute.xlu0 %8335  ;;  %v6049_v63 = vsel %vm2156_vm7, %v6048_v7, %v6044_v34  ;;  %v19909_v48 = vld [vmem:[#allocation450_spill] sm:$0xff]  ;;  %v19911_v40 = vld [vmem:[#allocation437_spill] sm:$0xff] }
 0x8ca   :  { %8536 = vperm.xlu1 %11070, %v7569_v50   ;;  %19907 = vst [vmem:[#allocation55_spill] sm:$0xff] %v16196_v47  ;;  %v6113_v9 = vsel %vm2135_vm4, %v6112_v33, %v6108_v44  ;;  %v6122_v42 = vrot.slane %v19908_v26, %v14697_v19  ;;  %v6181_v17 = vrot.slane %v19909_v48, %v14659_v54  ;;  %v19912_v47 = vld [vmem:[#allocation600_spill] sm:$0xff] }
 0x8cb   :  { %8440 = vperm.xlu0 %11071, %v7537_v25   ;;  %v6117_v60 = vrot.slane %v19910_v14, %v14706_v6  ;;  %v6176_v45 = vrot.slane %v19911_v40, %v14638_v59  ;;  %v6266_v50 = vsel %vm2128_vm3, %v6265_v62, %v6261_v10  ;;  %v7540_v7 = vmul.f32 %v19912_v47, %v14798_v21  ;;  %v19913_v44 = vld [vmem:[#allocation460_spill] sm:$0xff]  ;;  %v19914_v25 = vld [vmem:[#allocation621_spill] sm:$0xff]  ;;  %v16217_v3 = vpop.permute.xlu1 %8347  ;;  %v19916_v14 = vld [vmem:[#allocation426_spill] sm:$0xff] }
 0x8cc   :  { %v6054_v34 = vsel %vm2163_vm8, %v6053_v22, %v6049_v63  ;;  %v6271_v33 = vsel %vm2135_vm4, %v6270_v55, %v6266_v50  ;;  %v6280_v26 = vrot.slane %v19913_v44, %v14697_v19  ;;  %v7566_v48 = vmul.f32 %v19914_v25, %v14798_v21  ;;  %19915 = vst [vmem:[#allocation54_spill] sm:$0xff] %v16217_v3  ;;  %v19917_v47 = vld [vmem:[#allocation457_spill] sm:$0xff]  ;;  %v19919_v50 = vld [vmem:[#allocation440_spill] sm:$0xff] }
 0x8cd   :  { %v6063_v40 = vrot.slane %v19916_v14, %v14741_v53  ;;  %v6118_v10 = vsel %vm2142_vm5, %v6117_v60, %v6113_v9  ;;  %v6177_v62 = vsel %vm2114_vm1, %v6176_v45, %v6172_v35  ;;  %v6275_v22 = vrot.slane %v19917_v47, %v14706_v6  ;;  %v16225_v55 = vpop.permute.xlu0 %8389  ;;  %v19920_v3 = vld [vmem:[#allocation452_spill] sm:$0xff]  ;;  %v19921_v9 = vld [vmem:[#allocation427_spill] sm:$0xff] }
 0x8ce   :  { %8449 = vperm.xlu1 %11070, %v7540_v7   ;;  %19918 = vst [vmem:[#allocation29_spill] sm:$0xff] %v16225_v55  ;;  %v6123_v63 = vsel %vm2149_vm6, %v6122_v42, %v6118_v10  ;;  %v6132_v44 = vrot.slane %v19919_v50, %v14716_v41  ;;  %v6182_v25 = vsel %vm2121_vm2, %v6181_v17, %v6177_v62  ;;  %v19922_v60 = vld [vmem:[#allocation439_spill] sm:$0xff]  ;;  %v19923_v47 = vld [vmem:[#allocation624_spill] sm:$0xff]  ;;  %v19924_v17 = vld [vmem:[#allocation462_spill] sm:$0xff] }
 0x8cf   :  { %v6191_v14 = vrot.slane %v19920_v3, %v14677_v57  ;;  %8527 = vperm.xlu0 %11071, %v7566_v48   ;;  %v6127_v35 = vrot.slane %v19921_v9, %v14713_v0  ;;  %v6186_v45 = vrot.slane %v19922_v60, %v14671_v15  ;;  %v6276_v7 = vsel %vm2142_vm5, %v6275_v22, %v6271_v33  ;;  %v19925_v3 = vld [vmem:[#allocation637_spill] sm:$0xff]  ;;  %v16246_v55 = vpop.permute.xlu1 %8260 }
 0x8d0   :  { %v7570_v42 = vmul.f32 %v19923_v47, %v14798_v21  ;;  %v6059_v10 = vsel %vm2170_vm9, %v6058_v49, %v6054_v34  ;;  %v6281_v50 = vsel %vm2149_vm6, %v6280_v26, %v6276_v7  ;;  %v6290_v62 = vrot.slane %v19924_v17, %v14716_v41  ;;  %19926 = vst [vmem:[#allocation42_spill] sm:$0xff] %v16246_v55  ;;  %v19927_v22 = vld [vmem:[#allocation341_spill] sm:$0xff]  ;;  %v19929_v26 = vld [vmem:[#allocation442_spill] sm:$0xff] }
 0x8d1   :  { %v7584_v48 = vmul.f32 %v19925_v3, %v14798_v21  ;;  %v6064_v9 = vsel %vm2177_vm10, %v6063_v40, %v6059_v10  ;;  %v6128_v60 = vsel %vm2156_vm7, %v6127_v35, %v6123_v63  ;;  %v6187_v33 = vsel %vm2128_vm3, %v6186_v45, %v6182_v25  ;;  %v16253_v49 = vpop.permute.xlu0 %8302  ;;  %v19930_v3 = vld [vmem:[#allocation454_spill] sm:$0xff]  ;;  %v19931_v63 = vld [vmem:[#allocation429_spill] sm:$0xff] }
 0x8d2   :  { %v6285_v47 = vrot.slane %v19927_v22, %v14713_v0  ;;  %8539 = vperm.xlu1 %11070, %v7570_v42   ;;  %19928 = vst [vmem:[#allocation538_spill] sm:$0xff] %v16253_v49  ;;  %v6133_v34 = vsel %vm2163_vm8, %v6132_v44, %v6128_v60  ;;  %v6142_v7 = vrot.slane %v19929_v26, %v14741_v53  ;;  %v19932_v35 = vld [vmem:[#allocation441_spill] sm:$0xff]  ;;  %v19934_v60 = vld [vmem:[#allocation339_spill] sm:$0xff] }
 0x8d3   :  { %v6192_v17 = vsel %vm2135_vm4, %v6191_v14, %v6187_v33  ;;  %v6201_v40 = vrot.slane %v19930_v3, %v14697_v19  ;;  %8581 = vperm.xlu0 %11071, %v7584_v48   ;;  %v6137_v25 = vrot.slane %v19931_v63, %v14735_v8  ;;  %v6196_v45 = vrot.slane %v19932_v35, %v14706_v6  ;;  %v19933_v10 = vld [vmem:[#allocation593_spill] sm:$0xff]  ;;  %v19935_v33 = vld [vmem:[#allocation464_spill] sm:$0xff]  ;;  %v19936_v48 = vld [vmem:[#allocation602_spill] sm:$0xff]  ;;  %v16275_v63 = vpop.permute.xlu1 %8350 }
 0x8d4   :  { %v6286_v42 = vsel %vm2156_vm7, %v6285_v47, %v6281_v50  ;;  %v7541_v44 = vmul.f32 %v19933_v10, %v14798_v21  ;;  %v6068_v22 = vrot.slane %v19934_v60, %v14756_v18  ;;  %v6300_v26 = vrot.slane %v19935_v33, %v14741_v53  ;;  %19937 = vst [vmem:[#allocation45_spill] sm:$0xff] %v16275_v63  ;;  %v19938_v35 = vld [vmem:[#allocation428_spill] sm:$0xff]  ;;  %v19939_v10 = vld [vmem:[#allocation342_spill] sm:$0xff] }
 0x8d5   :  { %v6291_v14 = vsel %vm2163_vm8, %v6290_v62, %v6286_v42  ;;  %v7555_v3 = vmul.f32 %v19936_v48, %v14798_v21  ;;  %v6073_v49 = vrot.slane %v19938_v35, %v14765_v61  ;;  %v6138_v50 = vsel %vm2170_vm9, %v6137_v25, %v6133_v34  ;;  %v16283_v62 = vpop.permute.xlu0 %8392  ;;  %v19941_v63 = vld [vmem:[#allocation456_spill] sm:$0xff]  ;;  %v19942_v34 = vld [vmem:[#allocation443_spill] sm:$0xff]  ;;  %v19944_v35 = vld [vmem:[#allocation614_spill] sm:$0xff] }
 0x8d6   :  { %v6197_v47 = vsel %vm2142_vm5, %v6196_v45, %v6192_v17  ;;  %v6295_v60 = vrot.slane %v19939_v10, %v14735_v8  ;;  %8452 = vperm.xlu1 %11070, %v7541_v44   ;;  %19940 = vst [vmem:[#allocation523_spill] sm:$0xff] %v16283_v62  ;;  %v6069_v42 = vsel %vm2184_vm11, %v6068_v22, %v6064_v9  ;;  %v19943_v17 = vld [vmem:[#allocation444_spill] sm:$0xff]  ;;  %v19945_v9 = vld [vmem:[#allocation431_spill] sm:$0xff]  ;;  %v19946_v22 = vld [vmem:[#allocation466_spill] sm:$0xff] }
 0x8d7   :  { %v6143_v33 = vsel %vm2177_vm10, %v6142_v7, %v6138_v50  ;;  %v6202_v48 = vsel %vm2149_vm6, %v6201_v40, %v6197_v47  ;;  %v6211_v55 = vrot.slane %v19941_v63, %v14716_v41  ;;  %8494 = vperm.xlu0 %11071, %v7555_v3   ;;  %v6206_v25 = vrot.slane %v19942_v34, %v14713_v0  ;;  %v19947_v3 = vld [vmem:[#allocation626_spill] sm:$0xff]  ;;  %v16304_v47 = vpop.permute.xlu1 %8263  ;;  %v19949_v34 = vld [vmem:[#allocation417_spill] sm:$0xff] }
 0x8d8   :  { %v6152_v45 = vrot.slane %v19943_v17, %v14765_v61  ;;  %v6296_v44 = vsel %vm2170_vm9, %v6295_v60, %v6291_v14  ;;  %v7571_v10 = vmul.f32 %v19944_v35, %v14798_v21  ;;  %v6147_v7 = vrot.slane %v19945_v9, %v14756_v18  ;;  %19948 = vst [vmem:[#allocation159_spill] sm:$0xff] %v16304_v47  ;;  %v19950_v35 = vld [vmem:[#allocation344_spill] sm:$0xff]  ;;  %v19953_v62 = vld [vmem:[#allocation458_spill] sm:$0xff] }
 0x8d9   :  { %v6301_v40 = vsel %vm2177_vm10, %v6300_v26, %v6296_v44  ;;  %v6310_v63 = vrot.slane %v19946_v22, %v14765_v61  ;;  %v7585_v50 = vmul.f32 %v19947_v3, %v14798_v21  ;;  %v6078_v17 = vrot.slane %v19949_v34, %v14768_v38  ;;  %v16312_v26 = vpop.permute.xlu0 %8305  ;;  %v19952_v44 = vld [vmem:[#allocation430_spill] sm:$0xff] }
 0x8da   :  { %v6074_v14 = vsel %vm2191_vm12, %v6073_v49, %v6069_v42  ;;  %v6207_v60 = vsel %vm2156_vm7, %v6206_v25, %v6202_v48  ;;  %v6305_v9 = vrot.slane %v19950_v35, %v14756_v18  ;;  %8542 = vperm.xlu1 %11070, %v7571_v10   ;;  %19951 = vst [vmem:[#allocation57_spill] sm:$0xff] %v16312_v26  ;;  %v19954_v42 = vld [vmem:[#allocation445_spill] sm:$0xff] }
 0x8db   :  { %v6083_v22 = vrot.slane %v19952_v44, %v14771_v27  ;;  %v6148_v3 = vsel %vm2184_vm11, %v6147_v7, %v6143_v33  ;;  %v6212_v47 = vsel %vm2163_vm8, %v6211_v55, %v6207_v60  ;;  %v6221_v34 = vrot.slane %v19953_v62, %v14741_v53  ;;  %8584 = vperm.xlu0 %11071, %v7585_v50   ;;  %v19955_v10 = vld [vmem:[#allocation601_spill] sm:$0xff]  ;;  %v19956_v44 = vld [vmem:[#allocation446_spill] sm:$0xff]  ;;  %v19957_v55 = vld [vmem:[#allocation468_spill] sm:$0xff] }
 0x8dc   :  { %v6153_v49 = vsel %vm2191_vm12, %v6152_v45, %v6148_v3  ;;  %v6216_v48 = vrot.slane %v19954_v42, %v14735_v8  ;;  %v6306_v25 = vsel %vm2184_vm11, %v6305_v9, %v6301_v40  ;;  %v7542_v35 = vmul.f32 %v19955_v10, %v14798_v21  ;;  %v19958_v62 = vld [vmem:[#allocation611_spill] sm:$0xff]  ;;  %v16333_v45 = vpop.permute.xlu1 %8353  ;;  %v19960_v40 = vld [vmem:[#allocation433_spill] sm:$0xff]  ;;  %v19961_v42 = vld [vmem:[#allocation346_spill] sm:$0xff] }
 0x8dd   :  { %v6162_v26 = vrot.slane %v19956_v44, %v14771_v27  ;;  %v6311_v33 = vsel %vm2191_vm12, %v6310_v63, %v6306_v25  ;;  %v6320_v7 = vrot.slane %v19957_v55, %v14771_v27  ;;  %v7556_v50 = vmul.f32 %v19958_v62, %v14798_v21  ;;  %19959 = vst [vmem:[#allocation161_spill] sm:$0xff] %v16333_v45  ;;  %v16341_v63 = vpop.permute.xlu0 %8395 }
 0x8de   :  { %v6079_v60 = vsel %vm2198_vm13, %v6078_v17, %v6074_v14  ;;  %v6157_v9 = vrot.slane %v19960_v40, %v14768_v38  ;;  %v6217_v3 = vsel %vm2170_vm9, %v6216_v48, %v6212_v47  ;;  %v6315_v10 = vrot.slane %v19961_v42, %v14768_v38  ;;  %8455 = vperm.xlu1 %11070, %v7542_v35   ;;  %v19964_v14 = vld [vmem:[#allocation459_spill] sm:$0xff]  ;;  %v19966_v42 = vld [vmem:[#allocation625_spill] sm:$0xff] }
 0x8df   :  { %19962 = vst [vmem:[#allocation31_spill] sm:$0xff] %v16341_v63  ;;  %v19963_v25 = vrot.slane %v19883_v11, %v14768_v38  ;;  %v6084_v55 = vsel %vm2205_vm14, %v6083_v22, %v6079_v60  ;;  %v6222_v17 = vsel %vm2177_vm10, %v6221_v34, %v6217_v3  ;;  %v6231_v62 = vrot.slane %v19964_v14, %v14765_v61  ;;  %v19965_v48 = vld [vmem:[#allocation447_spill] sm:$0xff] }
 0x8e0   :  { %8497 = vperm.xlu0 %11071, %v7556_v50   ;;  %v6158_v47 = vsel %vm2198_vm13, %v6157_v9, %v6153_v49  ;;  %v6226_v35 = vrot.slane %v19965_v48, %v14756_v18  ;;  %v6316_v40 = vsel %vm2198_vm13, %v6315_v10, %v6311_v33  ;;  %v7572_v11 = vmul.f32 %v19966_v42, %v14798_v21  ;;  %v19968_v60 = vld [vmem:[#allocation639_spill] sm:$0xff]  ;;  %v16364_v3 = vpop.permute.xlu1 %8266  ;;  %v19971_v48 = vld [vmem:[#allocation348_spill] sm:$0xff] }
 0x8e1   :  { %v5684_v44 = vsel %vm2198_vm13, %v19963_v25, %v16159_v31  ;;  %v19967_v31 = vld [vmem:[#allocation419_spill] sm:$0xff]  ;;  %v6163_v22 = vsel %vm2205_vm14, %v6162_v26, %v6158_v47  ;;  %v6321_v34 = vsel %vm2205_vm14, %v6320_v7, %v6316_v40  ;;  %v7586_v50 = vmul.f32 %v19968_v60, %v14798_v21  ;;  %v16375_v7 = vpop.permute.xlu0 %8308  ;;  %v19973_v47 = vld [vmem:[#allocation414_spill] sm:$0xff]  ;;  %v19975_v60 = vld [vmem:[#allocation449_spill] sm:$0xff] }
 0x8e2   :  { %v6088_v25 = vrot.slane %v19967_v31, %v14776_v58  ;;  %v19969_v49 = vrot.slane %v19894_v30, %v14771_v27  ;;  %v19970_v9 = vld [vmem:[#allocation435_spill] sm:$0xff]  ;;  %v6227_v14 = vsel %vm2184_vm11, %v6226_v35, %v6222_v17  ;;  %v6325_v26 = vrot.slane %v19971_v48, %v14776_v58  ;;  %8545 = vperm.xlu1 %11070, %v7572_v11   ;;  %v19976_v35 = vld [vmem:[#allocation594_spill] sm:$0xff] }
 0x8e3   :  { %v6167_v10 = vrot.slane %v19970_v9, %v14776_v58  ;;  %19972 = vst [vmem:[#allocation71_spill] sm:$0xff] %v16375_v7  ;;  %v5698_v40 = vrot.slane %v19973_v47, %v14649_v52  ;;  %v6232_v30 = vsel %vm2191_vm12, %v6231_v62, %v6227_v14  ;;  %v6236_v17 = vrot.slane %v19975_v60, %v14768_v38  ;;  %v19980_v14 = vld [vmem:[#allocation604_spill] sm:$0xff] }
 0x8e4   :  { %v5689_v33 = vsel %vm2205_vm14, %v19969_v49, %v5684_v44  ;;  %v6089_v42 = vsel %vm2212_vm15, %v6088_v25, %v6084_v55  ;;  %v19974_v44 = vld [vmem:[#allocation343_spill] sm:$0xff]  ;;  %8587 = vperm.xlu0 %11071, %v7586_v50   ;;  %v7543_v49 = vmul.f32 %v19976_v35, %v14798_v21  ;;  %v6326_v9 = vsel %vm2212_vm15, %v6325_v26, %v6321_v34  ;;  %v19979_v25 = vld [vmem:[#allocation350_spill] sm:$0xff]  ;;  %v16400_v47 = vpop.permute.xlu1 %8356 }
 0x8e5   :  { %v6241_v31 = vrot.slane %v19974_v44, %v14771_v27  ;;  %v6168_v11 = vsel %vm2212_vm15, %v6167_v10, %v6163_v22  ;;  %v19977_v55 = vrot.slane %v19877_v23, %v14776_v58  ;;  %v5702_v50 = vrot.slane %v19979_v25, %v14638_v59  ;;  %19981 = vst [vmem:[#allocation47_spill] sm:$0xff] %v16400_v47  ;;  %v16410_v26 = vpop.permute.xlu0 %8398 }
 0x8e6   :  { %v7557_v48 = vmul.f32 %v19980_v14, %v14798_v21  ;;  %v19982_v22 = vrot.slane %v19865_v56, %v14776_v58  ;;  %8458 = vperm.xlu1 %11070, %v7543_v49   ;;  %19984 = vst [vmem:[#allocation536_spill] sm:$0xff] %v16410_v26  ;;  %v6643_v44 = vsel %vm3399_vm0, %v6089_v42, %v16043_v32  ;;  %v19988_v32 = vld [vmem:[#allocation451_spill] sm:$0xff] }
 0x8e7   :  { %v16394_v62 = vsel %vm2212_vm15, %v19977_v55, %v16117_v1  ;;  %v6237_v1 = vsel %vm2198_vm13, %v6236_v17, %v6232_v30  ;;  %v19985_v60 = vrot.slane %v19884_v43, %v14776_v58  ;;  %v16424_v17 = vsel %vm2114_vm1, %v5702_v50, %v5698_v40  ;;  %v19989_v43 = vld [vmem:[#allocation616_spill] sm:$0xff] }
 0x8e8   :  { %19978 = vst [vmem:[#allocation568_spill] sm:$0xff] %v16394_v62  ;;  %v5536_v34 = vsel %vm2212_vm15, %v19982_v22, %v16102_v2  ;;  %v6242_v56 = vsel %vm2205_vm14, %v6241_v31, %v6237_v1  ;;  %v19986_v2 = vld [vmem:[#allocation650_spill] sm:$0xff]  ;;  %8500 = vperm.xlu0 %11071, %v7557_v48   ;;  %19987 = vst [vmem:[#allocation49_spill] sm:$0xff] %v16424_v17  ;;  %v6246_v42 = vrot.slane %v19988_v32, %v14776_v58  ;;  %v19992_v48 = vld [vmem:[#allocation628_spill] sm:$0xff]  ;;  %v16438_v40 = vpop.permute.xlu1 %8269 }
 0x8e9   :  { %v5694_v35 = vsel %vm2212_vm15, %v19985_v60, %v5689_v33  ;;  %v8625_v55 = vrot.slane %v19986_v2, %v14649_v52  ;;  %v6644_v25 = vsel %vm3399_vm0, %v6168_v11, %v5536_v34  ;;  %v7573_v49 = vmul.f32 %v19989_v43, %v14798_v21  ;;  %v19990_v33 = vld [vmem:[#allocation651_spill] sm:$0xff]  ;;  %19994 = vst [vmem:[#allocation44_spill] sm:$0xff] %v16438_v40  ;;  %v16450_v2 = vpop.permute.xlu0 %8311 }
 0x8ea   :  { %v6646_v30 = vsel %vm3399_vm0, %v6326_v9, %v5694_v35  ;;  %v8634_v31 = vrot.slane %v19990_v33, %v14659_v54  ;;  %v7587_v11 = vmul.f32 %v19992_v48, %v14798_v21  ;;  %v19993_v9 = vld [vmem:[#allocation640_spill] sm:$0xff]  ;;  %v16441_v50 = vadd.f32 %v6643_v44, %v15530_v28  ;;  %v19997_v60 = vld [vmem:[#allocation595_spill] sm:$0xff]  ;;  %19998 = vst [vmem:[#allocation51_spill] sm:$0xff] %v16450_v2  ;;  %v20001_v33 = vld [vmem:[#allocation597_spill] sm:$0xff] }
 0x8eb   :  { %v8629_v34 = vrot.slane %v19993_v9, %v14638_v59  ;;  %v16444_v1 = vsel %vm2212_vm15, %v6246_v42, %v6242_v56  ;;  %v16448_v35 = vmul.f32 %v19997_v60, %v14798_v21  ;;  %8548 = vperm.xlu1 %11070, %v7573_v49   ;;  %v16453_v32 = vadd.f32 %v6644_v25, %v15660_v24  ;;  %v20002_v44 = vld [vmem:[#allocation599_spill] sm:$0xff]  ;;  %v20005_v24 = vld [vmem:[#allocation605_spill] sm:$0xff] }
 0x8ec   :  { %19995 = vst [vmem:[#allocation60_spill] sm:$0xff] %v16441_v50  ;;  %19996 = vst [vmem:[#allocation59_spill] sm:$0xff] %v16444_v1  ;;  %v16456_v43 = vadd.f32 %v6646_v30, %v15725_v12  ;;  %v16460_v28 = vmul.f32 %v20001_v33, %v14798_v21  ;;  %v16464_v56 = vmul.f32 %v20002_v44, %v14798_v21  ;;  %v20004_v42 = vld [vmem:[#allocation603_spill] sm:$0xff]  ;;  %8590 = vperm.xlu0 %11071, %v7587_v11   ;;  %v20007_v12 = vld [vmem:[#allocation606_spill] sm:$0xff]  ;;  %v16488_v10 = vpop.permute.xlu1 %8359 }
 0x8ed   :  { %19999 = vst [vmem:[#allocation74_spill] sm:$0xff] %v16453_v32  ;;  %v7544_v48 = vmul.f32 %v20004_v42, %v14798_v21  ;;  %v8630_v49 = vsel %vm2114_vm1, %v8629_v34, %v8625_v55  ;;  %v16471_v25 = vmul.f32 %v20005_v24, %v14798_v21  ;;  %v7559_v30 = vmul.f32 %v20007_v12, %v14798_v21  ;;  %v20008_v60 = vld [vmem:[#allocation653_spill] sm:$0xff]  ;;  %v20009_v44 = vld [vmem:[#allocation607_spill] sm:$0xff]  ;;  %v20012_v11 = vld [vmem:[#allocation642_spill] sm:$0xff]  ;;  %v16504_v62 = vpop.permute.xlu0 %8401 }
 0x8ee   :  { %20000 = vst [vmem:[#allocation527_spill] sm:$0xff] %v16456_v43  ;;  %20003 = vst [vmem:[#allocation33_spill] sm:$0xff] %v16464_v56  ;;  %v8635_v9 = vsel %vm2121_vm2, %v8634_v31, %v8630_v49  ;;  %v8644_v33 = vrot.slane %v20008_v60, %v14677_v57  ;;  %v16480_v23 = vmul.f32 %v20009_v44, %v14798_v21  ;;  %v20011_v42 = vld [vmem:[#allocation613_spill] sm:$0xff]  ;;  %v20015_v31 = vld [vmem:[#allocation608_spill] sm:$0xff] }
 0x8ef   :  { %20006 = vst [vmem:[#allocation69_spill] sm:$0xff] %v16471_v25  ;;  %v7558_v55 = vmul.f32 %v20011_v42, %v14798_v21  ;;  %v8639_v34 = vrot.slane %v20012_v11, %v14671_v15  ;;  %v20013_v24 = vld [vmem:[#allocation665_spill] sm:$0xff]  ;;  %20014 = vst [vmem:[#allocation46_spill] sm:$0xff] %v16488_v10  ;;  %v16492_v49 = vmul.f32 %v20015_v31, %v14798_v21  ;;  %v20017_v44 = vld [vmem:[#allocation610_spill] sm:$0xff]  ;;  %8461 = vperm.xlu1 %11070, %v7544_v48  }
 0x8f0   :  { %20010 = vst [vmem:[#allocation582_spill] sm:$0xff] %v16480_v23  ;;  %v8704_v22 = vrot.slane %v20013_v24, %v14649_v52  ;;  %v20016_v12 = vld [vmem:[#allocation609_spill] sm:$0xff]  ;;  %v16500_v1 = vmul.f32 %v20017_v44, %v14798_v21  ;;  %v20018_v42 = vld [vmem:[#allocation667_spill] sm:$0xff]  ;;  %20019 = vst [vmem:[#allocation163_spill] sm:$0xff] %v16504_v62  ;;  %v16533_v50 = vpop.permute.xlu1 %8272 }
 0x8f1   :  { %v16496_v60 = vmul.f32 %v20016_v12, %v14798_v21  ;;  %v8713_v11 = vrot.slane %v20018_v42, %v14659_v54  ;;  %v20020_v24 = vld [vmem:[#allocation615_spill] sm:$0xff]  ;;  %v20021_v31 = vld [vmem:[#allocation617_spill] sm:$0xff]  ;;  %v8640_v12 = vsel %vm2128_vm3, %v8639_v34, %v8635_v9  ;;  %v20022_v43 = vld [vmem:[#allocation654_spill] sm:$0xff]  ;;  %8503 = vperm.xlu0 %11071, %v7558_v55   ;;  %20030 = vst [vmem:[#allocation84_spill] sm:$0xff] %v16533_v50 }
 0x8f2   :  { %v16508_v14 = vmul.f32 %v20020_v24, %v14798_v21  ;;  %v16512_v17 = vmul.f32 %v20021_v31, %v14798_v21  ;;  %v8708_v44 = vrot.slane %v20022_v43, %v14638_v59  ;;  %v20023_v23 = vld [vmem:[#allocation618_spill] sm:$0xff]  ;;  %v20024_v48 = vld [vmem:[#allocation627_spill] sm:$0xff]  ;;  %v8645_v47 = vsel %vm2135_vm4, %v8644_v33, %v8640_v12  ;;  %v20028_v9 = vld [vmem:[#allocation641_spill] sm:$0xff] }
 0x8f3   :  { %v7575_v42 = vmul.f32 %v20023_v23, %v14798_v21  ;;  %v7574_v10 = vmul.f32 %v20024_v48, %v14798_v21  ;;  %v20025_v24 = vld [vmem:[#allocation655_spill] sm:$0xff]  ;;  %v7588_v34 = vmul.f32 %v20028_v9, %v14798_v21  ;;  %v20029_v43 = vld [vmem:[#allocation590_spill] sm:$0xff]  ;;  %v20031_v33 = vld [vmem:[#allocation620_spill] sm:$0xff] }
 0x8f4   :  { %v8654_v45 = vrot.slane %v20025_v24, %v14697_v19  ;;  %v20026_v31 = vld [vmem:[#allocation619_spill] sm:$0xff]  ;;  %v8649_v55 = vrot.slane %v20029_v43, %v14706_v6  ;;  %v8709_v23 = vsel %vm2114_vm1, %v8708_v44, %v8704_v22  ;;  %v16537_v12 = vmul.f32 %v20031_v33, %v14798_v21  ;;  %v20034_v9 = vld [vmem:[#allocation669_spill] sm:$0xff]  ;;  %v16546_v43 = vpop.permute.xlu0 %8314  ;;  %v20038_v33 = vld [vmem:[#allocation656_spill] sm:$0xff]  ;;  %v16573_v2 = vpop.permute.xlu1 %8362 }
 0x8f5   :  { %v16526_v32 = vmul.f32 %v20026_v31, %v14798_v21  ;;  %v11170_v48 = vld [vmem:[#allocation2 + $0x274] ss:$8 sps:$4 sm:$0xff]   ;;  %v8714_v31 = vsel %vm2121_vm2, %v8713_v11, %v8709_v23  ;;  %8551 = vperm.xlu1 %11070, %v7574_v10   ;;  %20035 = vst [vmem:[#allocation48_spill] sm:$0xff] %v16546_v43  ;;  %v20036_v22 = vld [vmem:[#allocation629_spill] sm:$0xff]  ;;  %v8718_v26 = vrot.slane %v20038_v33, %v14671_v15  ;;  %v20045_v33 = vld [vmem:[#allocation634_spill] sm:$0xff] }
 0x8f6   :  { %v20032_v24 = vld [vmem:[#allocation623_spill] sm:$0xff]  ;;  %v16550_v44 = vmul.f32 %v20036_v22, %v14798_v21  ;;  %v8650_v62 = vsel %vm2142_vm5, %v8649_v55, %v8645_v47  ;;  %8593 = vperm.xlu0 %11071, %v7588_v34   ;;  %10780 = vmatprep.subr.bf16.mxu0 %v11170_v48  ;;  %v20040_v23 = vld [vmem:[#allocation632_spill] sm:$0xff]  ;;  %v20046_v48 = vld [vmem:[#allocation645_spill] sm:$0xff]  ;;  %20047 = vst [vmem:[#allocation164_spill] sm:$0xff] %v16573_v2 }
 0x8f7   :  { %20027 = vst [vmem:[#allocation62_spill] sm:$0xff] %v16526_v32  ;;  %v16541_v56 = vmul.f32 %v20032_v24, %v14798_v21  ;;  %v8723_v32 = vrot.slane %v20034_v9, %v14677_v57  ;;  %v20039_v24 = vld [vmem:[#allocation630_spill] sm:$0xff]  ;;  %v16559_v9 = vmul.f32 %v20040_v23, %v14798_v21  ;;  %v8655_v10 = vsel %vm2149_vm6, %v8654_v45, %v8650_v62  ;;  %v20044_v55 = vld [vmem:[#allocation72_spill] sm:$0xff] }
 0x8f8   :  { %20037 = vst [vmem:[#allocation557_spill] sm:$0xff] %v16550_v44  ;;  %v7589_v11 = vmul.f32 %v20039_v24, %v14798_v21  ;;  %v20042_v44 = vld [vmem:[#allocation633_spill] sm:$0xff]  ;;  %v7465_v34 = vmul.f32 %v20045_v33, %v20044_v55  ;;  %v8659_v43 = vrot.slane %v20046_v48, %v14713_v0  ;;  %v8719_v24 = vsel %vm2128_vm3, %v8718_v26, %v8714_v31  ;;  %v20049_v23 = vld [vmem:[#allocation100_spill] sm:$0xff]  ;;  %v16585_v7 = vpop.permute.xlu0 %8404 }
 0x8f9   :  { %20033 = vst [vmem:[#allocation61_spill] sm:$0xff] %v16541_v56  ;;  %v20041_v56 = vld [vmem:[#allocation657_spill] sm:$0xff]  ;;  %v16566_v47 = vmul.f32 %v20042_v44, %v14798_v21  ;;  %v16577_v45 = vmul.f32 %v20045_v33, %v14798_v21  ;;  %v8724_v62 = vsel %vm2135_vm4, %v8723_v32, %v8719_v24  ;;  %8464 = vperm.xlu1 %11070, %v16448_v35   ;;  %20050 = vst [vmem:[#allocation64_spill] sm:$0xff] %v16585_v7  ;;  %v20051_v26 = vld [vmem:[#allocation636_spill] sm:$0xff] }
 0x8fa   :  { %v8664_v22 = vrot.slane %v20041_v56, %v14716_v41  ;;  %v20048_v56 = vld [vmem:[#allocation671_spill] sm:$0xff]  ;;  %v16589_v31 = vmul.f32 %v20051_v26, %v20044_v55  ;;  %v8660_v48 = vsel %vm2156_vm7, %v8659_v43, %v8655_v10  ;;  %v20052_v33 = vld [vmem:[#allocation658_spill] sm:$0xff]  ;;  %8506 = vperm.xlu0 %11071, %v7559_v30   ;;  %v20056_v50 = vld [vmem:[#allocation108_spill] sm:$0xff] }
 0x8fb   :  { %20043 = vst [vmem:[#allocation525_spill] sm:$0xff] %v16566_v47  ;;  %v8733_v44 = vrot.slane %v20048_v56, %v14697_v19  ;;  %v8862_v47 = vrot.slane %v20049_v23, %v14649_v52  ;;  %v8728_v2 = vrot.slane %v20052_v33, %v14706_v6  ;;  %v20053_v32 = vld [vmem:[#allocation131_spill] sm:$0xff]  ;;  %v16598_v56 = vmul.f32 %v20051_v26, %v14798_v21  ;;  %v20058_v33 = vld [vmem:[#allocation644_spill] sm:$0xff] }
 0x8fc   :  { %v8871_v24 = vrot.slane %v20053_v32, %v14659_v54  ;;  %v8665_v35 = vsel %vm2163_vm8, %v8664_v22, %v8660_v48  ;;  %v20055_v23 = vld [vmem:[#allocation659_spill] sm:$0xff]  ;;  %v8866_v63 = vrot.slane %v20056_v50, %v14638_v59  ;;  %v16609_v25 = vmul.f32 %v20058_v33, %v14798_v21  ;;  %v20061_v22 = vld [vmem:[#allocation646_spill] sm:$0xff]  ;;  %v16624_v33 = vpop.permute.xlu0 %8317 }
 0x8fd   :  { %20054 = vst [vmem:[#allocation86_spill] sm:$0xff] %v16598_v56  ;;  %v8674_v7 = vrot.slane %v20055_v23, %v14741_v53  ;;  %v20057_v43 = vld [vmem:[#allocation643_spill] sm:$0xff]  ;;  %v8729_v26 = vsel %vm2142_vm5, %v8728_v2, %v8724_v62  ;;  %v16614_v56 = vpop.permute.xlu1 %8275  ;;  %v16618_v48 = vmul.f32 %v20061_v22, %v20044_v55  ;;  %v20063_v23 = vld [vmem:[#allocation673_spill] sm:$0xff]  ;;  %8554 = vperm.xlu1 %11070, %v7575_v42   ;;  %20064 = vst [vmem:[#allocation77_spill] sm:$0xff] %v16624_v33 }
 0x8fe   :  { %v7590_v10 = vmul.f32 %v20057_v43, %v14798_v21  ;;  %v20059_v30 = vld [vmem:[#allocation647_spill] sm:$0xff]  ;;  %20060 = vst [vmem:[#allocation63_spill] sm:$0xff] %v16614_v56  ;;  %v8734_v50 = vsel %vm2149_vm6, %v8733_v44, %v8729_v26  ;;  %v8743_v43 = vrot.slane %v20063_v23, %v14716_v41  ;;  %v8867_v40 = vsel %vm2114_vm1, %v8866_v63, %v8862_v47  ;;  %v20065_v2 = vld [vmem:[#allocation660_spill] sm:$0xff]  ;;  %v20066_v55 = vld [vmem:[#allocation109_spill] sm:$0xff] }
 0x8ff   :  { %v8669_v32 = vrot.slane %v20059_v30, %v14735_v8  ;;  %20062 = vst [vmem:[#allocation160_spill] sm:$0xff] %v16618_v48  ;;  %v8738_v62 = vrot.slane %v20065_v2, %v14713_v0  ;;  %v8872_v56 = vsel %vm2121_vm2, %v8871_v24, %v8867_v40  ;;  %v8881_v48 = vrot.slane %v20066_v55, %v14677_v57  ;;  %v20067_v26 = vld [vmem:[#allocation661_spill] sm:$0xff]  ;;  %v20069_v47 = vld [vmem:[#allocation98_spill] sm:$0xff] }
 0x900   :  { %8596 = vperm.xlu0 %11071, %v7589_v11   ;;  %v8684_v23 = vrot.slane %v20067_v26, %v14765_v61  ;;  %v20068_v63 = vld [vmem:[#allocation677_spill] sm:$0xff]  ;;  %v20074_v2 = vld [vmem:[#allocation670_spill] sm:$0xff] }
 0x901   :  { %v8670_v30 = vsel %vm2170_vm9, %v8669_v32, %v8665_v35  ;;  %v8783_v42 = vrot.slane %v20068_v63, %v14649_v52  ;;  %v8876_v35 = vrot.slane %v20069_v47, %v14671_v15  ;;  %v16641_v32 = vmul.f32 %v20061_v22, %v14798_v21  ;;  %v20071_v40 = vld [vmem:[#allocation649_spill] sm:$0xff]  ;;  %v20075_v47 = vld [vmem:[#allocation675_spill] sm:$0xff]  ;;  %8224 = vperm.xlu1 %11070, %v7465_v34  }
 0x902   :  { %v8675_v44 = vsel %vm2177_vm10, %v8674_v7, %v8670_v30  ;;  %v8679_v24 = vrot.slane %v20071_v40, %v14756_v18  ;;  %v8739_v11 = vsel %vm2156_vm7, %v8738_v62, %v8734_v50  ;;  %v20072_v7 = vld [vmem:[#allocation104_spill] sm:$0xff]  ;;  %v16648_v30 = vpop.permute.xlu1 %8365  ;;  %v8787_v26 = vrot.slane %v20074_v2, %v14638_v59  ;;  %v20076_v62 = vld [vmem:[#allocation662_spill] sm:$0xff] }
 0x903   :  { %20070 = vst [vmem:[#allocation540_spill] sm:$0xff] %v16641_v32  ;;  %v8792_v55 = vrot.slane %v20072_v7, %v14659_v54  ;;  %20073 = vst [vmem:[#allocation66_spill] sm:$0xff] %v16648_v30  ;;  %v8744_v63 = vsel %vm2163_vm8, %v8743_v43, %v8739_v11  ;;  %v8753_v33 = vrot.slane %v20075_v47, %v14741_v53  ;;  %v16656_v32 = vpop.permute.xlu0 %8407  ;;  %v20077_v30 = vld [vmem:[#allocation103_spill] sm:$0xff]  ;;  %v20078_v43 = vld [vmem:[#allocation596_spill] sm:$0xff] }
 0x904   :  { %v8877_v22 = vsel %vm2128_vm3, %v8876_v35, %v8872_v56  ;;  %v8680_v50 = vsel %vm2184_vm11, %v8679_v24, %v8675_v44  ;;  %v8748_v40 = vrot.slane %v20076_v62, %v14735_v8  ;;  %v8891_v2 = vrot.slane %v20077_v30, %v14697_v19  ;;  %8509 = vperm.xlu0 %11071, %v16508_v14   ;;  %v20079_v35 = vld [vmem:[#allocation110_spill] sm:$0xff]  ;;  %v20080_v24 = vld [vmem:[#allocation663_spill] sm:$0xff]  ;;  %v20081_v30 = vld [vmem:[#allocation97_spill] sm:$0xff] }
 0x905   :  { %v8882_v7 = vsel %vm2135_vm4, %v8881_v48, %v8877_v22  ;;  %v8689_v11 = vrot.slane %v20078_v43, %v14768_v38  ;;  %v8685_v56 = vsel %vm2191_vm12, %v8684_v23, %v8680_v50  ;;  %v8788_v34 = vsel %vm2114_vm1, %v8787_v26, %v8783_v42  ;;  %v20082_v43 = vld [vmem:[#allocation672_spill] sm:$0xff]  ;;  %8518 = vperm.xlu1 %11070, %v16496_v60  }
 0x906   :  { %v8886_v44 = vrot.slane %v20079_v35, %v14706_v6  ;;  %v8694_v47 = vrot.slane %v20080_v24, %v14771_v27  ;;  %v8749_v48 = vsel %vm2170_vm9, %v8748_v40, %v8744_v63  ;;  %v8793_v22 = vsel %vm2121_vm2, %v8792_v55, %v8788_v34  ;;  %v16677_v62 = vpop.permute.xlu1 %8278  ;;  %v20083_v26 = vld [vmem:[#allocation676_spill] sm:$0xff] }
 0x907   :  { %v8802_v14 = vrot.slane %v20081_v30, %v14677_v57  ;;  %v8797_v23 = vrot.slane %v20082_v43, %v14671_v15  ;;  %v8754_v42 = vsel %vm2177_vm10, %v8753_v33, %v8749_v48  ;;  %v8763_v50 = vrot.slane %v20083_v26, %v14765_v61  ;;  %v16686_v63 = vpop.permute.xlu0 %8320  ;;  %v20084_v55 = vld [vmem:[#allocation648_spill] sm:$0xff]  ;;  %v20087_v33 = vld [vmem:[#allocation114_spill] sm:$0xff]  ;;  %v20089_v26 = vld [vmem:[#allocation119_spill] sm:$0xff] }
 0x908   :  { %v8887_v35 = vsel %vm2142_vm5, %v8886_v44, %v8882_v7  ;;  %v16690_v40 = vmul.f32 %v20084_v55, %v14798_v21  ;;  %v20086_v34 = vld [vmem:[#allocation664_spill] sm:$0xff]  ;;  %v8901_v48 = vrot.slane %v20087_v33, %v14716_v41  ;;  %8599 = vperm.xlu0 %11071, %v7590_v10   ;;  %v8690_v60 = vsel %vm2198_vm13, %v8689_v11, %v8685_v56  ;;  %v20092_v11 = vld [vmem:[#allocation674_spill] sm:$0xff] }
 0x909   :  { %v8758_v24 = vrot.slane %v20086_v34, %v14756_v18  ;;  %v8892_v30 = vsel %vm2149_vm6, %v8891_v2, %v8887_v35  ;;  %v20088_v43 = vld [vmem:[#allocation652_spill] sm:$0xff]  ;;  %v8798_v44 = vsel %vm2128_vm3, %v8797_v23, %v8793_v22  ;;  %v8896_v55 = vrot.slane %v20089_v26, %v14713_v0  ;;  %8608 = vperm.xlu1 %11070, %v16577_v45  }
 0x90a   :  { %20085 = vst [vmem:[#allocation566_spill] sm:$0xff] %v16690_v40  ;;  %v8699_v7 = vrot.slane %v20088_v43, %v14776_v58  ;;  %v8695_v21 = vsel %vm2205_vm14, %v8694_v47, %v8690_v60  ;;  %v8803_v2 = vsel %vm2135_vm4, %v8802_v14, %v8798_v44  ;;  %v20090_v35 = vld [vmem:[#allocation116_spill] sm:$0xff]  ;;  %v16708_v10 = vpop.permute.xlu1 %8368  ;;  %v20091_v43 = vld [vmem:[#allocation666_spill] sm:$0xff]  ;;  %v8807_v56 = vrot.slane %v20092_v11, %v14706_v6 }
 0x90b   :  { %v8759_v34 = vsel %vm2184_vm11, %v8758_v24, %v8754_v42  ;;  %v8812_v33 = vrot.slane %v20090_v35, %v14697_v19  ;;  %v8768_v40 = vrot.slane %v20091_v43, %v14768_v38  ;;  %v8897_v23 = vsel %vm2156_vm7, %v8896_v55, %v8892_v30  ;;  %v16717_v47 = vpop.permute.xlu0 %8410  ;;  %v11188_v14 = vld [vmem:[#allocation2 + $0x374] ss:$8 sps:$4 sm:$0xff]   ;;  %v20093_v42 = vld [vmem:[#allocation5_spill] sm:$0xff]  ;;  %v20094_v60 = vld [vmem:[#allocation94_spill] sm:$0xff] }
 0x90c   :  { %v8764_v22 = vsel %vm2191_vm12, %v8763_v50, %v8759_v34  ;;  %v8817_v24 = vrot.slane %v20093_v42, %v14713_v0  ;;  %v8773_v44 = vrot.slane %v20094_v60, %v14771_v27  ;;  %v8902_v26 = vsel %vm2163_vm8, %v8901_v48, %v8897_v23  ;;  %v20095_v35 = vld [vmem:[#allocation147_spill] sm:$0xff]  ;;  %8512 = vperm.xlu0 %11071, %v16492_v49   ;;  %v20096_v45 = vld [vmem:[#allocation28_spill] sm:$0xff]  ;;  %v20097_v48 = vld [vmem:[#allocation118_spill] sm:$0xff] }
 0x90d   :  { %v8911_v43 = vrot.slane %v20095_v35, %v14741_v53  ;;  %v8808_v50 = vsel %vm2142_vm5, %v8807_v56, %v8803_v2  ;;  %v8906_v55 = vrot.slane %v20096_v45, %v14735_v8  ;;  %v9340_v30 = vrot.slane %v16037_v37, %v14638_v59  ;;  %10821 = vmatprep.subr.bf16.mxu1 %v11188_v14  ;;  %v20098_v60 = vld [vmem:[#allocation135_spill] sm:$0xff] }
 0x90e   :  { %v9261_v34 = vrot.slane %v16069_v16, %v14638_v59  ;;  %v8813_v11 = vsel %vm2149_vm6, %v8812_v33, %v8808_v50  ;;  %v8822_v23 = vrot.slane %v20097_v48, %v14716_v41  ;;  %v9266_v49 = vrot.slane %v16099_v39, %v14659_v54  ;;  %v16739_v42 = vpop.permute.xlu1 %8281  ;;  %8470 = vperm.xlu1 %11070, %v16460_v28   ;;  %v20100_v50 = vld [vmem:[#allocation99_spill] sm:$0xff] }
 0x90f   :  { %v8769_v2 = vsel %vm2198_vm13, %v8768_v40, %v8764_v22  ;;  %v8907_v56 = vsel %vm2170_vm9, %v8906_v55, %v8902_v26  ;;  %v9336_v37 = vrot.slane %v15857_v36, %v14649_v52  ;;  %v9257_v16 = vrot.slane %v15886_v20, %v14649_v52  ;;  %v16750_v14 = vpop.permute.xlu0 %8323  ;;  %v20102_v55 = vld [vmem:[#allocation102_spill] sm:$0xff] }
 0x910   :  { %v9271_v33 = vrot.slane %v16166_v13, %v14671_v15  ;;  %v8912_v39 = vsel %vm2177_vm10, %v8911_v43, %v8907_v56  ;;  %v8921_v40 = vrot.slane %v20098_v60, %v14765_v61  ;;  %8602 = vperm.xlu0 %11071, %v16559_v9   ;;  %v8774_v22 = vsel %vm2205_vm14, %v8773_v44, %v8769_v2  ;;  %v20099_v13 = vld [vmem:[#allocation112_spill] sm:$0xff] }
 0x911   :  { %v16758_v36 = vsel %vm2212_vm15, %v8699_v7, %v8695_v21  ;;  %v8818_v20 = vsel %vm2156_vm7, %v8817_v24, %v8813_v11  ;;  %v8916_v26 = vrot.slane %v20099_v13, %v14756_v18  ;;  %v9341_v28 = vsel %vm2114_vm1, %v9340_v30, %v9336_v37  ;;  %v20101_v24 = vld [vmem:[#allocation668_spill] sm:$0xff] }
 0x912   :  { %v9262_v35 = vsel %vm2114_vm1, %v9261_v34, %v9257_v16  ;;  %v8823_v43 = vsel %vm2163_vm8, %v8822_v23, %v8818_v20  ;;  %v8832_v45 = vrot.slane %v20100_v50, %v14741_v53  ;;  %v9345_v9 = vrot.slane %v15914_v4, %v14659_v54  ;;  %v16771_v7 = vpop.permute.xlu1 %8371  ;;  %8560 = vperm.xlu1 %11070, %v16537_v12   ;;  %v20103_v4 = vld [vmem:[#allocation95_spill] sm:$0xff]  ;;  %v20104_v16 = vld [vmem:[#allocation121_spill] sm:$0xff] }
 0x913   :  { %v9267_v21 = vsel %vm2121_vm2, %v9266_v49, %v9262_v35  ;;  %v8778_v44 = vrot.slane %v20101_v24, %v14776_v58  ;;  %v8827_v30 = vrot.slane %v20102_v55, %v14735_v8  ;;  %v8917_v34 = vsel %vm2184_vm11, %v8916_v26, %v8912_v39  ;;  %v16780_v48 = vpop.permute.xlu0 %8413  ;;  %v20107_v50 = vld [vmem:[#allocation555_spill] sm:$0xff] }
 0x914   :  { %v9272_v11 = vsel %vm2128_vm3, %v9271_v33, %v9267_v21  ;;  %v8837_v23 = vrot.slane %v20103_v4, %v14756_v18  ;;  %v8922_v49 = vsel %vm2191_vm12, %v8921_v40, %v8917_v34  ;;  %v9346_v2 = vsel %vm2121_vm2, %v9345_v9, %v9341_v28  ;;  %8515 = vperm.xlu0 %11071, %v16512_v17   ;;  %v20105_v40 = vld [vmem:[#allocation8_spill] sm:$0xff]  ;;  %v20108_v9 = vld [vmem:[#allocation34_spill] sm:$0xff]  ;;  %v20156_v4 = vld [vmem:[#allocation107_spill] sm:$0xff] }
 0x915   :  { %v9276_v56 = vrot.slane %v16060_v51, %v14677_v57  ;;  %v8828_v37 = vsel %vm2170_vm9, %v8827_v30, %v8823_v43  ;;  %v8926_v33 = vrot.slane %v20104_v16, %v14768_v38  ;;  %v9350_v12 = vrot.slane %v15942_v5, %v14671_v15  ;;  %v20106_v51 = vld [vmem:[#allocation101_spill] sm:$0xff]  ;;  %v20112_v34 = vld [vmem:[#allocation42_spill] sm:$0xff] }
 0x916   :  { %v16795_v39 = vsel %vm2212_vm15, %v8778_v44, %v8774_v22  ;;  %v16798_v60 = vsel %vm2177_vm10, %v8832_v45, %v8828_v37  ;;  %v8936_v17 = vrot.slane %v20106_v51, %v14776_v58  ;;  %v16805_v26 = vpop.permute.xlu1 %8284  ;;  %v9281_v28 = vrot.slane %v16124_v46, %v14706_v6  ;;  %8230 = vperm.xlu1 %11070, %v16589_v31   ;;  %v20109_v46 = vld [vmem:[#allocation55_spill] sm:$0xff]  ;;  %v20111_v31 = vld [vmem:[#allocation53_spill] sm:$0xff] }
 0x917   :  { %v9277_v13 = vsel %vm2135_vm4, %v9276_v56, %v9272_v11  ;;  %v9494_v5 = vrot.slane %v16132_v29, %v14649_v52  ;;  %v9351_v22 = vsel %vm2128_vm3, %v9350_v12, %v9346_v2  ;;  %v16813_v35 = vpop.permute.xlu0 %8326  ;;  %v16816_v43 = vsel %vm2198_vm13, %v8926_v33, %v8922_v49  ;;  %v20110_v29 = vld [vmem:[#allocation29_spill] sm:$0xff]  ;;  %v20113_v49 = vld [vmem:[#allocation538_spill] sm:$0xff]  ;;  %v20114_v56 = vld [vmem:[#allocation539_spill] sm:$0xff] }
 0x918   :  { %v9355_v45 = vrot.slane %v20107_v50, %v14677_v57  ;;  %v9286_v21 = vrot.slane %v20108_v9, %v14697_v19  ;;  %v9415_v24 = vrot.slane %v20109_v46, %v14649_v52  ;;  %v9503_v44 = vrot.slane %v20110_v29, %v14659_v54  ;;  %8605 = vperm.xlu0 %11071, %v16609_v25   ;;  %v20115_v33 = vld [vmem:[#allocation523_spill] sm:$0xff]  ;;  %v20118_v29 = vld [vmem:[#allocation57_spill] sm:$0xff] }
 0x919   :  { %v9498_v55 = vrot.slane %v20111_v31, %v14638_v59  ;;  %v9282_v30 = vsel %vm2142_vm5, %v9281_v28, %v9277_v13  ;;  %v9291_v11 = vrot.slane %v20112_v34, %v14713_v0  ;;  %v9360_v2 = vrot.slane %v20113_v49, %v14706_v6  ;;  %v20116_v25 = vld [vmem:[#allocation159_spill] sm:$0xff]  ;;  %v20148_v51 = vld [vmem:[#allocation61_spill] sm:$0xff] }
 0x91a   :  { %v9419_v37 = vrot.slane %v20114_v56, %v14638_v59  ;;  %v9356_v16 = vsel %vm2135_vm4, %v9355_v45, %v9351_v22  ;;  %v9508_v12 = vrot.slane %v20115_v33, %v14671_v15  ;;  %v9296_v50 = vrot.slane %v20116_v25, %v14716_v41  ;;  %v16841_v9 = vpop.permute.xlu1 %8425  ;;  %v20117_v13 = vld [vmem:[#allocation39_spill] sm:$0xff]  ;;  %8524 = vperm.xlu1 %11070, %v16500_v1   ;;  %v20119_v33 = vld [vmem:[#allocation44_spill] sm:$0xff] }
 0x91b   :  { %v9424_v28 = vrot.slane %v20117_v13, %v14659_v54  ;;  %v9499_v46 = vsel %vm2114_vm1, %v9498_v55, %v9494_v5  ;;  %v9365_v31 = vrot.slane %v20118_v29, %v14697_v19  ;;  %v9301_v34 = vrot.slane %v16364_v3, %v14735_v8  ;;  %v16851_v22 = vpop.permute.xlu0 %8416  ;;  %v20120_v5 = vld [vmem:[#allocation69_spill] sm:$0xff]  ;;  %v20121_v3 = vld [vmem:[#allocation31_spill] sm:$0xff]  ;;  %v20122_v29 = vld [vmem:[#allocation84_spill] sm:$0xff] }
 0x91c   :  { %v9287_v45 = vsel %vm2149_vm6, %v9286_v21, %v9282_v30  ;;  %v9420_v49 = vsel %vm2114_vm1, %v9419_v37, %v9415_v24  ;;  %v9504_v56 = vsel %vm2121_vm2, %v9503_v44, %v9499_v46  ;;  %v9306_v25 = vrot.slane %v20119_v33, %v14741_v53  ;;  %8467 = vperm.xlu0 %11071, %v20120_v5   ;;  %v20123_v44 = vld [vmem:[#allocation71_spill] sm:$0xff]  ;;  %v20127_v5 = vld [vmem:[#allocation536_spill] sm:$0xff] }
 0x91d   :  { %v9292_v55 = vsel %vm2156_vm7, %v9291_v11, %v9287_v45  ;;  %v9361_v13 = vsel %vm2142_vm5, %v9360_v2, %v9356_v16  ;;  %v9513_v1 = vrot.slane %v20121_v3, %v14677_v57  ;;  %v9311_v20 = vrot.slane %v20122_v29, %v14756_v18  ;;  %v20124_v37 = vld [vmem:[#allocation63_spill] sm:$0xff]  ;;  %v20128_v29 = vld [vmem:[#allocation48_spill] sm:$0xff] }
 0x91e   :  { %v9509_v21 = vsel %vm2128_vm3, %v9508_v12, %v9504_v56  ;;  %v9297_v24 = vsel %vm2163_vm8, %v9296_v50, %v9292_v55  ;;  %v9370_v30 = vrot.slane %v20123_v44, %v14713_v0  ;;  %v9316_v46 = vrot.slane %v20124_v37, %v14765_v61  ;;  %v16871_v33 = vpop.permute.xlu1 %8428  ;;  %v20125_v16 = vld [vmem:[#allocation51_spill] sm:$0xff]  ;;  %v20126_v56 = vld [vmem:[#allocation86_spill] sm:$0xff] }
 0x91f   :  { %v9366_v11 = vsel %vm2149_vm6, %v9365_v31, %v9361_v13  ;;  %v9302_v2 = vsel %vm2170_vm9, %v9301_v34, %v9297_v24  ;;  %v9375_v45 = vrot.slane %v20125_v16, %v14716_v41  ;;  %v9321_v12 = vrot.slane %v16677_v62, %v14768_v38  ;;  %8614 = vperm.xlu1 %11070, %v20126_v56   ;;  %v8330_v50 = vpop.permute.xlu0 %8329  ;;  %v20129_v34 = vld [vmem:[#allocation557_spill] sm:$0xff] }
 0x920   :  { %v9518_v55 = vrot.slane %v20127_v5, %v14706_v6  ;;  %v9307_v3 = vsel %vm2177_vm10, %v9306_v25, %v9302_v2  ;;  %v9380_v44 = vrot.slane %v20128_v29, %v14735_v8  ;;  %v9326_v31 = vrot.slane %v16739_v42, %v14771_v27  ;;  %8557 = vperm.xlu0 %11071, %v20129_v34   ;;  %v20130_v24 = vld [vmem:[#allocation77_spill] sm:$0xff]  ;;  %v20131_v2 = vld [vmem:[#allocation163_spill] sm:$0xff] }
 0x921   :  { %v9514_v13 = vsel %vm2135_vm4, %v9513_v1, %v9509_v21  ;;  %v9312_v62 = vsel %vm2184_vm11, %v9311_v20, %v9307_v3  ;;  %v9385_v37 = vrot.slane %v20130_v24, %v14741_v53  ;;  %v9331_v16 = vrot.slane %v16805_v26, %v14776_v58  ;;  %v20132_v1 = vld [vmem:[#allocation64_spill] sm:$0xff] }
 0x922   :  { %v9371_v25 = vsel %vm2156_vm7, %v9370_v30, %v9366_v11  ;;  %v9523_v56 = vrot.slane %v20131_v2, %v14697_v19  ;;  %v9317_v5 = vsel %vm2191_vm12, %v9316_v46, %v9312_v62  ;;  %v9390_v42 = vrot.slane %v16686_v63, %v14756_v18  ;;  %v16900_v29 = vpop.permute.xlu1 %8479  ;;  %v20133_v30 = vld [vmem:[#allocation33_spill] sm:$0xff]  ;;  %v20134_v62 = vld [vmem:[#allocation160_spill] sm:$0xff] }
 0x923   :  { %v9376_v20 = vsel %vm2163_vm8, %v9375_v45, %v9371_v25  ;;  %v9528_v21 = vrot.slane %v20132_v1, %v14713_v0  ;;  %v9322_v3 = vsel %vm2198_vm13, %v9321_v12, %v9317_v5  ;;  %v9395_v26 = vrot.slane %v16750_v14, %v14765_v61  ;;  %8476 = vperm.xlu1 %11070, %v20133_v30   ;;  %v8420_v11 = vpop.permute.xlu0 %8419  ;;  %v20136_v5 = vld [vmem:[#allocation566_spill] sm:$0xff] }
 0x924   :  { %v9519_v46 = vsel %vm2142_vm5, %v9518_v55, %v9514_v13  ;;  %v9381_v34 = vsel %vm2170_vm9, %v9380_v44, %v9376_v20  ;;  %v9327_v63 = vsel %vm2205_vm14, %v9326_v31, %v9322_v3  ;;  %v9400_v45 = vrot.slane %v16813_v35, %v14768_v38  ;;  %8227 = vperm.xlu0 %11071, %v20134_v62   ;;  %v20135_v55 = vld [vmem:[#allocation122_spill] sm:$0xff] }
 0x925   :  { %v9386_v24 = vsel %vm2177_vm10, %v9385_v37, %v9381_v34  ;;  %v9533_v12 = vrot.slane %v16656_v32, %v14716_v41  ;;  %v9332_v14 = vsel %vm2212_vm15, %v9331_v16, %v9327_v63  ;;  %v9405_v25 = vrot.slane %v8330_v50, %v14771_v27  ;;  %v20137_v1 = vld [vmem:[#allocation62_spill] sm:$0xff] }
 0x926   :  { %v8931_v13 = vrot.slane %v20135_v55, %v14771_v27  ;;  %v9524_v44 = vsel %vm2149_vm6, %v9523_v56, %v9519_v46  ;;  %v9391_v31 = vsel %vm2184_vm11, %v9390_v42, %v9386_v24  ;;  %v9538_v35 = vrot.slane %v16717_v47, %v14735_v8  ;;  %v16926_v2 = vpop.permute.xlu1 %8431  ;;  %v20139_v30 = vld [vmem:[#allocation54_spill] sm:$0xff]  ;;  %v20140_v24 = vld [vmem:[#allocation525_spill] sm:$0xff] }
 0x927   :  { %v9425_v37 = vsel %vm2121_vm2, %v9424_v28, %v9420_v49  ;;  %v9529_v32 = vsel %vm2156_vm7, %v9528_v21, %v9524_v44  ;;  %v9396_v16 = vsel %vm2191_vm12, %v9395_v26, %v9391_v31  ;;  %v9543_v50 = vrot.slane %v16780_v48, %v14741_v53  ;;  %8617 = vperm.xlu1 %11070, %v20136_v5   ;;  %v8333_v20 = vpop.permute.xlu0 %8332  ;;  %v20138_v49 = vld [vmem:[#allocation52_spill] sm:$0xff]  ;;  %v20142_v55 = vld [vmem:[#allocation45_spill] sm:$0xff] }
 0x928   :  { %v9401_v56 = vsel %vm2198_vm13, %v9400_v45, %v9396_v16  ;;  %v9548_v42 = vrot.slane %v16851_v22, %v14756_v18  ;;  %v9410_v47 = vrot.slane %v8333_v20, %v14776_v58  ;;  %8521 = vperm.xlu0 %11071, %v20137_v1   ;;  %v9886_v28 = vsel %vm3399_vm0, %v9332_v14, %v16758_v36  ;;  %v20141_v14 = vld [vmem:[#allocation60_spill] sm:$0xff]  ;;  %v20146_v20 = vld [vmem:[#allocation47_spill] sm:$0xff] }
 0x929   :  { %v9429_v21 = vrot.slane %v20138_v49, %v14671_v15  ;;  %v9534_v48 = vsel %vm2163_vm8, %v9533_v12, %v9529_v32  ;;  %v9406_v3 = vsel %vm2205_vm14, %v9405_v25, %v9401_v56  ;;  %v9553_v26 = vrot.slane %v8420_v11, %v14765_v61  ;;  %v20145_v32 = vld [vmem:[#allocation161_spill] sm:$0xff]  ;;  %v11168_v49 = vld [vmem:[#allocation2 + $0x270] ss:$8 sps:$4 sm:$0xff]  }
 0x92a   :  { %v9434_v46 = vrot.slane %v20139_v30, %v14677_v57  ;;  %v9539_v22 = vsel %vm2170_vm9, %v9538_v35, %v9534_v48  ;;  %v16949_v34 = vpop.permute.xlu1 %8485  ;;  %v9411_v63 = vsel %vm2212_vm15, %v9410_v47, %v9406_v3  ;;  %v8932_v36 = vsel %vm2205_vm14, %v8931_v13, %v16816_v43  ;;  %v20143_v43 = vld [vmem:[#allocation540_spill] sm:$0xff]  ;;  %v20144_v13 = vld [vmem:[#allocation74_spill] sm:$0xff] }
 0x92b   :  { %v9430_v45 = vsel %vm2128_vm3, %v9429_v21, %v9425_v37  ;;  %v9544_v62 = vsel %vm2177_vm10, %v9543_v50, %v9539_v22  ;;  %8569 = vperm.xlu1 %11070, %v20140_v24   ;;  %v8423_v12 = vpop.permute.xlu0 %8422  ;;  %v9887_v11 = vsel %vm3399_vm0, %v9411_v63, %v16795_v39  ;;  %v9902_v25 = vadd.f32 %v9886_v28, %v20141_v14  ;;  %v20147_v21 = vld [vmem:[#allocation46_spill] sm:$0xff]  ;;  %v20149_v22 = vld [vmem:[#allocation164_spill] sm:$0xff] }
 0x92c   :  { %v9439_v44 = vrot.slane %v20142_v55, %v14706_v6  ;;  %v9549_v31 = vsel %vm2184_vm11, %v9548_v42, %v9544_v62  ;;  %v9558_v35 = vrot.slane %v8423_v12, %v14768_v38  ;;  %8611 = vperm.xlu0 %11071, %v20143_v43   ;;  %v9903_v37 = vadd.f32 %v9887_v11, %v20144_v13  ;;  %v11173_v30 = vld [vmem:[#allocation2 + $0x264] ss:$8 sps:$4 sm:$0xff]   ;;  %v20152_v62 = vld [vmem:[#allocation631_spill] sm:$0xff] }
 0x92d   :  { %v9444_v16 = vrot.slane %v20145_v32, %v14697_v19  ;;  %v9563_v50 = vrot.slane %v16841_v9, %v14771_v27  ;;  %v9554_v39 = vsel %vm2191_vm12, %v9553_v26, %v9549_v31  ;;  %v8937_v5 = vsel %vm2212_vm15, %v8936_v17, %v8932_v36  ;;  %v20150_v36 = vld [vmem:[#allocation582_spill] sm:$0xff]  ;;  %v20154_v43 = vld [vmem:[#allocation527_spill] sm:$0xff] }
 0x92e   :  { %v9449_v56 = vrot.slane %v20146_v20, %v14713_v0  ;;  %v9568_v42 = vrot.slane %v16871_v33, %v14776_v58  ;;  %v9559_v47 = vsel %vm2198_vm13, %v9558_v35, %v9554_v39  ;;  %v16980_v1 = vpop.permute.xlu1 %8488  ;;  %v9911_v28 = vpack.c.bf16 %v9903_v37, %v9903_v37  ;;  %v20153_v11 = vld [vmem:[#allocation66_spill] sm:$0xff]  ;;  %v11176_v39 = vld [vmem:[#allocation2 + $0x254] ss:$8 sps:$4 sm:$0xff]  }
 0x92f   :  { %v9435_v9 = vsel %vm2135_vm4, %v9434_v46, %v9430_v45  ;;  %v9454_v48 = vrot.slane %v20147_v21, %v14716_v41  ;;  %8572 = vperm.xlu1 %11070, %v20148_v51   ;;  %v8375_v17 = vpop.permute.xlu0 %8374  ;;  %v9910_v3 = vpack.c.bf16 %v9902_v25, %v9902_v25  ;;  %v9564_v26 = vsel %vm2205_vm14, %v9563_v50, %v9559_v47  ;;  %v20151_v45 = vld [vmem:[#allocation105_spill] sm:$0xff] }
 0x930   :  { %v9440_v33 = vsel %vm2142_vm5, %v9439_v44, %v9435_v9  ;;  %v9459_v63 = vrot.slane %v20149_v22, %v14735_v8  ;;  %8473 = vperm.xlu0 %11071, %v20150_v36   ;;  %10730 = vmatprep.mubr.bf16.mxu0 %v9911_v28  ;;  %v9569_v46 = vsel %vm2212_vm15, %v9568_v42, %v9564_v26  ;;  %v11171_v37 = vld [vmem:[#allocation2 + $0x260] ss:$8 sps:$4 sm:$0xff]   ;;  %v20163_v26 = vld [vmem:[#allocation648_spill] sm:$0xff] }
 0x931   :  { %v7578_v24 = vmul.f32 %v20152_v62, %v20151_v45  ;;  %v9445_v12 = vsel %vm2149_vm6, %v9444_v16, %v9440_v33  ;;  %v9464_v14 = vrot.slane %v20153_v11, %v14741_v53  ;;  %10731 = vmatmul.mubr.bf16.vlgmr.msra.gmra.mxu0 %v9910_v3  ;;  %v9889_v25 = vsel %vm3399_vm0, %v9569_v46, %v8937_v5  ;;  %v20157_v5 = vld [vmem:[#allocation96_spill] sm:$0xff]  ;;  %v20158_v47 = vld [vmem:[#allocation49_spill] sm:$0xff]  ;;  %v20159_v28 = vld [vmem:[#allocation278_spill] sm:$0xff] }
 0x932   :  { %v8838_v55 = vsel %vm2184_vm11, %v8837_v23, %v16798_v60  ;;  %v9450_v44 = vsel %vm2156_vm7, %v9449_v56, %v9445_v12  ;;  %v9469_v31 = vrot.slane %v16708_v10, %v14756_v18  ;;  %v17006_v35 = vpop.permute.xlu1 %8578  ;;  %v9905_v13 = vadd.f32 %v9889_v25, %v20154_v43  ;;  %10781 = vmatpush1.bf16.msra.mxu0 %v11168_v49  ;;  %v20162_v3 = vld [vmem:[#allocation72_spill] sm:$0xff]  ;;  %v20164_v36 = vld [vmem:[#allocation274_spill] sm:$0xff] }
 0x933   :  { %v20155_v32 = vrot.slane %v20105_v40, %v14765_v61  ;;  %v8852_v50 = vrot.slane %v20156_v4, %v14771_v27  ;;  %v9455_v23 = vsel %vm2163_vm8, %v9454_v48, %v9450_v44  ;;  %v9474_v60 = vrot.slane %v16771_v7, %v14765_v61  ;;  %v8378_v10 = vpop.permute.xlu0 %8377  ;;  %10782 = vmatprep.subr.bf16.mxu0 %v11173_v30  ;;  %v20161_v7 = vld [vmem:[#allocation280_spill] sm:$0xff]  ;;  %v20167_v44 = vld [vmem:[#allocation267_spill] sm:$0xff] }
 0x934   :  { %v8847_v20 = vrot.slane %v20157_v5, %v14768_v38  ;;  %v9460_v56 = vsel %vm2170_vm9, %v9459_v63, %v9455_v23  ;;  %v9479_v40 = vrot.slane %v8375_v17, %v14768_v38  ;;  %8563 = vperm.xlu0 %11071, %v7578_v24   ;;  %v9913_v42 = vpack.c.bf16 %v9905_v13, %v9905_v13  ;;  %v11174_v63 = vld [vmem:[#allocation2 + $0x250] ss:$8 sps:$4 sm:$0xff]   ;;  %v20169_v13 = vld [vmem:[#allocation106_spill] sm:$0xff]  ;;  %v20171_v23 = vld [vmem:[#allocation261_spill] sm:$0xff] }
 0x935   :  { %v8843_v16 = vsel %vm2191_vm12, %v20155_v32, %v8838_v55  ;;  %v20160_v49 = vrot.slane %v20159_v28, %v14659_v54  ;;  %v5717_v21 = vrot.slane %v20161_v7, %v14677_v57  ;;  %v9465_v48 = vsel %vm2177_vm10, %v9464_v14, %v9460_v56  ;;  %v20165_v11 = vld [vmem:[#allocation568_spill] sm:$0xff]  ;;  %v20166_v14 = vld [vmem:[#allocation59_spill] sm:$0xff]  ;;  %v11179_v55 = vld [vmem:[#allocation2 + $0x244] ss:$8 sps:$4 sm:$0xff]  }
 0x936   :  { %v9484_v51 = vrot.slane %v8378_v10, %v14771_v27  ;;  %v7468_v30 = vmul.f32 %v20163_v26, %v20162_v3  ;;  %v8848_v17 = vsel %vm2198_vm13, %v8847_v20, %v8843_v16  ;;  %v9470_v33 = vsel %vm2184_vm11, %v9469_v31, %v9465_v48  ;;  %v17035_v22 = vpop.permute.xlu1 %8491  ;;  %10771 = vmatprep.mubr.bf16.mxu1 %v9913_v42  ;;  %v20170_v4 = vld [vmem:[#allocation260_spill] sm:$0xff]  ;;  %v20172_v5 = vld [vmem:[#allocation622_spill] sm:$0xff] }
 0x937   :  { %v5708_v9 = vsel %vm2121_vm2, %v20160_v49, %v20158_v47  ;;  %10783 = vmatpush1.bf16.msra.mxu0 %v11171_v37  ;;  %v3382_v46 = vrot.slane %v20164_v36, %v14765_v61  ;;  %v8853_v62 = vsel %vm2205_vm14, %v8852_v50, %v8848_v17  ;;  %v9475_v24 = vsel %vm2191_vm12, %v9474_v60, %v9470_v33  ;;  %v8381_v12 = vpop.permute.xlu0 %8380  ;;  %v11177_v49 = vld [vmem:[#allocation2 + $0x240] ss:$8 sps:$4 sm:$0xff]   ;;  %v11182_v33 = vld [vmem:[#allocation2 + $0x234] ss:$8 sps:$4 sm:$0xff]  }
 0x938   :  { %v6645_v25 = vsel %vm3399_vm0, %v20166_v14, %v20165_v11  ;;  %10784 = vmatprep.subr.bf16.mxu0 %v11176_v39  ;;  %v20168_v31 = vrot.slane %v20167_v44, %v14671_v15  ;;  %v8857_v37 = vrot.slane %v20169_v13, %v14776_v58  ;;  %v9480_v32 = vsel %vm2198_vm13, %v9479_v40, %v9475_v24  ;;  %v20173_v40 = vld [vmem:[#allocation157_spill] sm:$0xff]  ;;  %v20178_v14 = vld [vmem:[#allocation271_spill] sm:$0xff] }
 0x939   :  { %v9489_v16 = vrot.slane %v8381_v12, %v14776_v58  ;;  %8233 = vperm.xlu0 %11071, %v7468_v30   ;;  %v3313_v50 = vrot.slane %v20170_v4, %v14771_v27  ;;  %v3377_v60 = vrot.slane %v20171_v23, %v14756_v18  ;;  %v9485_v39 = vsel %vm2205_vm14, %v9484_v51, %v9480_v32  ;;  %v20176_v51 = vld [vmem:[#allocation282_spill] sm:$0xff]  ;;  %v20177_v12 = vld [vmem:[#allocation276_spill] sm:$0xff] }
 0x93a   :  { %v5713_v43 = vsel %vm2128_vm3, %v20168_v31, %v5708_v9  ;;  %v7579_v20 = vmul.f32 %v20172_v5, %v20151_v45  ;;  %v17061_v42 = vpop.permute.xlu1 %8530  ;;  %v6661_v47 = vadd.f32 %v6645_v25, %v20173_v40  ;;  %v8858_v28 = vsel %vm2212_vm15, %v8857_v37, %v8853_v62  ;;  %v20174_v9 = vld [vmem:[#allocation20_spill] sm:$0xff]  ;;  %v11194_v23 = vld [vmem:[#allocation2 + $0x364] ss:$8 sps:$4 sm:$0xff]  }
 0x93b   :  { %v5718_v10 = vsel %vm2135_vm4, %v5717_v21, %v5713_v43  ;;  %v9490_v56 = vsel %vm2212_vm15, %v9489_v16, %v9485_v39  ;;  %10785 = vmatpush1.bf16.msra.mxu0 %v11174_v63  ;;  %v3378_v7 = vsel %vm2184_vm11, %v3377_v60, %v20174_v9  ;;  %v20175_v21 = vld [vmem:[#allocation269_spill] sm:$0xff]  ;;  %v5727_v26 = vrot.slane %v20176_v51, %v14697_v19  ;;  %v8483_v30 = vpop.permute.xlu0 %8482  ;;  %v11186_v31 = vld [vmem:[#allocation2 + $0x370] ss:$8 sps:$4 sm:$0xff]  }
 0x93c   :  { %v5722_v48 = vrot.slane %v20175_v21, %v14706_v6  ;;  %v9888_v17 = vsel %vm3399_vm0, %v9490_v56, %v8858_v28  ;;  %10786 = vmatprep.subr.bf16.mxu0 %v11179_v55  ;;  %v3383_v36 = vsel %vm2191_vm12, %v3382_v46, %v3378_v7  ;;  %v9652_v63 = vrot.slane %v16900_v29, %v14649_v52  ;;  %v20179_v46 = vld [vmem:[#allocation638_spill] sm:$0xff]  ;;  %v11180_v16 = vld [vmem:[#allocation2 + $0x230] ss:$8 sps:$4 sm:$0xff]   ;;  %v20182_v28 = vld [vmem:[#allocation233_spill] sm:$0xff] }
 0x93d   :  { %v9656_v62 = vrot.slane %v8483_v30, %v14638_v59  ;;  %8566 = vperm.xlu0 %11071, %v7579_v20   ;;  %v9904_v24 = vadd.f32 %v9888_v17, %v6661_v47  ;;  %v3392_v11 = vrot.slane %v20177_v12, %v14771_v27  ;;  %v5732_v25 = vrot.slane %v20178_v14, %v14713_v0  ;;  %v20181_v47 = vld [vmem:[#allocation554_spill] sm:$0xff]  ;;  %v20184_v9 = vld [vmem:[#allocation35_spill] sm:$0xff] }
 0x93e   :  { %v5723_v44 = vsel %vm2142_vm5, %v5722_v48, %v5718_v10  ;;  %v9661_v55 = vrot.slane %v16949_v34, %v14659_v54  ;;  %v7469_v43 = vmul.f32 %v20179_v46, %v20162_v3  ;;  %v9666_v29 = vrot.slane %v16980_v1, %v14671_v15  ;;  %v17088_v37 = vpop.permute.xlu1 %8443  ;;  %v20180_v10 = vld [vmem:[#allocation284_spill] sm:$0xff]  ;;  %v11185_v1 = vld [vmem:[#allocation2 + $0x224] ss:$8 sps:$4 sm:$0xff]   ;;  %v20185_v7 = vld [vmem:[#allocation247_spill] sm:$0xff] }
 0x93f   :  { %v9657_v13 = vsel %vm2114_vm1, %v9656_v62, %v9652_v63  ;;  %v9912_v32 = vpack.c.bf16 %v9904_v24, %v9904_v24  ;;  %10787 = vmatpush1.bf16.msra.mxu0 %v11177_v49  ;;  %v5728_v60 = vsel %vm2149_vm6, %v5727_v26, %v5723_v44  ;;  %v5737_v34 = vrot.slane %v20180_v10, %v14716_v41  ;;  %v8435_v5 = vpop.permute.xlu0 %8434  ;;  %v11192_v30 = vld [vmem:[#allocation2 + $0x360] ss:$8 sps:$4 sm:$0xff]   ;;  %v11200_v12 = vld [vmem:[#allocation2 + $0x354] ss:$8 sps:$4 sm:$0xff]  }
 0x940   :  { %v9671_v39 = vrot.slane %v17035_v22, %v14677_v57  ;;  %v9662_v3 = vsel %vm2121_vm2, %v9661_v55, %v9657_v13  ;;  %10788 = vmatprep.subr.bf16.mxu0 %v11182_v33  ;;  %v9573_v20 = vrot.slane %v16926_v2, %v14649_v52  ;;  %v9577_v56 = vrot.slane %v8435_v5, %v14638_v59  ;;  %v20187_v2 = vld [vmem:[#allocation263_spill] sm:$0xff]  ;;  %v11183_v24 = vld [vmem:[#allocation2 + $0x220] ss:$8 sps:$4 sm:$0xff]  }
 0x941   :  { %8236 = vperm.xlu0 %11071, %v7469_v43   ;;  %10772 = vmatmul.mubr.bf16.vlgmr.msra.gmra.mxu1 %v9912_v32  ;;  %v9667_v40 = vsel %vm2128_vm3, %v9666_v29, %v9662_v3  ;;  %v20183_v49 = vrot.slane %v20182_v28, %v14776_v58  ;;  %v20186_v21 = vrot.slane %v20185_v7, %v14768_v38  ;;  %v20188_v55 = vld [vmem:[#allocation286_spill] sm:$0xff]  ;;  %v20189_v29 = vld [vmem:[#allocation273_spill] sm:$0xff]  ;;  %v20190_v32 = vld [vmem:[#allocation292_spill] sm:$0xff] }
 0x942   :  { %v3387_v51 = vrot.slane %v20187_v2, %v14768_v38  ;;  %v17113_v26 = vsel %vm2135_vm4, %v9671_v39, %v9667_v40  ;;  %10822 = vmatpush1.bf16.msra.mxu1 %v11186_v31  ;;  %v5733_v17 = vsel %vm2156_vm7, %v5732_v25, %v5728_v60  ;;  %v7597_v33 = vmul.f32 %v20179_v46, %v20151_v45  ;;  %v17119_v62 = vpop.permute.xlu1 %8533  ;;  %v11191_v46 = vld [vmem:[#allocation2 + $0x214] ss:$8 sps:$4 sm:$0xff]   ;;  %v20193_v60 = vld [vmem:[#allocation249_spill] sm:$0xff]  ;;  %v11198_v5 = vld [vmem:[#allocation2 + $0x350] ss:$8 sps:$4 sm:$0xff]  }
 0x943   :  { %v3240_v22 = vsel %vm2212_vm15, %v20183_v49, %v20181_v47  ;;  %v3309_v48 = vsel %vm2198_vm13, %v20186_v21, %v20184_v9  ;;  %v9578_v63 = vsel %vm2114_vm1, %v9577_v56, %v9573_v20  ;;  %10789 = vmatpush1.bf16.msra.mxu0 %v11180_v16  ;;  %10823 = vmatprep.subr.bf16.mxu1 %v11194_v23  ;;  %v8438_v31 = vpop.permute.xlu0 %8437  ;;  %v20192_v16 = vld [vmem:[#allocation23_spill] sm:$0xff]  ;;  %v11206_v49 = vld [vmem:[#allocation2 + $0x344] ss:$8 sps:$4 sm:$0xff]  }
 0x944   :  { %v3314_v14 = vsel %vm2205_vm14, %v3313_v50, %v3309_v48  ;;  %v3388_v44 = vsel %vm2198_vm13, %v3387_v51, %v3383_v36  ;;  %v5738_v25 = vsel %vm2163_vm8, %v5737_v34, %v5733_v17  ;;  %v5747_v45 = vrot.slane %v20188_v55, %v14741_v53  ;;  %10790 = vmatprep.subr.bf16.mxu0 %v11185_v1  ;;  %v20191_v36 = vld [vmem:[#allocation125_spill] sm:$0xff]  ;;  %v11189_v28 = vld [vmem:[#allocation2 + $0x210] ss:$8 sps:$4 sm:$0xff]  }
 0x945   :  { %v3393_v43 = vsel %vm2205_vm14, %v3392_v11, %v3388_v44  ;;  %v5742_v13 = vrot.slane %v20189_v29, %v14735_v8  ;;  %v5777_v4 = vrot.slane %v20190_v32, %v14649_v52  ;;  %v9582_v50 = vrot.slane %v8438_v31, %v14659_v54  ;;  %8620 = vperm.xlu0 %11071, %v7597_v33   ;;  %v20194_v34 = vld [vmem:[#allocation265_spill] sm:$0xff]  ;;  %v20195_v11 = vld [vmem:[#allocation294_spill] sm:$0xff]  ;;  %v20197_v51 = vld [vmem:[#allocation139_spill] sm:$0xff] }
 0x946   :  { %v3404_v23 = vsel %vm3399_vm0, %v20192_v16, %v20191_v36  ;;  %v3318_v10 = vrot.slane %v20193_v60, %v14776_v58  ;;  %v3397_v39 = vrot.slane %v20194_v34, %v14776_v58  ;;  %v5786_v3 = vrot.slane %v20195_v11, %v14659_v54  ;;  %10824 = vmatpush1.bf16.msra.mxu1 %v11192_v30  ;;  %v20196_v1 = vld [vmem:[#allocation281_spill] sm:$0xff]  ;;  %v17148_v47 = vpop.permute.xlu1 %8446  ;;  %v20198_v17 = vld [vmem:[#allocation288_spill] sm:$0xff]  ;;  %v20204_v29 = vld [vmem:[#allocation15_spill] sm:$0xff] }
 0x947   :  { %v5781_v20 = vrot.slane %v20196_v1, %v14638_v59  ;;  %v5743_v56 = vsel %vm2170_vm9, %v5742_v13, %v5738_v25  ;;  %v9583_v40 = vsel %vm2121_vm2, %v9582_v50, %v9578_v63  ;;  %10791 = vmatpush1.bf16.msra.mxu0 %v11183_v24  ;;  %10825 = vmatprep.subr.bf16.mxu1 %v11200_v12  ;;  %v8576_v48 = vpop.permute.xlu0 %8575  ;;  %v11197_v2 = vld [vmem:[#allocation2 + $0x204] ss:$8 sps:$4 sm:$0xff]   ;;  %v20200_v55 = vld [vmem:[#allocation296_spill] sm:$0xff]  ;;  %v11195_v60 = vld [vmem:[#allocation2 + $0x200] ss:$8 sps:$4 sm:$0xff]  }
 0x948   :  { %v3319_v9 = vsel %vm2212_vm15, %v3318_v10, %v3314_v14  ;;  %v3398_v7 = vsel %vm2212_vm15, %v3397_v39, %v3393_v43  ;;  %v5748_v21 = vsel %vm2177_vm10, %v5747_v45, %v5743_v56  ;;  %10792 = vmatprep.subr.bf16.mxu0 %v11191_v46  ;;  %v3405_v30 = vsel %vm3399_vm0, %v3240_v22, %v20197_v51  ;;  %v20199_v14 = vld [vmem:[#allocation275_spill] sm:$0xff]  ;;  %v11204_v22 = vld [vmem:[#allocation2 + $0x340] ss:$8 sps:$4 sm:$0xff]   ;;  %v20203_v43 = vld [vmem:[#allocation124_spill] sm:$0xff] }
 0x949   :  { %v5757_v33 = vrot.slane %v20198_v17, %v14765_v61  ;;  %v5782_v63 = vsel %vm2114_vm1, %v5781_v20, %v5777_v4  ;;  %v9814_v24 = vrot.slane %v17006_v35, %v14638_v59  ;;  %v9810_v12 = vrot.slane %v8576_v48, %v14649_v52  ;;  %v17169_v31 = vld [vmem:[%s17993_s2] sm:$0xff]  ;;  %v20206_v4 = vld [vmem:[#allocation283_spill] sm:$0xff]  ;;  %v20207_v34 = vld [vmem:[#allocation10_spill] sm:$0xff] }
 0x94a   :  { %v5752_v44 = vrot.slane %v20199_v14, %v14756_v18  ;;  %v5787_v25 = vsel %vm2121_vm2, %v5786_v3, %v5782_v63  ;;  %v5796_v45 = vrot.slane %v20200_v55, %v14677_v57  ;;  %10826 = vmatpush1.bf16.msra.mxu1 %v11198_v5  ;;  %20201 = vst [vmem:[#allocation165_spill] sm:$0xff] %v17169_v31  ;;  %v17183_v16 = vpop.permute.xlu1 %8536  ;;  %v11212_v10 = vld [vmem:[#allocation2 + $0x334] ss:$8 sps:$4 sm:$0xff]   ;;  %v20209_v5 = vld [vmem:[#allocation25_spill] sm:$0xff] }
 0x94b   :  { %v20205_v13 = vrot.slane %v20203_v43, %v20204_v29  ;;  %v5791_v50 = vrot.slane %v20206_v4, %v14671_v15  ;;  %v17181_v36 = vsel %vm2114_vm1, %v9814_v24, %v9810_v12  ;;  %10793 = vmatpush1.bf16.msra.mxu0 %v11189_v28  ;;  %10827 = vmatprep.subr.bf16.mxu1 %v11206_v49  ;;  %v11203_v3 = vld [vmem:[#allocation2 + $0x2f4] ss:$8 sps:$4 sm:$0xff]   ;;  %v20211_v56 = vld [vmem:[#allocation141_spill] sm:$0xff]  ;;  %v11210_v12 = vld [vmem:[#allocation2 + $0x330] ss:$8 sps:$4 sm:$0xff]  }
 0x94c   :  { %v17187_v39 = vsel %vm3399_vm0, %v3319_v9, %v20207_v34  ;;  %v5753_v11 = vsel %vm2184_vm11, %v5752_v44, %v5748_v21  ;;  %10794 = vmatprep.subr.bf16.mxu0 %v11197_v2  ;;  %v20210_v1 = vrot.slane %v20203_v43, %v20209_v5  ;;  %v17197_v28 = vsel %vm3399_vm0, %v3398_v7, %v20211_v56  ;;  %v20213_v49 = vld [vmem:[#allocation277_spill] sm:$0xff]  ;;  %v20216_v14 = vld [vmem:[#allocation287_spill] sm:$0xff]  ;;  %v20217_v4 = vld [vmem:[#allocation290_spill] sm:$0xff] }
 0x94d   :  { %v17176_v32 = vadd.f32 %v3404_v23, %v20205_v13  ;;  %20208 = vst [vmem:[#allocation170_spill] sm:$0xff] %v17187_v39  ;;  %v8441_v23 = vpop.permute.xlu0 %8440  ;;  %20212 = vst [vmem:[#allocation88_spill] sm:$0xff] %v17197_v28  ;;  %v5762_v48 = vrot.slane %v20213_v49, %v14768_v38  ;;  %v5758_v9 = vsel %vm2191_vm12, %v5757_v33, %v5753_v11  ;;  %v20214_v2 = vld [vmem:[#allocation285_spill] sm:$0xff]  ;;  %v11201_v29 = vld [vmem:[#allocation2 + $0x2f0] ss:$8 sps:$4 sm:$0xff]  }
 0x94e   :  { %v17193_v20 = vadd.f32 %v3405_v30, %v20210_v1  ;;  %v5792_v51 = vsel %vm2128_vm3, %v5791_v50, %v5787_v25  ;;  %v9587_v21 = vrot.slane %v8441_v23, %v14671_v15  ;;  %v5801_v17 = vrot.slane %v20214_v2, %v14706_v6  ;;  %v20215_v30 = vld [vmem:[#allocation298_spill] sm:$0xff]  ;;  %10828 = vmatpush1.bf16.msra.mxu1 %v11204_v22  ;;  %v8450_v55 = vpop.permute.xlu1 %8449  ;;  %v20218_v5 = vld [vmem:[#allocation300_spill] sm:$0xff] }
 0x94f   :  { %v5797_v63 = vsel %vm2135_vm4, %v5796_v45, %v5792_v51  ;;  %v5806_v24 = vrot.slane %v20215_v30, %v14697_v19  ;;  %v9592_v7 = vrot.slane %v17088_v37, %v14677_v57  ;;  %v5811_v33 = vrot.slane %v20216_v14, %v14713_v0  ;;  %10795 = vmatpush1.bf16.msra.mxu0 %v11195_v60  ;;  %v11218_v45 = vld [vmem:[#allocation2 + $0x324] ss:$8 sps:$4 sm:$0xff]   ;;  %v11216_v49 = vld [vmem:[#allocation2 + $0x320] ss:$8 sps:$4 sm:$0xff]   ;;  %v11215_v14 = vld [vmem:[#allocation2 + $0x2d4] ss:$8 sps:$4 sm:$0xff]  }
 0x950   :  { %v9597_v44 = vrot.slane %v17148_v47, %v14706_v6  ;;  %v9588_v25 = vsel %vm2128_vm3, %v9587_v21, %v9583_v40  ;;  %10829 = vmatprep.subr.bf16.mxu1 %v11212_v10  ;;  %v5763_v13 = vsel %vm2198_vm13, %v5762_v48, %v5758_v9  ;;  %v5767_v37 = vrot.slane %v20217_v4, %v14771_v27  ;;  %v11209_v11 = vld [vmem:[#allocation2 + $0x2e4] ss:$8 sps:$4 sm:$0xff]   ;;  %v20219_v48 = vld [vmem:[#allocation308_spill] sm:$0xff]  ;;  %v11207_v2 = vld [vmem:[#allocation2 + $0x2e0] ss:$8 sps:$4 sm:$0xff]  }
 0x951   :  { %v9593_v22 = vsel %vm2135_vm4, %v9592_v7, %v9588_v25  ;;  %v9602_v50 = vrot.slane %v8450_v55, %v14697_v19  ;;  %v8528_v34 = vpop.permute.xlu0 %8527  ;;  %10796 = vmatprep.subr.bf16.mxu0 %v11203_v3  ;;  %v5802_v47 = vsel %vm2142_vm5, %v5801_v17, %v5797_v63  ;;  %v9735_v40 = vrot.slane %v17061_v42, %v14638_v59  ;;  %v11224_v17 = vld [vmem:[#allocation2 + $0x314] ss:$8 sps:$4 sm:$0xff]   ;;  %v11258_v28 = vld [vmem:[#allocation2 + $0x390] ss:$8 sps:$4 sm:$0xff]  }
 0x952   :  { %v9598_v60 = vsel %vm2142_vm5, %v9597_v44, %v9593_v22  ;;  %v9731_v10 = vrot.slane %v8528_v34, %v14649_v52  ;;  %v5807_v23 = vsel %vm2149_vm6, %v5806_v24, %v5802_v47  ;;  %v5816_v1 = vrot.slane %v20218_v5, %v14716_v41  ;;  %10830 = vmatpush1.bf16.msra.mxu1 %v11210_v12  ;;  %v8540_v21 = vpop.permute.xlu1 %8539  ;;  %v11222_v34 = vld [vmem:[#allocation2 + $0x310] ss:$8 sps:$4 sm:$0xff]  }
 0x953   :  { %v9740_v56 = vrot.slane %v17119_v62, %v14659_v54  ;;  %v9603_v3 = vsel %vm2149_vm6, %v9602_v50, %v9598_v60  ;;  %v5856_v9 = vrot.slane %v20219_v48, %v14649_v52  ;;  %v9745_v42 = vrot.slane %v17183_v16, %v14671_v15  ;;  %10797 = vmatpush2.bf16.msra.mxu0 %v11201_v29  ;;  %v20220_v62 = vld [vmem:[#allocation310_spill] sm:$0xff]  ;;  %v20221_v16 = vld [vmem:[#allocation297_spill] sm:$0xff] }
 0x954   :  { %v9736_v51 = vsel %vm2114_vm1, %v9735_v40, %v9731_v10  ;;  %10831 = vmatprep.subr.bf16.mxu1 %v11218_v45  ;;  %v5768_v63 = vsel %vm2205_vm14, %v5767_v37, %v5763_v13  ;;  %v5865_v30 = vrot.slane %v20220_v62, %v14659_v54  ;;  %v9750_v7 = vrot.slane %v8540_v21, %v14677_v57  ;;  %v20222_v45 = vld [vmem:[#allocation279_spill] sm:$0xff]  ;;  %v20223_v37 = vld [vmem:[#allocation302_spill] sm:$0xff]  ;;  %v20228_v62 = vld [vmem:[#allocation293_spill] sm:$0xff] }
 0x955   :  { %v9741_v24 = vsel %vm2121_vm2, %v9740_v56, %v9736_v51  ;;  %v8582_v12 = vpop.permute.xlu0 %8581  ;;  %10798 = vmatprep.subr.bf16.mxu0 %v11209_v11  ;;  %v5860_v44 = vrot.slane %v20221_v16, %v14638_v59  ;;  %v5812_v25 = vsel %vm2156_vm7, %v5811_v33, %v5807_v23  ;;  %v5772_v13 = vrot.slane %v20222_v45, %v14776_v58  ;;  %v20224_v11 = vld [vmem:[#allocation289_spill] sm:$0xff]  ;;  %v11213_v10 = vld [vmem:[#allocation2 + $0x2d0] ss:$8 sps:$4 sm:$0xff]  }
 0x956   :  { %v9746_v55 = vsel %vm2128_vm3, %v9745_v42, %v9741_v24  ;;  %v9819_v29 = vrot.slane %v8582_v12, %v14659_v54  ;;  %v5817_v4 = vsel %vm2163_vm8, %v5816_v1, %v5812_v25  ;;  %v5826_v22 = vrot.slane %v20223_v37, %v14741_v53  ;;  %10832 = vmatpush1.bf16.msra.mxu1 %v11216_v49  ;;  %v8453_v60 = vpop.permute.xlu1 %8452  ;;  %v11230_v23 = vld [vmem:[#allocation2 + $0x304] ss:$8 sps:$4 sm:$0xff]   ;;  %v20225_v56 = vld [vmem:[#allocation312_spill] sm:$0xff]  ;;  %v20227_v21 = vld [vmem:[#allocation299_spill] sm:$0xff] }
 0x957   :  { %v9751_v50 = vsel %vm2135_vm4, %v9750_v7, %v9746_v55  ;;  %v5821_v47 = vrot.slane %v20224_v11, %v14735_v8  ;;  %v5861_v33 = vsel %vm2114_vm1, %v5860_v44, %v5856_v9  ;;  %10799 = vmatpush2.bf16.msra.mxu0 %v11207_v2  ;;  %10833 = vmatprep.subr.bf16.mxu1 %v11224_v17  ;;  %v11221_v9 = vld [vmem:[#allocation2 + $0x2c4] ss:$8 sps:$4 sm:$0xff]   ;;  %v20229_v24 = vld [vmem:[#allocation295_spill] sm:$0xff]  ;;  %v11228_v16 = vld [vmem:[#allocation2 + $0x300] ss:$8 sps:$4 sm:$0xff]  }
 0x958   :  { %v9820_v40 = vsel %vm2121_vm2, %v9819_v29, %v17181_v36  ;;  %v17259_v5 = vsel %vm2212_vm15, %v5772_v13, %v5768_v63  ;;  %v5866_v1 = vsel %vm2121_vm2, %v5865_v30, %v5861_v33  ;;  %v5875_v49 = vrot.slane %v20225_v56, %v14677_v57  ;;  %10800 = vmatprep.subr.bf16.mxu0 %v11215_v14  ;;  %v20226_v36 = vld [vmem:[#allocation291_spill] sm:$0xff]  ;;  %v20230_v44 = vld [vmem:[#allocation304_spill] sm:$0xff]  ;;  %v11219_v13 = vld [vmem:[#allocation2 + $0x2c0] ss:$8 sps:$4 sm:$0xff]  }
 0x959   :  { %v9607_v48 = vrot.slane %v8453_v60, %v14713_v0  ;;  %v8495_v42 = vpop.permute.xlu0 %8494  ;;  %v5831_v51 = vrot.slane %v20226_v36, %v14756_v18  ;;  %v5870_v2 = vrot.slane %v20227_v21, %v14671_v15  ;;  %v5822_v17 = vsel %vm2170_vm9, %v5821_v47, %v5817_v4  ;;  %v11236_v4 = vld [vmem:[#allocation2 + $0x3f4] ss:$8 sps:$4 sm:$0xff]   ;;  %v20235_v56 = vld [vmem:[#allocation470_spill] sm:$0xff]  ;;  %v20236_v36 = vld [vmem:[#allocation313_spill] sm:$0xff] }
 0x95a   :  { %v9676_v63 = vrot.slane %v8495_v42, %v14706_v6  ;;  %v5841_v30 = vrot.slane %v20228_v62, %v14768_v38  ;;  %v5827_v12 = vsel %vm2177_vm10, %v5826_v22, %v5822_v17  ;;  %10834 = vmatpush1.bf16.msra.mxu1 %v11222_v34  ;;  %v5836_v25 = vrot.slane %v20230_v44, %v14765_v61  ;;  %v8543_v45 = vpop.permute.xlu1 %8542  ;;  %v20232_v34 = vld [vmem:[#allocation324_spill] sm:$0xff]  ;;  %v20238_v44 = vld [vmem:[#allocation351_spill] sm:$0xff] }
 0x95b   :  { %v17277_v14 = vsel %vm2156_vm7, %v9607_v48, %v9603_v3  ;;  %v5871_v55 = vsel %vm2128_vm3, %v5870_v2, %v5866_v1  ;;  %10801 = vmatpush2.bf16.msra.mxu0 %v11213_v10  ;;  %10835 = vmatprep.subr.bf16.mxu1 %v11230_v23  ;;  %v20231_v3 = vld [vmem:[#allocation314_spill] sm:$0xff]  ;;  %v5935_v11 = vrot.slane %v20232_v34, %v14649_v52  ;;  %v11227_v60 = vld [vmem:[#allocation2 + $0x2b4] ss:$8 sps:$4 sm:$0xff]  }
 0x95c   :  { %v17284_v29 = vsel %vm2142_vm5, %v9676_v63, %v17113_v26  ;;  %v5876_v37 = vsel %vm2135_vm4, %v5875_v49, %v5871_v55  ;;  %v5885_v22 = vrot.slane %v20231_v3, %v14697_v19  ;;  %v9755_v47 = vrot.slane %v8543_v45, %v14706_v6  ;;  %10802 = vmatprep.subr.bf16.mxu0 %v11221_v9  ;;  %v20233_v26 = vld [vmem:[#allocation301_spill] sm:$0xff]  ;;  %v20234_v10 = vld [vmem:[#allocation326_spill] sm:$0xff]  ;;  %v20237_v2 = vld [vmem:[#allocation472_spill] sm:$0xff] }
 0x95d   :  { %v8585_v33 = vpop.permute.xlu0 %8584  ;;  %v5880_v1 = vrot.slane %v20233_v26, %v14706_v6  ;;  %v5944_v23 = vrot.slane %v20234_v10, %v14659_v54  ;;  %v6330_v49 = vrot.slane %v20235_v56, %v14649_v52  ;;  %v5832_v42 = vsel %vm2184_vm11, %v5831_v51, %v5827_v12  ;;  %v11234_v63 = vld [vmem:[#allocation2 + $0x3f0] ss:$8 sps:$4 sm:$0xff]   ;;  %v11242_v12 = vld [vmem:[#allocation2 + $0x3e4] ss:$8 sps:$4 sm:$0xff]  }
 0x95e   :  { %v9824_v48 = vrot.slane %v8585_v33, %v14671_v15  ;;  %v5939_v21 = vrot.slane %v20236_v36, %v14638_v59  ;;  %v6339_v9 = vrot.slane %v20237_v2, %v14659_v54  ;;  %v9756_v17 = vsel %vm2142_vm5, %v9755_v47, %v9751_v50  ;;  %10836 = vmatpush1.bf16.msra.mxu1 %v11228_v16  ;;  %v17309_v3 = vpop.permute.xlu1 %8455  ;;  %v11225_v51 = vld [vmem:[#allocation2 + $0x2b0] ss:$8 sps:$4 sm:$0xff]   ;;  %v11233_v26 = vld [vmem:[#allocation2 + $0x2a4] ss:$8 sps:$4 sm:$0xff]  }
 0x95f   :  { %v5881_v62 = vsel %vm2142_vm5, %v5880_v1, %v5876_v37  ;;  %v6334_v55 = vrot.slane %v20238_v44, %v14638_v59  ;;  %10803 = vmatpush2.bf16.msra.mxu0 %v11219_v13  ;;  %10837 = vmatprep.subr.bf16.mxu1 %v11236_v4  ;;  %v5837_v34 = vsel %vm2191_vm12, %v5836_v25, %v5832_v42  ;;  %v20239_v50 = vld [vmem:[#allocation316_spill] sm:$0xff] }
 0x960   :  { %v9825_v45 = vsel %vm2128_vm3, %v9824_v48, %v9820_v40  ;;  %v5886_v33 = vsel %vm2149_vm6, %v5885_v22, %v5881_v62  ;;  %v5895_v16 = vrot.slane %v20239_v50, %v14716_v41  ;;  %v5940_v37 = vsel %vm2114_vm1, %v5939_v21, %v5935_v11  ;;  %10804 = vmatprep.subr.bf16.mxu0 %v11227_v60  ;;  %v20240_v40 = vld [vmem:[#allocation303_spill] sm:$0xff]  ;;  %v20241_v4 = vld [vmem:[#allocation328_spill] sm:$0xff]  ;;  %v20242_v22 = vld [vmem:[#allocation305_spill] sm:$0xff] }
 0x961   :  { %v17316_v47 = vpop.permute.xlu0 %8497  ;;  %v5890_v1 = vrot.slane %v20240_v40, %v14713_v0  ;;  %v5945_v13 = vsel %vm2121_vm2, %v5944_v23, %v5940_v37  ;;  %v5954_v10 = vrot.slane %v20241_v4, %v14677_v57  ;;  %v6335_v25 = vsel %vm2114_vm1, %v6334_v55, %v6330_v49  ;;  %v20243_v48 = vld [vmem:[#allocation315_spill] sm:$0xff]  ;;  %v20244_v60 = vld [vmem:[#allocation474_spill] sm:$0xff]  ;;  %v20245_v49 = vld [vmem:[#allocation461_spill] sm:$0xff] }
 0x962   :  { %v5900_v56 = vrot.slane %v20242_v22, %v14735_v8  ;;  %v5949_v11 = vrot.slane %v20243_v48, %v14671_v15  ;;  %v6340_v42 = vsel %vm2121_vm2, %v6339_v9, %v6335_v25  ;;  %v6349_v36 = vrot.slane %v20244_v60, %v14677_v57  ;;  %10838 = vmatpush2.bf16.msra.mxu1 %v11234_v63  ;;  %v11240_v21 = vld [vmem:[#allocation2 + $0x3e0] ss:$8 sps:$4 sm:$0xff]   ;;  %v8546_v44 = vpop.permute.xlu1 %8545  ;;  %v11248_v50 = vld [vmem:[#allocation2 + $0x3d4] ss:$8 sps:$4 sm:$0xff]   ;;  %v11246_v60 = vld [vmem:[#allocation2 + $0x3d0] ss:$8 sps:$4 sm:$0xff]  }
 0x963   :  { %v17332_v23 = vsel %vm2198_vm13, %v5841_v30, %v5837_v34  ;;  %v5891_v2 = vsel %vm2156_vm7, %v5890_v1, %v5886_v33  ;;  %v6344_v62 = vrot.slane %v20245_v49, %v14671_v15  ;;  %10805 = vmatpush2.bf16.msra.mxu0 %v11225_v51  ;;  %v11231_v55 = vld [vmem:[#allocation2 + $0x2a0] ss:$8 sps:$4 sm:$0xff]   ;;  %10839 = vmatprep.subr.bf16.mxu1 %v11242_v12  ;;  %v11239_v33 = vld [vmem:[#allocation2 + $0x294] ss:$8 sps:$4 sm:$0xff]  }
 0x964   :  { %v5896_v9 = vsel %vm2163_vm8, %v5895_v16, %v5891_v2  ;;  %v20246_v37 = vld [vmem:[#allocation318_spill] sm:$0xff]  ;;  %v5950_v63 = vsel %vm2128_vm3, %v5949_v11, %v5945_v13  ;;  %v9760_v30 = vrot.slane %v8546_v44, %v14697_v19  ;;  %10806 = vmatprep.subr.bf16.mxu0 %v11233_v26  ;;  %v20247_v1 = vld [vmem:[#allocation317_spill] sm:$0xff]  ;;  %v20249_v13 = vld [vmem:[#allocation476_spill] sm:$0xff] }
 0x965   :  { %v5905_v40 = vrot.slane %v20246_v37, %v14741_v53  ;;  %v8588_v34 = vpop.permute.xlu0 %8587  ;;  %v5959_v4 = vrot.slane %v20247_v1, %v14706_v6  ;;  %v5955_v51 = vsel %vm2135_vm4, %v5954_v10, %v5950_v63  ;;  %v6345_v12 = vsel %vm2128_vm3, %v6344_v62, %v6340_v42  ;;  %v20248_v16 = vld [vmem:[#allocation330_spill] sm:$0xff]  ;;  %v20250_v10 = vld [vmem:[#allocation463_spill] sm:$0xff] }
 0x966   :  { %v9829_v25 = vrot.slane %v8588_v34, %v14677_v57  ;;  %v5964_v22 = vrot.slane %v20248_v16, %v14697_v19  ;;  %v6350_v48 = vsel %vm2135_vm4, %v6349_v36, %v6345_v12  ;;  %v6359_v11 = vrot.slane %v20249_v13, %v14697_v19  ;;  %10840 = vmatpush2.bf16.msra.mxu1 %v11240_v21  ;;  %v17357_v62 = vpop.permute.xlu1 %8458  ;;  %v11237_v44 = vld [vmem:[#allocation2 + $0x290] ss:$8 sps:$4 sm:$0xff]   ;;  %v11251_v36 = vld [vmem:[#allocation2 + $0x3c4] ss:$8 sps:$4 sm:$0xff]  }
 0x967   :  { %v9761_v26 = vsel %vm2149_vm6, %v9760_v30, %v9756_v17  ;;  %v5901_v2 = vsel %vm2170_vm9, %v5900_v56, %v5896_v9  ;;  %v6354_v49 = vrot.slane %v20250_v10, %v14706_v6  ;;  %10807 = vmatpush2.bf16.msra.mxu0 %v11231_v55  ;;  %10841 = vmatprep.subr.bf16.mxu1 %v11248_v50  ;;  %v20251_v37 = vld [vmem:[#allocation306_spill] sm:$0xff]  ;;  %v20252_v17 = vld [vmem:[#allocation307_spill] sm:$0xff]  ;;  %v20253_v56 = vld [vmem:[#allocation320_spill] sm:$0xff] }
 0x968   :  { %v9830_v42 = vsel %vm2135_vm4, %v9829_v25, %v9825_v45  ;;  %v5846_v63 = vrot.slane %v20251_v37, %v14771_v27  ;;  %v5910_v21 = vrot.slane %v20252_v17, %v14756_v18  ;;  %v5906_v30 = vsel %vm2177_vm10, %v5905_v40, %v5901_v2  ;;  %10808 = vmatprep.subr.bf16.mxu0 %v11239_v33  ;;  %v11245_v45 = vld [vmem:[#allocation2 + $0x284] ss:$8 sps:$4 sm:$0xff]   ;;  %v20255_v50 = vld [vmem:[#allocation319_spill] sm:$0xff]  ;;  %v11249_v17 = vld [vmem:[#allocation2 + $0x3c0] ss:$8 sps:$4 sm:$0xff]  }
 0x969   :  { %v5915_v9 = vrot.slane %v20253_v56, %v14765_v61  ;;  %v17366_v34 = vpop.permute.xlu0 %8500  ;;  %v20254_v55 = vld [vmem:[#allocation309_spill] sm:$0xff]  ;;  %v5969_v12 = vrot.slane %v20255_v50, %v14713_v0  ;;  %v5960_v25 = vsel %vm2142_vm5, %v5959_v4, %v5955_v51  ;;  %v6355_v16 = vsel %vm2142_vm5, %v6354_v49, %v6350_v48  ;;  %v20256_v2 = vld [vmem:[#allocation478_spill] sm:$0xff]  ;;  %v20259_v4 = vld [vmem:[#allocation488_spill] sm:$0xff] }
 0x96a   :  { %v5920_v1 = vrot.slane %v20254_v55, %v14768_v38  ;;  %v5965_v13 = vsel %vm2149_vm6, %v5964_v22, %v5960_v25  ;;  %v6360_v40 = vsel %vm2149_vm6, %v6359_v11, %v6355_v16  ;;  %v6369_v10 = vrot.slane %v20256_v2, %v14716_v41  ;;  %v20257_v33 = vld [vmem:[#allocation486_spill] sm:$0xff]  ;;  %10842 = vmatpush2.bf16.msra.mxu1 %v11246_v60  ;;  %v20258_v55 = vld [vmem:[#allocation465_spill] sm:$0xff]  ;;  %v8549_v48 = vpop.permute.xlu1 %8548  ;;  %v11254_v11 = vld [vmem:[#allocation2 + $0x3b4] ss:$8 sps:$4 sm:$0xff]  }
 0x96b   :  { %v6409_v37 = vrot.slane %v20257_v33, %v14649_v52  ;;  %v5911_v56 = vsel %vm2184_vm11, %v5910_v21, %v5906_v30  ;;  %v6364_v50 = vrot.slane %v20258_v55, %v14713_v0  ;;  %v6418_v51 = vrot.slane %v20259_v4, %v14659_v54  ;;  %10809 = vmatpush2.bf16.msra.mxu0 %v11237_v44  ;;  %v11243_v22 = vld [vmem:[#allocation2 + $0x280] ss:$8 sps:$4 sm:$0xff]   ;;  %v20260_v25 = vld [vmem:[#allocation332_spill] sm:$0xff]  ;;  %v20261_v60 = vld [vmem:[#allocation475_spill] sm:$0xff] }
 0x96c   :  { %10843 = vmatprep.subr.bf16.mxu1 %v11251_v36  ;;  %v5916_v49 = vsel %vm2191_vm12, %v5915_v9, %v5911_v56  ;;  %v5974_v16 = vrot.slane %v20260_v25, %v14716_v41  ;;  %v6413_v2 = vrot.slane %v20261_v60, %v14638_v59  ;;  %v9765_v21 = vrot.slane %v8549_v48, %v14713_v0  ;;  %v20262_v55 = vld [vmem:[#allocation467_spill] sm:$0xff]  ;;  %v20263_v56 = vld [vmem:[#allocation480_spill] sm:$0xff] }
 0x96d   :  { %v8591_v30 = vpop.permute.xlu0 %8590  ;;  %10810 = vmatprep.subr.bf16.mxu0 %v11245_v45  ;;  %v5970_v33 = vsel %vm2156_vm7, %v5969_v12, %v5965_v13  ;;  %v6374_v44 = vrot.slane %v20262_v55, %v14735_v8  ;;  %v6365_v36 = vsel %vm2156_vm7, %v6364_v50, %v6360_v40  ;;  %v6379_v25 = vrot.slane %v20263_v56, %v14741_v53  ;;  %v11252_v45 = vld [vmem:[#allocation2 + $0x3b0] ss:$8 sps:$4 sm:$0xff]   ;;  %v20265_v13 = vld [vmem:[#allocation490_spill] sm:$0xff] }
 0x96e   :  { %v9834_v4 = vrot.slane %v8591_v30, %v14706_v6  ;;  %v6370_v9 = vsel %vm2163_vm8, %v6369_v10, %v6365_v36  ;;  %v6414_v60 = vsel %vm2114_vm1, %v6413_v2, %v6409_v37  ;;  %v17401_v48 = vsel %vm2156_vm7, %v9765_v21, %v9761_v26  ;;  %10844 = vmatpush2.bf16.msra.mxu1 %v11249_v17  ;;  %v17407_v50 = vpop.permute.xlu1 %8461  ;;  %v11257_v10 = vld [vmem:[#allocation2 + $0x3a4] ss:$8 sps:$4 sm:$0xff]   ;;  %v20266_v17 = vld [vmem:[#allocation415_spill] sm:$0xff] }
 0x96f   :  { %20264 = vst [vmem:[#allocation162_spill] sm:$0xff] %v17401_v48  ;;  %v6419_v12 = vsel %vm2121_vm2, %v6418_v51, %v6414_v60  ;;  %v6428_v55 = vrot.slane %v20265_v13, %v14677_v57  ;;  %10811 = vmatpush2.bf16.msra.mxu0 %v11243_v22  ;;  %10845 = vmatprep.subr.bf16.mxu1 %v11254_v11  ;;  %v20267_v51 = vld [vmem:[#allocation477_spill] sm:$0xff]  ;;  %v20271_v56 = vld [vmem:[#allocation482_spill] sm:$0xff] }
 0x970   :  { %v9835_v40 = vsel %vm2142_vm5, %v9834_v4, %v9830_v42  ;;  %v17411_v37 = vsel %vm2205_vm14, %v5846_v63, %v17332_v23  ;;  %v5975_v26 = vsel %vm2163_vm8, %v5974_v16, %v5970_v33  ;;  %v5984_v2 = vrot.slane %v20266_v17, %v14741_v53  ;;  %v20268_v42 = vld [vmem:[#allocation311_spill] sm:$0xff]  ;;  %v20269_v22 = vld [vmem:[#allocation321_spill] sm:$0xff]  ;;  %v20270_v63 = vld [vmem:[#allocation322_spill] sm:$0xff] }
 0x971   :  { %v6423_v21 = vrot.slane %v20267_v51, %v14671_v15  ;;  %v17418_v30 = vpop.permute.xlu0 %8503  ;;  %v5930_v36 = vrot.slane %v20268_v42, %v14776_v58  ;;  %v5979_v11 = vrot.slane %v20269_v22, %v14735_v8  ;;  %v5921_v4 = vsel %vm2198_vm13, %v5920_v1, %v5916_v49  ;;  %v11255_v17 = vld [vmem:[#allocation2 + $0x3a0] ss:$8 sps:$4 sm:$0xff]   ;;  %v20273_v49 = vld [vmem:[#allocation492_spill] sm:$0xff] }
 0x972   :  { %v6375_v23 = vsel %vm2170_vm9, %v6374_v44, %v6370_v9  ;;  %v5925_v16 = vrot.slane %v20270_v63, %v14771_v27  ;;  %v6389_v60 = vrot.slane %v20271_v56, %v14765_v61  ;;  %10846 = vmatpush2.bf16.msra.mxu1 %v11252_v45  ;;  %v20272_v42 = vld [vmem:[#allocation469_spill] sm:$0xff]  ;;  %v6438_v44 = vrot.slane %v20273_v49, %v14697_v19  ;;  %v17438_v9 = vpop.permute.xlu1 %8551 }
 0x973   :  { %v6380_v33 = vsel %vm2177_vm10, %v6379_v25, %v6375_v23  ;;  %v6424_v13 = vsel %vm2128_vm3, %v6423_v21, %v6419_v12  ;;  %v5980_v51 = vsel %vm2170_vm9, %v5979_v11, %v5975_v26  ;;  %v6384_v22 = vrot.slane %v20272_v42, %v14756_v18  ;;  %10847 = vmatprep.subr.bf16.mxu1 %v11257_v10  ;;  %v11260_v25 = vld [vmem:[#allocation2 + $0x394] ss:$8 sps:$4 sm:$0xff]   ;;  %v20278_v10 = vld [vmem:[#allocation502_spill] sm:$0xff] }
 0x974   :  { %v6429_v1 = vsel %vm2135_vm4, %v6428_v55, %v6424_v13  ;;  %v20274_v23 = vld [vmem:[#allocation323_spill] sm:$0xff]  ;;  %v5985_v45 = vsel %vm2177_vm10, %v5984_v2, %v5980_v51  ;;  %v6488_v49 = vrot.slane %v20278_v10, %v14649_v52  ;;  %v20279_v2 = vld [vmem:[#allocation484_spill] sm:$0xff]  ;;  %v20282_v10 = vld [vmem:[#allocation494_spill] sm:$0xff] }
 0x975   :  { %v5989_v63 = vrot.slane %v20274_v23, %v14756_v18  ;;  %v20275_v12 = vld [vmem:[#allocation335_spill] sm:$0xff]  ;;  %v8594_v56 = vpop.permute.xlu0 %8593  ;;  %v6385_v42 = vsel %vm2184_vm11, %v6384_v22, %v6380_v33  ;;  %v6399_v51 = vrot.slane %v20279_v2, %v14771_v27 }
 0x976   :  { %v5994_v26 = vrot.slane %v20275_v12, %v14765_v61  ;;  %v20276_v21 = vld [vmem:[#allocation479_spill] sm:$0xff]  ;;  %v9839_v35 = vrot.slane %v8594_v56, %v14697_v19  ;;  %v6390_v23 = vsel %vm2191_vm12, %v6389_v60, %v6385_v42  ;;  %10848 = vmatpush2.bf16.msra.mxu1 %v11255_v17  ;;  %v6448_v56 = vrot.slane %v20282_v10, %v14716_v41  ;;  %v17467_v42 = vpop.permute.xlu1 %8464  ;;  %v20284_v17 = vld [vmem:[#allocation325_spill] sm:$0xff] }
 0x977   :  { %v6433_v11 = vrot.slane %v20276_v21, %v14706_v6  ;;  %v20277_v55 = vld [vmem:[#allocation471_spill] sm:$0xff]  ;;  %v20280_v21 = vld [vmem:[#allocation504_spill] sm:$0xff]  ;;  %10849 = vmatprep.subr.bf16.mxu1 %v11260_v25  ;;  %v5999_v2 = vrot.slane %v20284_v17, %v14768_v38 }
 0x978   :  { %v6394_v13 = vrot.slane %v20277_v55, %v14768_v38  ;;  %v6497_v7 = vrot.slane %v20280_v21, %v14659_v54  ;;  %v20281_v55 = vld [vmem:[#allocation491_spill] sm:$0xff]  ;;  %v17465_v60 = vsel %vm2149_vm6, %v9839_v35, %v9835_v40  ;;  %v5990_v21 = vsel %vm2184_vm11, %v5989_v63, %v5985_v45  ;;  %v20286_v35 = vld [vmem:[#allocation337_spill] sm:$0xff]  ;;  %v20287_v45 = vld [vmem:[#allocation506_spill] sm:$0xff] }
 0x979   :  { %v6434_v12 = vsel %vm2142_vm5, %v6433_v11, %v6429_v1  ;;  %v6492_v33 = vrot.slane %v20281_v55, %v14638_v59  ;;  %20283 = vst [vmem:[#allocation171_spill] sm:$0xff] %v17465_v60  ;;  %v11263_v1 = vld [vmem:[#allocation2 + $0x384] ss:$8 sps:$4 sm:$0xff]   ;;  %v5926_v11 = vsel %vm2205_vm14, %v5925_v16, %v5921_v4  ;;  %v5995_v10 = vsel %vm2191_vm12, %v5994_v26, %v5990_v21 }
 0x97a   :  { %v6439_v22 = vsel %vm2149_vm6, %v6438_v44, %v6434_v12  ;;  %v20285_v55 = vld [vmem:[#allocation481_spill] sm:$0xff]  ;;  %v17475_v12 = vpop.permute.xlu0 %8506  ;;  %v6004_v40 = vrot.slane %v20286_v35, %v14771_v27  ;;  %v6395_v25 = vsel %vm2198_vm13, %v6394_v13, %v6390_v23  ;;  %v6507_v17 = vrot.slane %v20287_v45, %v14677_v57  ;;  %10850 = vmatpush2.bf16.msra.mxu1 %v11258_v28 }
 0x97b   :  { %v6443_v44 = vrot.slane %v20285_v55, %v14713_v0  ;;  %v6493_v46 = vsel %vm2114_vm1, %v6492_v33, %v6488_v49  ;;  %v6400_v4 = vsel %vm2205_vm14, %v6399_v51, %v6395_v25  ;;  %v11261_v55 = vld [vmem:[#allocation2 + $0x380] ss:$8 sps:$4 sm:$0xff]   ;;  %v20290_v49 = vld [vmem:[#allocation496_spill] sm:$0xff]  ;;  %v17494_v51 = vpop.permute.xlu1 %8554  ;;  %10851 = vmatprep.subr.bf16.mxu1 %v11263_v1  ;;  %v6000_v33 = vsel %vm2198_vm13, %v5999_v2, %v5995_v10  ;;  %v20294_v25 = vld [vmem:[#allocation327_spill] sm:$0xff] }
 0x97c   :  { %v6498_v63 = vsel %vm2121_vm2, %v6497_v7, %v6493_v46  ;;  %v20288_v26 = vld [vmem:[#allocation473_spill] sm:$0xff]  ;;  %v6458_v23 = vrot.slane %v20290_v49, %v14741_v53  ;;  %v20291_v46 = vrot.slane %v20229_v24, %v14776_v58  ;;  %v17504_v7 = vsel %vm2212_vm15, %v5930_v36, %v5926_v11  ;;  %v20295_v11 = vld [vmem:[#allocation508_spill] sm:$0xff]  ;;  %v20296_v10 = vld [vmem:[#allocation518_spill] sm:$0xff] }
 0x97d   :  { %v6444_v16 = vsel %vm2156_vm7, %v6443_v44, %v6439_v22  ;;  %v6404_v21 = vrot.slane %v20288_v26, %v14776_v58  ;;  %v20289_v35 = vld [vmem:[#allocation493_spill] sm:$0xff]  ;;  %20292 = vst [vmem:[#allocation79_spill] sm:$0xff] %v17504_v7  ;;  %v20293_v22 = vld [vmem:[#allocation483_spill] sm:$0xff]  ;;  %v6009_v1 = vrot.slane %v20294_v25, %v14776_v58  ;;  %v6517_v2 = vrot.slane %v20295_v11, %v14697_v19 }
 0x97e   :  { %v6502_v31 = vrot.slane %v20289_v35, %v14671_v15  ;;  %v6449_v13 = vsel %vm2163_vm8, %v6448_v56, %v6444_v16  ;;  %v17501_v28 = vsel %vm2212_vm15, %v20291_v46, %v17411_v37  ;;  %v6453_v56 = vrot.slane %v20293_v22, %v14735_v8  ;;  %v17509_v44 = vpop.permute.xlu0 %8596  ;;  %10852 = vmatpush2.bf16.msra.mxu1 %v11261_v55  ;;  %v20297_v35 = vld [vmem:[#allocation495_spill] sm:$0xff]  ;;  %v20302_v55 = vld [vmem:[#allocation485_spill] sm:$0xff] }
 0x97f   :  { %v6005_v16 = vsel %vm2205_vm14, %v6004_v40, %v6000_v33  ;;  %v6405_v24 = vsel %vm2212_vm15, %v6404_v21, %v6400_v4  ;;  %v6567_v26 = vrot.slane %v20296_v10, %v14649_v52  ;;  %v6512_v49 = vrot.slane %v20297_v35, %v14706_v6  ;;  %v20298_v4 = vld [vmem:[#allocation498_spill] sm:$0xff]  ;;  %v20304_v25 = vld [vmem:[#allocation487_spill] sm:$0xff] }
 0x980   :  { %v6503_v37 = vsel %vm2128_vm3, %v6502_v31, %v6498_v63  ;;  %v6454_v45 = vsel %vm2170_vm9, %v6453_v56, %v6449_v13  ;;  %v6468_v21 = vrot.slane %v20298_v4, %v14765_v61  ;;  %v20299_v31 = vld [vmem:[#allocation520_spill] sm:$0xff]  ;;  %v17529_v13 = vpop.permute.xlu1 %8224  ;;  %v17536_v46 = vsel %vm3399_vm0, %v6405_v24, %v17259_v5  ;;  %v20307_v35 = vld [vmem:[#allocation510_spill] sm:$0xff] }
 0x981   :  { %v6508_v36 = vsel %vm2135_vm4, %v6507_v17, %v6503_v37  ;;  %v6459_v40 = vsel %vm2177_vm10, %v6458_v23, %v6454_v45  ;;  %v6576_v63 = vrot.slane %v20299_v31, %v14659_v54  ;;  %20300 = vst [vmem:[#allocation75_spill] sm:$0xff] %v17529_v13  ;;  %v17532_v17 = vsel %vm2212_vm15, %v6009_v1, %v6005_v16  ;;  %v20303_v23 = vld [vmem:[#allocation507_spill] sm:$0xff]  ;;  %v20305_v45 = vld [vmem:[#allocation489_spill] sm:$0xff]  ;;  %v20318_v13 = vld [vmem:[#allocation512_spill] sm:$0xff] }
 0x982   :  { %20301 = vst [vmem:[#allocation570_spill] sm:$0xff] %v17532_v17  ;;  %v6463_v33 = vrot.slane %v20302_v55, %v14756_v18  ;;  %v6571_v22 = vrot.slane %v20303_v23, %v14638_v59  ;;  %v17542_v56 = vpop.permute.xlu0 %8509  ;;  %v6473_v37 = vrot.slane %v20304_v25, %v14768_v38  ;;  %v6483_v11 = vrot.slane %v20305_v45, %v14776_v58  ;;  %v20306_v1 = vld [vmem:[#allocation497_spill] sm:$0xff]  ;;  %v20308_v25 = vld [vmem:[#allocation522_spill] sm:$0xff] }
 0x983   :  { %v6522_v16 = vrot.slane %v20306_v1, %v14713_v0  ;;  %v6513_v5 = vsel %vm2142_vm5, %v6512_v49, %v6508_v36  ;;  %v6527_v4 = vrot.slane %v20307_v35, %v14716_v41  ;;  %v6586_v45 = vrot.slane %v20308_v25, %v14677_v57  ;;  %v20309_v1 = vld [vmem:[#allocation142_spill] sm:$0xff]  ;;  %v20310_v49 = vld [vmem:[#allocation499_spill] sm:$0xff] }
 0x984   :  { %v6464_v24 = vsel %vm2184_vm11, %v6463_v33, %v6459_v40  ;;  %v6518_v10 = vsel %vm2149_vm6, %v6517_v2, %v6513_v5  ;;  %v6572_v31 = vsel %vm2114_vm1, %v6571_v22, %v6567_v26  ;;  %v9020_v17 = vrot.slane %v20309_v1, %v14649_v52  ;;  %v17562_v36 = vpop.permute.xlu1 %8518  ;;  %v20311_v40 = vld [vmem:[#allocation509_spill] sm:$0xff]  ;;  %v20315_v25 = vld [vmem:[#allocation151_spill] sm:$0xff] }
 0x985   :  { %v6469_v55 = vsel %vm2191_vm12, %v6468_v21, %v6464_v24  ;;  %v6577_v23 = vsel %vm2121_vm2, %v6576_v63, %v6572_v31  ;;  %v6532_v2 = vrot.slane %v20310_v49, %v14735_v8  ;;  %v6581_v33 = vrot.slane %v20311_v40, %v14671_v15  ;;  %v20312_v26 = vld [vmem:[#allocation113_spill] sm:$0xff]  ;;  %v20314_v24 = vld [vmem:[#allocation500_spill] sm:$0xff] }
 0x986   :  { %v8941_v22 = vrot.slane %v20312_v26, %v14649_v52  ;;  %v20313_v21 = vld [vmem:[#allocation129_spill] sm:$0xff]  ;;  %v17572_v5 = vpop.permute.xlu0 %8599  ;;  %v6478_v35 = vrot.slane %v20314_v24, %v14771_v27  ;;  %v6523_v31 = vsel %vm2156_vm7, %v6522_v16, %v6518_v10  ;;  %v8950_v1 = vrot.slane %v20315_v25, %v14659_v54  ;;  %v20319_v10 = vld [vmem:[#allocation524_spill] sm:$0xff] }
 0x987   :  { %v9029_v63 = vrot.slane %v20313_v21, %v14659_v54  ;;  %v20316_v49 = vld [vmem:[#allocation117_spill] sm:$0xff]  ;;  %v6474_v40 = vsel %vm2198_vm13, %v6473_v37, %v6469_v55  ;;  %v6528_v26 = vsel %vm2163_vm8, %v6527_v4, %v6523_v31  ;;  %v6582_v43 = vsel %vm2128_vm3, %v6581_v33, %v6577_v23  ;;  %v20321_v37 = vld [vmem:[#allocation511_spill] sm:$0xff] }
 0x988   :  { %v9024_v39 = vrot.slane %v20316_v49, %v14638_v59  ;;  %v20317_v21 = vld [vmem:[#allocation133_spill] sm:$0xff]  ;;  %v6537_v24 = vrot.slane %v20318_v13, %v14741_v53  ;;  %v6587_v16 = vsel %vm2135_vm4, %v6586_v45, %v6582_v43  ;;  %v6596_v25 = vrot.slane %v20319_v10, %v14697_v19  ;;  %v17592_v49 = vpop.permute.xlu1 %8608  ;;  %v20322_v33 = vld [vmem:[#allocation11_spill] sm:$0xff] }
 0x989   :  { %v8945_v7 = vrot.slane %v20317_v21, %v14638_v59  ;;  %20320 = vst [vmem:[#allocation50_spill] sm:$0xff] %v17592_v49  ;;  %v6591_v4 = vrot.slane %v20321_v37, %v14706_v6  ;;  %v9039_v31 = vrot.slane %v20322_v33, %v14677_v57  ;;  %v6479_v43 = vsel %vm2205_vm14, %v6478_v35, %v6474_v40  ;;  %v20324_v21 = vld [vmem:[#allocation153_spill] sm:$0xff] }
 0x98a   :  { %v9025_v60 = vsel %vm2114_vm1, %v9024_v39, %v9020_v17  ;;  %v17600_v13 = vpop.permute.xlu0 %8512  ;;  %v20323_v39 = vld [vmem:[#allocation115_spill] sm:$0xff]  ;;  %v9034_v10 = vrot.slane %v20324_v21, %v14671_v15  ;;  %v20325_v37 = vld [vmem:[#allocation501_spill] sm:$0xff] }
 0x98b   :  { %v8946_v55 = vsel %vm2114_vm1, %v8945_v7, %v8941_v22  ;;  %v9030_v23 = vsel %vm2121_vm2, %v9029_v63, %v9025_v60  ;;  %v8960_v17 = vrot.slane %v20323_v39, %v14677_v57  ;;  %v6542_v7 = vrot.slane %v20325_v37, %v14756_v18  ;;  %v20326_v63 = vld [vmem:[#allocation120_spill] sm:$0xff]  ;;  %v20328_v37 = vld [vmem:[#allocation526_spill] sm:$0xff] }
 0x98c   :  { %v8951_v45 = vsel %vm2121_vm2, %v8950_v1, %v8946_v55  ;;  %v6533_v60 = vsel %vm2170_vm9, %v6532_v2, %v6528_v26  ;;  %v6592_v22 = vsel %vm2142_vm5, %v6591_v4, %v6587_v16  ;;  %v8955_v33 = vrot.slane %v20326_v63, %v14671_v15  ;;  %v20327_v1 = vld [vmem:[#allocation514_spill] sm:$0xff]  ;;  %v17619_v21 = vpop.permute.xlu1 %8470  ;;  %v20329_v16 = vld [vmem:[#allocation155_spill] sm:$0xff] }
 0x98d   :  { %v6538_v35 = vsel %vm2177_vm10, %v6537_v24, %v6533_v60  ;;  %v6547_v40 = vrot.slane %v20327_v1, %v14765_v61  ;;  %v6597_v55 = vsel %vm2149_vm6, %v6596_v25, %v6592_v22  ;;  %v9035_v39 = vsel %vm2128_vm3, %v9034_v10, %v9030_v23  ;;  %v20330_v60 = vld [vmem:[#allocation513_spill] sm:$0xff]  ;;  %v20331_v23 = vld [vmem:[#allocation127_spill] sm:$0xff]  ;;  %v20332_v22 = vld [vmem:[#allocation140_spill] sm:$0xff] }
 0x98e   :  { %v6606_v49 = vrot.slane %v20328_v37, %v14716_v41  ;;  %v8956_v2 = vsel %vm2128_vm3, %v8955_v33, %v8951_v45  ;;  %v9040_v26 = vsel %vm2135_vm4, %v9039_v31, %v9035_v39  ;;  %v9049_v4 = vrot.slane %v20329_v16, %v14697_v19  ;;  %v17627_v24 = vpop.permute.xlu0 %8602  ;;  %v20333_v31 = vld [vmem:[#allocation503_spill] sm:$0xff] }
 0x98f   :  { %v6601_v63 = vrot.slane %v20330_v60, %v14713_v0  ;;  %v8961_v25 = vsel %vm2135_vm4, %v8960_v17, %v8956_v2  ;;  %v8970_v10 = vrot.slane %v20331_v23, %v14697_v19  ;;  %v9044_v1 = vrot.slane %v20332_v22, %v14706_v6  ;;  %v20334_v37 = vld [vmem:[#allocation123_spill] sm:$0xff]  ;;  %v20335_v17 = vld [vmem:[#allocation516_spill] sm:$0xff] }
 0x990   :  { %v6484_v45 = vsel %vm2212_vm15, %v6483_v11, %v6479_v43  ;;  %v6552_v33 = vrot.slane %v20333_v31, %v14768_v38  ;;  %v6543_v39 = vsel %vm2184_vm11, %v6542_v7, %v6538_v35  ;;  %v8965_v16 = vrot.slane %v20334_v37, %v14706_v6  ;;  %v17647_v22 = vpop.permute.xlu1 %8560  ;;  %v20336_v35 = vld [vmem:[#allocation144_spill] sm:$0xff] }
 0x991   :  { %v6548_v60 = vsel %vm2191_vm12, %v6547_v40, %v6543_v39  ;;  %v6557_v2 = vrot.slane %v20335_v17, %v14771_v27  ;;  %v6602_v23 = vsel %vm2156_vm7, %v6601_v63, %v6597_v55  ;;  %v9045_v48 = vsel %vm2142_vm5, %v9044_v1, %v9040_v26  ;;  %v20337_v40 = vld [vmem:[#allocation528_spill] sm:$0xff]  ;;  %v20338_v26 = vld [vmem:[#allocation126_spill] sm:$0xff] }
 0x992   :  { %v6607_v11 = vsel %vm2163_vm8, %v6606_v49, %v6602_v23  ;;  %v8966_v43 = vsel %vm2142_vm5, %v8965_v16, %v8961_v25  ;;  %v9050_v7 = vsel %vm2149_vm6, %v9049_v4, %v9045_v48  ;;  %v9059_v31 = vrot.slane %v20336_v35, %v14716_v41  ;;  %v17654_v37 = vpop.permute.xlu0 %8515  ;;  %v20339_v1 = vld [vmem:[#allocation550_spill] sm:$0xff]  ;;  %v20340_v25 = vld [vmem:[#allocation515_spill] sm:$0xff] }
 0x993   :  { %v6616_v39 = vrot.slane %v20337_v40, %v14741_v53  ;;  %v8971_v55 = vsel %vm2149_vm6, %v8970_v10, %v8966_v43  ;;  %v8980_v63 = vrot.slane %v20338_v26, %v14716_v41  ;;  %v9054_v49 = vrot.slane %v20339_v1, %v14713_v0  ;;  %v20341_v4 = vld [vmem:[#allocation111_spill] sm:$0xff]  ;;  %v20342_v10 = vld [vmem:[#allocation505_spill] sm:$0xff] }
 0x994   :  { %v6611_v16 = vrot.slane %v20340_v25, %v14735_v8  ;;  %v6553_v48 = vsel %vm2198_vm13, %v6552_v33, %v6548_v60  ;;  %v8975_v17 = vrot.slane %v20341_v4, %v14713_v0  ;;  %v17670_v23 = vadd.f32 %v17536_v46, %v17176_v32  ;;  %v20343_v25 = vld [vmem:[#allocation13_spill] sm:$0xff] }
 0x995   :  { %v6562_v43 = vrot.slane %v20342_v10, %v14776_v58  ;;  %v6558_v35 = vsel %vm2205_vm14, %v6557_v2, %v6553_v48  ;;  %v9055_v40 = vsel %vm2156_vm7, %v9054_v49, %v9050_v7  ;;  %v6648_v26 = vsel %vm3399_vm0, %v6484_v45, %v17501_v28  ;;  %v20344_v7 = vld [vmem:[#allocation158_spill] sm:$0xff]  ;;  %v20345_v28 = vld [vmem:[#allocation152_spill] sm:$0xff] }
 0x996   :  { %v6612_v1 = vsel %vm2170_vm9, %v6611_v16, %v6607_v11  ;;  %v8976_v33 = vsel %vm2156_vm7, %v8975_v17, %v8971_v55  ;;  %v9060_v60 = vsel %vm2163_vm8, %v9059_v31, %v9055_v40  ;;  %v9069_v32 = vrot.slane %v20343_v25, %v14741_v53  ;;  %v17683_v46 = vpop.permute.xlu0 %8605  ;;  %v17691_v11 = vpop.permute.xlu1 %8230  ;;  %v20347_v55 = vld [vmem:[#allocation517_spill] sm:$0xff]  ;;  %v20348_v16 = vld [vmem:[#allocation530_spill] sm:$0xff]  ;;  %v20351_v40 = vld [vmem:[#allocation519_spill] sm:$0xff] }
 0x997   :  { %v6617_v4 = vsel %vm2177_vm10, %v6616_v39, %v6612_v1  ;;  %v8981_v2 = vsel %vm2163_vm8, %v8980_v63, %v8976_v33  ;;  %v8990_v49 = vrot.slane %v20344_v7, %v14741_v53  ;;  %v9064_v45 = vrot.slane %v20345_v28, %v14735_v8  ;;  %20346 = vst [vmem:[#allocation65_spill] sm:$0xff] %v17691_v11  ;;  %v20349_v17 = vld [vmem:[#allocation149_spill] sm:$0xff]  ;;  %v20355_v25 = vld [vmem:[#allocation22_spill] sm:$0xff] }
 0x998   :  { %v6621_v31 = vrot.slane %v20347_v55, %v14756_v18  ;;  %v6626_v48 = vrot.slane %v20348_v16, %v14765_v61  ;;  %v8985_v10 = vrot.slane %v20349_v17, %v14735_v8  ;;  %v17700_v39 = vadd.f32 %v6648_v26, %v17193_v20  ;;  %v20352_v33 = vld [vmem:[#allocation521_spill] sm:$0xff]  ;;  %v20353_v20 = vld [vmem:[#allocation12_spill] sm:$0xff] }
 0x999   :  { %v17703_v63 = vsel %vm2212_vm15, %v6562_v43, %v6558_v35  ;;  %v6631_v1 = vrot.slane %v20351_v40, %v14768_v38  ;;  %v9065_v7 = vsel %vm2170_vm9, %v9064_v45, %v9060_v60  ;;  %v9079_v26 = vrot.slane %v20353_v20, %v14765_v61  ;;  %v20354_v35 = vld [vmem:[#allocation128_spill] sm:$0xff] }
 0x99a   :  { %20350 = vst [vmem:[#allocation584_spill] sm:$0xff] %v17703_v63  ;;  %v6622_v28 = vsel %vm2184_vm11, %v6621_v31, %v6617_v4  ;;  %v8986_v55 = vsel %vm2170_vm9, %v8985_v10, %v8981_v2  ;;  %v9070_v16 = vsel %vm2177_vm10, %v9069_v32, %v9065_v7  ;;  %v17715_v17 = vpop.permute.xlu0 %8467  ;;  %v9074_v40 = vrot.slane %v20354_v35, %v14756_v18  ;;  %v20356_v32 = vld [vmem:[#allocation136_spill] sm:$0xff]  ;;  %v20358_v10 = vld [vmem:[#allocation87_spill] sm:$0xff]  ;;  %v20360_v35 = vld [vmem:[#allocation534_spill] sm:$0xff] }
 0x99b   :  { %v8991_v43 = vsel %vm2177_vm10, %v8990_v49, %v8986_v55  ;;  %v9099_v11 = vrot.slane %v20355_v25, %v14649_v52  ;;  %v9681_v60 = vrot.slane %v17316_v47, %v14697_v19  ;;  %v6627_v4 = vsel %vm2191_vm12, %v6626_v48, %v6622_v28  ;;  %v20357_v45 = vld [vmem:[#allocation36_spill] sm:$0xff]  ;;  %v20359_v55 = vld [vmem:[#allocation143_spill] sm:$0xff]  ;;  %v8525_v48 = vpop.permute.xlu1 %8524 }
 0x99c   :  { %v8995_v2 = vrot.slane %v20356_v32, %v14756_v18  ;;  %v9108_v31 = vrot.slane %v20357_v45, %v14659_v54  ;;  %v9686_v49 = vrot.slane %v17366_v34, %v14713_v0  ;;  %v9000_v7 = vrot.slane %v20358_v10, %v14765_v61 }
 0x99d   :  { %v9103_v25 = vrot.slane %v20359_v55, %v14638_v59  ;;  %v9075_v20 = vsel %vm2184_vm11, %v9074_v40, %v9070_v16  ;;  %v9691_v47 = vrot.slane %v17418_v30, %v14716_v41  ;;  %v9084_v32 = vrot.slane %v20360_v35, %v14768_v38  ;;  %v20361_v55 = vld [vmem:[#allocation21_spill] sm:$0xff] }
 0x99e   :  { %v8996_v28 = vsel %vm2184_vm11, %v8995_v2, %v8991_v43  ;;  %v9080_v45 = vsel %vm2191_vm12, %v9079_v26, %v9075_v20  ;;  %v9696_v34 = vrot.slane %v17475_v12, %v14735_v8  ;;  %v17744_v10 = vpop.permute.xlu0 %8557  ;;  %v9089_v63 = vrot.slane %v20361_v55, %v14771_v27  ;;  %v20362_v26 = vld [vmem:[#allocation145_spill] sm:$0xff] }
 0x99f   :  { %v9104_v16 = vsel %vm2114_vm1, %v9103_v25, %v9099_v11  ;;  %v9682_v30 = vsel %vm2149_vm6, %v9681_v60, %v17284_v29  ;;  %v9701_v43 = vrot.slane %v17542_v56, %v14741_v53  ;;  %v9118_v2 = vrot.slane %v20362_v26, %v14677_v57  ;;  %v20363_v11 = vld [vmem:[#allocation130_spill] sm:$0xff]  ;;  %v20366_v26 = vld [vmem:[#allocation24_spill] sm:$0xff] }
 0x9a0   :  { %v9109_v40 = vsel %vm2121_vm2, %v9108_v31, %v9104_v16  ;;  %v9687_v12 = vsel %vm2156_vm7, %v9686_v49, %v9682_v30  ;;  %v9706_v20 = vrot.slane %v17600_v13, %v14756_v18  ;;  %v9001_v35 = vsel %vm2191_vm12, %v9000_v7, %v8996_v28  ;;  %v20364_v31 = vld [vmem:[#allocation137_spill] sm:$0xff]  ;;  %v20365_v7 = vld [vmem:[#allocation138_spill] sm:$0xff] }
 0x9a1   :  { %v9113_v25 = vrot.slane %v20363_v11, %v14671_v15  ;;  %v9692_v29 = vsel %vm2163_vm8, %v9691_v47, %v9687_v12  ;;  %v9711_v56 = vrot.slane %v17654_v37, %v14765_v61  ;;  %v17766_v60 = vsel %vm2198_vm13, %v6631_v1, %v6627_v4  ;;  %v17779_v1 = vpop.permute.xlu1 %8614  ;;  %v20367_v12 = vld [vmem:[#allocation154_spill] sm:$0xff] }
 0x9a2   :  { %v9005_v55 = vrot.slane %v20364_v31, %v14768_v38  ;;  %v9085_v49 = vsel %vm2198_vm13, %v9084_v32, %v9080_v45  ;;  %v9697_v13 = vsel %vm2170_vm9, %v9696_v34, %v9692_v29  ;;  %v17772_v16 = vpop.permute.xlu0 %8227  ;;  %v9015_v28 = vrot.slane %v20365_v7, %v14776_v58 }
 0x9a3   :  { %v9090_v47 = vsel %vm2205_vm14, %v9089_v63, %v9085_v49  ;;  %v9114_v30 = vsel %vm2128_vm3, %v9113_v25, %v9109_v40  ;;  %v9702_v37 = vsel %vm2177_vm10, %v9701_v43, %v9697_v13  ;;  %v9094_v32 = vrot.slane %v20366_v26, %v14776_v58  ;;  %v20368_v63 = vld [vmem:[#allocation552_spill] sm:$0xff]  ;;  %v20370_v49 = vld [vmem:[#allocation14_spill] sm:$0xff] }
 0x9a4   :  { %v9006_v4 = vsel %vm2198_vm13, %v9005_v55, %v9001_v35  ;;  %v9119_v45 = vsel %vm2135_vm4, %v9118_v2, %v9114_v30  ;;  %v9707_v34 = vsel %vm2184_vm11, %v9706_v20, %v9702_v37  ;;  %v9010_v11 = vrot.slane %v20367_v12, %v14771_v27  ;;  %v20369_v35 = vld [vmem:[#allocation148_spill] sm:$0xff]  ;;  %v20371_v30 = vld [vmem:[#allocation19_spill] sm:$0xff]  ;;  %v20372_v26 = vld [vmem:[#allocation30_spill] sm:$0xff] }
 0x9a5   :  { %v9123_v29 = vrot.slane %v20368_v63, %v14706_v6  ;;  %v9612_v43 = vrot.slane %v17309_v3, %v14716_v41  ;;  %v9712_v40 = vsel %vm2191_vm12, %v9711_v56, %v9707_v34  ;;  %v9128_v25 = vrot.slane %v20369_v35, %v14697_v19  ;;  %v20375_v35 = vld [vmem:[#allocation571_spill] sm:$0xff] }
 0x9a6   :  { %v9617_v31 = vrot.slane %v17357_v62, %v14735_v8  ;;  %v9716_v2 = vrot.slane %v17562_v36, %v14768_v38  ;;  %v8522_v20 = vpop.permute.xlu0 %8521  ;;  %v9095_v55 = vsel %vm2212_vm15, %v9094_v32, %v9090_v47  ;;  %v9182_v13 = vrot.slane %v20370_v49, %v14638_v59 }
 0x9a7   :  { %v9124_v7 = vsel %vm2142_vm5, %v9123_v29, %v9119_v45  ;;  %v9622_v3 = vrot.slane %v17407_v50, %v14741_v53  ;;  %v9721_v56 = vrot.slane %v8522_v20, %v14771_v27  ;;  %v9178_v37 = vrot.slane %v20371_v30, %v14649_v52  ;;  %v8477_v45 = vpop.permute.xlu1 %8476 }
 0x9a8   :  { %v9627_v62 = vrot.slane %v17467_v42, %v14756_v18  ;;  %v9726_v36 = vrot.slane %v8525_v48, %v14776_v58  ;;  %v9717_v47 = vsel %vm2198_vm13, %v9716_v2, %v9712_v40  ;;  %v9187_v59 = vrot.slane %v20372_v26, %v14659_v54  ;;  %v20373_v42 = vld [vmem:[#allocation38_spill] sm:$0xff] }
 0x9a9   :  { %v9613_v32 = vsel %vm2163_vm8, %v9612_v43, %v17277_v14  ;;  %v9632_v50 = vrot.slane %v17715_v17, %v14765_v61  ;;  %v9722_v34 = vsel %vm2205_vm14, %v9721_v56, %v9717_v47  ;;  %v9129_v52 = vsel %vm2149_vm6, %v9128_v25, %v9124_v7  ;;  %v20374_v14 = vld [vmem:[#allocation132_spill] sm:$0xff]  ;;  %v20377_v56 = vld [vmem:[#allocation134_spill] sm:$0xff] }
 0x9aa   :  { %v9138_v12 = vrot.slane %v20373_v42, %v14716_v41  ;;  %v9618_v48 = vsel %vm2170_vm9, %v9617_v31, %v9613_v32  ;;  %v9727_v63 = vsel %vm2212_vm15, %v9726_v36, %v9722_v34  ;;  %v17824_v29 = vpop.permute.xlu0 %8611  ;;  %v9011_v54 = vsel %vm2205_vm14, %v9010_v11, %v9006_v4  ;;  %v20376_v11 = vld [vmem:[#allocation37_spill] sm:$0xff]  ;;  %v20379_v47 = vld [vmem:[#allocation156_spill] sm:$0xff]  ;;  %v20380_v32 = vld [vmem:[#allocation146_spill] sm:$0xff] }
 0x9ab   :  { %v9133_v43 = vrot.slane %v20374_v14, %v14713_v0  ;;  %v9623_v17 = vsel %vm2177_vm10, %v9622_v3, %v9618_v48  ;;  %v9891_v40 = vsel %vm3399_vm0, %v9727_v63, %v9095_v55  ;;  %v9192_v25 = vrot.slane %v20375_v35, %v14671_v15  ;;  %v17851_v26 = vpop.permute.xlu1 %8617  ;;  %v20383_v35 = vld [vmem:[#allocation150_spill] sm:$0xff] }
 0x9ac   :  { %v9183_v2 = vsel %vm2114_vm1, %v9182_v13, %v9178_v37  ;;  %v9628_v31 = vsel %vm2184_vm11, %v9627_v62, %v9623_v17  ;;  %v9907_v20 = vadd.f32 %v9891_v40, %v17700_v39  ;;  %v9197_v7 = vrot.slane %v20376_v11, %v14677_v57  ;;  %v20378_v39 = vld [vmem:[#allocation532_spill] sm:$0xff] }
 0x9ad   :  { %v9134_v49 = vsel %vm2156_vm7, %v9133_v43, %v9129_v52  ;;  %v9188_v4 = vsel %vm2121_vm2, %v9187_v59, %v9183_v2  ;;  %v9633_v3 = vsel %vm2191_vm12, %v9632_v50, %v9628_v31  ;;  %v9148_v15 = vrot.slane %v20377_v56, %v14741_v53 }
 0x9ae   :  { %v9139_v55 = vsel %vm2163_vm8, %v9138_v12, %v9134_v49  ;;  %v9637_v13 = vrot.slane %v17619_v21, %v14768_v38  ;;  %v8474_v30 = vpop.permute.xlu0 %8473  ;;  %v9915_v37 = vpack.c.bf16 %v9907_v20, %v9907_v20  ;;  %v6636_v62 = vrot.slane %v20378_v39, %v14771_v27  ;;  %v20381_v12 = vld [vmem:[#allocation32_spill] sm:$0xff] }
 0x9af   :  { %v9016_v36 = vsel %vm2212_vm15, %v9015_v28, %v9011_v54  ;;  %v9143_v57 = vrot.slane %v20379_v47, %v14735_v8  ;;  %v9642_v59 = vrot.slane %v8474_v30, %v14771_v27  ;;  %v9153_v50 = vrot.slane %v20380_v32, %v14756_v18  ;;  %v20382_v54 = vld [vmem:[#allocation18_spill] sm:$0xff]  ;;  %v20387_v30 = vld [vmem:[#allocation17_spill] sm:$0xff] }
 0x9b0   :  { %v9193_v34 = vsel %vm2128_vm3, %v9192_v25, %v9188_v4  ;;  %v9647_v21 = vrot.slane %v8477_v45, %v14776_v58  ;;  %v9638_v52 = vsel %vm2198_vm13, %v9637_v13, %v9633_v3  ;;  %10812 = vmatprep.mubr.bf16.mxu0 %v9915_v37  ;;  %v9207_v48 = vrot.slane %v20381_v12, %v14697_v19  ;;  %v20384_v4 = vld [vmem:[#allocation541_spill] sm:$0xff]  ;;  %v8570_v3 = vpop.permute.xlu1 %8569 }
 0x9b1   :  { %v9144_v42 = vsel %vm2170_vm9, %v9143_v57, %v9139_v55  ;;  %v9198_v28 = vsel %vm2135_vm4, %v9197_v7, %v9193_v34  ;;  %v9643_v63 = vsel %vm2205_vm14, %v9642_v59, %v9638_v52  ;;  %v9202_v14 = vrot.slane %v20382_v54, %v14706_v6  ;;  %v20385_v55 = vld [vmem:[#allocation27_spill] sm:$0xff] }
 0x9b2   :  { %v9149_v43 = vsel %vm2177_vm10, %v9148_v15, %v9144_v42  ;;  %v9770_v45 = vrot.slane %v17438_v9, %v14716_v41  ;;  %v9648_v17 = vsel %vm2212_vm15, %v9647_v21, %v9643_v63  ;;  %v8564_v40 = vpop.permute.xlu0 %8563  ;;  %v9158_v25 = vrot.slane %v20383_v35, %v14765_v61  ;;  %v20392_v54 = vld [vmem:[#allocation75_spill] sm:$0xff] }
 0x9b3   :  { %v9775_v2 = vrot.slane %v17494_v51, %v14735_v8  ;;  %v9844_v19 = vrot.slane %v17509_v44, %v14713_v0  ;;  %v9890_v31 = vsel %vm3399_vm0, %v9648_v17, %v9016_v36  ;;  %v9203_v6 = vsel %vm2142_vm5, %v9202_v14, %v9198_v28 }
 0x9b4   :  { %v9849_v20 = vrot.slane %v17572_v5, %v14716_v41  ;;  %v9780_v9 = vrot.slane %v17744_v10, %v14741_v53  ;;  %v9906_v49 = vadd.f32 %v9890_v31, %v17670_v23  ;;  %v9163_v11 = vrot.slane %v20384_v4, %v14768_v38  ;;  %v20386_v5 = vld [vmem:[#allocation162_spill] sm:$0xff]  ;;  %v8573_v17 = vpop.permute.xlu1 %8572 }
 0x9b5   :  { %v9154_v51 = vsel %vm2184_vm11, %v9153_v50, %v9149_v43  ;;  %v9208_v7 = vsel %vm2149_vm6, %v9207_v48, %v9203_v6  ;;  %v9854_v44 = vrot.slane %v17627_v24, %v14735_v8  ;;  %v9217_v56 = vrot.slane %v20385_v55, %v14716_v41  ;;  %v20388_v24 = vld [vmem:[#allocation171_spill] sm:$0xff]  ;;  %v20389_v41 = vld [vmem:[#allocation40_spill] sm:$0xff]  ;;  %v20390_v50 = vld [vmem:[#allocation26_spill] sm:$0xff] }
 0x9b6   :  { %v9771_v15 = vsel %vm2163_vm8, %v9770_v45, %v20386_v5  ;;  %v9859_v23 = vrot.slane %v17683_v46, %v14741_v53  ;;  %v8234_v10 = vpop.permute.xlu0 %8233  ;;  %v9914_v13 = vpack.c.bf16 %v9906_v49, %v9906_v49  ;;  %v9212_v37 = vrot.slane %v20387_v30, %v14713_v0  ;;  %v20393_v43 = vld [vmem:[#allocation50_spill] sm:$0xff]  ;;  %v20399_v30 = vld [vmem:[#allocation124_spill] sm:$0xff] }
 0x9b7   :  { %v9159_v39 = vsel %vm2191_vm12, %v9158_v25, %v9154_v51  ;;  %v9776_v36 = vsel %vm2170_vm9, %v9775_v2, %v9771_v15  ;;  %v9845_v47 = vsel %vm2156_vm7, %v9844_v19, %v20388_v24  ;;  %v9222_v57 = vrot.slane %v20389_v41, %v14735_v8  ;;  %v20391_v8 = vld [vmem:[#allocation43_spill] sm:$0xff]  ;;  %v20395_v51 = vld [vmem:[#allocation16_spill] sm:$0xff]  ;;  %v20398_v15 = vld [vmem:[#allocation65_spill] sm:$0xff] }
 0x9b8   :  { %v9850_v59 = vsel %vm2163_vm8, %v9849_v20, %v9845_v47  ;;  %v9781_v32 = vsel %vm2177_vm10, %v9780_v9, %v9776_v36  ;;  %v9790_v46 = vrot.slane %v8564_v40, %v14765_v61  ;;  %10813 = vmatmul.mubr.bf16.vlgmr.msra.gmra.mxu0 %v9914_v13  ;;  %v9168_v0 = vrot.slane %v20390_v50, %v14771_v27  ;;  %v20402_v36 = vld [vmem:[#allocation170_spill] sm:$0xff] }
 0x9b9   :  { %v9213_v34 = vsel %vm2156_vm7, %v9212_v37, %v9208_v7  ;;  %v9855_v21 = vsel %vm2170_vm9, %v9854_v44, %v9850_v59  ;;  %v9785_v52 = vrot.slane %v17647_v22, %v14756_v18  ;;  %v9227_v28 = vrot.slane %v20391_v8, %v14741_v53  ;;  %v20400_v37 = vld [vmem:[#allocation41_spill] sm:$0xff]  ;;  %v20405_v50 = vld [vmem:[#allocation58_spill] sm:$0xff] }
 0x9ba   :  { %v9218_v42 = vsel %vm2163_vm8, %v9217_v56, %v9213_v34  ;;  %v9860_v12 = vsel %vm2177_vm10, %v9859_v23, %v9855_v21  ;;  %v9869_v48 = vrot.slane %v17824_v29, %v14765_v61  ;;  %v8567_v63 = vpop.permute.xlu0 %8566  ;;  %v9232_v14 = vrot.slane %v20392_v54, %v14756_v18  ;;  %v20396_v56 = vld [vmem:[#allocation79_spill] sm:$0xff]  ;;  %v20407_v34 = vld [vmem:[#allocation88_spill] sm:$0xff] }
 0x9bb   :  { %v9864_v45 = vrot.slane %v20393_v43, %v14756_v18  ;;  %v9786_v22 = vsel %vm2184_vm11, %v9785_v52, %v9781_v32  ;;  %v9795_v40 = vrot.slane %v8567_v63, %v14768_v38  ;;  %v6637_v53 = vsel %vm2205_vm14, %v6636_v62, %v17766_v60 }
 0x9bc   :  { %v9237_v35 = vrot.slane %v17772_v16, %v14765_v61  ;;  %v9800_v29 = vrot.slane %v8570_v3, %v14771_v27  ;;  %v9791_v25 = vsel %vm2191_vm12, %v9790_v46, %v9786_v22  ;;  %v9164_v2 = vsel %vm2198_vm13, %v9163_v11, %v9159_v39  ;;  %v20404_v46 = vld [vmem:[#allocation165_spill] sm:$0xff] }
 0x9bd   :  { %v9223_v19 = vsel %vm2170_vm9, %v9222_v57, %v9218_v42  ;;  %v9865_v18 = vsel %vm2184_vm11, %v9864_v45, %v9860_v12  ;;  %v9796_v31 = vsel %vm2198_vm13, %v9795_v40, %v9791_v25  ;;  %v9805_v60 = vrot.slane %v8573_v17, %v14776_v58  ;;  %v20403_v57 = vld [vmem:[#allocation570_spill] sm:$0xff]  ;;  %v10046_v40 = vld [vmem:[%s17995_s4] sm:$0x3]  ;;  %s11307_s4 = smov 28  }
 0x9be   :  { %v9228_v6 = vsel %vm2177_vm10, %v9227_v28, %v9223_v19  ;;  %v9870_v20 = vsel %vm2191_vm12, %v9869_v48, %v9865_v18  ;;  %v9801_v61 = vsel %vm2205_vm14, %v9800_v29, %v9796_v31  ;;  %v8237_v16 = vpop.permute.xlu0 %8236  ;;  %v20394_v62 = vrot.slane %v20352_v33, %v14776_v58  ;;  %v20397_v33 = vld [vmem:[#allocation584_spill] sm:$0xff]  ;;  %v20409_v29 = vld [vmem:[#allocation7_spill] sm:$0xff] }
 0x9bf   :  { %v9169_v49 = vsel %vm2205_vm14, %v9168_v0, %v9164_v2  ;;  %v9233_v4 = vsel %vm2184_vm11, %v9232_v14, %v9228_v6  ;;  %v9874_v11 = vrot.slane %v17779_v1, %v14768_v38  ;;  %v9173_v7 = vrot.slane %v20395_v51, %v14776_v58 }
 0x9c0   :  { %v6642_v9 = vsel %vm2212_vm15, %v20394_v62, %v6637_v53  ;;  %v9238_v44 = vsel %vm2191_vm12, %v9237_v35, %v9233_v4  ;;  %v9247_v3 = vrot.slane %v8234_v10, %v14771_v27  ;;  %v9806_v55 = vsel %vm2212_vm15, %v9805_v60, %v9801_v61  ;;  %v20408_v53 = vld [vmem:[#allocation6_spill] sm:$0xff] }
 0x9c1   :  { %v6649_v5 = vsel %vm3399_vm0, %v20397_v33, %v20396_v56  ;;  %v9242_v23 = vrot.slane %v20398_v15, %v14768_v38  ;;  %v9875_v13 = vsel %vm2198_vm13, %v9874_v11, %v9870_v20  ;;  %v9252_v1 = vrot.slane %v8237_v16, %v14776_v58 }
 0x9c2   :  { %v20401_v39 = vrot.slane %v20399_v30, %v20400_v37  ;;  %v9174_v10 = vsel %vm2212_vm15, %v9173_v7, %v9169_v49  ;;  %v9879_v47 = vrot.slane %v17851_v26, %v14771_v27  ;;  %v8621_v41 = vpop.permute.xlu0 %8620  ;;  %v6650_v59 = vsel %vm3399_vm0, %v6642_v9, %v20403_v57 }
 0x9c3   :  { %v9243_v38 = vsel %vm2198_vm13, %v9242_v23, %v9238_v44  ;;  %v9884_v32 = vrot.slane %v8621_v41, %v14776_v58  ;;  %v20406_v0 = vrot.slane %v20404_v46, %v20405_v50  ;;  %v9892_v52 = vsel %vm3399_vm0, %v9806_v55, %v9174_v10 }
 0x9c4   :  { %v3422_v24 = vadd.f32 %v20402_v36, %v20401_v39  ;;  %v9248_v42 = vsel %vm2205_vm14, %v9247_v3, %v9243_v38  ;;  %v9880_v8 = vsel %vm2205_vm14, %v9879_v47, %v9875_v13  ;;  %v10051_v35 = vrot.slane %v10046_v40, %v20408_v53 }
 0x9c5   :  { %v3423_v21 = vadd.f32 %v20407_v34, %v20406_v0  ;;  %v9253_v26 = vsel %vm2212_vm15, %v9252_v1, %v9248_v42  ;;  %v9885_v28 = vsel %vm2212_vm15, %v9884_v32, %v9880_v8  ;;  %v10055_v25 = vrot.slane %v10046_v40, %v20409_v29 }
 0x9c6   :  { %v6665_v27 = vadd.f32 %v6649_v5, %v3422_v24  ;;  %v9893_v48 = vsel %vm3399_vm0, %v9885_v28, %v9253_v26  ;;  %vm10874_vm1 = vcmask 976672   ;;  %vm10862_vm2 = vcmask 812032  }
 0x9c7   :  { %v6666_v12 = vadd.f32 %v6650_v59, %v3423_v21  ;;  %vm10897_vm3 = vcmask 74752   ;;  %vm10885_vm4 = vcmask 156672   ;;  %vm10909_vm5 = vcmask 818176  }
 0x9c8   :  { %v9908_v58 = vadd.f32 %v9892_v52, %v6665_v27  ;;  %vm10911_vm6 = vcmask 982016   ;;  %vm10913_vm7 = vcmask 998400   ;;  %vm10915_vm8 = vcmask 80896  }
 0x9c9   :  { %v9909_v63 = vadd.f32 %v9893_v48, %v6666_v12 }
 0x9ca   :  { %v9916_v14 = vpack.c.bf16 %v9908_v58, %v9908_v58 }
 0x9cb   :  { %v9917_v54 = vpack.c.bf16 %v9909_v63, %v9909_v63 }
 0x9cd   :  { %10853 = vmatprep.mubr.bf16.mxu1 %v9917_v54 }
 0x9ce   :  { %10854 = vmatmul.mubr.bf16.vlgmr.msra.gmra.mxu1 %v9916_v14 }
 0x9f1   :  { %v10732_v43 = vpop.f32.mrf.mxu0 }
 0x9f2   :  { %v10733_v2 = vadd.f32 %v10732_v43, %v10051_v35 }
 0x9f3   :  { %v10734_v45 = vpop.f32.mrf.mxu0 }
 0x9f4   :  { %v10735_v18 = vadd.f32 %v10734_v45, %v10055_v25 }
 0x9f5   :  { %v10736_v17 = vpop.f32.mrf.mxu0 }
 0x9f7   :  { %v10737_v22 = vpop.f32.mrf.mxu0 }
 0xa01   :  { %v10773_v19 = vpop.f32.mrf.mxu1 }
 0xa02   :  { %v10774_v31 = vadd.f32 %v10773_v19, %v10733_v2 }
 0xa03   :  { %v10775_v6 = vpop.f32.mrf.mxu1 }
 0xa04   :  { %v10776_v20 = vadd.f32 %v10775_v6, %v10735_v18 }
 0xa05   :  { %v10777_v60 = vpop.f32.mrf.mxu1 }
 0xa07   :  { %v10778_v61 = vpop.f32.mrf.mxu1 }
 0xa78   :  { %v10814_v16 = vpop.f32.mrf.mxu0 }
 0xa79   :  { %v10815_v4 = vadd.f32 %v10814_v16, %v10774_v31 }
 0xa7a   :  { %v10816_v62 = vpop.f32.mrf.mxu0 }
 0xa7b   :  { %v10817_v51 = vadd.f32 %v10816_v62, %v10776_v20 }
 0xa7c   :  { %v10818_v9 = vpop.f32.mrf.mxu0 }
 0xa7e   :  { %v10819_v49 = vpop.f32.mrf.mxu0 }
 0xa8e   :  { %v10855_v11 = vpop.f32.mrf.mxu1 }
 0xa8f   :  { %v10856_v7 = vadd.f32 %v10855_v11, %v10815_v4 }
 0xa90   :  { %v10857_v44 = vpop.f32.mrf.mxu1 }
 0xa91   :  { %v10858_v3 = vadd.f32 %v10857_v44, %v10817_v51  ;;  %v10875_v55 = vsel %vm10874_vm1, %v10856_v7, -inf  ;;  %v10863_v56 = vsel %vm10862_vm2, %v10856_v7, -inf  ;;  %v10891_v50 = vsub.f32 0.0, %v10856_v7 }
 0xa92   :  { %v10859_v33 = vpop.f32.mrf.mxu1  ;;  %10876 = vmax.xlane.f32.xlu0 %v10875_v55  ;;  %10864 = vmax.xlane.f32.xlu1 %v10863_v56 }
 0xa93   :  { %v10898_v15 = vsel %vm10897_vm3, %v10858_v3, -inf  ;;  %v10892_v0 = vmul.f32 1.442695, %v10891_v50 }
 0xa94   :  { %v10860_v5 = vpop.f32.mrf.mxu1 }
 0xa96   :  { %10899 = vmax.xlane.f32.xlu0 %v10898_v15 }
 0xb1b   :  { %v10877_v23 = vpop.xlane.xlu0 %10876  ;;  %v10865_v13 = vpop.xlane.xlu1 %10864 }
 0xb1c   :  { %v10878_v1 = vsub.f32 %v10856_v7, %v10877_v23  ;;  %v10866_v30 = vsub.f32 %v10856_v7, %v10865_v13 }
 0xb1e   :  { %v10879_v37 = vmul.f32 1.442695, %v10878_v1  ;;  %v10867_v39 = vmul.f32 1.442695, %v10866_v30 }
 0xb1f   :  { %v10900_v47 = vpop.xlane.xlu0 %10899 }
 0xb20   :  { %11264 = vpow2.f32 %v10879_v37  ;;  %v10901_v41 = vsub.f32 %v10858_v3, %v10900_v47 }
 0xb21   :  { %11266 = vpow2.f32 %v10867_v39 }
 0xb22   :  { %v10902_v57 = vmul.f32 1.442695, %v10901_v41 }
 0xb24   :  { %11268 = vpow2.f32 %v10902_v57 }
 0xb25   :  { %11270 = vpow2.f32 %v10892_v0 }
 0xb2d   :  { %v11265_v36 = vpop.eup %11264 }
 0xb2e   :  { %v11267_v24 = vpop.eup %11266  ;;  %10882 = vrot.lane.b32.xlu0 %v11265_v36, %s11307_s4 }
 0xb2f   :  { %v10869_v10 = vsel %vm10862_vm2, %v11267_v24, 0.0 }
 0xb30   :  { %10870 = vadd.xlane.f32.xlu1 %v10869_v10 }
 0xb31   :  { %v11269_v32 = vpop.eup %11268 }
 0xb32   :  { %v10904_v46 = vsel %vm10897_vm3, %v11269_v32, 0.0  ;;  %v11271_v21 = vpop.eup %11270 }
 0xb33   :  { %v10894_v52 = vadd.f32 1.0, %v11271_v21 }
 0xba0   :  { %v10883_v59 = vpop.permute.xlu0 %10882 }
 0xba1   :  { %v10886_v38 = vsel %vm10885_vm4, %v10883_v59, 0.0 }
 0xba2   :  { %10887 = vadd.xlane.f32.xlu1 %v10886_v38 }
 0xba6   :  { %10905 = vadd.xlane.f32.xlu1 %v10904_v46 }
 0xbb9   :  { %v10871_v34 = vpop.xlane.xlu1 %10870 }
 0xbba   :  { %11272 = vrcp.f32 %v10871_v34 }
 0xbc7   :  { %v11273_v27 = vpop.eup %11272 }
 0xbc8   :  { %v10873_v28 = vmul.f32 %v11273_v27, %v11267_v24 }
 0xc2b   :  { %v10888_v42 = vpop.xlane.xlu1 %10887 }
 0xc2c   :  { %11274 = vrcp.f32 %v10888_v42 }
 0xc2d   :  { %11276 = vrcp.f32 %v10894_v52 }
 0xc2f   :  { %v10906_v8 = vpop.xlane.xlu1 %10905 }
 0xc30   :  { %11278 = vrcp.f32 %v10906_v8 }
 0xc39   :  { %v11275_v26 = vpop.eup %11274 }
 0xc3a   :  { %v10890_v12 = vmul.f32 %v11275_v26, %v11265_v36  ;;  %v11277_v48 = vpop.eup %11276 }
 0xc3c   :  { %v10910_v58 = vsel %vm10909_vm5, %v10873_v28, %v10890_v12 }
 0xc3d   :  { %v11279_v63 = vpop.eup %11278  ;;  %v10912_v54 = vsel %vm10911_vm6, %v10910_v58, %v11277_v48 }
 0xc3e   :  { %v10908_v14 = vmul.f32 %v11279_v63, %v11269_v32  ;;  %v10914_v43 = vsel %vm10913_vm7, %v10912_v54, 0.0 }
 0xc40   :  { %v10916_v45 = vsel %vm10915_vm8, %v10908_v14, 0.0 }
 0xc41   :  { %v10919_v17 = vcombine.low %v10914_v43, %v10916_v45 }
 0xc43   :  { %11064 = vst.sshfl [vmem:[%s17996_s5] sm:$0x33 pattern:$0x76325410] %v10919_v17 }
 0xc44   :  { %10933 = vsyncpa [#allocation3], 1 }

</bundles_post_ra>
